<compile_context>
chip_gen: v6e
topology: v6e:2x2x1
jax: 0.10.0
libtpu: 0.0.40
codegen_flags: <defaults>
</compile_context>

<pallas_src>
import functools

import jax
import jax.numpy as jnp
from jax.experimental import pallas as pl
from jax.experimental.pallas import tpu as pltpu


# ----------------------------------------------------------------------------
# Softplus (matches torch.nn.Softplus(beta=1, threshold=20))
# ----------------------------------------------------------------------------
def _softplus_f32(x):
    u = jnp.exp(jnp.minimum(x, 20.0))
    v = 1.0 + u
    log1p_u = jnp.where(v == 1.0, u, jnp.log(v) * (u / (v - 1.0)))
    return jnp.where(x > 20.0, x, log1p_u)


# ----------------------------------------------------------------------------
# Fused whole-network kernel (one batch element per grid step)
# ----------------------------------------------------------------------------
def _fused_cnn_kernel(x_ref, w1_ref, b1_ref, w2_ref, b2_ref, w36_ref, b36_ref,
                      wf_ref, bf_ref, o_ref,
                      pad1, pad2, pad3, pad4, pad5, pad6, padf,
                      hp2, hp4, hp6, *, H, W):
    H2, W2 = H // 2, W // 2
    H4, W4 = H // 4, W // 4
    H8, W8 = H // 8, W // 8
    f32 = jnp.float32

    def conv_taps(src_ref, w_taps, h, w, kh, kw, cin, cout):
        """Conv as KH*KW shifted (h*w, cin) @ (cin, cout) MXU matmuls, f32 acc."""
        acc = None
        for ki in range(kh):
            for kj in range(kw):
                a = src_ref[ki:ki + h, kj:kj + w, :].reshape(h * w, cin)
                d = jnp.dot(a, w_taps[ki * kw + kj], preferred_element_type=f32)
                acc = d if acc is None else acc + d
        return acc                                               # (h*w, cout) f32

    def store_padded(dst_ref, val, h, w, c, oh, ow):
        """Write an activation into the interior of the next padded VMEM buffer."""
        dst_ref[...] = jnp.zeros_like(dst_ref)
        dst_ref[oh:oh + h, ow:ow + w, :] = val.reshape(h, w, c).astype(dst_ref.dtype)

    def maxpool2(val, hp_ref, h, w, c):
        """MaxPool2d(2) of an (h*w, c) f32 value -> (h//2, w//2, c) f32."""
        y = val.reshape(h // 2, 2, w, c)
        hp_ref[...] = jnp.maximum(y[:, 0], y[:, 1])              # pool along H
        return jnp.maximum(hp_ref[:, pl.ds(0, w // 2, stride=2), :],   # pool along W
                           hp_ref[:, pl.ds(1, w // 2, stride=2), :])

    # Stage the zero-padded input ('same' for k=3: one row/col on each side).
    pad1[...] = jnp.zeros_like(pad1)
    pad1[1:1 + H, 1:1 + W, :] = x_ref[...]

    # conv1: 3->16, k3, ReLU
    a = jnp.maximum(conv_taps(pad1, w1_ref, H, W, 3, 3, 3, 16) + b1_ref[...], 0.0)
    store_padded(pad2, a, H, W, 16, 1, 1)

    # conv2: 16->32, k3, ReLU, MaxPool(2)
    a = jnp.maximum(conv_taps(pad2, w2_ref, H, W, 3, 3, 16, 32) + b2_ref[...], 0.0)
    store_padded(pad3, maxpool2(a, hp2, H, W, 32), H2, W2, 32, 0, 0)

    # conv3: 32->32, k2, ReLU       (PyTorch 'same' k=2 pads only after)
    a = jnp.maximum(conv_taps(pad3, w36_ref[0], H2, W2, 2, 2, 32, 32) + b36_ref[0], 0.0)
    store_padded(pad4, a, H2, W2, 32, 0, 0)

    # conv4: 32->32, k2, ReLU, MaxPool(2)
    a = jnp.maximum(conv_taps(pad4, w36_ref[1], H2, W2, 2, 2, 32, 32) + b36_ref[1], 0.0)
    store_padded(pad5, maxpool2(a, hp4, H2, W2, 32), H4, W4, 32, 0, 0)

    # conv5: 32->32, k2, ReLU
    a = jnp.maximum(conv_taps(pad5, w36_ref[2], H4, W4, 2, 2, 32, 32) + b36_ref[2], 0.0)
    store_padded(pad6, a, H4, W4, 32, 0, 0)

    # conv6: 32->32, k2, ReLU, MaxPool(2)
    a = jnp.maximum(conv_taps(pad6, w36_ref[3], H4, W4, 2, 2, 32, 32) + b36_ref[3], 0.0)
    store_padded(padf, maxpool2(a, hp6, H4, W4, 32), H8, W8, 32, 0, 0)

    # final: 32->1, k2, Softplus.  Cout=1 would waste MXU columns -> VPU
    # broadcast-multiply + lane reduction, producing (H8, W8) directly.
    acc = None
    for ki in range(2):
        for kj in range(2):
            patch = padf[ki:ki + H8, kj:kj + W8, :].astype(f32)       # (H8, W8, 32)
            d = jnp.sum(patch * wf_ref[ki * 2 + kj], axis=-1)         # (H8, W8)
            acc = d if acc is None else acc + d
    o_ref[...] = _softplus_f32(acc + bf_ref[...]).astype(o_ref.dtype)


# ----------------------------------------------------------------------------
# Wrapper
# ----------------------------------------------------------------------------
def _per_tap(w, dtype=jnp.bfloat16):
    """(Cout, Cin, KH, KW) -> (KH*KW, Cin, Cout) per-tap weight slabs."""
    co, ci, kh, kw = w.shape
    return jnp.transpose(w, (2, 3, 1, 0)).reshape(kh * kw, ci, co).astype(dtype)


def vertex_weight_cnn_forward(params, x_nchw):
    """Forward pass. x_nchw: (B, 3, H, W) -> (B, H//8, W//8) float32."""
    B, C, H, W = x_nchw.shape
    assert C == 3 and H % 8 == 0 and W % 8 == 0

    x = jnp.transpose(x_nchw, (0, 2, 3, 1)).astype(jnp.bfloat16)      # NHWC, bf16

    w1 = _per_tap(params["conv1_w"])                                  # (9, 3, 16)  bf16
    w2 = _per_tap(params["conv2_w"])                                  # (9, 16, 32) bf16
    w36 = jnp.stack([_per_tap(params[f"conv{i}_w"]) for i in range(3, 7)])   # (4,4,32,32)
    wf = jnp.transpose(params["final_w"], (2, 3, 1, 0)).reshape(4, 1, 1, 32) \
            .astype(jnp.float32)                                      # (4,1,1,32) f32
    b1 = params["conv1_b"].reshape(1, 16).astype(jnp.float32)
    b2 = params["conv2_b"].reshape(1, 32).astype(jnp.float32)
    b36 = jnp.stack([params[f"conv{i}_b"].reshape(1, 32)
                     for i in range(3, 7)]).astype(jnp.float32)       # (4,1,32)
    bf = params["final_b"].reshape(1, 1).astype(jnp.float32)          # (1,1)

    H2, W2, H4, W4, H8, W8 = H // 2, W // 2, H // 4, W // 4, H // 8, W // 8

    zeros2 = lambda b: (0, 0)
    zeros3 = lambda b: (0, 0, 0)
    zeros4 = lambda b: (0, 0, 0, 0)

    kernel = functools.partial(_fused_cnn_kernel, H=H, W=W)
    return pl.pallas_call(
        kernel,
        out_shape=jax.ShapeDtypeStruct((B, H8, W8), jnp.float32),
        grid=(B,),
        in_specs=[
            pl.BlockSpec((None, H, W, 3), lambda b: (b, 0, 0, 0)),
            pl.BlockSpec((9, 3, 16), zeros3),
            pl.BlockSpec((1, 16), zeros2),
            pl.BlockSpec((9, 16, 32), zeros3),
            pl.BlockSpec((1, 32), zeros2),
            pl.BlockSpec((4, 4, 32, 32), zeros4),
            pl.BlockSpec((4, 1, 32), zeros3),
            pl.BlockSpec((4, 1, 1, 32), zeros4),
            pl.BlockSpec((1, 1), zeros2),
        ],
        out_specs=pl.BlockSpec((None, H8, W8), lambda b: (b, 0, 0)),
        scratch_shapes=[
            pltpu.VMEM((H + 2, W + 2, 3), jnp.bfloat16),     # pad1 (conv1 input)
            pltpu.VMEM((H + 2, W + 2, 16), jnp.bfloat16),    # pad2 (conv2 input)
            pltpu.VMEM((H2 + 1, W2 + 1, 32), jnp.bfloat16),  # pad3 (conv3 input)
            pltpu.VMEM((H2 + 1, W2 + 1, 32), jnp.bfloat16),  # pad4 (conv4 input)
            pltpu.VMEM((H4 + 1, W4 + 1, 32), jnp.bfloat16),  # pad5 (conv5 input)
            pltpu.VMEM((H4 + 1, W4 + 1, 32), jnp.bfloat16),  # pad6 (conv6 input)
            pltpu.VMEM((H8 + 1, W8 + 1, 32), jnp.bfloat16),  # padf (final input)
            pltpu.VMEM((H2, W, 32), jnp.float32),            # hp2 (conv2 H-pool)
            pltpu.VMEM((H4, W2, 32), jnp.float32),           # hp4 (conv4 H-pool)
            pltpu.VMEM((H8, W4, 32), jnp.float32),           # hp6 (conv6 H-pool)
        ],
        compiler_params=pltpu.CompilerParams(
            dimension_semantics=("parallel",)),
    )(x, w1, b1, w2, b2, w36, b36, wf, bf)


# ----------------------------------------------------------------------------
# Params + pure-JAX reference (for correctness check)
# ----------------------------------------------------------------------------
def init_params(key):
    shapes = {
        "conv1": (16, 3, 3, 3), "conv2": (32, 16, 3, 3),
        "conv3": (32, 32, 2, 2), "conv4": (32, 32, 2, 2),
        "conv5": (32, 32, 2, 2), "conv6": (32, 32, 2, 2),
        "final": (1, 32, 2, 2),
    }
    params = {}
    keys = jax.random.split(key, len(shapes))
    for (name, shp), k in zip(shapes.items(), keys):
        kw_key, kb_key = jax.random.split(k)
        cout, cin, kh, kw = shp
        bound = 1.0 / ((cin * kh * kw) ** 0.5)
        params[name + "_w"] = jax.random.uniform(kw_key, shp, jnp.float32, -bound, bound)
        params[name + "_b"] = jax.random.uniform(kb_key, (cout,), jnp.float32, -bound, bound)
    return params


def _reference_forward(params, x_nchw):
    """f32 XLA reference with PyTorch-style 'same' padding."""
    x = x_nchw.astype(jnp.float32)

    def conv(x, w, b, pad):
        y = jax.lax.conv_general_dilated(
            x, w, window_strides=(1, 1), padding=pad,
            dimension_numbers=("NCHW", "OIHW", "NCHW"))
        return y + b.reshape(1, -1, 1, 1)

    def pool(x):
        return jax.lax.reduce_window(x, -jnp.inf, jax.lax.max,
                                     (1, 1, 2, 2), (1, 1, 2, 2), "VALID")

    p3 = [(1, 1), (1, 1)]   # k=3 'same'
    p2 = [(0, 1), (0, 1)]   # k=2 'same' (PyTorch pads after only)
    x = jax.nn.relu(conv(x, params["conv1_w"], params["conv1_b"], p3))
    x = pool(jax.nn.relu(conv(x, params["conv2_w"], params["conv2_b"], p3)))
    x = jax.nn.relu(conv(x, params["conv3_w"], params["conv3_b"], p2))
    x = pool(jax.nn.relu(conv(x, params["conv4_w"], params["conv4_b"], p2)))
    x = jax.nn.relu(conv(x, params["conv5_w"], params["conv5_b"], p2))
    x = pool(jax.nn.relu(conv(x, params["conv6_w"], params["conv6_b"], p2)))
    y = jax.nn.softplus(conv(x, params["final_w"], params["final_b"], p2))
    return y[:, 0]


# ----------------------------------------------------------------------------
if __name__ == "__main__":
    key = jax.random.PRNGKey(0)
    k_params, k_x = jax.random.split(key)

    params = init_params(k_params)
    # Small version of the Warcraft input (real case: (b, 3, 96, 96)).
    x = jax.random.normal(k_x, (2, 3, 16, 16), dtype=jnp.float32)

    fwd = jax.jit(vertex_weight_cnn_forward)
    out = jax.block_until_ready(fwd(params, x))

    assert out.shape == (2, 2, 2), out.shape        # (b, h/8, w/8)
    assert bool(jnp.all(jnp.isfinite(out)))
    assert bool(jnp.all(out > 0.0))                 # softplus output is positive

    ref = jax.block_until_ready(jax.jit(_reference_forward)(params, x))
    err = float(jnp.max(jnp.abs(out - ref)))
    assert err < 0.05, f"max abs error vs f32 reference: {err}"

    print("KERNEL_OK")
</pallas_src>

<mosaic_0001>
module attributes {stable_mosaic.version = 11 : i64} {
  func.func @_fused_cnn_kernel(%arg0: i32, %arg1: memref<1x16x16x3xbf16, #tpu.memory_space<vmem>>, %arg2: memref<9x3x16xbf16, #tpu.memory_space<vmem>>, %arg3: memref<1x16xf32, #tpu.memory_space<vmem>>, %arg4: memref<9x16x32xbf16, #tpu.memory_space<vmem>>, %arg5: memref<1x32xf32, #tpu.memory_space<vmem>>, %arg6: memref<4x4x32x32xbf16, #tpu.memory_space<vmem>>, %arg7: memref<4x1x32xf32, #tpu.memory_space<vmem>>, %arg8: memref<4x1x1x32xf32, #tpu.memory_space<vmem>>, %arg9: memref<1x1xf32, #tpu.memory_space<vmem>>, %arg10: memref<1x2x2xf32, #tpu.memory_space<vmem>>, %arg11: memref<18x18x3xbf16, #tpu.memory_space<vmem>>, %arg12: memref<18x18x16xbf16, #tpu.memory_space<vmem>>, %arg13: memref<9x9x32xbf16, #tpu.memory_space<vmem>>, %arg14: memref<9x9x32xbf16, #tpu.memory_space<vmem>>, %arg15: memref<5x5x32xbf16, #tpu.memory_space<vmem>>, %arg16: memref<5x5x32xbf16, #tpu.memory_space<vmem>>, %arg17: memref<3x3x32xbf16, #tpu.memory_space<vmem>>, %arg18: memref<8x16x32xf32, #tpu.memory_space<vmem>>, %arg19: memref<4x8x32xf32, #tpu.memory_space<vmem>>, %arg20: memref<2x4x32xf32, #tpu.memory_space<vmem>>) attributes {dimension_semantics = [#tpu.dimension_semantics<parallel>], iteration_bounds = array<i64: 2>, scalar_prefetch = 0 : i64, scratch_operands = 10 : i64, tpu.core_type = #tpu.core_type<tc>, window_params = [{transform_indices = @transform_0, window_bounds = array<i64: 1, 16, 16, 3>}, {pipeline_mode = #tpu.pipeline_mode<synchronous>, transform_indices = @transform_1, window_bounds = array<i64: 9, 3, 16>}, {pipeline_mode = #tpu.pipeline_mode<synchronous>, transform_indices = @transform_2, window_bounds = array<i64: 1, 16>}, {pipeline_mode = #tpu.pipeline_mode<synchronous>, transform_indices = @transform_3, window_bounds = array<i64: 9, 16, 32>}, {pipeline_mode = #tpu.pipeline_mode<synchronous>, transform_indices = @transform_4, window_bounds = array<i64: 1, 32>}, {pipeline_mode = #tpu.pipeline_mode<synchronous>, transform_indices = @transform_5, window_bounds = array<i64: 4, 4, 32, 32>}, {pipeline_mode = #tpu.pipeline_mode<synchronous>, transform_indices = @transform_6, window_bounds = array<i64: 4, 1, 32>}, {pipeline_mode = #tpu.pipeline_mode<synchronous>, transform_indices = @transform_7, window_bounds = array<i64: 4, 1, 1, 32>}, {pipeline_mode = #tpu.pipeline_mode<synchronous>, transform_indices = @transform_8, window_bounds = array<i64: 1, 1>}, {transform_indices = @transform_9, window_bounds = array<i64: 1, 2, 2>}]} {
    %cst = arith.constant 0.000000e+00 : bf16
    %0 = vector.broadcast %cst : bf16 to vector<18x18x3xbf16>
    %c0 = arith.constant 0 : index
    %c0_0 = arith.constant 0 : index
    %c0_1 = arith.constant 0 : index
    %1 = vector.load %arg11[%c0, %c0_0, %c0_1] : memref<18x18x3xbf16, #tpu.memory_space<vmem>>, vector<18x18x3xbf16>
    tpu.vector_store %arg11[%c0, %c0_0, %c0_1], %0 {strides = array<i32>} : memref<18x18x3xbf16, #tpu.memory_space<vmem>>, vector<18x18x3xbf16>,
    %c0_2 = arith.constant 0 : index
    %c0_3 = arith.constant 0 : index
    %c0_4 = arith.constant 0 : index
    %c0_5 = arith.constant 0 : index
    %2 = vector.load %arg1[%c0_2, %c0_3, %c0_4, %c0_5] : memref<1x16x16x3xbf16, #tpu.memory_space<vmem>>, vector<1x16x16x3xbf16>
    %3 = vector.shape_cast %2 : vector<1x16x16x3xbf16> to vector<16x16x3xbf16>
    %c1 = arith.constant 1 : index
    %c1_6 = arith.constant 1 : index
    %c0_7 = arith.constant 0 : index
    %4 = vector.load %arg11[%c1, %c1_6, %c0_7] : memref<18x18x3xbf16, #tpu.memory_space<vmem>>, vector<16x16x3xbf16>
    tpu.vector_store %arg11[%c1, %c1_6, %c0_7], %3 {strides = array<i32>} : memref<18x18x3xbf16, #tpu.memory_space<vmem>>, vector<16x16x3xbf16>,
    %c0_8 = arith.constant 0 : index
    %c0_9 = arith.constant 0 : index
    %c0_10 = arith.constant 0 : index
    %5 = vector.load %arg11[%c0_8, %c0_9, %c0_10] : memref<18x18x3xbf16, #tpu.memory_space<vmem>>, vector<16x16x3xbf16>
    %6 = vector.shape_cast %5 : vector<16x16x3xbf16> to vector<256x3xbf16>
    %c0_11 = arith.constant 0 : index
    %c0_12 = arith.constant 0 : index
    %c0_13 = arith.constant 0 : index
    %7 = vector.load %arg2[%c0_11, %c0_12, %c0_13] : memref<9x3x16xbf16, #tpu.memory_space<vmem>>, vector<1x3x16xbf16>
    %8 = vector.shape_cast %7 : vector<1x3x16xbf16> to vector<3x16xbf16>
    %cst_14 = arith.constant dense<0.000000e+00> : vector<256x16xf32>
    %9 = tpu.matmul %6, %8, %cst_14 {dimension_numbers = #tpu.dot_dimension_numbers<[1], [0], [0], [1], [0, 0, 1, 1], [], []>} : vector<256x3xbf16>, vector<3x16xbf16>, vector<256x16xf32> -> vector<256x16xf32>
    %c0_15 = arith.constant 0 : index
    %c1_16 = arith.constant 1 : index
    %c0_17 = arith.constant 0 : index
    %10 = vector.load %arg11[%c0_15, %c1_16, %c0_17] : memref<18x18x3xbf16, #tpu.memory_space<vmem>>, vector<16x16x3xbf16>
    %11 = vector.shape_cast %10 : vector<16x16x3xbf16> to vector<256x3xbf16>
    %c1_18 = arith.constant 1 : index
    %c0_19 = arith.constant 0 : index
    %c0_20 = arith.constant 0 : index
    %12 = vector.load %arg2[%c1_18, %c0_19, %c0_20] : memref<9x3x16xbf16, #tpu.memory_space<vmem>>, vector<1x3x16xbf16>
    %13 = vector.shape_cast %12 : vector<1x3x16xbf16> to vector<3x16xbf16>
    %cst_21 = arith.constant dense<0.000000e+00> : vector<256x16xf32>
    %14 = tpu.matmul %11, %13, %cst_21 {dimension_numbers = #tpu.dot_dimension_numbers<[1], [0], [0], [1], [0, 0, 1, 1], [], []>} : vector<256x3xbf16>, vector<3x16xbf16>, vector<256x16xf32> -> vector<256x16xf32>
    %15 = arith.addf %9, %14 : vector<256x16xf32>
    %c0_22 = arith.constant 0 : index
    %c2 = arith.constant 2 : index
    %c0_23 = arith.constant 0 : index
    %16 = vector.load %arg11[%c0_22, %c2, %c0_23] : memref<18x18x3xbf16, #tpu.memory_space<vmem>>, vector<16x16x3xbf16>
    %17 = vector.shape_cast %16 : vector<16x16x3xbf16> to vector<256x3xbf16>
    %c2_24 = arith.constant 2 : index
    %c0_25 = arith.constant 0 : index
    %c0_26 = arith.constant 0 : index
    %18 = vector.load %arg2[%c2_24, %c0_25, %c0_26] : memref<9x3x16xbf16, #tpu.memory_space<vmem>>, vector<1x3x16xbf16>
    %19 = vector.shape_cast %18 : vector<1x3x16xbf16> to vector<3x16xbf16>
    %cst_27 = arith.constant dense<0.000000e+00> : vector<256x16xf32>
    %20 = tpu.matmul %17, %19, %cst_27 {dimension_numbers = #tpu.dot_dimension_numbers<[1], [0], [0], [1], [0, 0, 1, 1], [], []>} : vector<256x3xbf16>, vector<3x16xbf16>, vector<256x16xf32> -> vector<256x16xf32>
    %21 = arith.addf %15, %20 : vector<256x16xf32>
    %c1_28 = arith.constant 1 : index
    %c0_29 = arith.constant 0 : index
    %c0_30 = arith.constant 0 : index
    %22 = vector.load %arg11[%c1_28, %c0_29, %c0_30] : memref<18x18x3xbf16, #tpu.memory_space<vmem>>, vector<16x16x3xbf16>
    %23 = vector.shape_cast %22 : vector<16x16x3xbf16> to vector<256x3xbf16>
    %c3 = arith.constant 3 : index
    %c0_31 = arith.constant 0 : index
    %c0_32 = arith.constant 0 : index
    %24 = vector.load %arg2[%c3, %c0_31, %c0_32] : memref<9x3x16xbf16, #tpu.memory_space<vmem>>, vector<1x3x16xbf16>
    %25 = vector.shape_cast %24 : vector<1x3x16xbf16> to vector<3x16xbf16>
    %cst_33 = arith.constant dense<0.000000e+00> : vector<256x16xf32>
    %26 = tpu.matmul %23, %25, %cst_33 {dimension_numbers = #tpu.dot_dimension_numbers<[1], [0], [0], [1], [0, 0, 1, 1], [], []>} : vector<256x3xbf16>, vector<3x16xbf16>, vector<256x16xf32> -> vector<256x16xf32>
    %27 = arith.addf %21, %26 : vector<256x16xf32>
    %c1_34 = arith.constant 1 : index
    %c1_35 = arith.constant 1 : index
    %c0_36 = arith.constant 0 : index
    %28 = vector.load %arg11[%c1_34, %c1_35, %c0_36] : memref<18x18x3xbf16, #tpu.memory_space<vmem>>, vector<16x16x3xbf16>
    %29 = vector.shape_cast %28 : vector<16x16x3xbf16> to vector<256x3xbf16>
    %c4 = arith.constant 4 : index
    %c0_37 = arith.constant 0 : index
    %c0_38 = arith.constant 0 : index
    %30 = vector.load %arg2[%c4, %c0_37, %c0_38] : memref<9x3x16xbf16, #tpu.memory_space<vmem>>, vector<1x3x16xbf16>
    %31 = vector.shape_cast %30 : vector<1x3x16xbf16> to vector<3x16xbf16>
    %cst_39 = arith.constant dense<0.000000e+00> : vector<256x16xf32>
    %32 = tpu.matmul %29, %31, %cst_39 {dimension_numbers = #tpu.dot_dimension_numbers<[1], [0], [0], [1], [0, 0, 1, 1], [], []>} : vector<256x3xbf16>, vector<3x16xbf16>, vector<256x16xf32> -> vector<256x16xf32>
    %33 = arith.addf %27, %32 : vector<256x16xf32>
    %c1_40 = arith.constant 1 : index
    %c2_41 = arith.constant 2 : index
    %c0_42 = arith.constant 0 : index
    %34 = vector.load %arg11[%c1_40, %c2_41, %c0_42] : memref<18x18x3xbf16, #tpu.memory_space<vmem>>, vector<16x16x3xbf16>
    %35 = vector.shape_cast %34 : vector<16x16x3xbf16> to vector<256x3xbf16>
    %c5 = arith.constant 5 : index
    %c0_43 = arith.constant 0 : index
    %c0_44 = arith.constant 0 : index
    %36 = vector.load %arg2[%c5, %c0_43, %c0_44] : memref<9x3x16xbf16, #tpu.memory_space<vmem>>, vector<1x3x16xbf16>
    %37 = vector.shape_cast %36 : vector<1x3x16xbf16> to vector<3x16xbf16>
    %cst_45 = arith.constant dense<0.000000e+00> : vector<256x16xf32>
    %38 = tpu.matmul %35, %37, %cst_45 {dimension_numbers = #tpu.dot_dimension_numbers<[1], [0], [0], [1], [0, 0, 1, 1], [], []>} : vector<256x3xbf16>, vector<3x16xbf16>, vector<256x16xf32> -> vector<256x16xf32>
    %39 = arith.addf %33, %38 : vector<256x16xf32>
    %c2_46 = arith.constant 2 : index
    %c0_47 = arith.constant 0 : index
    %c0_48 = arith.constant 0 : index
    %40 = vector.load %arg11[%c2_46, %c0_47, %c0_48] : memref<18x18x3xbf16, #tpu.memory_space<vmem>>, vector<16x16x3xbf16>
    %41 = vector.shape_cast %40 : vector<16x16x3xbf16> to vector<256x3xbf16>
    %c6 = arith.constant 6 : index
    %c0_49 = arith.constant 0 : index
    %c0_50 = arith.constant 0 : index
    %42 = vector.load %arg2[%c6, %c0_49, %c0_50] : memref<9x3x16xbf16, #tpu.memory_space<vmem>>, vector<1x3x16xbf16>
    %43 = vector.shape_cast %42 : vector<1x3x16xbf16> to vector<3x16xbf16>
    %cst_51 = arith.constant dense<0.000000e+00> : vector<256x16xf32>
    %44 = tpu.matmul %41, %43, %cst_51 {dimension_numbers = #tpu.dot_dimension_numbers<[1], [0], [0], [1], [0, 0, 1, 1], [], []>} : vector<256x3xbf16>, vector<3x16xbf16>, vector<256x16xf32> -> vector<256x16xf32>
    %45 = arith.addf %39, %44 : vector<256x16xf32>
    %c2_52 = arith.constant 2 : index
    %c1_53 = arith.constant 1 : index
    %c0_54 = arith.constant 0 : index
    %46 = vector.load %arg11[%c2_52, %c1_53, %c0_54] : memref<18x18x3xbf16, #tpu.memory_space<vmem>>, vector<16x16x3xbf16>
    %47 = vector.shape_cast %46 : vector<16x16x3xbf16> to vector<256x3xbf16>
    %c7 = arith.constant 7 : index
    %c0_55 = arith.constant 0 : index
    %c0_56 = arith.constant 0 : index
    %48 = vector.load %arg2[%c7, %c0_55, %c0_56] : memref<9x3x16xbf16, #tpu.memory_space<vmem>>, vector<1x3x16xbf16>
    %49 = vector.shape_cast %48 : vector<1x3x16xbf16> to vector<3x16xbf16>
    %cst_57 = arith.constant dense<0.000000e+00> : vector<256x16xf32>
    %50 = tpu.matmul %47, %49, %cst_57 {dimension_numbers = #tpu.dot_dimension_numbers<[1], [0], [0], [1], [0, 0, 1, 1], [], []>} : vector<256x3xbf16>, vector<3x16xbf16>, vector<256x16xf32> -> vector<256x16xf32>
    %51 = arith.addf %45, %50 : vector<256x16xf32>
    %c2_58 = arith.constant 2 : index
    %c2_59 = arith.constant 2 : index
    %c0_60 = arith.constant 0 : index
    %52 = vector.load %arg11[%c2_58, %c2_59, %c0_60] : memref<18x18x3xbf16, #tpu.memory_space<vmem>>, vector<16x16x3xbf16>
    %53 = vector.shape_cast %52 : vector<16x16x3xbf16> to vector<256x3xbf16>
    %c8 = arith.constant 8 : index
    %c0_61 = arith.constant 0 : index
    %c0_62 = arith.constant 0 : index
    %54 = vector.load %arg2[%c8, %c0_61, %c0_62] : memref<9x3x16xbf16, #tpu.memory_space<vmem>>, vector<1x3x16xbf16>
    %55 = vector.shape_cast %54 : vector<1x3x16xbf16> to vector<3x16xbf16>
    %cst_63 = arith.constant dense<0.000000e+00> : vector<256x16xf32>
    %56 = tpu.matmul %53, %55, %cst_63 {dimension_numbers = #tpu.dot_dimension_numbers<[1], [0], [0], [1], [0, 0, 1, 1], [], []>} : vector<256x3xbf16>, vector<3x16xbf16>, vector<256x16xf32> -> vector<256x16xf32>
    %57 = arith.addf %51, %56 : vector<256x16xf32>
    %c0_64 = arith.constant 0 : index
    %c0_65 = arith.constant 0 : index
    %58 = vector.load %arg3[%c0_64, %c0_65] : memref<1x16xf32, #tpu.memory_space<vmem>>, vector<1x16xf32>
    %59 = vector.broadcast %58 : vector<1x16xf32> to vector<256x16xf32>
    %60 = arith.addf %57, %59 : vector<256x16xf32>
    %cst_66 = arith.constant 0.000000e+00 : f32
    %61 = vector.broadcast %cst_66 : f32 to vector<256x16xf32>
    %62 = arith.maximumf %60, %61 : vector<256x16xf32>
    %cst_67 = arith.constant 0.000000e+00 : bf16
    %63 = vector.broadcast %cst_67 : bf16 to vector<18x18x16xbf16>
    %c0_68 = arith.constant 0 : index
    %c0_69 = arith.constant 0 : index
    %c0_70 = arith.constant 0 : index
    %64 = vector.load %arg12[%c0_68, %c0_69, %c0_70] : memref<18x18x16xbf16, #tpu.memory_space<vmem>>, vector<18x18x16xbf16>
    tpu.vector_store %arg12[%c0_68, %c0_69, %c0_70], %63 {strides = array<i32>} : memref<18x18x16xbf16, #tpu.memory_space<vmem>>, vector<18x18x16xbf16>,
    %65 = vector.shape_cast %62 : vector<256x16xf32> to vector<16x16x16xf32>
    %66 = arith.truncf %65 : vector<16x16x16xf32> to vector<16x16x16xbf16>
    %c1_71 = arith.constant 1 : index
    %c1_72 = arith.constant 1 : index
    %c0_73 = arith.constant 0 : index
    %67 = vector.load %arg12[%c1_71, %c1_72, %c0_73] : memref<18x18x16xbf16, #tpu.memory_space<vmem>>, vector<16x16x16xbf16>
    tpu.vector_store %arg12[%c1_71, %c1_72, %c0_73], %66 {strides = array<i32>} : memref<18x18x16xbf16, #tpu.memory_space<vmem>>, vector<16x16x16xbf16>,
    %c0_74 = arith.constant 0 : index
    %c0_75 = arith.constant 0 : index
    %c0_76 = arith.constant 0 : index
    %68 = vector.load %arg12[%c0_74, %c0_75, %c0_76] : memref<18x18x16xbf16, #tpu.memory_space<vmem>>, vector<16x16x16xbf16>
    %69 = vector.shape_cast %68 : vector<16x16x16xbf16> to vector<256x16xbf16>
    %c0_77 = arith.constant 0 : index
    %c0_78 = arith.constant 0 : index
    %c0_79 = arith.constant 0 : index
    %70 = vector.load %arg4[%c0_77, %c0_78, %c0_79] : memref<9x16x32xbf16, #tpu.memory_space<vmem>>, vector<1x16x32xbf16>
    %71 = vector.shape_cast %70 : vector<1x16x32xbf16> to vector<16x32xbf16>
    %cst_80 = arith.constant dense<0.000000e+00> : vector<256x32xf32>
    %72 = tpu.matmul %69, %71, %cst_80 {dimension_numbers = #tpu.dot_dimension_numbers<[1], [0], [0], [1], [0, 0, 1, 1], [], []>} : vector<256x16xbf16>, vector<16x32xbf16>, vector<256x32xf32> -> vector<256x32xf32>
    %c0_81 = arith.constant 0 : index
    %c1_82 = arith.constant 1 : index
    %c0_83 = arith.constant 0 : index
    %73 = vector.load %arg12[%c0_81, %c1_82, %c0_83] : memref<18x18x16xbf16, #tpu.memory_space<vmem>>, vector<16x16x16xbf16>
    %74 = vector.shape_cast %73 : vector<16x16x16xbf16> to vector<256x16xbf16>
    %c1_84 = arith.constant 1 : index
    %c0_85 = arith.constant 0 : index
    %c0_86 = arith.constant 0 : index
    %75 = vector.load %arg4[%c1_84, %c0_85, %c0_86] : memref<9x16x32xbf16, #tpu.memory_space<vmem>>, vector<1x16x32xbf16>
    %76 = vector.shape_cast %75 : vector<1x16x32xbf16> to vector<16x32xbf16>
    %cst_87 = arith.constant dense<0.000000e+00> : vector<256x32xf32>
    %77 = tpu.matmul %74, %76, %cst_87 {dimension_numbers = #tpu.dot_dimension_numbers<[1], [0], [0], [1], [0, 0, 1, 1], [], []>} : vector<256x16xbf16>, vector<16x32xbf16>, vector<256x32xf32> -> vector<256x32xf32>
    %78 = arith.addf %72, %77 : vector<256x32xf32>
    %c0_88 = arith.constant 0 : index
    %c2_89 = arith.constant 2 : index
    %c0_90 = arith.constant 0 : index
    %79 = vector.load %arg12[%c0_88, %c2_89, %c0_90] : memref<18x18x16xbf16, #tpu.memory_space<vmem>>, vector<16x16x16xbf16>
    %80 = vector.shape_cast %79 : vector<16x16x16xbf16> to vector<256x16xbf16>
    %c2_91 = arith.constant 2 : index
    %c0_92 = arith.constant 0 : index
    %c0_93 = arith.constant 0 : index
    %81 = vector.load %arg4[%c2_91, %c0_92, %c0_93] : memref<9x16x32xbf16, #tpu.memory_space<vmem>>, vector<1x16x32xbf16>
    %82 = vector.shape_cast %81 : vector<1x16x32xbf16> to vector<16x32xbf16>
    %cst_94 = arith.constant dense<0.000000e+00> : vector<256x32xf32>
    %83 = tpu.matmul %80, %82, %cst_94 {dimension_numbers = #tpu.dot_dimension_numbers<[1], [0], [0], [1], [0, 0, 1, 1], [], []>} : vector<256x16xbf16>, vector<16x32xbf16>, vector<256x32xf32> -> vector<256x32xf32>
    %84 = arith.addf %78, %83 : vector<256x32xf32>
    %c1_95 = arith.constant 1 : index
    %c0_96 = arith.constant 0 : index
    %c0_97 = arith.constant 0 : index
    %85 = vector.load %arg12[%c1_95, %c0_96, %c0_97] : memref<18x18x16xbf16, #tpu.memory_space<vmem>>, vector<16x16x16xbf16>
    %86 = vector.shape_cast %85 : vector<16x16x16xbf16> to vector<256x16xbf16>
    %c3_98 = arith.constant 3 : index
    %c0_99 = arith.constant 0 : index
    %c0_100 = arith.constant 0 : index
    %87 = vector.load %arg4[%c3_98, %c0_99, %c0_100] : memref<9x16x32xbf16, #tpu.memory_space<vmem>>, vector<1x16x32xbf16>
    %88 = vector.shape_cast %87 : vector<1x16x32xbf16> to vector<16x32xbf16>
    %cst_101 = arith.constant dense<0.000000e+00> : vector<256x32xf32>
    %89 = tpu.matmul %86, %88, %cst_101 {dimension_numbers = #tpu.dot_dimension_numbers<[1], [0], [0], [1], [0, 0, 1, 1], [], []>} : vector<256x16xbf16>, vector<16x32xbf16>, vector<256x32xf32> -> vector<256x32xf32>
    %90 = arith.addf %84, %89 : vector<256x32xf32>
    %c1_102 = arith.constant 1 : index
    %c1_103 = arith.constant 1 : index
    %c0_104 = arith.constant 0 : index
    %91 = vector.load %arg12[%c1_102, %c1_103, %c0_104] : memref<18x18x16xbf16, #tpu.memory_space<vmem>>, vector<16x16x16xbf16>
    %92 = vector.shape_cast %91 : vector<16x16x16xbf16> to vector<256x16xbf16>
    %c4_105 = arith.constant 4 : index
    %c0_106 = arith.constant 0 : index
    %c0_107 = arith.constant 0 : index
    %93 = vector.load %arg4[%c4_105, %c0_106, %c0_107] : memref<9x16x32xbf16, #tpu.memory_space<vmem>>, vector<1x16x32xbf16>
    %94 = vector.shape_cast %93 : vector<1x16x32xbf16> to vector<16x32xbf16>
    %cst_108 = arith.constant dense<0.000000e+00> : vector<256x32xf32>
    %95 = tpu.matmul %92, %94, %cst_108 {dimension_numbers = #tpu.dot_dimension_numbers<[1], [0], [0], [1], [0, 0, 1, 1], [], []>} : vector<256x16xbf16>, vector<16x32xbf16>, vector<256x32xf32> -> vector<256x32xf32>
    %96 = arith.addf %90, %95 : vector<256x32xf32>
    %c1_109 = arith.constant 1 : index
    %c2_110 = arith.constant 2 : index
    %c0_111 = arith.constant 0 : index
    %97 = vector.load %arg12[%c1_109, %c2_110, %c0_111] : memref<18x18x16xbf16, #tpu.memory_space<vmem>>, vector<16x16x16xbf16>
    %98 = vector.shape_cast %97 : vector<16x16x16xbf16> to vector<256x16xbf16>
    %c5_112 = arith.constant 5 : index
    %c0_113 = arith.constant 0 : index
    %c0_114 = arith.constant 0 : index
    %99 = vector.load %arg4[%c5_112, %c0_113, %c0_114] : memref<9x16x32xbf16, #tpu.memory_space<vmem>>, vector<1x16x32xbf16>
    %100 = vector.shape_cast %99 : vector<1x16x32xbf16> to vector<16x32xbf16>
    %cst_115 = arith.constant dense<0.000000e+00> : vector<256x32xf32>
    %101 = tpu.matmul %98, %100, %cst_115 {dimension_numbers = #tpu.dot_dimension_numbers<[1], [0], [0], [1], [0, 0, 1, 1], [], []>} : vector<256x16xbf16>, vector<16x32xbf16>, vector<256x32xf32> -> vector<256x32xf32>
    %102 = arith.addf %96, %101 : vector<256x32xf32>
    %c2_116 = arith.constant 2 : index
    %c0_117 = arith.constant 0 : index
    %c0_118 = arith.constant 0 : index
    %103 = vector.load %arg12[%c2_116, %c0_117, %c0_118] : memref<18x18x16xbf16, #tpu.memory_space<vmem>>, vector<16x16x16xbf16>
    %104 = vector.shape_cast %103 : vector<16x16x16xbf16> to vector<256x16xbf16>
    %c6_119 = arith.constant 6 : index
    %c0_120 = arith.constant 0 : index
    %c0_121 = arith.constant 0 : index
    %105 = vector.load %arg4[%c6_119, %c0_120, %c0_121] : memref<9x16x32xbf16, #tpu.memory_space<vmem>>, vector<1x16x32xbf16>
    %106 = vector.shape_cast %105 : vector<1x16x32xbf16> to vector<16x32xbf16>
    %cst_122 = arith.constant dense<0.000000e+00> : vector<256x32xf32>
    %107 = tpu.matmul %104, %106, %cst_122 {dimension_numbers = #tpu.dot_dimension_numbers<[1], [0], [0], [1], [0, 0, 1, 1], [], []>} : vector<256x16xbf16>, vector<16x32xbf16>, vector<256x32xf32> -> vector<256x32xf32>
    %108 = arith.addf %102, %107 : vector<256x32xf32>
    %c2_123 = arith.constant 2 : index
    %c1_124 = arith.constant 1 : index
    %c0_125 = arith.constant 0 : index
    %109 = vector.load %arg12[%c2_123, %c1_124, %c0_125] : memref<18x18x16xbf16, #tpu.memory_space<vmem>>, vector<16x16x16xbf16>
    %110 = vector.shape_cast %109 : vector<16x16x16xbf16> to vector<256x16xbf16>
    %c7_126 = arith.constant 7 : index
    %c0_127 = arith.constant 0 : index
    %c0_128 = arith.constant 0 : index
    %111 = vector.load %arg4[%c7_126, %c0_127, %c0_128] : memref<9x16x32xbf16, #tpu.memory_space<vmem>>, vector<1x16x32xbf16>
    %112 = vector.shape_cast %111 : vector<1x16x32xbf16> to vector<16x32xbf16>
    %cst_129 = arith.constant dense<0.000000e+00> : vector<256x32xf32>
    %113 = tpu.matmul %110, %112, %cst_129 {dimension_numbers = #tpu.dot_dimension_numbers<[1], [0], [0], [1], [0, 0, 1, 1], [], []>} : vector<256x16xbf16>, vector<16x32xbf16>, vector<256x32xf32> -> vector<256x32xf32>
    %114 = arith.addf %108, %113 : vector<256x32xf32>
    %c2_130 = arith.constant 2 : index
    %c2_131 = arith.constant 2 : index
    %c0_132 = arith.constant 0 : index
    %115 = vector.load %arg12[%c2_130, %c2_131, %c0_132] : memref<18x18x16xbf16, #tpu.memory_space<vmem>>, vector<16x16x16xbf16>
    %116 = vector.shape_cast %115 : vector<16x16x16xbf16> to vector<256x16xbf16>
    %c8_133 = arith.constant 8 : index
    %c0_134 = arith.constant 0 : index
    %c0_135 = arith.constant 0 : index
    %117 = vector.load %arg4[%c8_133, %c0_134, %c0_135] : memref<9x16x32xbf16, #tpu.memory_space<vmem>>, vector<1x16x32xbf16>
    %118 = vector.shape_cast %117 : vector<1x16x32xbf16> to vector<16x32xbf16>
    %cst_136 = arith.constant dense<0.000000e+00> : vector<256x32xf32>
    %119 = tpu.matmul %116, %118, %cst_136 {dimension_numbers = #tpu.dot_dimension_numbers<[1], [0], [0], [1], [0, 0, 1, 1], [], []>} : vector<256x16xbf16>, vector<16x32xbf16>, vector<256x32xf32> -> vector<256x32xf32>
    %120 = arith.addf %114, %119 : vector<256x32xf32>
    %c0_137 = arith.constant 0 : index
    %c0_138 = arith.constant 0 : index
    %121 = vector.load %arg5[%c0_137, %c0_138] : memref<1x32xf32, #tpu.memory_space<vmem>>, vector<1x32xf32>
    %122 = vector.broadcast %121 : vector<1x32xf32> to vector<256x32xf32>
    %123 = arith.addf %120, %122 : vector<256x32xf32>
    %cst_139 = arith.constant 0.000000e+00 : f32
    %124 = vector.broadcast %cst_139 : f32 to vector<256x32xf32>
    %125 = arith.maximumf %123, %124 : vector<256x32xf32>
    %126 = vector.shape_cast %125 : vector<256x32xf32> to vector<8x2x16x32xf32>
    %127 = vector.extract_strided_slice %126 {offsets = [0, 0, 0, 0], sizes = [8, 1, 16, 32], strides = [1, 1, 1, 1]} : vector<8x2x16x32xf32> to vector<8x1x16x32xf32>
    %128 = vector.shape_cast %127 : vector<8x1x16x32xf32> to vector<8x16x32xf32>
    %129 = vector.extract_strided_slice %126 {offsets = [0, 1, 0, 0], sizes = [8, 1, 16, 32], strides = [1, 1, 1, 1]} : vector<8x2x16x32xf32> to vector<8x1x16x32xf32>
    %130 = vector.shape_cast %129 : vector<8x1x16x32xf32> to vector<8x16x32xf32>
    %131 = arith.maximumf %128, %130 : vector<8x16x32xf32>
    %c0_140 = arith.constant 0 : index
    %c0_141 = arith.constant 0 : index
    %c0_142 = arith.constant 0 : index
    %132 = vector.load %arg18[%c0_140, %c0_141, %c0_142] : memref<8x16x32xf32, #tpu.memory_space<vmem>>, vector<8x16x32xf32>
    tpu.vector_store %arg18[%c0_140, %c0_141, %c0_142], %131 {strides = array<i32>} : memref<8x16x32xf32, #tpu.memory_space<vmem>>, vector<8x16x32xf32>,
    %c0_143 = arith.constant 0 : index
    %c0_144 = arith.constant 0 : index
    %c0_145 = arith.constant 0 : index
    %133 = tpu.strided_load %arg18[%c0_143, %c0_144, %c0_145] {strides = array<i32: 1, 2, 1>} : memref<8x16x32xf32, #tpu.memory_space<vmem>>, vector<8x8x32xf32>
    %c0_146 = arith.constant 0 : index
    %c1_147 = arith.constant 1 : index
    %c0_148 = arith.constant 0 : index
    %134 = tpu.strided_load %arg18[%c0_146, %c1_147, %c0_148] {strides = array<i32: 1, 2, 1>} : memref<8x16x32xf32, #tpu.memory_space<vmem>>, vector<8x8x32xf32>
    %135 = arith.maximumf %133, %134 : vector<8x8x32xf32>
    %cst_149 = arith.constant 0.000000e+00 : bf16
    %136 = vector.broadcast %cst_149 : bf16 to vector<9x9x32xbf16>
    %c0_150 = arith.constant 0 : index
    %c0_151 = arith.constant 0 : index
    %c0_152 = arith.constant 0 : index
    %137 = vector.load %arg13[%c0_150, %c0_151, %c0_152] : memref<9x9x32xbf16, #tpu.memory_space<vmem>>, vector<9x9x32xbf16>
    tpu.vector_store %arg13[%c0_150, %c0_151, %c0_152], %136 {strides = array<i32>} : memref<9x9x32xbf16, #tpu.memory_space<vmem>>, vector<9x9x32xbf16>,
    %138 = arith.truncf %135 : vector<8x8x32xf32> to vector<8x8x32xbf16>
    %c0_153 = arith.constant 0 : index
    %c0_154 = arith.constant 0 : index
    %c0_155 = arith.constant 0 : index
    %139 = vector.load %arg13[%c0_153, %c0_154, %c0_155] : memref<9x9x32xbf16, #tpu.memory_space<vmem>>, vector<8x8x32xbf16>
    tpu.vector_store %arg13[%c0_153, %c0_154, %c0_155], %138 {strides = array<i32>} : memref<9x9x32xbf16, #tpu.memory_space<vmem>>, vector<8x8x32xbf16>,
    %c0_156 = arith.constant 0 : index
    %c0_157 = arith.constant 0 : index
    %c0_158 = arith.constant 0 : index
    %c0_159 = arith.constant 0 : index
    %140 = vector.load %arg6[%c0_156, %c0_157, %c0_158, %c0_159] : memref<4x4x32x32xbf16, #tpu.memory_space<vmem>>, vector<1x4x32x32xbf16>
    %141 = vector.shape_cast %140 : vector<1x4x32x32xbf16> to vector<4x32x32xbf16>
    %c0_160 = arith.constant 0 : index
    %c0_161 = arith.constant 0 : index
    %c0_162 = arith.constant 0 : index
    %142 = vector.load %arg13[%c0_160, %c0_161, %c0_162] : memref<9x9x32xbf16, #tpu.memory_space<vmem>>, vector<8x8x32xbf16>
    %143 = vector.shape_cast %142 : vector<8x8x32xbf16> to vector<64x32xbf16>
    %144 = vector.extract_strided_slice %141 {offsets = [0, 0, 0], sizes = [1, 32, 32], strides = [1, 1, 1]} : vector<4x32x32xbf16> to vector<1x32x32xbf16>
    %145 = vector.shape_cast %144 : vector<1x32x32xbf16> to vector<32x32xbf16>
    %cst_163 = arith.constant dense<0.000000e+00> : vector<64x32xf32>
    %146 = tpu.matmul %143, %145, %cst_163 {dimension_numbers = #tpu.dot_dimension_numbers<[1], [0], [0], [1], [0, 0, 1, 1], [], []>} : vector<64x32xbf16>, vector<32x32xbf16>, vector<64x32xf32> -> vector<64x32xf32>
    %c0_164 = arith.constant 0 : index
    %c1_165 = arith.constant 1 : index
    %c0_166 = arith.constant 0 : index
    %147 = vector.load %arg13[%c0_164, %c1_165, %c0_166] : memref<9x9x32xbf16, #tpu.memory_space<vmem>>, vector<8x8x32xbf16>
    %148 = vector.shape_cast %147 : vector<8x8x32xbf16> to vector<64x32xbf16>
    %149 = vector.extract_strided_slice %141 {offsets = [1, 0, 0], sizes = [1, 32, 32], strides = [1, 1, 1]} : vector<4x32x32xbf16> to vector<1x32x32xbf16>
    %150 = vector.shape_cast %149 : vector<1x32x32xbf16> to vector<32x32xbf16>
    %cst_167 = arith.constant dense<0.000000e+00> : vector<64x32xf32>
    %151 = tpu.matmul %148, %150, %cst_167 {dimension_numbers = #tpu.dot_dimension_numbers<[1], [0], [0], [1], [0, 0, 1, 1], [], []>} : vector<64x32xbf16>, vector<32x32xbf16>, vector<64x32xf32> -> vector<64x32xf32>
    %152 = arith.addf %146, %151 : vector<64x32xf32>
    %c1_168 = arith.constant 1 : index
    %c0_169 = arith.constant 0 : index
    %c0_170 = arith.constant 0 : index
    %153 = vector.load %arg13[%c1_168, %c0_169, %c0_170] : memref<9x9x32xbf16, #tpu.memory_space<vmem>>, vector<8x8x32xbf16>
    %154 = vector.shape_cast %153 : vector<8x8x32xbf16> to vector<64x32xbf16>
    %155 = vector.extract_strided_slice %141 {offsets = [2, 0, 0], sizes = [1, 32, 32], strides = [1, 1, 1]} : vector<4x32x32xbf16> to vector<1x32x32xbf16>
    %156 = vector.shape_cast %155 : vector<1x32x32xbf16> to vector<32x32xbf16>
    %cst_171 = arith.constant dense<0.000000e+00> : vector<64x32xf32>
    %157 = tpu.matmul %154, %156, %cst_171 {dimension_numbers = #tpu.dot_dimension_numbers<[1], [0], [0], [1], [0, 0, 1, 1], [], []>} : vector<64x32xbf16>, vector<32x32xbf16>, vector<64x32xf32> -> vector<64x32xf32>
    %158 = arith.addf %152, %157 : vector<64x32xf32>
    %c1_172 = arith.constant 1 : index
    %c1_173 = arith.constant 1 : index
    %c0_174 = arith.constant 0 : index
    %159 = vector.load %arg13[%c1_172, %c1_173, %c0_174] : memref<9x9x32xbf16, #tpu.memory_space<vmem>>, vector<8x8x32xbf16>
    %160 = vector.shape_cast %159 : vector<8x8x32xbf16> to vector<64x32xbf16>
    %161 = vector.extract_strided_slice %141 {offsets = [3, 0, 0], sizes = [1, 32, 32], strides = [1, 1, 1]} : vector<4x32x32xbf16> to vector<1x32x32xbf16>
    %162 = vector.shape_cast %161 : vector<1x32x32xbf16> to vector<32x32xbf16>
    %cst_175 = arith.constant dense<0.000000e+00> : vector<64x32xf32>
    %163 = tpu.matmul %160, %162, %cst_175 {dimension_numbers = #tpu.dot_dimension_numbers<[1], [0], [0], [1], [0, 0, 1, 1], [], []>} : vector<64x32xbf16>, vector<32x32xbf16>, vector<64x32xf32> -> vector<64x32xf32>
    %164 = arith.addf %158, %163 : vector<64x32xf32>
    %c0_176 = arith.constant 0 : index
    %c0_177 = arith.constant 0 : index
    %c0_178 = arith.constant 0 : index
    %165 = vector.load %arg7[%c0_176, %c0_177, %c0_178] : memref<4x1x32xf32, #tpu.memory_space<vmem>>, vector<1x1x32xf32>
    %166 = vector.shape_cast %165 : vector<1x1x32xf32> to vector<1x32xf32>
    %167 = vector.broadcast %166 : vector<1x32xf32> to vector<64x32xf32>
    %168 = arith.addf %164, %167 : vector<64x32xf32>
    %cst_179 = arith.constant 0.000000e+00 : f32
    %169 = vector.broadcast %cst_179 : f32 to vector<64x32xf32>
    %170 = arith.maximumf %168, %169 : vector<64x32xf32>
    %cst_180 = arith.constant 0.000000e+00 : bf16
    %171 = vector.broadcast %cst_180 : bf16 to vector<9x9x32xbf16>
    %c0_181 = arith.constant 0 : index
    %c0_182 = arith.constant 0 : index
    %c0_183 = arith.constant 0 : index
    %172 = vector.load %arg14[%c0_181, %c0_182, %c0_183] : memref<9x9x32xbf16, #tpu.memory_space<vmem>>, vector<9x9x32xbf16>
    tpu.vector_store %arg14[%c0_181, %c0_182, %c0_183], %171 {strides = array<i32>} : memref<9x9x32xbf16, #tpu.memory_space<vmem>>, vector<9x9x32xbf16>,
    %173 = vector.shape_cast %170 : vector<64x32xf32> to vector<8x8x32xf32>
    %174 = arith.truncf %173 : vector<8x8x32xf32> to vector<8x8x32xbf16>
    %c0_184 = arith.constant 0 : index
    %c0_185 = arith.constant 0 : index
    %c0_186 = arith.constant 0 : index
    %175 = vector.load %arg14[%c0_184, %c0_185, %c0_186] : memref<9x9x32xbf16, #tpu.memory_space<vmem>>, vector<8x8x32xbf16>
    tpu.vector_store %arg14[%c0_184, %c0_185, %c0_186], %174 {strides = array<i32>} : memref<9x9x32xbf16, #tpu.memory_space<vmem>>, vector<8x8x32xbf16>,
    %c1_187 = arith.constant 1 : index
    %c0_188 = arith.constant 0 : index
    %c0_189 = arith.constant 0 : index
    %c0_190 = arith.constant 0 : index
    %176 = vector.load %arg6[%c1_187, %c0_188, %c0_189, %c0_190] : memref<4x4x32x32xbf16, #tpu.memory_space<vmem>>, vector<1x4x32x32xbf16>
    %177 = vector.shape_cast %176 : vector<1x4x32x32xbf16> to vector<4x32x32xbf16>
    %c0_191 = arith.constant 0 : index
    %c0_192 = arith.constant 0 : index
    %c0_193 = arith.constant 0 : index
    %178 = vector.load %arg14[%c0_191, %c0_192, %c0_193] : memref<9x9x32xbf16, #tpu.memory_space<vmem>>, vector<8x8x32xbf16>
    %179 = vector.shape_cast %178 : vector<8x8x32xbf16> to vector<64x32xbf16>
    %180 = vector.extract_strided_slice %177 {offsets = [0, 0, 0], sizes = [1, 32, 32], strides = [1, 1, 1]} : vector<4x32x32xbf16> to vector<1x32x32xbf16>
    %181 = vector.shape_cast %180 : vector<1x32x32xbf16> to vector<32x32xbf16>
    %cst_194 = arith.constant dense<0.000000e+00> : vector<64x32xf32>
    %182 = tpu.matmul %179, %181, %cst_194 {dimension_numbers = #tpu.dot_dimension_numbers<[1], [0], [0], [1], [0, 0, 1, 1], [], []>} : vector<64x32xbf16>, vector<32x32xbf16>, vector<64x32xf32> -> vector<64x32xf32>
    %c0_195 = arith.constant 0 : index
    %c1_196 = arith.constant 1 : index
    %c0_197 = arith.constant 0 : index
    %183 = vector.load %arg14[%c0_195, %c1_196, %c0_197] : memref<9x9x32xbf16, #tpu.memory_space<vmem>>, vector<8x8x32xbf16>
    %184 = vector.shape_cast %183 : vector<8x8x32xbf16> to vector<64x32xbf16>
    %185 = vector.extract_strided_slice %177 {offsets = [1, 0, 0], sizes = [1, 32, 32], strides = [1, 1, 1]} : vector<4x32x32xbf16> to vector<1x32x32xbf16>
    %186 = vector.shape_cast %185 : vector<1x32x32xbf16> to vector<32x32xbf16>
    %cst_198 = arith.constant dense<0.000000e+00> : vector<64x32xf32>
    %187 = tpu.matmul %184, %186, %cst_198 {dimension_numbers = #tpu.dot_dimension_numbers<[1], [0], [0], [1], [0, 0, 1, 1], [], []>} : vector<64x32xbf16>, vector<32x32xbf16>, vector<64x32xf32> -> vector<64x32xf32>
    %188 = arith.addf %182, %187 : vector<64x32xf32>
    %c1_199 = arith.constant 1 : index
    %c0_200 = arith.constant 0 : index
    %c0_201 = arith.constant 0 : index
    %189 = vector.load %arg14[%c1_199, %c0_200, %c0_201] : memref<9x9x32xbf16, #tpu.memory_space<vmem>>, vector<8x8x32xbf16>
    %190 = vector.shape_cast %189 : vector<8x8x32xbf16> to vector<64x32xbf16>
    %191 = vector.extract_strided_slice %177 {offsets = [2, 0, 0], sizes = [1, 32, 32], strides = [1, 1, 1]} : vector<4x32x32xbf16> to vector<1x32x32xbf16>
    %192 = vector.shape_cast %191 : vector<1x32x32xbf16> to vector<32x32xbf16>
    %cst_202 = arith.constant dense<0.000000e+00> : vector<64x32xf32>
    %193 = tpu.matmul %190, %192, %cst_202 {dimension_numbers = #tpu.dot_dimension_numbers<[1], [0], [0], [1], [0, 0, 1, 1], [], []>} : vector<64x32xbf16>, vector<32x32xbf16>, vector<64x32xf32> -> vector<64x32xf32>
    %194 = arith.addf %188, %193 : vector<64x32xf32>
    %c1_203 = arith.constant 1 : index
    %c1_204 = arith.constant 1 : index
    %c0_205 = arith.constant 0 : index
    %195 = vector.load %arg14[%c1_203, %c1_204, %c0_205] : memref<9x9x32xbf16, #tpu.memory_space<vmem>>, vector<8x8x32xbf16>
    %196 = vector.shape_cast %195 : vector<8x8x32xbf16> to vector<64x32xbf16>
    %197 = vector.extract_strided_slice %177 {offsets = [3, 0, 0], sizes = [1, 32, 32], strides = [1, 1, 1]} : vector<4x32x32xbf16> to vector<1x32x32xbf16>
    %198 = vector.shape_cast %197 : vector<1x32x32xbf16> to vector<32x32xbf16>
    %cst_206 = arith.constant dense<0.000000e+00> : vector<64x32xf32>
    %199 = tpu.matmul %196, %198, %cst_206 {dimension_numbers = #tpu.dot_dimension_numbers<[1], [0], [0], [1], [0, 0, 1, 1], [], []>} : vector<64x32xbf16>, vector<32x32xbf16>, vector<64x32xf32> -> vector<64x32xf32>
    %200 = arith.addf %194, %199 : vector<64x32xf32>
    %c1_207 = arith.constant 1 : index
    %c0_208 = arith.constant 0 : index
    %c0_209 = arith.constant 0 : index
    %201 = vector.load %arg7[%c1_207, %c0_208, %c0_209] : memref<4x1x32xf32, #tpu.memory_space<vmem>>, vector<1x1x32xf32>
    %202 = vector.shape_cast %201 : vector<1x1x32xf32> to vector<1x32xf32>
    %203 = vector.broadcast %202 : vector<1x32xf32> to vector<64x32xf32>
    %204 = arith.addf %200, %203 : vector<64x32xf32>
    %cst_210 = arith.constant 0.000000e+00 : f32
    %205 = vector.broadcast %cst_210 : f32 to vector<64x32xf32>
    %206 = arith.maximumf %204, %205 : vector<64x32xf32>
    %207 = vector.shape_cast %206 : vector<64x32xf32> to vector<4x2x8x32xf32>
    %208 = vector.extract_strided_slice %207 {offsets = [0, 0, 0, 0], sizes = [4, 1, 8, 32], strides = [1, 1, 1, 1]} : vector<4x2x8x32xf32> to vector<4x1x8x32xf32>
    %209 = vector.shape_cast %208 : vector<4x1x8x32xf32> to vector<4x8x32xf32>
    %210 = vector.extract_strided_slice %207 {offsets = [0, 1, 0, 0], sizes = [4, 1, 8, 32], strides = [1, 1, 1, 1]} : vector<4x2x8x32xf32> to vector<4x1x8x32xf32>
    %211 = vector.shape_cast %210 : vector<4x1x8x32xf32> to vector<4x8x32xf32>
    %212 = arith.maximumf %209, %211 : vector<4x8x32xf32>
    %c0_211 = arith.constant 0 : index
    %c0_212 = arith.constant 0 : index
    %c0_213 = arith.constant 0 : index
    %213 = vector.load %arg19[%c0_211, %c0_212, %c0_213] : memref<4x8x32xf32, #tpu.memory_space<vmem>>, vector<4x8x32xf32>
    tpu.vector_store %arg19[%c0_211, %c0_212, %c0_213], %212 {strides = array<i32>} : memref<4x8x32xf32, #tpu.memory_space<vmem>>, vector<4x8x32xf32>,
    %c0_214 = arith.constant 0 : index
    %c0_215 = arith.constant 0 : index
    %c0_216 = arith.constant 0 : index
    %214 = tpu.strided_load %arg19[%c0_214, %c0_215, %c0_216] {strides = array<i32: 1, 2, 1>} : memref<4x8x32xf32, #tpu.memory_space<vmem>>, vector<4x4x32xf32>
    %c0_217 = arith.constant 0 : index
    %c1_218 = arith.constant 1 : index
    %c0_219 = arith.constant 0 : index
    %215 = tpu.strided_load %arg19[%c0_217, %c1_218, %c0_219] {strides = array<i32: 1, 2, 1>} : memref<4x8x32xf32, #tpu.memory_space<vmem>>, vector<4x4x32xf32>
    %216 = arith.maximumf %214, %215 : vector<4x4x32xf32>
    %cst_220 = arith.constant 0.000000e+00 : bf16
    %217 = vector.broadcast %cst_220 : bf16 to vector<5x5x32xbf16>
    %c0_221 = arith.constant 0 : index
    %c0_222 = arith.constant 0 : index
    %c0_223 = arith.constant 0 : index
    %218 = vector.load %arg15[%c0_221, %c0_222, %c0_223] : memref<5x5x32xbf16, #tpu.memory_space<vmem>>, vector<5x5x32xbf16>
    tpu.vector_store %arg15[%c0_221, %c0_222, %c0_223], %217 {strides = array<i32>} : memref<5x5x32xbf16, #tpu.memory_space<vmem>>, vector<5x5x32xbf16>,
    %219 = arith.truncf %216 : vector<4x4x32xf32> to vector<4x4x32xbf16>
    %c0_224 = arith.constant 0 : index
    %c0_225 = arith.constant 0 : index
    %c0_226 = arith.constant 0 : index
    %220 = vector.load %arg15[%c0_224, %c0_225, %c0_226] : memref<5x5x32xbf16, #tpu.memory_space<vmem>>, vector<4x4x32xbf16>
    tpu.vector_store %arg15[%c0_224, %c0_225, %c0_226], %219 {strides = array<i32>} : memref<5x5x32xbf16, #tpu.memory_space<vmem>>, vector<4x4x32xbf16>,
    %c2_227 = arith.constant 2 : index
    %c0_228 = arith.constant 0 : index
    %c0_229 = arith.constant 0 : index
    %c0_230 = arith.constant 0 : index
    %221 = vector.load %arg6[%c2_227, %c0_228, %c0_229, %c0_230] : memref<4x4x32x32xbf16, #tpu.memory_space<vmem>>, vector<1x4x32x32xbf16>
    %222 = vector.shape_cast %221 : vector<1x4x32x32xbf16> to vector<4x32x32xbf16>
    %c0_231 = arith.constant 0 : index
    %c0_232 = arith.constant 0 : index
    %c0_233 = arith.constant 0 : index
    %223 = vector.load %arg15[%c0_231, %c0_232, %c0_233] : memref<5x5x32xbf16, #tpu.memory_space<vmem>>, vector<4x4x32xbf16>
    %224 = vector.shape_cast %223 : vector<4x4x32xbf16> to vector<16x32xbf16>
    %225 = vector.extract_strided_slice %222 {offsets = [0, 0, 0], sizes = [1, 32, 32], strides = [1, 1, 1]} : vector<4x32x32xbf16> to vector<1x32x32xbf16>
    %226 = vector.shape_cast %225 : vector<1x32x32xbf16> to vector<32x32xbf16>
    %cst_234 = arith.constant dense<0.000000e+00> : vector<16x32xf32>
    %227 = tpu.matmul %224, %226, %cst_234 {dimension_numbers = #tpu.dot_dimension_numbers<[1], [0], [0], [1], [0, 0, 1, 1], [], []>} : vector<16x32xbf16>, vector<32x32xbf16>, vector<16x32xf32> -> vector<16x32xf32>
    %c0_235 = arith.constant 0 : index
    %c1_236 = arith.constant 1 : index
    %c0_237 = arith.constant 0 : index
    %228 = vector.load %arg15[%c0_235, %c1_236, %c0_237] : memref<5x5x32xbf16, #tpu.memory_space<vmem>>, vector<4x4x32xbf16>
    %229 = vector.shape_cast %228 : vector<4x4x32xbf16> to vector<16x32xbf16>
    %230 = vector.extract_strided_slice %222 {offsets = [1, 0, 0], sizes = [1, 32, 32], strides = [1, 1, 1]} : vector<4x32x32xbf16> to vector<1x32x32xbf16>
    %231 = vector.shape_cast %230 : vector<1x32x32xbf16> to vector<32x32xbf16>
    %cst_238 = arith.constant dense<0.000000e+00> : vector<16x32xf32>
    %232 = tpu.matmul %229, %231, %cst_238 {dimension_numbers = #tpu.dot_dimension_numbers<[1], [0], [0], [1], [0, 0, 1, 1], [], []>} : vector<16x32xbf16>, vector<32x32xbf16>, vector<16x32xf32> -> vector<16x32xf32>
    %233 = arith.addf %227, %232 : vector<16x32xf32>
    %c1_239 = arith.constant 1 : index
    %c0_240 = arith.constant 0 : index
    %c0_241 = arith.constant 0 : index
    %234 = vector.load %arg15[%c1_239, %c0_240, %c0_241] : memref<5x5x32xbf16, #tpu.memory_space<vmem>>, vector<4x4x32xbf16>
    %235 = vector.shape_cast %234 : vector<4x4x32xbf16> to vector<16x32xbf16>
    %236 = vector.extract_strided_slice %222 {offsets = [2, 0, 0], sizes = [1, 32, 32], strides = [1, 1, 1]} : vector<4x32x32xbf16> to vector<1x32x32xbf16>
    %237 = vector.shape_cast %236 : vector<1x32x32xbf16> to vector<32x32xbf16>
    %cst_242 = arith.constant dense<0.000000e+00> : vector<16x32xf32>
    %238 = tpu.matmul %235, %237, %cst_242 {dimension_numbers = #tpu.dot_dimension_numbers<[1], [0], [0], [1], [0, 0, 1, 1], [], []>} : vector<16x32xbf16>, vector<32x32xbf16>, vector<16x32xf32> -> vector<16x32xf32>
    %239 = arith.addf %233, %238 : vector<16x32xf32>
    %c1_243 = arith.constant 1 : index
    %c1_244 = arith.constant 1 : index
    %c0_245 = arith.constant 0 : index
    %240 = vector.load %arg15[%c1_243, %c1_244, %c0_245] : memref<5x5x32xbf16, #tpu.memory_space<vmem>>, vector<4x4x32xbf16>
    %241 = vector.shape_cast %240 : vector<4x4x32xbf16> to vector<16x32xbf16>
    %242 = vector.extract_strided_slice %222 {offsets = [3, 0, 0], sizes = [1, 32, 32], strides = [1, 1, 1]} : vector<4x32x32xbf16> to vector<1x32x32xbf16>
    %243 = vector.shape_cast %242 : vector<1x32x32xbf16> to vector<32x32xbf16>
    %cst_246 = arith.constant dense<0.000000e+00> : vector<16x32xf32>
    %244 = tpu.matmul %241, %243, %cst_246 {dimension_numbers = #tpu.dot_dimension_numbers<[1], [0], [0], [1], [0, 0, 1, 1], [], []>} : vector<16x32xbf16>, vector<32x32xbf16>, vector<16x32xf32> -> vector<16x32xf32>
    %245 = arith.addf %239, %244 : vector<16x32xf32>
    %c2_247 = arith.constant 2 : index
    %c0_248 = arith.constant 0 : index
    %c0_249 = arith.constant 0 : index
    %246 = vector.load %arg7[%c2_247, %c0_248, %c0_249] : memref<4x1x32xf32, #tpu.memory_space<vmem>>, vector<1x1x32xf32>
    %247 = vector.shape_cast %246 : vector<1x1x32xf32> to vector<1x32xf32>
    %248 = vector.broadcast %247 : vector<1x32xf32> to vector<16x32xf32>
    %249 = arith.addf %245, %248 : vector<16x32xf32>
    %cst_250 = arith.constant 0.000000e+00 : f32
    %250 = vector.broadcast %cst_250 : f32 to vector<16x32xf32>
    %251 = arith.maximumf %249, %250 : vector<16x32xf32>
    %cst_251 = arith.constant 0.000000e+00 : bf16
    %252 = vector.broadcast %cst_251 : bf16 to vector<5x5x32xbf16>
    %c0_252 = arith.constant 0 : index
    %c0_253 = arith.constant 0 : index
    %c0_254 = arith.constant 0 : index
    %253 = vector.load %arg16[%c0_252, %c0_253, %c0_254] : memref<5x5x32xbf16, #tpu.memory_space<vmem>>, vector<5x5x32xbf16>
    tpu.vector_store %arg16[%c0_252, %c0_253, %c0_254], %252 {strides = array<i32>} : memref<5x5x32xbf16, #tpu.memory_space<vmem>>, vector<5x5x32xbf16>,
    %254 = vector.shape_cast %251 : vector<16x32xf32> to vector<4x4x32xf32>
    %255 = arith.truncf %254 : vector<4x4x32xf32> to vector<4x4x32xbf16>
    %c0_255 = arith.constant 0 : index
    %c0_256 = arith.constant 0 : index
    %c0_257 = arith.constant 0 : index
    %256 = vector.load %arg16[%c0_255, %c0_256, %c0_257] : memref<5x5x32xbf16, #tpu.memory_space<vmem>>, vector<4x4x32xbf16>
    tpu.vector_store %arg16[%c0_255, %c0_256, %c0_257], %255 {strides = array<i32>} : memref<5x5x32xbf16, #tpu.memory_space<vmem>>, vector<4x4x32xbf16>,
    %c3_258 = arith.constant 3 : index
    %c0_259 = arith.constant 0 : index
    %c0_260 = arith.constant 0 : index
    %c0_261 = arith.constant 0 : index
    %257 = vector.load %arg6[%c3_258, %c0_259, %c0_260, %c0_261] : memref<4x4x32x32xbf16, #tpu.memory_space<vmem>>, vector<1x4x32x32xbf16>
    %258 = vector.shape_cast %257 : vector<1x4x32x32xbf16> to vector<4x32x32xbf16>
    %c0_262 = arith.constant 0 : index
    %c0_263 = arith.constant 0 : index
    %c0_264 = arith.constant 0 : index
    %259 = vector.load %arg16[%c0_262, %c0_263, %c0_264] : memref<5x5x32xbf16, #tpu.memory_space<vmem>>, vector<4x4x32xbf16>
    %260 = vector.shape_cast %259 : vector<4x4x32xbf16> to vector<16x32xbf16>
    %261 = vector.extract_strided_slice %258 {offsets = [0, 0, 0], sizes = [1, 32, 32], strides = [1, 1, 1]} : vector<4x32x32xbf16> to vector<1x32x32xbf16>
    %262 = vector.shape_cast %261 : vector<1x32x32xbf16> to vector<32x32xbf16>
    %cst_265 = arith.constant dense<0.000000e+00> : vector<16x32xf32>
    %263 = tpu.matmul %260, %262, %cst_265 {dimension_numbers = #tpu.dot_dimension_numbers<[1], [0], [0], [1], [0, 0, 1, 1], [], []>} : vector<16x32xbf16>, vector<32x32xbf16>, vector<16x32xf32> -> vector<16x32xf32>
    %c0_266 = arith.constant 0 : index
    %c1_267 = arith.constant 1 : index
    %c0_268 = arith.constant 0 : index
    %264 = vector.load %arg16[%c0_266, %c1_267, %c0_268] : memref<5x5x32xbf16, #tpu.memory_space<vmem>>, vector<4x4x32xbf16>
    %265 = vector.shape_cast %264 : vector<4x4x32xbf16> to vector<16x32xbf16>
    %266 = vector.extract_strided_slice %258 {offsets = [1, 0, 0], sizes = [1, 32, 32], strides = [1, 1, 1]} : vector<4x32x32xbf16> to vector<1x32x32xbf16>
    %267 = vector.shape_cast %266 : vector<1x32x32xbf16> to vector<32x32xbf16>
    %cst_269 = arith.constant dense<0.000000e+00> : vector<16x32xf32>
    %268 = tpu.matmul %265, %267, %cst_269 {dimension_numbers = #tpu.dot_dimension_numbers<[1], [0], [0], [1], [0, 0, 1, 1], [], []>} : vector<16x32xbf16>, vector<32x32xbf16>, vector<16x32xf32> -> vector<16x32xf32>
    %269 = arith.addf %263, %268 : vector<16x32xf32>
    %c1_270 = arith.constant 1 : index
    %c0_271 = arith.constant 0 : index
    %c0_272 = arith.constant 0 : index
    %270 = vector.load %arg16[%c1_270, %c0_271, %c0_272] : memref<5x5x32xbf16, #tpu.memory_space<vmem>>, vector<4x4x32xbf16>
    %271 = vector.shape_cast %270 : vector<4x4x32xbf16> to vector<16x32xbf16>
    %272 = vector.extract_strided_slice %258 {offsets = [2, 0, 0], sizes = [1, 32, 32], strides = [1, 1, 1]} : vector<4x32x32xbf16> to vector<1x32x32xbf16>
    %273 = vector.shape_cast %272 : vector<1x32x32xbf16> to vector<32x32xbf16>
    %cst_273 = arith.constant dense<0.000000e+00> : vector<16x32xf32>
    %274 = tpu.matmul %271, %273, %cst_273 {dimension_numbers = #tpu.dot_dimension_numbers<[1], [0], [0], [1], [0, 0, 1, 1], [], []>} : vector<16x32xbf16>, vector<32x32xbf16>, vector<16x32xf32> -> vector<16x32xf32>
    %275 = arith.addf %269, %274 : vector<16x32xf32>
    %c1_274 = arith.constant 1 : index
    %c1_275 = arith.constant 1 : index
    %c0_276 = arith.constant 0 : index
    %276 = vector.load %arg16[%c1_274, %c1_275, %c0_276] : memref<5x5x32xbf16, #tpu.memory_space<vmem>>, vector<4x4x32xbf16>
    %277 = vector.shape_cast %276 : vector<4x4x32xbf16> to vector<16x32xbf16>
    %278 = vector.extract_strided_slice %258 {offsets = [3, 0, 0], sizes = [1, 32, 32], strides = [1, 1, 1]} : vector<4x32x32xbf16> to vector<1x32x32xbf16>
    %279 = vector.shape_cast %278 : vector<1x32x32xbf16> to vector<32x32xbf16>
    %cst_277 = arith.constant dense<0.000000e+00> : vector<16x32xf32>
    %280 = tpu.matmul %277, %279, %cst_277 {dimension_numbers = #tpu.dot_dimension_numbers<[1], [0], [0], [1], [0, 0, 1, 1], [], []>} : vector<16x32xbf16>, vector<32x32xbf16>, vector<16x32xf32> -> vector<16x32xf32>
    %281 = arith.addf %275, %280 : vector<16x32xf32>
    %c3_278 = arith.constant 3 : index
    %c0_279 = arith.constant 0 : index
    %c0_280 = arith.constant 0 : index
    %282 = vector.load %arg7[%c3_278, %c0_279, %c0_280] : memref<4x1x32xf32, #tpu.memory_space<vmem>>, vector<1x1x32xf32>
    %283 = vector.shape_cast %282 : vector<1x1x32xf32> to vector<1x32xf32>
    %284 = vector.broadcast %283 : vector<1x32xf32> to vector<16x32xf32>
    %285 = arith.addf %281, %284 : vector<16x32xf32>
    %cst_281 = arith.constant 0.000000e+00 : f32
    %286 = vector.broadcast %cst_281 : f32 to vector<16x32xf32>
    %287 = arith.maximumf %285, %286 : vector<16x32xf32>
    %288 = vector.shape_cast %287 : vector<16x32xf32> to vector<2x2x4x32xf32>
    %289 = vector.extract_strided_slice %288 {offsets = [0, 0, 0, 0], sizes = [2, 1, 4, 32], strides = [1, 1, 1, 1]} : vector<2x2x4x32xf32> to vector<2x1x4x32xf32>
    %290 = vector.shape_cast %289 : vector<2x1x4x32xf32> to vector<2x4x32xf32>
    %291 = vector.extract_strided_slice %288 {offsets = [0, 1, 0, 0], sizes = [2, 1, 4, 32], strides = [1, 1, 1, 1]} : vector<2x2x4x32xf32> to vector<2x1x4x32xf32>
    %292 = vector.shape_cast %291 : vector<2x1x4x32xf32> to vector<2x4x32xf32>
    %293 = arith.maximumf %290, %292 : vector<2x4x32xf32>
    %c0_282 = arith.constant 0 : index
    %c0_283 = arith.constant 0 : index
    %c0_284 = arith.constant 0 : index
    %294 = vector.load %arg20[%c0_282, %c0_283, %c0_284] : memref<2x4x32xf32, #tpu.memory_space<vmem>>, vector<2x4x32xf32>
    tpu.vector_store %arg20[%c0_282, %c0_283, %c0_284], %293 {strides = array<i32>} : memref<2x4x32xf32, #tpu.memory_space<vmem>>, vector<2x4x32xf32>,
    %c0_285 = arith.constant 0 : index
    %c0_286 = arith.constant 0 : index
    %c0_287 = arith.constant 0 : index
    %295 = tpu.strided_load %arg20[%c0_285, %c0_286, %c0_287] {strides = array<i32: 1, 2, 1>} : memref<2x4x32xf32, #tpu.memory_space<vmem>>, vector<2x2x32xf32>
    %c0_288 = arith.constant 0 : index
    %c1_289 = arith.constant 1 : index
    %c0_290 = arith.constant 0 : index
    %296 = tpu.strided_load %arg20[%c0_288, %c1_289, %c0_290] {strides = array<i32: 1, 2, 1>} : memref<2x4x32xf32, #tpu.memory_space<vmem>>, vector<2x2x32xf32>
    %297 = arith.maximumf %295, %296 : vector<2x2x32xf32>
    %cst_291 = arith.constant 0.000000e+00 : bf16
    %298 = vector.broadcast %cst_291 : bf16 to vector<3x3x32xbf16>
    %c0_292 = arith.constant 0 : index
    %c0_293 = arith.constant 0 : index
    %c0_294 = arith.constant 0 : index
    %299 = vector.load %arg17[%c0_292, %c0_293, %c0_294] : memref<3x3x32xbf16, #tpu.memory_space<vmem>>, vector<3x3x32xbf16>
    tpu.vector_store %arg17[%c0_292, %c0_293, %c0_294], %298 {strides = array<i32>} : memref<3x3x32xbf16, #tpu.memory_space<vmem>>, vector<3x3x32xbf16>,
    %300 = arith.truncf %297 : vector<2x2x32xf32> to vector<2x2x32xbf16>
    %c0_295 = arith.constant 0 : index
    %c0_296 = arith.constant 0 : index
    %c0_297 = arith.constant 0 : index
    %301 = vector.load %arg17[%c0_295, %c0_296, %c0_297] : memref<3x3x32xbf16, #tpu.memory_space<vmem>>, vector<2x2x32xbf16>
    tpu.vector_store %arg17[%c0_295, %c0_296, %c0_297], %300 {strides = array<i32>} : memref<3x3x32xbf16, #tpu.memory_space<vmem>>, vector<2x2x32xbf16>,
    %c0_298 = arith.constant 0 : index
    %c0_299 = arith.constant 0 : index
    %c0_300 = arith.constant 0 : index
    %302 = vector.load %arg17[%c0_298, %c0_299, %c0_300] : memref<3x3x32xbf16, #tpu.memory_space<vmem>>, vector<2x2x32xbf16>
    %303 = arith.extf %302 : vector<2x2x32xbf16> to vector<2x2x32xf32>
    %c0_301 = arith.constant 0 : index
    %c0_302 = arith.constant 0 : index
    %c0_303 = arith.constant 0 : index
    %c0_304 = arith.constant 0 : index
    %304 = vector.load %arg8[%c0_301, %c0_302, %c0_303, %c0_304] : memref<4x1x1x32xf32, #tpu.memory_space<vmem>>, vector<1x1x1x32xf32>
    %305 = vector.shape_cast %304 : vector<1x1x1x32xf32> to vector<1x1x32xf32>
    %306 = vector.broadcast %305 : vector<1x1x32xf32> to vector<2x2x32xf32>
    %307 = arith.mulf %303, %306 : vector<2x2x32xf32>
    %cst_305 = arith.constant dense<0.000000e+00> : vector<2x2xf32>
    %308 = vector.multi_reduction <add>, %307, %cst_305 [2] : vector<2x2x32xf32> to vector<2x2xf32>
    %c0_306 = arith.constant 0 : index
    %c1_307 = arith.constant 1 : index
    %c0_308 = arith.constant 0 : index
    %309 = vector.load %arg17[%c0_306, %c1_307, %c0_308] : memref<3x3x32xbf16, #tpu.memory_space<vmem>>, vector<2x2x32xbf16>
    %310 = arith.extf %309 : vector<2x2x32xbf16> to vector<2x2x32xf32>
    %c1_309 = arith.constant 1 : index
    %c0_310 = arith.constant 0 : index
    %c0_311 = arith.constant 0 : index
    %c0_312 = arith.constant 0 : index
    %311 = vector.load %arg8[%c1_309, %c0_310, %c0_311, %c0_312] : memref<4x1x1x32xf32, #tpu.memory_space<vmem>>, vector<1x1x1x32xf32>
    %312 = vector.shape_cast %311 : vector<1x1x1x32xf32> to vector<1x1x32xf32>
    %313 = vector.broadcast %312 : vector<1x1x32xf32> to vector<2x2x32xf32>
    %314 = arith.mulf %310, %313 : vector<2x2x32xf32>
    %cst_313 = arith.constant dense<0.000000e+00> : vector<2x2xf32>
    %315 = vector.multi_reduction <add>, %314, %cst_313 [2] : vector<2x2x32xf32> to vector<2x2xf32>
    %316 = arith.addf %308, %315 : vector<2x2xf32>
    %c1_314 = arith.constant 1 : index
    %c0_315 = arith.constant 0 : index
    %c0_316 = arith.constant 0 : index
    %317 = vector.load %arg17[%c1_314, %c0_315, %c0_316] : memref<3x3x32xbf16, #tpu.memory_space<vmem>>, vector<2x2x32xbf16>
    %318 = arith.extf %317 : vector<2x2x32xbf16> to vector<2x2x32xf32>
    %c2_317 = arith.constant 2 : index
    %c0_318 = arith.constant 0 : index
    %c0_319 = arith.constant 0 : index
    %c0_320 = arith.constant 0 : index
    %319 = vector.load %arg8[%c2_317, %c0_318, %c0_319, %c0_320] : memref<4x1x1x32xf32, #tpu.memory_space<vmem>>, vector<1x1x1x32xf32>
    %320 = vector.shape_cast %319 : vector<1x1x1x32xf32> to vector<1x1x32xf32>
    %321 = vector.broadcast %320 : vector<1x1x32xf32> to vector<2x2x32xf32>
    %322 = arith.mulf %318, %321 : vector<2x2x32xf32>
    %cst_321 = arith.constant dense<0.000000e+00> : vector<2x2xf32>
    %323 = vector.multi_reduction <add>, %322, %cst_321 [2] : vector<2x2x32xf32> to vector<2x2xf32>
    %324 = arith.addf %316, %323 : vector<2x2xf32>
    %c1_322 = arith.constant 1 : index
    %c1_323 = arith.constant 1 : index
    %c0_324 = arith.constant 0 : index
    %325 = vector.load %arg17[%c1_322, %c1_323, %c0_324] : memref<3x3x32xbf16, #tpu.memory_space<vmem>>, vector<2x2x32xbf16>
    %326 = arith.extf %325 : vector<2x2x32xbf16> to vector<2x2x32xf32>
    %c3_325 = arith.constant 3 : index
    %c0_326 = arith.constant 0 : index
    %c0_327 = arith.constant 0 : index
    %c0_328 = arith.constant 0 : index
    %327 = vector.load %arg8[%c3_325, %c0_326, %c0_327, %c0_328] : memref<4x1x1x32xf32, #tpu.memory_space<vmem>>, vector<1x1x1x32xf32>
    %328 = vector.shape_cast %327 : vector<1x1x1x32xf32> to vector<1x1x32xf32>
    %329 = vector.broadcast %328 : vector<1x1x32xf32> to vector<2x2x32xf32>
    %330 = arith.mulf %326, %329 : vector<2x2x32xf32>
    %cst_329 = arith.constant dense<0.000000e+00> : vector<2x2xf32>
    %331 = vector.multi_reduction <add>, %330, %cst_329 [2] : vector<2x2x32xf32> to vector<2x2xf32>
    %332 = arith.addf %324, %331 : vector<2x2xf32>
    %c0_330 = arith.constant 0 : index
    %c0_331 = arith.constant 0 : index
    %333 = vector.load %arg9[%c0_330, %c0_331] : memref<1x1xf32, #tpu.memory_space<vmem>>, vector<1x1xf32>
    %334 = vector.broadcast %333 : vector<1x1xf32> to vector<2x2xf32>
    %335 = arith.addf %332, %334 : vector<2x2xf32>
    %cst_332 = arith.constant 2.000000e+01 : f32
    %336 = vector.broadcast %cst_332 : f32 to vector<2x2xf32>
    %337 = arith.minimumf %335, %336 : vector<2x2xf32>
    %338 = math.exp %337 : vector<2x2xf32>
    %cst_333 = arith.constant 1.000000e+00 : f32
    %339 = vector.broadcast %cst_333 : f32 to vector<2x2xf32>
    %340 = arith.addf %339, %338 : vector<2x2xf32>
    %cst_334 = arith.constant 1.000000e+00 : f32
    %341 = vector.broadcast %cst_334 : f32 to vector<2x2xf32>
    %342 = arith.cmpf oeq, %340, %341 : vector<2x2xf32>
    %343 = math.log %340 : vector<2x2xf32>
    %cst_335 = arith.constant 1.000000e+00 : f32
    %344 = vector.broadcast %cst_335 : f32 to vector<2x2xf32>
    %345 = arith.subf %340, %344 : vector<2x2xf32>
    %346 = arith.divf %338, %345 : vector<2x2xf32>
    %347 = arith.mulf %343, %346 : vector<2x2xf32>
    %348 = arith.select %342, %338, %347 : vector<2x2xi1>, vector<2x2xf32>
    %cst_336 = arith.constant 2.000000e+01 : f32
    %349 = vector.broadcast %cst_336 : f32 to vector<2x2xf32>
    %350 = arith.cmpf ogt, %335, %349 : vector<2x2xf32>
    %351 = arith.select %350, %335, %348 : vector<2x2xi1>, vector<2x2xf32>
    %c0_337 = arith.constant 0 : index
    %c0_338 = arith.constant 0 : index
    %c0_339 = arith.constant 0 : index
    %352 = vector.load %arg10[%c0_337, %c0_338, %c0_339] : memref<1x2x2xf32, #tpu.memory_space<vmem>>, vector<1x2x2xf32>
    %353 = vector.shape_cast %352 : vector<1x2x2xf32> to vector<2x2xf32>
    %354 = vector.shape_cast %351 : vector<2x2xf32> to vector<1x2x2xf32>
    tpu.vector_store %arg10[%c0_337, %c0_338, %c0_339], %354 {strides = array<i32>} : memref<1x2x2xf32, #tpu.memory_space<vmem>>, vector<1x2x2xf32>,
    return
  }
  func.func @transform_0(%arg0: i32) -> (i32, i32, i32, i32) {
    %c0_i32 = arith.constant 0 : i32
    %c0_i32_0 = arith.constant 0 : i32
    %c0_i32_1 = arith.constant 0 : i32
    %c0_i32_2 = arith.constant 0 : i32
    return %arg0, %c0_i32, %c0_i32_0, %c0_i32_1 : i32, i32, i32, i32
  }
  func.func @transform_1(%arg0: i32) -> (i32, i32, i32) {
    %c0_i32 = arith.constant 0 : i32
    %c0_i32_0 = arith.constant 0 : i32
    %c0_i32_1 = arith.constant 0 : i32
    %c0_i32_2 = arith.constant 0 : i32
    return %c0_i32, %c0_i32_0, %c0_i32_1 : i32, i32, i32
  }
  func.func @transform_2(%arg0: i32) -> (i32, i32) {
    %c0_i32 = arith.constant 0 : i32
    %c0_i32_0 = arith.constant 0 : i32
    %c0_i32_1 = arith.constant 0 : i32
    return %c0_i32, %c0_i32_0 : i32, i32
  }
  func.func @transform_3(%arg0: i32) -> (i32, i32, i32) {
    %c0_i32 = arith.constant 0 : i32
    %c0_i32_0 = arith.constant 0 : i32
    %c0_i32_1 = arith.constant 0 : i32
    %c0_i32_2 = arith.constant 0 : i32
    return %c0_i32, %c0_i32_0, %c0_i32_1 : i32, i32, i32
  }
  func.func @transform_4(%arg0: i32) -> (i32, i32) {
    %c0_i32 = arith.constant 0 : i32
    %c0_i32_0 = arith.constant 0 : i32
    %c0_i32_1 = arith.constant 0 : i32
    return %c0_i32, %c0_i32_0 : i32, i32
  }
  func.func @transform_5(%arg0: i32) -> (i32, i32, i32, i32) {
    %c0_i32 = arith.constant 0 : i32
    %c0_i32_0 = arith.constant 0 : i32
    %c0_i32_1 = arith.constant 0 : i32
    %c0_i32_2 = arith.constant 0 : i32
    %c0_i32_3 = arith.constant 0 : i32
    return %c0_i32, %c0_i32_0, %c0_i32_1, %c0_i32_2 : i32, i32, i32, i32
  }
  func.func @transform_6(%arg0: i32) -> (i32, i32, i32) {
    %c0_i32 = arith.constant 0 : i32
    %c0_i32_0 = arith.constant 0 : i32
    %c0_i32_1 = arith.constant 0 : i32
    %c0_i32_2 = arith.constant 0 : i32
    return %c0_i32, %c0_i32_0, %c0_i32_1 : i32, i32, i32
  }
  func.func @transform_7(%arg0: i32) -> (i32, i32, i32, i32) {
    %c0_i32 = arith.constant 0 : i32
    %c0_i32_0 = arith.constant 0 : i32
    %c0_i32_1 = arith.constant 0 : i32
    %c0_i32_2 = arith.constant 0 : i32
    %c0_i32_3 = arith.constant 0 : i32
    return %c0_i32, %c0_i32_0, %c0_i32_1, %c0_i32_2 : i32, i32, i32, i32
  }
  func.func @transform_8(%arg0: i32) -> (i32, i32) {
    %c0_i32 = arith.constant 0 : i32
    %c0_i32_0 = arith.constant 0 : i32
    %c0_i32_1 = arith.constant 0 : i32
    return %c0_i32, %c0_i32_0 : i32, i32
  }
  func.func @transform_9(%arg0: i32) -> (i32, i32, i32) {
    %c0_i32 = arith.constant 0 : i32
    %c0_i32_0 = arith.constant 0 : i32
    %c0_i32_1 = arith.constant 0 : i32
    return %arg0, %c0_i32, %c0_i32_0 : i32, i32, i32
  }
}

</mosaic_0001>

<bundles_post_ra>
// kernel: vertex_weight_cnn_forward.1
= control target key start
LH: loop header
LB: loop body
LE: loop exit
PB: predicated region body
PF: predicated region fallthrough
CT: control target
= control target key end

     0   :  { %s21929_s0 = inlined_call_operand.vmem [shape: bf16[2,16,16,3], index: 0, kind: input, shape index: {}]   ;;  %s21930_s1 = inlined_call_operand.vmem [shape: bf16[9,3,16], index: 1, kind: input, shape index: {}]   ;;  %s21931_s2 = inlined_call_operand.vmem [shape: f32[1,16], index: 2, kind: input, shape index: {}]   ;;  %s21932_s3 = inlined_call_operand.vmem [shape: bf16[9,16,32], index: 3, kind: input, shape index: {}]   ;;  %s21933_s4 = inlined_call_operand.vmem [shape: f32[1,32], index: 4, kind: input, shape index: {}]   ;;  %s21934_s5 = inlined_call_operand.vmem [shape: bf16[4,4,32,32], index: 5, kind: input, shape index: {}]   ;;  %s21935_s6 = inlined_call_operand.vmem [shape: f32[4,1,32], index: 6, kind: input, shape index: {}]   ;;  %s21936_s7 = inlined_call_operand.vmem [shape: f32[4,1,1,32], index: 7, kind: input, shape index: {}]   ;;  %s21937_s8 = inlined_call_operand.<no memory space> [shape: f32[1,1], index: 8, kind: input, shape index: {}]   ;;  %s21938_s9 = inlined_call_operand.hbm [shape: f32[2,2,2], index: 9, kind: output, shape index: {}]  }
   0x1   :  { %v14_v0 = vstv %s21937_s8 }
   0x2   :  { %15 = vst [vmem:[#allocation12] sm:$0x1] %v14_v0 }
   0x3   :  { %16 = vsyncpa [#allocation14], 0 }
   0x4   :  { %18 = vsyncpa [#allocation14 + $0x1], 0  ;;  %s16315_s11 = smov 0   ;;  %s16317_s12 = smov 0  }
   0x5   :  { %s16319_s13 = smov 0   ;;  %s16321_s14 = smov 0  }
   0x6 LB: > { %s16336_s8 = sadd.s32 4294967295, %s16254_s14   ;;  %s13831_s15 = sadd.s32 4294967294, %s16254_s14   ;;  %s16254_s14 = sphi %s16321_s14, %s22402_s14   ;;  %s16250_s13 = sphi %s16319_s13, %s22401_s13   ;;  %s16246_s12 = sphi %s16317_s12, %s22400_s12   ;;  %s16242_s11 = sphi %s16315_s11, %s22399_s11  }
   0x7   : > { %s16340_s16 = sadd.s32 1, %s16254_s14   ;;  %s225_s17 = sadd.s32 1, %s16250_s13 }
   0x8   : > { %s222_s18 = ssub.s32 %s16254_s14, %s16340_s16  ;;  %p235_p0 = scmp.ne.s32.totalorder %s16250_s13, %s16246_s12 }
   0x9   : > { %p223_p1 = scmp.eq.s32.totalorder %s222_s18, 0  ;;  %p236_p2 = scmp.eq.s32.totalorder %s16336_s8, 1 }
   0xa   : > { %p241_p3 = scmp.ne.s32.totalorder %s16246_s12, %s16242_s11  ;;  %p242_p4 = scmp.eq.s32.totalorder %s13831_s15, 1 }
   0xb   : > { %s16351_s19 = scalar_select %p223_p1, %s16250_s13, %s225_s17  }
   0xc   : > { %p16353_p5 = por %p236_p2, %p235_p0  ;;  %p16357_p6 = por %p242_p4, %p241_p3 }
   0xd   : > { %p13834_p7 = scmp.ge.s32.totalorder %s16254_s14, 1  ;;  %p292_p8 = scmp.lt.s32.totalorder %s16254_s14, 3 }
   0xf   : > { %p293_p9 = pnand %p13834_p7, %p292_p8 }
  0x11   : > { %296 = sbr.rel (%p293_p9) target bundleno = 2582 (0xa16), region = 56 }
  0x16   : > { %v16366_v1 = vld [vmem:[%s21930_s1 + $0x2] sm:$0x3]  ;;  %vm1398_vm0 = vcmask 1040384   ;;  %vm1399_vm1 = vcmask 1041408   ;;  %vm334_vm2 = vcmask 19456   ;;  %v16256_v2 = vmov 65535  }
  0x17   : > { %v1400_v3 = vsel %vm1398_vm0, 4294967295, %v16256_v2  ;;  %v895_v4 = vld [vmem:[%s21930_s1] sm:$0x3]  ;;  %vm337_vm3 = vcmask 16384   ;;  %v21939_v6 = vmov 0   ;;  %p328_p10 = scmp.lt.s32.totalorder %s16336_s8, 1 }
  0x18   : > { %v16371_v5 = vsel %vm1399_vm1, %v1400_v3, 0  ;;  %335 = vst.msk [vmem:[#allocation2] sm:$0xf] %vm334_vm2, %v21939_v6  ;;  %336 = vst.msk [vmem:[#allocation2 + $0x4] sm:$0xf] %vm334_vm2, %v21939_v6  ;;  %15993 = vset.pattern.permute.xlu0 %v21939_v6  ;;  %15994 = vset.pattern.permute.xlu1 %v21939_v6  ;;  %vm1349_vm6 = vcmask 23552  }
  0x19   : > { %338 = vst.msk [vmem:[#allocation2 + $0x8] sm:$0x1] %vm337_vm3, %v21939_v6  ;;  %341 = vst.msk [vmem:[#allocation2 + $0x14] sm:$0x1] %vm337_vm3, %v21939_v6  ;;  %v1403_v7 = vand.u32 %v16366_v1, %v16371_v5  ;;  %v1695_v8 = vand.u32 %v16371_v5, %v895_v4  ;;  %v13919_v9 = vld [vmem:[%s21930_s1 + $0x4] sm:$0x3] }
  0x1a   : > { %339 = vst.msk [vmem:[#allocation2 + $0xc] sm:$0xf] %vm334_vm2, %v21939_v6  ;;  %340 = vst.msk [vmem:[#allocation2 + $0x10] sm:$0xf] %vm334_vm2, %v21939_v6  ;;  %vm912_vm4 = vsmask.f32 3328  ;;  %v16491_v10 = vand.u32 %v13919_v9, %v16371_v5 }
  0x1b   : > { %342 = vst.msk [vmem:[#allocation2 + $0x18] sm:$0xf] %vm334_vm2, %v21939_v6  ;;  %343 = vst.msk [vmem:[#allocation2 + $0x1c] sm:$0xf] %vm334_vm2, %v21939_v6  ;;  %s329_s28 = scalar_select %p328_p10, %s16336_s8, 1  ;;  %15177 = vmatprep.subr.bf16.mxu0 %v1403_v7  ;;  %15211 = vmatprep.subr.bf16.mxu1 %v1695_v8  ;;  %v21971_v29 = vmov 0 }
  0x1c   : > { %344 = vst.msk [vmem:[#allocation2 + $0x20] sm:$0x1] %vm337_vm3, %v21939_v6  ;;  %347 = vst.msk [vmem:[#allocation2 + $0x2c] sm:$0x1] %vm337_vm3, %v21939_v6  ;;  %vm913_vm5 = vsmask.f32 7440  ;;  %15178 = vmatpush3.bf16.msra.mxu0 %v1403_v7  ;;  %15212 = vmatpush3.bf16.msra.mxu1 %v1695_v8 }
  0x1d   : > { %345 = vst.msk [vmem:[#allocation2 + $0x24] sm:$0xf] %vm334_vm2, %v21939_v6  ;;  %346 = vst.msk [vmem:[#allocation2 + $0x28] sm:$0xf] %vm334_vm2, %v21939_v6  ;;  %s14766_s29 = sshll.u32 %s329_s28, 7  ;;  %15245 = vmatprep.subr.bf16.mxu0 %v16491_v10  ;;  %v21976_v41 = vmov 0 }
  0x1e   : > { %348 = vst.msk [vmem:[#allocation2 + $0x30] sm:$0xf] %vm334_vm2, %v21939_v6  ;;  %349 = vst.msk [vmem:[#allocation2 + $0x34] sm:$0xf] %vm334_vm2, %v21939_v6  ;;  %s16498_s15 = scalar_lea.vmem %s21929_s0, %s14766_s29  ;;  %vm422_vm7 = vsmask.f32 256 }
  0x1f   : > { %350 = vst.msk [vmem:[#allocation2 + $0x38] sm:$0x1] %vm337_vm3, %v21939_v6  ;;  %353 = vst.msk [vmem:[#allocation2 + $0x44] sm:$0x1] %vm337_vm3, %v21939_v6  ;;  %v390_v11 = vld [vmem:[%s16498_s15] sm:$0xf] }
  0x20   : > { %351 = vst.msk [vmem:[#allocation2 + $0x3c] sm:$0xf] %vm334_vm2, %v21939_v6  ;;  %352 = vst.msk [vmem:[#allocation2 + $0x40] sm:$0xf] %vm334_vm2, %v21939_v6  ;;  %vm423_vm8 = vsmask.f32 4368 }
  0x21   : > { %354 = vst.msk [vmem:[#allocation2 + $0x48] sm:$0xf] %vm334_vm2, %v21939_v6  ;;  %355 = vst.msk [vmem:[#allocation2 + $0x4c] sm:$0xf] %vm334_vm2, %v21939_v6  ;;  %vm747_vm9 = vsmask.f32 7938 }
  0x22   : > { %356 = vst.msk [vmem:[#allocation2 + $0x50] sm:$0x1] %vm337_vm3, %v21939_v6  ;;  %359 = vst.msk [vmem:[#allocation2 + $0x5c] sm:$0x1] %vm337_vm3, %v21939_v6  ;;  %v863_v12 = vld [vmem:[#allocation2] sm:$0xf] }
  0x23   : > { %357 = vst.msk [vmem:[#allocation2 + $0x54] sm:$0xf] %vm334_vm2, %v21939_v6  ;;  %358 = vst.msk [vmem:[#allocation2 + $0x58] sm:$0xf] %vm334_vm2, %v21939_v6  ;;  %v864_v13 = vld [vmem:[#allocation2 + $0x4] sm:$0xf] }
  0x24   : > { %360 = vst.msk [vmem:[#allocation2 + $0x60] sm:$0xf] %vm334_vm2, %v21939_v6  ;;  %361 = vst.msk [vmem:[#allocation2 + $0x64] sm:$0xf] %vm334_vm2, %v21939_v6  ;;  %v16501_v14 = vld [vmem:[#allocation2 + $0x8] sm:$0x1]  ;;  %v13871_v22 = vcombine.low %v863_v12, %v864_v13 }
  0x25   : > { %362 = vst.msk [vmem:[#allocation2 + $0x68] sm:$0x1] %vm337_vm3, %v21939_v6  ;;  %365 = vst.msk [vmem:[#allocation2 + $0x74] sm:$0x1] %vm337_vm3, %v21939_v6  ;;  %v916_v15 = vshrl.u32 %v863_v12, 16  ;;  %v919_v16 = vshll.u32 %v863_v12, 16 }
  0x26   : > { %363 = vst.msk [vmem:[#allocation2 + $0x6c] sm:$0xf] %vm334_vm2, %v21939_v6  ;;  %364 = vst.msk [vmem:[#allocation2 + $0x70] sm:$0xf] %vm334_vm2, %v21939_v6  ;;  %v925_v17 = vshll.u32 %v864_v13, 16  ;;  %v929_v18 = vshrl.u32 %v864_v13, 16  ;;  %15213 = vmatprep.mubr.msk.bf16.mxu1 %vm1349_vm6, %v13871_v22 }
  0x27   : > { %366 = vst.msk [vmem:[#allocation2 + $0x78] sm:$0xf] %vm334_vm2, %v21939_v6  ;;  %367 = vst.msk [vmem:[#allocation2 + $0x7c] sm:$0xf] %vm334_vm2, %v21939_v6  ;;  %v391_v19 = vld [vmem:[%s16498_s15 + $0x4] sm:$0xf] }
  0x28   : > { %368 = vst.msk [vmem:[#allocation2 + $0x80] sm:$0x1] %vm337_vm3, %v21939_v6  ;;  %371 = vst.msk [vmem:[#allocation2 + $0x8c] sm:$0x1] %vm337_vm3, %v21939_v6  ;;  %v935_v20 = vshll.u32 %v16501_v14, 16  ;;  %v1914_v21 = vrot.slane %v16501_v14, 5 }
  0x29   : > { %369 = vst.msk [vmem:[#allocation2 + $0x84] sm:$0xf] %vm334_vm2, %v21939_v6  ;;  %370 = vst.msk [vmem:[#allocation2 + $0x88] sm:$0xf] %vm334_vm2, %v21939_v6  ;;  %v426_v23 = vshrl.u32 %v390_v11, 16  ;;  %v918_v25 = vrot.slane %v916_v15, 4 }
  0x2a   : > { %372 = vst.msk [vmem:[#allocation2 + $0x90] sm:$0xf] %vm334_vm2, %v21939_v6  ;;  %373 = vst.msk [vmem:[#allocation2 + $0x94] sm:$0xf] %vm334_vm2, %v21939_v6  ;;  %v392_v24 = vld [vmem:[%s16498_s15 + $0x8] sm:$0xf] }
  0x2b   : > { %374 = vst.msk [vmem:[#allocation2 + $0x98] sm:$0x1] %vm337_vm3, %v21939_v6  ;;  %377 = vst.msk [vmem:[#allocation2 + $0xa4] sm:$0x1] %vm337_vm3, %v21939_v6  ;;  %v921_v26 = vrot.slane %v919_v16, 5  ;;  %v927_v27 = vrot.slane %v925_v17, 5 }
  0x2c   : > { %375 = vst.msk [vmem:[#allocation2 + $0x9c] sm:$0xf] %vm334_vm2, %v21939_v6  ;;  %376 = vst.msk [vmem:[#allocation2 + $0xa0] sm:$0xf] %vm334_vm2, %v21939_v6  ;;  %v931_v28 = vrot.slane %v929_v18, 4  ;;  %v937_v30 = vrot.slane %v935_v20, 5 }
  0x2d   : > { %378 = vst.msk [vmem:[#allocation2 + $0xa8] sm:$0xf] %vm334_vm2, %v21939_v6  ;;  %379 = vst.msk [vmem:[#allocation2 + $0xac] sm:$0xf] %vm334_vm2, %v21939_v6  ;;  %v428_v31 = vrot.slane %v426_v23, 7  ;;  %v429_v32 = vshll.u32 %v390_v11, 16  ;;  %v922_v35 = vor.u32 %v921_v26, %v918_v25 }
  0x2e   : > { %380 = vst.msk [vmem:[#allocation2 + $0xb0] sm:$0x1] %vm337_vm3, %v21939_v6  ;;  %383 = vst.msk [vmem:[#allocation2 + $0xbc] sm:$0x1] %vm337_vm3, %v21939_v6  ;;  %v434_v33 = vshrl.u32 %v391_v19, 16  ;;  %v932_v36 = vor.u32 %v931_v28, %v927_v27  ;;  %v437_v37 = vshll.u32 %v391_v19, 16 }
  0x2f   : > { %381 = vst.msk [vmem:[#allocation2 + $0xb4] sm:$0xf] %vm334_vm2, %v21939_v6  ;;  %382 = vst.msk [vmem:[#allocation2 + $0xb8] sm:$0xf] %vm334_vm2, %v21939_v6  ;;  %v393_v34 = vld [vmem:[%s16498_s15 + $0xc] sm:$0xf]  ;;  %v431_v42 = vor.u32 %v429_v32, %v428_v31 }
  0x30   : > { %384 = vst.msk [vmem:[#allocation2 + $0xc0] sm:$0xf] %vm334_vm2, %v21939_v6  ;;  %385 = vst.msk [vmem:[#allocation2 + $0xc4] sm:$0xf] %vm334_vm2, %v21939_v6  ;;  %v749_v39 = vld [vmem:[#allocation2 + $0xc] sm:$0xf] }
  0x31   : > { %386 = vst.msk [vmem:[#allocation2 + $0xc8] sm:$0x1] %vm337_vm3, %v21939_v6  ;;  %389 = vst.msk [vmem:[#allocation2 + $0xd4] sm:$0x1] %vm337_vm3, %v21939_v6  ;;  %v443_v40 = vshrl.u32 %v392_v24, 16  ;;  %v432_v43 = vrot.slane %v428_v31, 4 }
  0x32   : > { %387 = vst.msk [vmem:[#allocation2 + $0xcc] sm:$0xf] %vm334_vm2, %v21939_v6  ;;  %388 = vst.msk [vmem:[#allocation2 + $0xd0] sm:$0xf] %vm334_vm2, %v21939_v6  ;;  %v436_v44 = vrot.slane %v434_v33, 7  ;;  %v446_v46 = vshll.u32 %v392_v24, 16 }
  0x33   : > { %vm16509_vm10 = vmor %vm912_vm4, %vm913_vm5  ;;  %v755_v45 = vld [vmem:[#allocation2 + $0x14] sm:$0x1]  ;;  %v923_v47 = vrot.slane %v922_v35, 4  ;;  %v933_v48 = vrot.slane %v932_v36, 4  ;;  %v445_v50 = vrot.slane %v443_v40, 7  ;;  %v451_v51 = vshrl.u32 %v393_v34, 16 }
  0x34   : > { %v21972_v29 = vsel %vm16509_vm10, 4294967295, %v21971_v29  ;;  %vm16517_vm11 = vmand %vm334_vm2, %vm747_vm9  ;;  %v758_v52 = vld [vmem:[#allocation2 + $0x18] sm:$0xf]  ;;  %v439_v53 = vor.u32 %v437_v37, %v436_v44  ;;  %v441_v54 = vrot.slane %v436_v44, 4  ;;  %v454_v56 = vshll.u32 %v393_v34, 16  ;;  %s325_s23 = sand.u32 1, %s16246_s12  }
  0x35   : > { %21973 = vst [vmem:[#allocation16_spill] sm:$0xff] %v21972_v29  ;;  %vm16523_vm12 = vmor %vm422_vm7, %vm423_vm8  ;;  %v750_v55 = vsel %vm16517_vm11, %v431_v42, %v749_v39  ;;  %v394_v57 = vld [vmem:[%s16498_s15 + $0x10] sm:$0xf]  ;;  %v395_v58 = vld [vmem:[%s16498_s15 + $0x14] sm:$0xf]  ;;  %v928_v59 = vsel %vm16509_vm10, %v923_v47, %v927_v27  ;;  %v938_v60 = vsel %vm16509_vm10, %v933_v48, %v937_v30  ;;  %v448_v61 = vor.u32 %v446_v46, %v445_v50  ;;  %s13835_s24 = sshll.u32 %s325_s23, 1 }
  0x36   : > { %v21977_v41 = vsel %vm16523_vm12, 4294967295, %v21976_v41  ;;  %vm16529_vm13 = vmand %vm337_vm3, %vm422_vm7  ;;  %751 = vst [vmem:[#allocation2 + $0xc] sm:$0xf] %v750_v55  ;;  %v449_v62 = vrot.slane %v445_v50, 4  ;;  %v396_v63 = vld [vmem:[%s16498_s15 + $0x18] sm:$0xf]  ;;  %v13839_v0 = vcombine.low %v928_v59, %v938_v60  ;;  %v440_v1 = vsel %vm16523_vm12, %v432_v43, %v439_v53 }
  0x37   : > { %21978 = vst [vmem:[#allocation17_spill] sm:$0xff] %v21977_v41  ;;  %v756_v2 = vsel %vm16529_vm13, %v441_v54, %v755_v45  ;;  %v453_v3 = vrot.slane %v451_v51, 7  ;;  %v397_v4 = vld [vmem:[%s16498_s15 + $0x1c] sm:$0xf]  ;;  %752 = vst.msk [vmem:[#allocation2 + $0x10] sm:$0xf] %vm334_vm2, %v440_v1  ;;  %v759_v7 = vsel %vm16517_vm11, %v448_v61, %v758_v52 }
  0x38   : > { %757 = vst [vmem:[#allocation2 + $0x14] sm:$0x1] %v756_v2  ;;  %v762_v8 = vld [vmem:[#allocation2 + $0x20] sm:$0x1]  ;;  %v460_v9 = vshrl.u32 %v394_v57, 16  ;;  %v463_v11 = vshll.u32 %v394_v57, 16  ;;  %15179 = vmatprep.mubr.msk.bf16.mxu0 %vm1349_vm6, %v13839_v0 }
  0x39   : > { %v468_v12 = vshrl.u32 %v395_v58, 16  ;;  %v456_v13 = vor.u32 %v454_v56, %v453_v3  ;;  %v458_v15 = vrot.slane %v453_v3, 4  ;;  %760 = vst [vmem:[#allocation2 + $0x18] sm:$0xf] %v759_v7  ;;  %v471_v16 = vshll.u32 %v395_v58, 16  ;;  %s14763_s25 = sshll.u32 %s16336_s8, 5 }
  0x3a   : > { %v477_v17 = vshrl.u32 %v396_v63, 16  ;;  %v462_v18 = vrot.slane %v460_v9, 7  ;;  %v480_v20 = vshll.u32 %v396_v63, 16  ;;  %v485_v22 = vshrl.u32 %v397_v4, 16  ;;  %v16552_v23 = vld [vmem:[%s16498_s15 + $0x20] sm:$0xf]  ;;  %s21894_s30 = scalar_lea.hbm %s21938_s9, %s14763_s25 }
  0x3b   : > { %v470_v19 = vrot.slane %v468_v12, 7  ;;  %v457_v24 = vsel %vm16523_vm12, %v449_v62, %v456_v13  ;;  %v763_v25 = vsel %vm16529_vm13, %v458_v15, %v762_v8  ;;  %v765_v26 = vld [vmem:[#allocation2 + $0x24] sm:$0xf]  ;;  %v488_v28 = vshll.u32 %v397_v4, 16  ;;  %v769_v34 = vld [vmem:[#allocation2 + $0x2c] sm:$0x1] }
  0x3c   : > { %v479_v27 = vrot.slane %v477_v17, 7  ;;  %761 = vst.msk [vmem:[#allocation2 + $0x1c] sm:$0xf] %vm334_vm2, %v457_v24  ;;  %764 = vst [vmem:[#allocation2 + $0x20] sm:$0x1] %v763_v25  ;;  %v465_v30 = vor.u32 %v463_v11, %v462_v18  ;;  %v466_v31 = vrot.slane %v462_v18, 4 }
  0x3d   : > { %v473_v32 = vor.u32 %v471_v16, %v470_v19  ;;  %v475_v33 = vrot.slane %v470_v19, 4  ;;  %v772_v35 = vld [vmem:[#allocation2 + $0x30] sm:$0xf]  ;;  %v865_v36 = vld [vmem:[#allocation2 + $0xc] sm:$0xf]  ;;  %v487_v40 = vrot.slane %v485_v22, 7 }
  0x3e   : > { %v482_v37 = vor.u32 %v480_v20, %v479_v27  ;;  %v483_v39 = vrot.slane %v479_v27, 4  ;;  %v494_v42 = vshrl.u32 %v16552_v23, 16  ;;  %v940_v43 = vshrl.u32 %v865_v36, 16  ;;  %v776_v47 = vld [vmem:[#allocation2 + $0x38] sm:$0x1]  ;;  %s327_s26 = scalar_lea.vmem [#allocation13], %s13835_s24 }
  0x3f   : > { %v943_v44 = vshll.u32 %v865_v36, 16  ;;  %v474_v45 = vsel %vm16523_vm12, %v466_v31, %v473_v32  ;;  %v766_v46 = vsel %vm16517_vm11, %v465_v30, %v765_v26  ;;  %v16564_v48 = vld [vmem:[#allocation2 + $0x10] sm:$0xf]  ;;  %v16566_v50 = vld [vmem:[#allocation2 + $0x14] sm:$0x1]  ;;  %v770_v51 = vsel %vm16529_vm13, %v475_v33, %v769_v34  ;;  %s13772_s27 = sshll.u32 %s327_s26, 4  ;;  %s13773_s27 = int_to_ptr.vmem [resolvable:$true] %s13772_s27 }
  0x40   : > { %767 = vst [vmem:[#allocation2 + $0x24] sm:$0xf] %v766_v46  ;;  %768 = vst.msk [vmem:[#allocation2 + $0x28] sm:$0xf] %vm334_vm2, %v474_v45  ;;  %v490_v52 = vor.u32 %v488_v28, %v487_v40  ;;  %v492_v53 = vrot.slane %v487_v40, 4  ;;  %v773_v54 = vsel %vm16517_vm11, %v482_v37, %v772_v35  ;;  %v942_v55 = vrot.slane %v940_v43, 4 }
  0x41   : > { %v945_v56 = vrot.slane %v943_v44, 5  ;;  %v949_v57 = vshll.u32 %v16564_v48, 16  ;;  %v953_v58 = vshrl.u32 %v16564_v48, 16  ;;  %v867_v59 = vld [vmem:[#allocation2 + $0x18] sm:$0xf]  ;;  %v959_v60 = vshll.u32 %v16566_v50, 16 }
  0x42   : > { %771 = vst [vmem:[#allocation2 + $0x2c] sm:$0x1] %v770_v51  ;;  %774 = vst [vmem:[#allocation2 + $0x30] sm:$0xf] %v773_v54  ;;  %v1918_v61 = vrot.slane %v16564_v48, 5  ;;  %v1921_v62 = vrot.slane %v16566_v50, 5  ;;  %v13872_v63 = vcombine.low %v865_v36, %v16564_v48  ;;  %v491_v11 = vsel %vm16523_vm12, %v483_v39, %v490_v52 }
  0x43   : > { %v946_v0 = vor.u32 %v945_v56, %v942_v55  ;;  %v951_v1 = vrot.slane %v949_v57, 5  ;;  %v955_v2 = vrot.slane %v953_v58, 4  ;;  %v964_v3 = vshrl.u32 %v867_v59, 16  ;;  %v868_v7 = vld [vmem:[#allocation2 + $0x1c] sm:$0xf]  ;;  %s13759_s10 = scalar_lea.sflag [#allocation14], %s325_s23 }
  0x44   : > { %v961_v4 = vrot.slane %v959_v60, 5  ;;  %15214 = vmatmul.mubr.msk.bf16.vlgmr.msra.gmra.mxu1 %vm1349_vm6, %v13872_v63  ;;  %v898_v8 = vld [vmem:[#allocation2 + $0x20] sm:$0x1]  ;;  %v967_v9 = vshll.u32 %v867_v59, 16  ;;  %v777_v12 = vsel %vm16529_vm13, %v492_v53, %v776_v47  ;;  %v973_v17 = vshll.u32 %v868_v7, 16  ;;  %s16261_s8 = smov [#allocation13]  }
  0x45   : > { %v947_v13 = vrot.slane %v946_v0, 4  ;;  %v956_v15 = vor.u32 %v955_v2, %v951_v1  ;;  %v966_v16 = vrot.slane %v964_v3, 4  ;;  %775 = vst.msk [vmem:[#allocation2 + $0x34] sm:$0xf] %vm334_vm2, %v491_v11  ;;  %778 = vst [vmem:[#allocation2 + $0x38] sm:$0x1] %v777_v12  ;;  %v13873_v22 = vcombine.low %v867_v59, %v868_v7 }
  0x46   : > { %v969_v18 = vrot.slane %v967_v9, 5  ;;  %v977_v19 = vshrl.u32 %v868_v7, 16  ;;  %v983_v20 = vshll.u32 %v898_v8, 16  ;;  %v975_v26 = vrot.slane %v973_v17, 5  ;;  %v399_v17 = vld [vmem:[%s16498_s15 + $0x24] sm:$0xf] }
  0x47   : > { %v952_v24 = vsel %vm16509_vm10, %v947_v13, %v951_v1  ;;  %v957_v25 = vrot.slane %v956_v15, 4  ;;  %v869_v27 = vld [vmem:[#allocation2 + $0x24] sm:$0xf]  ;;  %v870_v28 = vld [vmem:[#allocation2 + $0x28] sm:$0xf]  ;;  %15217 = vmatprep.mubr.msk.bf16.mxu1 %vm1349_vm6, %v13873_v22  ;;  %v496_v22 = vrot.slane %v494_v42, 7 }
  0x48   : > { %v970_v30 = vor.u32 %v969_v18, %v966_v16  ;;  %v979_v31 = vrot.slane %v977_v19, 4  ;;  %v985_v32 = vrot.slane %v983_v20, 5  ;;  %v988_v34 = vshrl.u32 %v869_v27, 16  ;;  %v1861_v6 = vld [vmem:[#allocation2 + $0x24] sm:$0xe]  ;;  %s16198_s17 = sshll.u32 %s16261_s8, 4  ;;  %s16199_s17 = int_to_ptr.vmem [resolvable:$false] %s16198_s17 }
  0x49   : > { %v899_v33 = vld [vmem:[#allocation2 + $0x2c] sm:$0x1]  ;;  %v962_v35 = vsel %vm16509_vm10, %v957_v25, %v961_v4  ;;  %v991_v36 = vshll.u32 %v869_v27, 16  ;;  %v997_v37 = vshll.u32 %v870_v28, 16  ;;  %v1001_v39 = vshrl.u32 %v870_v28, 16  ;;  %s16200_s18 = scalar_lea.vmem %s16199_s17, 64  ;;  %p16201_p0 = scmp.lt.s32.totalorder %s13773_s27, %s16199_s17 }
  0x4a   : > { %v871_v40 = vld [vmem:[#allocation2 + $0x30] sm:$0xf]  ;;  %v13840_v43 = vcombine.low %v952_v24, %v962_v35  ;;  %v971_v44 = vrot.slane %v970_v30, 4  ;;  %v980_v45 = vor.u32 %v979_v31, %v975_v26  ;;  %v990_v46 = vrot.slane %v988_v34, 4  ;;  %v400_v24 = vld [vmem:[%s16498_s15 + $0x28] sm:$0xf] }
  0x4b   : > { %v993_v47 = vrot.slane %v991_v36, 5  ;;  %v999_v51 = vrot.slane %v997_v37, 5  ;;  %v1003_v52 = vrot.slane %v1001_v39, 4  ;;  %v1007_v53 = vshll.u32 %v899_v33, 16  ;;  %v779_v30 = vld [vmem:[#allocation2 + $0x3c] sm:$0xf] }
  0x4c   : > { %15180 = vmatmul.mubr.msk.bf16.vlgmr.msra.gmra.mxu0 %vm1349_vm6, %v13840_v43  ;;  %v976_v54 = vsel %vm16509_vm10, %v971_v44, %v975_v26  ;;  %v981_v55 = vrot.slane %v980_v45, 4  ;;  %v13874_v56 = vcombine.low %v869_v27, %v870_v28  ;;  %v872_v57 = vld [vmem:[#allocation2 + $0x34] sm:$0xf]  ;;  %v1012_v58 = vshrl.u32 %v871_v40, 16  ;;  %v900_v0 = vld [vmem:[#allocation2 + $0x38] sm:$0x1] }
  0x4d   : > { %15246 = vmatpush3.bf16.msra.mxu0 %v16491_v10  ;;  %v994_v59 = vor.u32 %v993_v47, %v990_v46  ;;  %v1004_v60 = vor.u32 %v1003_v52, %v999_v51  ;;  %v1009_v63 = vrot.slane %v1007_v53, 5  ;;  %v1015_v1 = vshll.u32 %v871_v40, 16  ;;  %v401_v31 = vld [vmem:[%s16498_s15 + $0x2c] sm:$0xf]  ;;  %v402_v36 = vld [vmem:[%s16498_s15 + $0x30] sm:$0xf] }
  0x4e   : > { %v986_v2 = vsel %vm16509_vm10, %v981_v55, %v985_v32  ;;  %15218 = vmatmul.mubr.msk.bf16.gmra.mxu1 %vm1349_vm6, %v13874_v56  ;;  %v1014_v3 = vrot.slane %v1012_v58, 4  ;;  %v1021_v4 = vshll.u32 %v872_v57, 16  ;;  %v1025_v7 = vshrl.u32 %v872_v57, 16  ;;  %v786_v53 = vld [vmem:[#allocation2 + $0x48] sm:$0xf] }
  0x4f   : > { %v13841_v8 = vcombine.low %v976_v54, %v986_v2  ;;  %v995_v9 = vrot.slane %v994_v59, 4  ;;  %v1005_v11 = vrot.slane %v1004_v60, 4  ;;  %v1017_v12 = vrot.slane %v1015_v1, 5  ;;  %v790_v59 = vld [vmem:[#allocation2 + $0x50] sm:$0x1] }
  0x50   : > { %v1023_v10 = vrot.slane %v1021_v4, 5  ;;  %v1027_v13 = vrot.slane %v1025_v7, 4  ;;  %v1031_v15 = vshll.u32 %v900_v0, 16  ;;  %v13875_v16 = vcombine.low %v871_v40, %v872_v57  ;;  %v403_v60 = vld [vmem:[%s16498_s15 + $0x34] sm:$0xf] }
  0x51   : > { %15183 = vmatprep.mubr.msk.bf16.mxu0 %vm1349_vm6, %v13841_v8  ;;  %v1000_v18 = vsel %vm16509_vm10, %v995_v9, %v999_v51  ;;  %v1010_v19 = vsel %vm16509_vm10, %v1005_v11, %v1009_v63  ;;  %v1018_v20 = vor.u32 %v1017_v12, %v1014_v3  ;;  %v497_v28 = vshll.u32 %v16552_v23, 16  ;;  %v783_v51 = vld [vmem:[#allocation2 + $0x44] sm:$0x1]  ;;  %v404_v3 = vld [vmem:[%s16498_s15 + $0x38] sm:$0xf] }
  0x52   : > { %v13842_v25 = vcombine.low %v1000_v18, %v1010_v19  ;;  %v1028_v26 = vor.u32 %v1027_v13, %v1023_v10  ;;  %v1033_v27 = vrot.slane %v1031_v15, 5  ;;  %15221 = vmatprep.mubr.msk.bf16.mxu1 %vm1349_vm6, %v13875_v16  ;;  %v500_v33 = vrot.slane %v496_v22, 4  ;;  %v793_v11 = vld [vmem:[#allocation2 + $0x54] sm:$0xf]  ;;  %v405_v12 = vld [vmem:[%s16498_s15 + $0x3c] sm:$0xf] }
  0x53   : > { %v1019_v32 = vrot.slane %v1018_v20, 4  ;;  %v502_v34 = vshrl.u32 %v399_v17, 16  ;;  %v505_v35 = vshll.u32 %v399_v17, 16  ;;  %v499_v39 = vor.u32 %v497_v28, %v496_v22  ;;  %v16629_v17 = vld [vmem:[%s16498_s15 + $0x40] sm:$0xf] }
  0x54   : > { %15184 = vmatmul.mubr.msk.bf16.gmra.mxu0 %vm1349_vm6, %v13842_v25  ;;  %v1029_v37 = vrot.slane %v1028_v26, 4  ;;  %v511_v42 = vshrl.u32 %v400_v24, 16  ;;  %v514_v40 = vshll.u32 %v400_v24, 16  ;;  %v519_v45 = vshrl.u32 %v401_v31, 16  ;;  %v16636_v24 = vld [vmem:[%s16498_s15 + $0x44] sm:$0xf] }
  0x55   : > { %v1024_v43 = vsel %vm16509_vm10, %v1019_v32, %v1023_v10  ;;  %v504_v44 = vrot.slane %v502_v34, 7  ;;  %v522_v23 = vshll.u32 %v401_v31, 16  ;;  %v780_v47 = vsel %vm16517_vm11, %v499_v39, %v779_v30 }
  0x56   : > { %v1034_v46 = vsel %vm16509_vm10, %v1029_v37, %v1033_v27  ;;  %v513_v52 = vrot.slane %v511_v42, 7  ;;  %v528_v54 = vshrl.u32 %v402_v36, 16  ;;  %781 = vst [vmem:[#allocation2 + $0x3c] sm:$0xf] %v780_v47  ;;  %v521_v58 = vrot.slane %v519_v45, 7 }
  0x57   : > { %v13843_v55 = vcombine.low %v1024_v43, %v1034_v46  ;;  %v507_v56 = vor.u32 %v505_v35, %v504_v44  ;;  %v509_v57 = vrot.slane %v504_v44, 4  ;;  %v531_v2 = vshll.u32 %v402_v36, 16  ;;  %v797_v27 = vld [vmem:[#allocation2 + $0x5c] sm:$0x1] }
  0x58   : > { %v516_v63 = vor.u32 %v514_v40, %v513_v52  ;;  %v517_v0 = vrot.slane %v513_v52, 4  ;;  %v530_v1 = vrot.slane %v528_v54, 7  ;;  %v524_v8 = vor.u32 %v522_v23, %v521_v58 }
  0x59   : > { %15187 = vmatprep.mubr.msk.bf16.mxu0 %vm1349_vm6, %v13843_v55  ;;  %v508_v4 = vsel %vm16523_vm12, %v500_v33, %v507_v56  ;;  %v784_v7 = vsel %vm16529_vm13, %v509_v57, %v783_v51  ;;  %v526_v9 = vrot.slane %v521_v58, 4  ;;  %v536_v16 = vshrl.u32 %v403_v60, 16  ;;  %v800_v33 = vld [vmem:[#allocation2 + $0x60] sm:$0xf] }
  0x5a   : > { %782 = vst.msk [vmem:[#allocation2 + $0x40] sm:$0xf] %vm334_vm2, %v508_v4  ;;  %785 = vst [vmem:[#allocation2 + $0x44] sm:$0x1] %v784_v7  ;;  %v787_v10 = vsel %vm16517_vm11, %v516_v63, %v786_v53  ;;  %v533_v13 = vor.u32 %v531_v2, %v530_v1  ;;  %v534_v15 = vrot.slane %v530_v1, 4  ;;  %v525_v18 = vsel %vm16523_vm12, %v517_v0, %v524_v8 }
  0x5b   : > { %788 = vst [vmem:[#allocation2 + $0x48] sm:$0xf] %v787_v10  ;;  %v791_v19 = vsel %vm16529_vm13, %v526_v9, %v790_v59  ;;  %v539_v20 = vshll.u32 %v403_v60, 16  ;;  %v545_v22 = vshrl.u32 %v404_v3, 16  ;;  %789 = vst.msk [vmem:[#allocation2 + $0x4c] sm:$0xf] %vm334_vm2, %v525_v18 }
  0x5c   : > { %792 = vst [vmem:[#allocation2 + $0x50] sm:$0x1] %v791_v19  ;;  %v538_v25 = vrot.slane %v536_v16, 7  ;;  %v794_v26 = vsel %vm16517_vm11, %v533_v13, %v793_v11  ;;  %v548_v28 = vshll.u32 %v404_v3, 16  ;;  %v553_v30 = vshrl.u32 %v405_v12, 16 }
  0x5d   : > { %795 = vst [vmem:[#allocation2 + $0x54] sm:$0xf] %v794_v26  ;;  %v547_v31 = vrot.slane %v545_v22, 7  ;;  %v556_v32 = vshll.u32 %v405_v12, 16  ;;  %v562_v34 = vshrl.u32 %v16629_v17, 16  ;;  %v565_v35 = vshll.u32 %v16629_v17, 16 }
  0x5e   : > { %v873_v36 = vld [vmem:[#allocation2 + $0x3c] sm:$0xf]  ;;  %v541_v37 = vor.u32 %v539_v20, %v538_v25  ;;  %v543_v39 = vrot.slane %v538_v25, 4  ;;  %v555_v42 = vrot.slane %v553_v30, 7  ;;  %v570_v40 = vshrl.u32 %v16636_v24, 16 }
  0x5f   : > { %v1036_v43 = vshrl.u32 %v873_v36, 16  ;;  %v1039_v44 = vshll.u32 %v873_v36, 16  ;;  %v550_v45 = vor.u32 %v548_v28, %v547_v31  ;;  %v551_v23 = vrot.slane %v547_v31, 4  ;;  %v13952_v53 = vld [vmem:[%s21930_s1 + $0x6] sm:$0x3] }
  0x60   : > { %v542_v46 = vsel %vm16523_vm12, %v534_v15, %v541_v37  ;;  %v798_v47 = vsel %vm16529_vm13, %v543_v39, %v797_v27  ;;  %v558_v51 = vor.u32 %v556_v32, %v555_v42  ;;  %v560_v52 = vrot.slane %v555_v42, 4  ;;  %v804_v25 = vld [vmem:[#allocation2 + $0x68] sm:$0x1] }
  0x61   : > { %v16651_v54 = vld [vmem:[#allocation2 + $0x40] sm:$0xf]  ;;  %v16653_v55 = vld [vmem:[#allocation2 + $0x44] sm:$0x1]  ;;  %v1038_v56 = vrot.slane %v1036_v43, 4  ;;  %v1041_v57 = vrot.slane %v1039_v44, 5  ;;  %v801_v58 = vsel %vm16517_vm11, %v550_v45, %v800_v33  ;;  %v2478_v59 = vand.u32 %v13952_v53, %v16371_v5 }
  0x62   : > { %796 = vst.msk [vmem:[#allocation2 + $0x58] sm:$0xf] %vm334_vm2, %v542_v46  ;;  %799 = vst [vmem:[#allocation2 + $0x5c] sm:$0x1] %v798_v47  ;;  %v1045_v60 = vshll.u32 %v16651_v54, 16  ;;  %v1049_v63 = vshrl.u32 %v16651_v54, 16  ;;  %v13876_v1 = vcombine.low %v873_v36, %v16651_v54  ;;  %v559_v11 = vsel %vm16523_vm12, %v551_v23, %v558_v51 }
  0x63   : > { %v1055_v0 = vshll.u32 %v16653_v55, 16  ;;  %v875_v2 = vld [vmem:[#allocation2 + $0x48] sm:$0xf]  ;;  %802 = vst [vmem:[#allocation2 + $0x60] sm:$0xf] %v801_v58  ;;  %v1042_v3 = vor.u32 %v1041_v57, %v1038_v56  ;;  %15279 = vmatprep.subr.bf16.mxu1 %v2478_v59  ;;  %v805_v45 = vsel %vm16529_vm13, %v560_v52, %v804_v25  ;;  %vm1906_vm14 = vcmask 1042432  }
  0x64   : > { %v16663_v4 = vld [vmem:[#allocation2 + $0x4c] sm:$0xf]  ;;  %v16665_v7 = vld [vmem:[#allocation2 + $0x50] sm:$0x1]  ;;  %v1060_v8 = vshrl.u32 %v875_v2, 16  ;;  %v1063_v9 = vshll.u32 %v875_v2, 16  ;;  %15222 = vmatmul.mubr.msk.bf16.gmra.mxu1 %vm1349_vm6, %v13876_v1 }
  0x65   : > { %v1047_v12 = vrot.slane %v1045_v60, 5  ;;  %v1051_v10 = vrot.slane %v1049_v63, 4  ;;  %v1057_v13 = vrot.slane %v1055_v0, 5  ;;  %v1069_v15 = vshll.u32 %v16663_v4, 16  ;;  %v877_v16 = vld [vmem:[#allocation2 + $0x54] sm:$0xf]  ;;  %15280 = vmatpush3.bf16.msra.mxu1 %v2478_v59 }
  0x66   : > { %803 = vst.msk [vmem:[#allocation2 + $0x64] sm:$0xf] %vm334_vm2, %v559_v11  ;;  %v1043_v18 = vrot.slane %v1042_v3, 4  ;;  %v1062_v19 = vrot.slane %v1060_v8, 4  ;;  %v1065_v20 = vrot.slane %v1063_v9, 5  ;;  %v1073_v22 = vshrl.u32 %v16663_v4, 16 }
  0x67   : > { %v1052_v26 = vor.u32 %v1051_v10, %v1047_v12  ;;  %v1071_v27 = vrot.slane %v1069_v15, 5  ;;  %v1079_v28 = vshll.u32 %v16665_v7, 16  ;;  %v13877_v30 = vcombine.low %v875_v2, %v16663_v4  ;;  %v13985_v31 = vld [vmem:[%s21930_s1 + $0x8] sm:$0x3]  ;;  %806 = vst [vmem:[#allocation2 + $0x68] sm:$0x1] %v805_v45 }
  0x68   : > { %v1048_v32 = vsel %vm16509_vm10, %v1043_v18, %v1047_v12  ;;  %v1066_v33 = vor.u32 %v1065_v20, %v1062_v19  ;;  %v1075_v36 = vrot.slane %v1073_v22, 4  ;;  %v1084_v37 = vshrl.u32 %v877_v16, 16 }
  0x69   : > { %v1053_v39 = vrot.slane %v1052_v26, 4  ;;  %v1081_v42 = vrot.slane %v1079_v28, 5  ;;  %15225 = vmatprep.mubr.msk.bf16.mxu1 %vm1349_vm6, %v13877_v30  ;;  %v16681_v43 = vld [vmem:[#allocation2 + $0x58] sm:$0xf]  ;;  %v16683_v44 = vld [vmem:[#allocation2 + $0x5c] sm:$0x1]  ;;  %v16688_v23 = vand.u32 %v13985_v31, %v16371_v5 }
  0x6a   : > { %v1067_v46 = vrot.slane %v1066_v33, 4  ;;  %v1076_v47 = vor.u32 %v1075_v36, %v1071_v27  ;;  %v1086_v51 = vrot.slane %v1084_v37, 4  ;;  %v1087_v53 = vshll.u32 %v877_v16, 16  ;;  %v879_v56 = vld [vmem:[#allocation2 + $0x60] sm:$0xf] }
  0x6b   : > { %v1058_v57 = vsel %vm16509_vm10, %v1053_v39, %v1057_v13  ;;  %v1093_v58 = vshll.u32 %v16681_v43, 16  ;;  %v1097_v59 = vshrl.u32 %v16681_v43, 16  ;;  %v1103_v60 = vshll.u32 %v16683_v44, 16  ;;  %15313 = vmatprep.subr.bf16.mxu0 %v16688_v23  ;;  %v807_v28 = vld [vmem:[#allocation2 + $0x6c] sm:$0xf] }
  0x6c   : > { %v13844_v52 = vcombine.low %v1048_v32, %v1058_v57  ;;  %v1072_v63 = vsel %vm16509_vm10, %v1067_v46, %v1071_v27  ;;  %v1077_v0 = vrot.slane %v1076_v47, 4  ;;  %v1089_v1 = vrot.slane %v1087_v53, 5  ;;  %v811_v46 = vld [vmem:[#allocation2 + $0x74] sm:$0x1]  ;;  %v408_v47 = vld [vmem:[%s16498_s15 + $0x48] sm:$0xf] }
  0x6d   : > { %v16698_v2 = vld [vmem:[#allocation2 + $0x64] sm:$0xf]  ;;  %v1095_v3 = vrot.slane %v1093_v58, 5  ;;  %v1099_v8 = vrot.slane %v1097_v59, 4  ;;  %v1105_v9 = vrot.slane %v1103_v60, 5  ;;  %v13878_v11 = vcombine.low %v877_v16, %v16681_v43 }
  0x6e   : > { %15188 = vmatmul.mubr.msk.bf16.gmra.mxu0 %vm1349_vm6, %v13844_v52  ;;  %v1082_v12 = vsel %vm16509_vm10, %v1077_v0, %v1081_v42  ;;  %v1090_v10 = vor.u32 %v1089_v1, %v1086_v51  ;;  %v1108_v13 = vshrl.u32 %v879_v56, 16  ;;  %v1111_v15 = vshll.u32 %v879_v56, 16  ;;  %v16709_v31 = vld [vmem:[#allocation2 + $0x68] sm:$0x1]  ;;  %v409_v51 = vld [vmem:[%s16498_s15 + $0x4c] sm:$0xf] }
  0x6f   : > { %v13845_v18 = vcombine.low %v1072_v63, %v1082_v12  ;;  %v1100_v19 = vor.u32 %v1099_v8, %v1095_v3  ;;  %15226 = vmatmul.mubr.msk.bf16.gmra.mxu1 %vm1349_vm6, %v13878_v11  ;;  %v1117_v20 = vshll.u32 %v16698_v2, 16  ;;  %v1121_v22 = vshrl.u32 %v16698_v2, 16  ;;  %v410_v58 = vld [vmem:[%s16498_s15 + $0x50] sm:$0xf]  ;;  %v814_v11 = vld [vmem:[#allocation2 + $0x78] sm:$0xf] }
  0x70   : > { %v1091_v25 = vrot.slane %v1090_v10, 4  ;;  %v1110_v26 = vrot.slane %v1108_v13, 4  ;;  %v1113_v16 = vrot.slane %v1111_v15, 5  ;;  %v13879_v27 = vcombine.low %v879_v56, %v16698_v2  ;;  %v411_v12 = vld [vmem:[%s16498_s15 + $0x54] sm:$0xf] }
  0x71   : > { %15191 = vmatprep.mubr.msk.bf16.mxu0 %vm1349_vm6, %v13845_v18  ;;  %v1101_v30 = vrot.slane %v1100_v19, 4  ;;  %v1119_v32 = vrot.slane %v1117_v20, 5  ;;  %v1123_v33 = vrot.slane %v1121_v22, 4  ;;  %v564_v36 = vrot.slane %v562_v34, 7  ;;  %v412_v10 = vld [vmem:[%s16498_s15 + $0x58] sm:$0xf] }
  0x72   : > { %v1096_v37 = vsel %vm16509_vm10, %v1091_v25, %v1095_v3  ;;  %v1114_v39 = vor.u32 %v1113_v16, %v1110_v26  ;;  %v1127_v42 = vshll.u32 %v16709_v31, 16  ;;  %15229 = vmatprep.mubr.msk.bf16.mxu1 %vm1349_vm6, %v13879_v27  ;;  %v572_v45 = vrot.slane %v570_v40, 7  ;;  %v818_v27 = vld [vmem:[#allocation2 + $0x80] sm:$0x1] }
  0x73   : > { %v1106_v53 = vsel %vm16509_vm10, %v1101_v30, %v1105_v9  ;;  %v1124_v56 = vor.u32 %v1123_v33, %v1119_v32  ;;  %v567_v34 = vor.u32 %v565_v35, %v564_v36  ;;  %v568_v57 = vrot.slane %v564_v36, 4 }
  0x74   : > { %v13846_v59 = vcombine.low %v1096_v37, %v1106_v53  ;;  %v1115_v60 = vrot.slane %v1114_v39, 4  ;;  %v1129_v52 = vrot.slane %v1127_v42, 5  ;;  %v573_v63 = vshll.u32 %v16636_v24, 16  ;;  %v413_v39 = vld [vmem:[%s16498_s15 + $0x5c] sm:$0xf] }
  0x75   : > { %v1125_v40 = vrot.slane %v1124_v56, 4  ;;  %v577_v0 = vrot.slane %v572_v45, 4  ;;  %v808_v1 = vsel %vm16517_vm11, %v567_v34, %v807_v28  ;;  %v579_v3 = vshrl.u32 %v408_v47, 16 }
  0x76   : > { %15192 = vmatmul.mubr.msk.bf16.gmra.mxu0 %vm1349_vm6, %v13846_v59  ;;  %v1120_v17 = vsel %vm16509_vm10, %v1115_v60, %v1119_v32  ;;  %v575_v35 = vor.u32 %v573_v63, %v572_v45  ;;  %809 = vst [vmem:[#allocation2 + $0x6c] sm:$0xf] %v808_v1  ;;  %v582_v8 = vshll.u32 %v408_v47, 16  ;;  %v587_v9 = vshrl.u32 %v409_v51, 16  ;;  %v828_v59 = vld [vmem:[#allocation2 + $0x90] sm:$0xf] }
  0x77   : > { %v1130_v24 = vsel %vm16509_vm10, %v1125_v40, %v1129_v52  ;;  %v812_v13 = vsel %vm16529_vm13, %v577_v0, %v811_v46  ;;  %v581_v15 = vrot.slane %v579_v3, 7  ;;  %v590_v18 = vshll.u32 %v409_v51, 16  ;;  %v821_v46 = vld [vmem:[#allocation2 + $0x84] sm:$0xf] }
  0x78   : > { %v13847_v19 = vcombine.low %v1120_v17, %v1130_v24  ;;  %v576_v20 = vsel %vm16523_vm12, %v568_v57, %v575_v35  ;;  %813 = vst [vmem:[#allocation2 + $0x74] sm:$0x1] %v812_v13  ;;  %v589_v22 = vrot.slane %v587_v9, 7  ;;  %v596_v25 = vshrl.u32 %v410_v58, 16 }
  0x79   : > { %810 = vst.msk [vmem:[#allocation2 + $0x70] sm:$0xf] %vm334_vm2, %v576_v20  ;;  %v584_v26 = vor.u32 %v582_v8, %v581_v15  ;;  %v585_v16 = vrot.slane %v581_v15, 4  ;;  %v599_v28 = vshll.u32 %v410_v58, 16  ;;  %v604_v30 = vshrl.u32 %v411_v12, 16 }
  0x7a   : > { %15195 = vmatprep.mubr.msk.bf16.mxu0 %vm1349_vm6, %v13847_v19  ;;  %v592_v32 = vor.u32 %v590_v18, %v589_v22  ;;  %v594_v33 = vrot.slane %v589_v22, 4  ;;  %v598_v36 = vrot.slane %v596_v25, 7  ;;  %v607_v37 = vshll.u32 %v411_v12, 16  ;;  %v825_v58 = vld [vmem:[#allocation2 + $0x8c] sm:$0x1] }
  0x7b   : > { %v815_v42 = vsel %vm16517_vm11, %v584_v26, %v814_v11  ;;  %v606_v45 = vrot.slane %v604_v30, 7  ;;  %v613_v47 = vshrl.u32 %v412_v10, 16  ;;  %v616_v51 = vshll.u32 %v412_v10, 16  ;;  %v16753_v8 = vld [vmem:[%s16498_s15 + $0x60] sm:$0xf] }
  0x7c   : > { %v593_v53 = vsel %vm16523_vm12, %v585_v16, %v592_v32  ;;  %816 = vst [vmem:[#allocation2 + $0x78] sm:$0xf] %v815_v42  ;;  %v819_v56 = vsel %vm16529_vm13, %v594_v33, %v818_v27  ;;  %v601_v34 = vor.u32 %v599_v28, %v598_v36  ;;  %v602_v57 = vrot.slane %v598_v36, 4  ;;  %v832_v27 = vld [vmem:[#allocation2 + $0x98] sm:$0x1] }
  0x7d   : > { %v881_v60 = vld [vmem:[#allocation2 + $0x6c] sm:$0xf]  ;;  %817 = vst.msk [vmem:[#allocation2 + $0x7c] sm:$0xf] %vm334_vm2, %v593_v53  ;;  %820 = vst [vmem:[#allocation2 + $0x80] sm:$0x1] %v819_v56  ;;  %v609_v52 = vor.u32 %v607_v37, %v606_v45 }
  0x7e   : > { %v611_v63 = vrot.slane %v606_v45, 4  ;;  %v615_v40 = vrot.slane %v613_v47, 7  ;;  %v621_v0 = vshrl.u32 %v413_v39, 16  ;;  %v1132_v1 = vshrl.u32 %v881_v60, 16 }
  0x7f   : > { %v1135_v3 = vshll.u32 %v881_v60, 16  ;;  %v822_v17 = vsel %vm16517_vm11, %v601_v34, %v821_v46  ;;  %v624_v35 = vshll.u32 %v413_v39, 16  ;;  %v16755_v9 = vld [vmem:[#allocation2 + $0x74] sm:$0x1]  ;;  %v610_v11 = vsel %vm16523_vm12, %v602_v57, %v609_v52 }
  0x80   : > { %823 = vst [vmem:[#allocation2 + $0x84] sm:$0xf] %v822_v17  ;;  %v826_v12 = vsel %vm16529_vm13, %v611_v63, %v825_v58  ;;  %v618_v10 = vor.u32 %v616_v51, %v615_v40  ;;  %v619_v24 = vrot.slane %v615_v40, 4  ;;  %v16761_v13 = vld [vmem:[#allocation2 + $0x70] sm:$0xf]  ;;  %v1134_v15 = vrot.slane %v1132_v1, 4 }
  0x81   : > { %v1137_v18 = vrot.slane %v1135_v3, 5  ;;  %v1151_v19 = vshll.u32 %v16755_v9, 16  ;;  %824 = vst.msk [vmem:[#allocation2 + $0x88] sm:$0xf] %vm334_vm2, %v610_v11  ;;  %827 = vst [vmem:[#allocation2 + $0x8c] sm:$0x1] %v826_v12  ;;  %v13880_v26 = vcombine.low %v881_v60, %v16761_v13 }
  0x82   : > { %v623_v20 = vrot.slane %v621_v0, 7  ;;  %v1141_v22 = vshll.u32 %v16761_v13, 16  ;;  %v1145_v25 = vshrl.u32 %v16761_v13, 16  ;;  %v829_v16 = vsel %vm16517_vm11, %v618_v10, %v828_v59 }
  0x83   : > { %v1138_v28 = vor.u32 %v1137_v18, %v1134_v15  ;;  %v1153_v30 = vrot.slane %v1151_v19, 5  ;;  %830 = vst [vmem:[#allocation2 + $0x90] sm:$0xf] %v829_v16  ;;  %15230 = vmatmul.mubr.msk.bf16.gmra.mxu1 %vm1349_vm6, %v13880_v26  ;;  %v883_v39 = vld [vmem:[#allocation2 + $0x78] sm:$0xf]  ;;  %v630_v42 = vshrl.u32 %v16753_v8, 16 }
  0x84   : > { %v626_v32 = vor.u32 %v624_v35, %v623_v20  ;;  %v628_v33 = vrot.slane %v623_v20, 4  ;;  %v1143_v36 = vrot.slane %v1141_v22, 5  ;;  %v1147_v37 = vrot.slane %v1145_v25, 4  ;;  %v16773_v47 = vld [vmem:[#allocation2 + $0x7c] sm:$0xf] }
  0x85   : > { %v633_v45 = vshll.u32 %v16753_v8, 16  ;;  %v1139_v46 = vrot.slane %v1138_v28, 4  ;;  %v16775_v51 = vld [vmem:[#allocation2 + $0x80] sm:$0x1]  ;;  %v1156_v53 = vshrl.u32 %v883_v39, 16  ;;  %v1159_v58 = vshll.u32 %v883_v39, 16 }
  0x86   : > { %v627_v56 = vsel %vm16523_vm12, %v619_v24, %v626_v32  ;;  %v833_v34 = vsel %vm16529_vm13, %v628_v33, %v832_v27  ;;  %v1148_v57 = vor.u32 %v1147_v37, %v1143_v36  ;;  %v1165_v59 = vshll.u32 %v16773_v47, 16 }
  0x87   : > { %v1169_v60 = vshrl.u32 %v16773_v47, 16  ;;  %831 = vst.msk [vmem:[#allocation2 + $0x94] sm:$0xf] %vm334_vm2, %v627_v56  ;;  %834 = vst [vmem:[#allocation2 + $0x98] sm:$0x1] %v833_v34  ;;  %v1144_v52 = vsel %vm16509_vm10, %v1139_v46, %v1143_v36  ;;  %v1158_v63 = vrot.slane %v1156_v53, 4  ;;  %v13881_v0 = vcombine.low %v883_v39, %v16773_v47 }
  0x88   : > { %v1175_v40 = vshll.u32 %v16775_v51, 16  ;;  %v885_v1 = vld [vmem:[#allocation2 + $0x84] sm:$0xf]  ;;  %v1149_v3 = vrot.slane %v1148_v57, 4  ;;  %v1161_v17 = vrot.slane %v1159_v58, 5  ;;  %v1167_v35 = vrot.slane %v1165_v59, 5 }
  0x89   : > { %v1171_v11 = vrot.slane %v1169_v60, 4  ;;  %v16788_v12 = vld [vmem:[#allocation2 + $0x88] sm:$0xf]  ;;  %15233 = vmatprep.mubr.msk.bf16.mxu1 %vm1349_vm6, %v13881_v0  ;;  %v16791_v24 = vld [vmem:[#allocation2 + $0x8c] sm:$0x1]  ;;  %v1180_v15 = vshrl.u32 %v885_v1, 16 }
  0x8a   : > { %v1177_v10 = vrot.slane %v1175_v40, 5  ;;  %v1183_v18 = vshll.u32 %v885_v1, 16  ;;  %v1189_v19 = vshll.u32 %v16788_v12, 16  ;;  %v1154_v20 = vsel %vm16509_vm10, %v1149_v3, %v1153_v30  ;;  %v887_v16 = vld [vmem:[#allocation2 + $0x90] sm:$0xf] }
  0x8b   : > { %v1162_v22 = vor.u32 %v1161_v17, %v1158_v63  ;;  %v1172_v25 = vor.u32 %v1171_v11, %v1167_v35  ;;  %v1193_v26 = vshrl.u32 %v16788_v12, 16  ;;  %v13848_v27 = vcombine.low %v1144_v52, %v1154_v20 }
  0x8c   : > { %v1182_v28 = vrot.slane %v1180_v15, 4  ;;  %v1185_v32 = vrot.slane %v1183_v18, 5  ;;  %v1191_v33 = vrot.slane %v1189_v19, 5  ;;  %v1199_v46 = vshll.u32 %v16791_v24, 16  ;;  %v415_v18 = vld [vmem:[%s16498_s15 + $0x64] sm:$0xf] }
  0x8d   : > { %v1163_v36 = vrot.slane %v1162_v22, 4  ;;  %v1173_v37 = vrot.slane %v1172_v25, 4  ;;  %v1195_v39 = vrot.slane %v1193_v26, 4  ;;  %15196 = vmatmul.mubr.msk.bf16.gmra.mxu0 %vm1349_vm6, %v13848_v27  ;;  %v13882_v56 = vcombine.low %v885_v1, %v16788_v12  ;;  %v835_v25 = vld [vmem:[#allocation2 + $0x9c] sm:$0xf] }
  0x8e   : > { %v1186_v53 = vor.u32 %v1185_v32, %v1182_v28  ;;  %v16800_v30 = vld [vmem:[#allocation2 + $0x94] sm:$0xf]  ;;  %v16802_v34 = vld [vmem:[#allocation2 + $0x98] sm:$0x1]  ;;  %v1204_v57 = vshrl.u32 %v887_v16, 16  ;;  %v1207_v58 = vshll.u32 %v887_v16, 16 }
  0x8f   : > { %v1168_v59 = vsel %vm16509_vm10, %v1163_v36, %v1167_v35  ;;  %v1178_v60 = vsel %vm16509_vm10, %v1173_v37, %v1177_v10  ;;  %v1196_v52 = vor.u32 %v1195_v39, %v1191_v33  ;;  %v1201_v63 = vrot.slane %v1199_v46, 5  ;;  %15234 = vmatmul.mubr.msk.bf16.gmra.mxu1 %vm1349_vm6, %v13882_v56  ;;  %v416_v26 = vld [vmem:[%s16498_s15 + $0x68] sm:$0xf]  ;;  %v417_v37 = vld [vmem:[%s16498_s15 + $0x6c] sm:$0xf] }
  0x90   : > { %v13849_v40 = vcombine.low %v1168_v59, %v1178_v60  ;;  %v1187_v0 = vrot.slane %v1186_v53, 4  ;;  %v1206_v1 = vrot.slane %v1204_v57, 4  ;;  %v1209_v3 = vrot.slane %v1207_v58, 5  ;;  %v418_v53 = vld [vmem:[%s16498_s15 + $0x70] sm:$0xf] }
  0x91   : > { %v1197_v17 = vrot.slane %v1196_v52, 4  ;;  %v1213_v11 = vshll.u32 %v16800_v30, 16  ;;  %v1217_v15 = vshrl.u32 %v16800_v30, 16  ;;  %v1223_v35 = vshll.u32 %v16802_v34, 16  ;;  %v419_v59 = vld [vmem:[%s16498_s15 + $0x74] sm:$0xf] }
  0x92   : > { %15199 = vmatprep.mubr.msk.bf16.mxu0 %vm1349_vm6, %v13849_v40  ;;  %v1192_v10 = vsel %vm16509_vm10, %v1187_v0, %v1191_v33  ;;  %v1210_v19 = vor.u32 %v1209_v3, %v1206_v1  ;;  %v13883_v20 = vcombine.low %v887_v16, %v16800_v30  ;;  %v632_v22 = vrot.slane %v630_v42, 7 }
  0x93   : > { %v1202_v27 = vsel %vm16509_vm10, %v1197_v17, %v1201_v63  ;;  %v1215_v28 = vrot.slane %v1213_v11, 5  ;;  %v1219_v32 = vrot.slane %v1217_v15, 4  ;;  %v1225_v36 = vrot.slane %v1223_v35, 5  ;;  %v842_v11 = vld [vmem:[#allocation2 + $0xa8] sm:$0xf] }
  0x94   : > { %v13850_v39 = vcombine.low %v1192_v10, %v1202_v27  ;;  %v1211_v46 = vrot.slane %v1210_v19, 4  ;;  %15237 = vmatprep.mubr.msk.bf16.mxu1 %vm1349_vm6, %v13883_v20  ;;  %v635_v16 = vor.u32 %v633_v45, %v632_v22  ;;  %v636_v33 = vrot.slane %v632_v22, 4  ;;  %v839_v45 = vld [vmem:[#allocation2 + $0xa4] sm:$0x1] }
  0x95   : > { %v1220_v42 = vor.u32 %v1219_v32, %v1215_v28  ;;  %v638_v56 = vshrl.u32 %v415_v18, 16  ;;  %v641_v57 = vshll.u32 %v415_v18, 16  ;;  %v647_v58 = vshrl.u32 %v416_v26, 16 }
  0x96   : > { %15200 = vmatmul.mubr.msk.bf16.gmra.mxu0 %vm1349_vm6, %v13850_v39  ;;  %v1216_v60 = vsel %vm16509_vm10, %v1211_v46, %v1215_v28  ;;  %v836_v52 = vsel %vm16517_vm11, %v635_v16, %v835_v25  ;;  %v650_v63 = vshll.u32 %v416_v26, 16  ;;  %v655_v40 = vshrl.u32 %v417_v37, 16  ;;  %v846_v25 = vld [vmem:[#allocation2 + $0xb0] sm:$0x1] }
  0x97   : > { %v1221_v0 = vrot.slane %v1220_v42, 4  ;;  %v640_v8 = vrot.slane %v638_v56, 7  ;;  %837 = vst [vmem:[#allocation2 + $0x9c] sm:$0xf] %v836_v52  ;;  %v649_v1 = vrot.slane %v647_v58, 7  ;;  %v658_v3 = vshll.u32 %v417_v37, 16 }
  0x98   : > { %v657_v17 = vrot.slane %v655_v40, 7  ;;  %v664_v15 = vshrl.u32 %v418_v53, 16  ;;  %v667_v35 = vshll.u32 %v418_v53, 16  ;;  %v672_v18 = vshrl.u32 %v419_v59, 16  ;;  %v1858_v53 = vld [vmem:[#allocation2] sm:$0xe] }
  0x99   : > { %v1226_v10 = vsel %vm16509_vm10, %v1221_v0, %v1225_v36  ;;  %v643_v19 = vor.u32 %v641_v57, %v640_v8  ;;  %v645_v20 = vrot.slane %v640_v8, 4  ;;  %v652_v22 = vor.u32 %v650_v63, %v649_v1  ;;  %v849_v57 = vld [vmem:[#allocation2 + $0xb4] sm:$0xf]  ;;  %v1859_v58 = vld [vmem:[#allocation2 + $0xc] sm:$0xe] }
  0x9a   : > { %v13851_v26 = vcombine.low %v1216_v60, %v1226_v10  ;;  %v653_v27 = vrot.slane %v649_v1, 4  ;;  %v660_v28 = vor.u32 %v658_v3, %v657_v17  ;;  %v662_v32 = vrot.slane %v657_v17, 4  ;;  %v853_v63 = vld [vmem:[#allocation2 + $0xbc] sm:$0x1]  ;;  %v16167_v3 = vld [vmem:[#allocation2 + $0x4] sm:$0xf] }
  0x9b   : > { %v644_v39 = vsel %vm16523_vm12, %v636_v33, %v643_v19  ;;  %v840_v37 = vsel %vm16529_vm13, %v645_v20, %v839_v45  ;;  %v843_v46 = vsel %vm16517_vm11, %v652_v22, %v842_v11  ;;  %v666_v16 = vrot.slane %v664_v15, 7  ;;  %v14034_v22 = vld [vmem:[%s21930_s1 + $0xa] sm:$0x3] }
  0x9c   : > { %15203 = vmatprep.mubr.msk.bf16.mxu0 %vm1349_vm6, %v13851_v26  ;;  %838 = vst.msk [vmem:[#allocation2 + $0xa0] sm:$0xf] %vm334_vm2, %v644_v39  ;;  %841 = vst [vmem:[#allocation2 + $0xa4] sm:$0x1] %v840_v37  ;;  %v661_v36 = vsel %vm16523_vm12, %v653_v27, %v660_v28  ;;  %v847_v33 = vsel %vm16529_vm13, %v662_v32, %v846_v25  ;;  %v674_v42 = vrot.slane %v672_v18, 7  ;;  %v675_v56 = vshll.u32 %v419_v59, 16 }
  0x9d   : > { %844 = vst [vmem:[#allocation2 + $0xa8] sm:$0xf] %v843_v46  ;;  %845 = vst.msk [vmem:[#allocation2 + $0xac] sm:$0xf] %vm334_vm2, %v661_v36  ;;  %v669_v60 = vor.u32 %v667_v35, %v666_v16  ;;  %v670_v52 = vrot.slane %v666_v16, 4  ;;  %vm1907_vm15 = vcmask 1046532  }
  0x9e   : > { %848 = vst [vmem:[#allocation2 + $0xb0] sm:$0x1] %v847_v33  ;;  %v889_v40 = vld [vmem:[#allocation2 + $0x9c] sm:$0xf]  ;;  %v677_v0 = vor.u32 %v675_v56, %v674_v42  ;;  %v679_v8 = vrot.slane %v674_v42, 4  ;;  %vm16848_vm0 = vmor %vm1906_vm14, %vm1907_vm15  ;;  %v21981_v45 = vmov 0 }
  0x9f   : > { %v21982_v45 = vsel %vm16848_vm0, 4294967295, %v21981_v45  ;;  %v13903_v1 = vrot.slane %v1858_v53, 9  ;;  %v1911_v59 = vrot.slane %v16167_v3, 5  ;;  %v1228_v17 = vshrl.u32 %v889_v40, 16  ;;  %v16854_v18 = vld [vmem:[#allocation2 + $0x18] sm:$0xe] }
  0xa0   : > { %21983 = vst [vmem:[#allocation18_spill] sm:$0xff] %v21982_v45  ;;  %v1231_v11 = vshll.u32 %v889_v40, 16  ;;  %v850_v15 = vsel %vm16517_vm11, %v669_v60, %v849_v57  ;;  %v13904_v35 = vrot.slane %v1859_v58, 9  ;;  %v678_v10 = vsel %vm16523_vm12, %v670_v52, %v677_v0  ;;  %v16877_v37 = vld [vmem:[#allocation2 + $0x1c] sm:$0xf]  ;;  %v16010_v39 = vld [vmem:[#allocation2 + $0xc] sm:$0xff]  }
  0xa1   : > { %851 = vst [vmem:[#allocation2 + $0xb4] sm:$0xf] %v850_v15  ;;  %v854_v19 = vsel %vm16529_vm13, %v679_v8, %v853_v63  ;;  %v1913_v20 = vrot.slane %v1911_v59, 4  ;;  %v1230_v25 = vrot.slane %v1228_v17, 4  ;;  %852 = vst.msk [vmem:[#allocation2 + $0xb8] sm:$0xf] %vm334_vm2, %v678_v10  ;;  %v16866_v27 = vsel %vm16848_vm0, %v13903_v1, %v1911_v59 }
  0xa2   : > { %v1233_v26 = vrot.slane %v1231_v11, 5  ;;  %855 = vst [vmem:[#allocation2 + $0xbc] sm:$0x1] %v854_v19  ;;  %v1920_v28 = vrot.slane %v1918_v61, 4  ;;  %v16874_v32 = vsel %vm16848_vm0, %v13904_v35, %v1918_v61  ;;  %v1925_v46 = vrot.slane %v16877_v37, 5 }
  0xa3   : > { %v16880_v16 = vld [vmem:[#allocation2 + $0x20] sm:$0x1]  ;;  %v16885_v33 = vld [vmem:[#allocation2 + $0xa4] sm:$0x1]  ;;  %v16891_v61 = vsel %vm16848_vm0, %v1913_v20, %v1914_v21  ;;  %v16900_v57 = vand.u32 %v14034_v22, %v16371_v5  ;;  %vm5495_vm1 = vcmask 125952   ;;  %vm6575_vm3 = vcmask 130048  }
  0xa4   : > { %v16883_v36 = vld [vmem:[#allocation2 + $0xa0] sm:$0xf]  ;;  %v1234_v42 = vor.u32 %v1233_v26, %v1230_v25  ;;  %v891_v48 = vld [vmem:[#allocation2 + $0xa8] sm:$0xf]  ;;  %v16897_v56 = vsel %vm16848_vm0, %v1920_v28, %v1921_v62  ;;  %v1247_v52 = vshll.u32 %v16885_v33, 16  ;;  %vm18794_vm4 = vmand %vm5495_vm1, %vm747_vm9  ;;  %vm10816_vm8 = vcmask 253952  }
  0xa5   : > { %v1237_v58 = vshll.u32 %v16883_v36, 16  ;;  %v1241_v60 = vshrl.u32 %v16883_v36, 16  ;;  %v13884_v14 = vcombine.low %v889_v40, %v16883_v36  ;;  %v16906_v63 = vld [vmem:[#allocation2 + $0xac] sm:$0xf]  ;;  %v16908_v0 = vld [vmem:[#allocation2 + $0xb0] sm:$0x1]  ;;  %15347 = vmatprep.subr.bf16.mxu1 %v16900_v57  ;;  %vm20976_vm9 = vmand %vm10816_vm8, %vm422_vm7 }
  0xa6   : > { %v1235_v21 = vrot.slane %v1234_v42, 4  ;;  %v1252_v50 = vshrl.u32 %v891_v48, 16  ;;  %v1255_v8 = vshll.u32 %v891_v48, 16  ;;  %v1261_v62 = vshll.u32 %v16906_v63, 16 }
  0xa7   : > { %v1239_v1 = vrot.slane %v1237_v58, 5  ;;  %v1243_v3 = vrot.slane %v1241_v60, 4  ;;  %v1249_v59 = vrot.slane %v1247_v52, 5  ;;  %15238 = vmatmul.mubr.msk.bf16.gmra.mxu1 %vm1349_vm6, %v13884_v14  ;;  %v1265_v17 = vshrl.u32 %v16906_v63, 16 }
  0xa8   : > { %v1254_v11 = vrot.slane %v1252_v50, 4  ;;  %v1257_v40 = vrot.slane %v1255_v8, 5  ;;  %v1263_v15 = vrot.slane %v1261_v62, 5  ;;  %v1271_v35 = vshll.u32 %v16908_v0, 16  ;;  %v893_v10 = vld [vmem:[#allocation2 + $0xb4] sm:$0xf] }
  0xa9   : > { %v1240_v19 = vsel %vm16509_vm10, %v1235_v21, %v1239_v1  ;;  %v1244_v20 = vor.u32 %v1243_v3, %v1239_v1  ;;  %v1267_v22 = vrot.slane %v1265_v17, 4  ;;  %v13885_v25 = vcombine.low %v891_v48, %v16906_v63  ;;  %v16918_v26 = vld [vmem:[#allocation2 + $0xb8] sm:$0xf]  ;;  %v16920_v28 = vld [vmem:[#allocation2 + $0xbc] sm:$0x1] }
  0xaa   : > { %v1258_v42 = vor.u32 %v1257_v40, %v1254_v11  ;;  %v1273_v58 = vrot.slane %v1271_v35, 5  ;;  %v1276_v60 = vshrl.u32 %v893_v10, 16  ;;  %v1279_v52 = vshll.u32 %v893_v10, 16 }
  0xab   : > { %v1245_v14 = vrot.slane %v1244_v20, 4  ;;  %v1268_v50 = vor.u32 %v1267_v22, %v1263_v15  ;;  %15241 = vmatprep.mubr.msk.bf16.mxu1 %vm1349_vm6, %v13885_v25  ;;  %v1285_v8 = vshll.u32 %v16918_v26, 16  ;;  %v1289_v21 = vshrl.u32 %v16918_v26, 16 }
  0xac   : > { %v1259_v62 = vrot.slane %v1258_v42, 4  ;;  %v1278_v1 = vrot.slane %v1276_v60, 4  ;;  %v1281_v3 = vrot.slane %v1279_v52, 5  ;;  %v1295_v48 = vshll.u32 %v16920_v28, 16 }
  0xad   : > { %v1250_v17 = vsel %vm16509_vm10, %v1245_v14, %v1249_v59  ;;  %v1269_v11 = vrot.slane %v1268_v50, 4  ;;  %v1287_v40 = vrot.slane %v1285_v8, 5  ;;  %v1291_v35 = vrot.slane %v1289_v21, 4  ;;  %v1862_v14 = vld [vmem:[#allocation2 + $0x30] sm:$0xe] }
  0xae   : > { %v13852_v20 = vcombine.low %v1240_v19, %v1250_v17  ;;  %v1264_v22 = vsel %vm16509_vm10, %v1259_v62, %v1263_v15  ;;  %v1282_v25 = vor.u32 %v1281_v3, %v1278_v1  ;;  %v1297_v53 = vrot.slane %v1295_v48, 5  ;;  %v16170_v62 = vld [vmem:[#allocation2 + $0x28] sm:$0xf]  ;;  %v16171_v3 = vld [vmem:[#allocation2 + $0x2c] sm:$0x1] }
  0xaf   : > { %v1274_v42 = vsel %vm16509_vm10, %v1269_v11, %v1273_v58  ;;  %v1292_v60 = vor.u32 %v1291_v35, %v1287_v40  ;;  %v13886_v52 = vcombine.low %v893_v10, %v16918_v26  ;;  %v13921_v59 = vcombine.low %v16874_v32, %v16897_v56  ;;  %v16172_v11 = vld [vmem:[#allocation2 + $0x34] sm:$0xf]  ;;  %v1863_v35 = vld [vmem:[#allocation2 + $0x3c] sm:$0xe]  ;;  %v1872_v56 = vld [vmem:[#allocation2 + $0xa8] sm:$0xe] }
  0xb0   : > { %15204 = vmatmul.mubr.msk.bf16.gmra.mxu0 %vm1349_vm6, %v13852_v20  ;;  %v13853_v50 = vcombine.low %v1264_v22, %v1274_v42  ;;  %v1283_v19 = vrot.slane %v1282_v25, 4  ;;  %v21984_v15 = vrot.slane %v16854_v18, 9  ;;  %v1927_v58 = vrot.slane %v1925_v46, 4 }
  0xb1   : > { %v1293_v10 = vrot.slane %v1292_v60, 4  ;;  %15242 = vmatmul.mubr.msk.bf16.gmra.mxu1 %vm1349_vm6, %v13886_v52  ;;  %v13906_v21 = vrot.slane %v1861_v6, 9  ;;  %v1932_v1 = vrot.slane %v16170_v62, 5  ;;  %v1935_v48 = vrot.slane %v16171_v3, 5  ;;  %v16173_v52 = vld [vmem:[#allocation2 + $0x38] sm:$0x1] }
  0xb2   : > { %v16942_v8 = vsel %vm16848_vm0, %v21984_v15, %v1925_v46  ;;  %15207 = vmatprep.mubr.msk.bf16.mxu0 %vm1349_vm6, %v13853_v50  ;;  %v1288_v18 = vsel %vm16509_vm10, %v1283_v19, %v1287_v40  ;;  %15281 = vmatprep.mubr.msk.bf16.mxu1 %vm1349_vm6, %v16010_v39  ;;  %v21985_v17 = vrot.slane %v16880_v16, 5  ;;  %v13907_v46 = vrot.slane %v1862_v14, 9  ;;  %v1864_v16 = vld [vmem:[#allocation2 + $0x48] sm:$0xe]  ;;  %v16011_v50 = vld [vmem:[#allocation2 + $0x18] sm:$0xff]  }
  0xb3   : > { %v1939_v6 = vrot.slane %v16172_v11, 5  ;;  %v1298_v20 = vsel %vm16509_vm10, %v1293_v10, %v1297_v53  ;;  %v13920_v22 = vcombine.low %v16866_v27, %v16891_v61  ;;  %v16963_v40 = vsel %vm16848_vm0, %v13906_v21, %v1932_v1  ;;  %v1865_v15 = vld [vmem:[#allocation2 + $0x54] sm:$0xe]  ;;  %v16012_v10 = vld [vmem:[#allocation2 + $0x24] sm:$0xff]   ;;  %v1866_v3 = vld [vmem:[#allocation2 + $0x60] sm:$0xe] }
  0xb4   : > { %v16955_v37 = vsel %vm16848_vm0, %v1927_v58, %v21985_v17  ;;  %v1934_v39 = vrot.slane %v1932_v1, 4  ;;  %v13854_v25 = vcombine.low %v1288_v18, %v1298_v20  ;;  %v1942_v14 = vrot.slane %v16173_v52, 5 }
  0xb5   : > { %v13922_v42 = vcombine.low %v16942_v8, %v16955_v37  ;;  %v1941_v60 = vrot.slane %v1939_v6, 4  ;;  %v13908_v19 = vrot.slane %v1863_v35, 9  ;;  %v1946_v27 = vrot.slane %v16651_v54, 5 }
  0xb6   : > { %v16969_v53 = vsel %vm16848_vm0, %v1934_v39, %v1935_v48  ;;  %v1949_v61 = vrot.slane %v16653_v55, 5  ;;  %v16977_v21 = vsel %vm16848_vm0, %v13907_v46, %v1939_v6  ;;  %v13909_v62 = vrot.slane %v1864_v16, 9  ;;  %v1867_v39 = vld [vmem:[#allocation2 + $0x6c] sm:$0xe] }
  0xb7   : > { %v13923_v58 = vcombine.low %v16963_v40, %v16969_v53  ;;  %v1953_v1 = vrot.slane %v16663_v4, 5  ;;  %v16982_v48 = vsel %vm16848_vm0, %v1941_v60, %v1942_v14  ;;  %v16986_v54 = vsel %vm16848_vm0, %v13908_v19, %v1946_v27  ;;  %v1868_v60 = vld [vmem:[#allocation2 + $0x78] sm:$0xe] }
  0xb8   : > { %v1948_v55 = vrot.slane %v1946_v27, 4  ;;  %v1956_v18 = vrot.slane %v16665_v7, 5  ;;  %15208 = vmatmul.mubr.msk.bf16.gmra.mxu0 %vm1349_vm6, %v13854_v25  ;;  %v13910_v4 = vrot.slane %v1865_v15, 9  ;;  %v1960_v11 = vrot.slane %v16681_v43, 5  ;;  %v1869_v15 = vld [vmem:[#allocation2 + $0x84] sm:$0xe] }
  0xb9   : > { %v16992_v17 = vsel %vm16848_vm0, %v13909_v62, %v1953_v1  ;;  %v1955_v46 = vrot.slane %v1953_v1, 4  ;;  %15247 = vmatprep.mubr.msk.bf16.mxu0 %vm1349_vm6, %v13920_v22  ;;  %15282 = vmatmul.mubr.msk.bf16.vlgmr.msra.gmra.mxu1 %vm1349_vm6, %v16011_v50  ;;  %v1963_v7 = vrot.slane %v16683_v44, 5  ;;  %v13911_v35 = vrot.slane %v1866_v3, 9  ;;  %v1870_v1 = vld [vmem:[#allocation2 + $0x90] sm:$0xe] }
  0xba   : > { %v16999_v6 = vsel %vm16848_vm0, %v1948_v55, %v1949_v61  ;;  %v1967_v20 = vrot.slane %v16698_v2, 5  ;;  %15285 = vmatprep.mubr.msk.bf16.mxu1 %vm1349_vm6, %v16012_v10  ;;  %v13924_v16 = vcombine.low %v16977_v21, %v16982_v48  ;;  %v17012_v22 = vsel %vm16848_vm0, %v13910_v4, %v1960_v11  ;;  %15348 = vmatpush3.bf16.msra.mxu1 %v16900_v57  ;;  %v16013_v3 = vld [vmem:[#allocation2 + $0x30] sm:$0xff]  }
  0xbb   : > { %v17008_v43 = vsel %vm16848_vm0, %v1955_v46, %v1956_v18  ;;  %v1962_v25 = vrot.slane %v1960_v11, 4  ;;  %v13925_v44 = vcombine.low %v16986_v54, %v16999_v6  ;;  %v1970_v14 = vrot.slane %v16709_v31, 5  ;;  %v16014_v46 = vld [vmem:[#allocation2 + $0x3c] sm:$0xff]  }
  0xbc   : > { %v13926_v2 = vcombine.low %v16992_v17, %v17008_v43  ;;  %v1969_v52 = vrot.slane %v1967_v20, 4  ;;  %v13912_v19 = vrot.slane %v1867_v39, 9  ;;  %v1974_v27 = vrot.slane %v16761_v13, 5 }
  0xbd   : > { %v17022_v50 = vsel %vm16848_vm0, %v1962_v25, %v1963_v7  ;;  %v1977_v61 = vrot.slane %v16755_v9, 5  ;;  %v17030_v10 = vsel %vm16848_vm0, %v13911_v35, %v1967_v20  ;;  %v13913_v62 = vrot.slane %v1868_v60, 9  ;;  %v1871_v25 = vld [vmem:[#allocation2 + $0x9c] sm:$0xe] }
  0xbe   : > { %v13927_v57 = vcombine.low %v17012_v22, %v17022_v50  ;;  %v1981_v31 = vrot.slane %v16773_v47, 5  ;;  %v17035_v55 = vsel %vm16848_vm0, %v1969_v52, %v1970_v14  ;;  %v17039_v9 = vsel %vm16848_vm0, %v13912_v19, %v1974_v27  ;;  %v1873_v19 = vld [vmem:[#allocation2 + $0xb4] sm:$0xe] }
  0xbf   : > { %v1976_v13 = vrot.slane %v1974_v27, 4  ;;  %v1984_v18 = vrot.slane %v16775_v51, 5  ;;  %v13914_v47 = vrot.slane %v1869_v15, 9  ;;  %v1988_v7 = vrot.slane %v16788_v12, 5 }
  0xc0   : > { %v17044_v4 = vsel %vm16848_vm0, %v13913_v62, %v1981_v31  ;;  %v1983_v11 = vrot.slane %v1981_v31, 4  ;;  %15248 = vmatmul.mubr.msk.bf16.vlgmr.msra.gmra.mxu0 %vm1349_vm6, %v13921_v59  ;;  %v1991_v51 = vrot.slane %v16791_v24, 5  ;;  %v13915_v20 = vrot.slane %v1870_v1, 9  ;;  %v420_v62 = vld [vmem:[%s16498_s15 + $0x78] sm:$0xf] }
  0xc1   : > { %v17053_v35 = vsel %vm16848_vm0, %v1976_v13, %v1977_v61  ;;  %v1995_v39 = vrot.slane %v16800_v30, 5  ;;  %15314 = vmatpush3.bf16.msra.mxu0 %v16688_v23  ;;  %15251 = vmatprep.mubr.msk.bf16.mxu0 %vm1349_vm6, %v13922_v42  ;;  %v17070_v24 = vsel %vm16848_vm0, %v13914_v47, %v1988_v7  ;;  %v1990_v30 = vrot.slane %v1988_v7, 4  ;;  %v421_v31 = vld [vmem:[%s16498_s15 + $0x7c] sm:$0xf]  ;;  %v2673_v13 = vld [vmem:[#allocation2 + $0xc] sm:$0xf] }
  0xc2   : > { %v13929_v12 = vcombine.low %v17039_v9, %v17053_v35  ;;  %v17066_v32 = vsel %vm16848_vm0, %v1983_v11, %v1984_v18  ;;  %15286 = vmatmul.mubr.msk.bf16.gmra.mxu1 %vm1349_vm6, %v16013_v3  ;;  %v1998_v37 = vrot.slane %v16802_v34, 5  ;;  %v13916_v60 = vrot.slane %v1871_v25, 9  ;;  %v17103_v18 = vld [vmem:[#allocation2 + $0x10] sm:$0xf]  ;;  %s16194_s15 = scalar_lea.vmem %s13773_s27, 32 }
  0xc3   : > { %v13930_v23 = vcombine.low %v17044_v4, %v17066_v32  ;;  %v17077_v59 = vsel %vm16848_vm0, %v13915_v20, %v1995_v39  ;;  %v1997_v8 = vrot.slane %v1995_v39, 4  ;;  %15289 = vmatprep.mubr.msk.bf16.mxu1 %vm1349_vm6, %v16014_v46  ;;  %v17083_v42 = vsel %vm16848_vm0, %v1990_v30, %v1991_v51  ;;  %v16015_v46 = vld [vmem:[#allocation2 + $0x48] sm:$0xff]   ;;  %v16016_v51 = vld [vmem:[#allocation2 + $0x54] sm:$0xff]   ;;  %p16195_p11 = scmp.ne.s32.totalorder %s13773_s27, %s16194_s15  ;;  %p16202_p1 = scmp.lt.s32.totalorder %s16200_s18, %s16194_s15 }
  0xc4   : > { %v2002_v52 = vrot.slane %v16883_v36, 5  ;;  %v2005_v14 = vrot.slane %v16885_v33, 5  ;;  %v13931_v27 = vcombine.low %v17070_v24, %v17083_v42  ;;  %v13917_v34 = vrot.slane %v1872_v56, 9 }
  0xc5   : > { %v17091_v61 = vsel %vm16848_vm0, %v1997_v8, %v1998_v37  ;;  %v2009_v15 = vrot.slane %v16906_v63, 5  ;;  %v2012_v3 = vrot.slane %v16908_v0, 5  ;;  %v13918_v47 = vrot.slane %v1873_v19, 9  ;;  %p16196_p12 = pnand %p16195_p11, %p16353_p5  ;;  %p16203_p2 = por %p16202_p1, %p16201_p0 }
  0xc6   : > { %v13932_v1 = vcombine.low %v17077_v59, %v17091_v61  ;;  %v17100_v36 = vsel %vm16848_vm0, %v13916_v60, %v2002_v52  ;;  %v2004_v33 = vrot.slane %v2002_v52, 4  ;;  %v2016_v7 = vrot.slane %v16918_v26, 5  ;;  %v17140_v52 = vld [vmem:[#allocation2 + $0x14] sm:$0x1] }
  0xc7   : > { %v17107_v11 = vsel %vm16848_vm0, %v13917_v34, %v2009_v15  ;;  %v2011_v63 = vrot.slane %v2009_v15, 4  ;;  %v2019_v39 = vrot.slane %v16920_v28, 5  ;;  %v681_v0 = vshrl.u32 %v420_v62, 16  ;;  %v856_v28 = vld [vmem:[#allocation2 + $0xc0] sm:$0xf]  ;;  %p16197_p13 = pneg %p16196_p12 }
  0xc8   : > { %v17112_v20 = vsel %vm16848_vm0, %v2004_v33, %v2005_v14  ;;  %v684_v25 = vshll.u32 %v420_v62, 16  ;;  %15252 = vmatmul.mubr.msk.bf16.gmra.mxu0 %vm1349_vm6, %v13923_v58  ;;  %v17127_v56 = vsel %vm16848_vm0, %v13918_v47, %v2016_v7  ;;  %v2018_v8 = vrot.slane %v2016_v7, 4  ;;  %v14067_v62 = vld [vmem:[%s21930_s1 + $0xc] sm:$0x3]  ;;  %v16017_v47 = vld [vmem:[#allocation2 + $0x60] sm:$0xff]  }
  0xc9   : > { %v13933_v30 = vcombine.low %v17100_v36, %v17112_v20  ;;  %v17123_v26 = vsel %vm16848_vm0, %v2011_v63, %v2012_v3  ;;  %15255 = vmatprep.mubr.msk.bf16.mxu0 %vm1349_vm6, %v13924_v16  ;;  %v683_v53 = vrot.slane %v681_v0, 7  ;;  %v689_v58 = vshrl.u32 %v421_v31, 16  ;;  %v17152_v63 = vld [vmem:[#allocation2 + $0x1c] sm:$0xf]  ;;  %p16204_p3 = pnand %p16203_p2, %p16197_p13 }
  0xca   : > { %v692_v37 = vshll.u32 %v421_v31, 16  ;;  %15290 = vmatmul.mubr.msk.bf16.gmra.mxu1 %vm1349_vm6, %v16015_v46  ;;  %v17138_v60 = vsel %vm16848_vm0, %v2018_v8, %v2019_v39  ;;  %v2722_v14 = vshrl.u32 %v2673_v13, 16  ;;  %v2725_v19 = vshll.u32 %v2673_v13, 16  ;;  %v2676_v31 = vld [vmem:[#allocation2 + $0x18] sm:$0xf] }
  0xcb   : > { %v2731_v21 = vshll.u32 %v17103_v18, 16  ;;  %15293 = vmatprep.mubr.msk.bf16.mxu1 %vm1349_vm6, %v16016_v51  ;;  %v686_v16 = vor.u32 %v684_v25, %v683_v53  ;;  %v687_v34 = vrot.slane %v683_v53, 4  ;;  %v17146_v15 = vrot.slane %v689_v58, 7  ;;  %v17160_v25 = vld [vmem:[#allocation2 + $0x20] sm:$0x1] }
  0xcc   : > { %v2724_v33 = vrot.slane %v2722_v14, 4  ;;  %v2727_v3 = vrot.slane %v2725_v19, 5  ;;  %v2735_v13 = vshrl.u32 %v17103_v18, 16  ;;  %v13928_v7 = vcombine.low %v17030_v10, %v17035_v55  ;;  %v3399_v8 = vld [vmem:[#allocation2 + $0xc] sm:$0xe] }
  0xcd   : > { %v2733_v46 = vrot.slane %v2731_v21, 5  ;;  %v694_v51 = vor.u32 %v692_v37, %v17146_v15  ;;  %v857_v39 = vsel %vm16517_vm11, %v686_v16, %v856_v28  ;;  %v2741_v0 = vshll.u32 %v17140_v52, 16  ;;  %v16018_v21 = vld [vmem:[#allocation2 + $0x6c] sm:$0xff]  }
  0xce   : > { %858 = vst [vmem:[#allocation2 + $0xc0] sm:$0xf] %v857_v39  ;;  %v2728_v53 = vor.u32 %v2727_v3, %v2724_v33  ;;  %v2737_v58 = vrot.slane %v2735_v13, 4  ;;  %v17163_v14 = vand.u32 %v14067_v62, %v16371_v5  ;;  %v2746_v19 = vshrl.u32 %v2676_v31, 16  ;;  %v2679_v39 = vld [vmem:[#allocation2 + $0x24] sm:$0xf] }
  0xcf   : > { %v695_v48 = vsel %vm16523_vm12, %v687_v34, %v694_v51  ;;  %v2743_v37 = vrot.slane %v2741_v0, 5  ;;  %v2749_v40 = vshll.u32 %v2676_v31, 16  ;;  %v2755_v38 = vshll.u32 %v17152_v63, 16  ;;  %v3400_v51 = vld [vmem:[#allocation2 + $0x18] sm:$0xe] }
  0xd0   : > { %15256 = vmatmul.mubr.msk.bf16.gmra.mxu0 %vm1349_vm6, %v13925_v44  ;;  %859 = vst.msk [vmem:[#allocation2 + $0xc4] sm:$0xf] %vm334_vm2, %v695_v48  ;;  %v2729_v28 = vrot.slane %v2728_v53, 4  ;;  %v2738_v16 = vor.u32 %v2737_v58, %v2733_v46  ;;  %15381 = vmatprep.subr.bf16.mxu0 %v17163_v14  ;;  %v2748_v62 = vrot.slane %v2746_v19, 4  ;;  %v2759_v33 = vshrl.u32 %v17152_v63, 16 }
  0xd1   : > { %15259 = vmatprep.mubr.msk.bf16.mxu0 %vm1349_vm6, %v13926_v2  ;;  %v2751_v34 = vrot.slane %v2749_v40, 5  ;;  %v2757_v31 = vrot.slane %v2755_v38, 5  ;;  %v2765_v54 = vshll.u32 %v17160_v25, 16  ;;  %v14018_v6 = vrot.slane %v3399_v8, 9  ;;  %v17193_v53 = vld [vmem:[#allocation2 + $0x28] sm:$0xf] }
  0xd2   : > { %15294 = vmatmul.mubr.msk.bf16.gmra.mxu1 %vm1349_vm6, %v16017_v47  ;;  %v696_v44 = vrot.slane %v17146_v15, 4  ;;  %v2739_v48 = vrot.slane %v2738_v16, 4  ;;  %v2761_v3 = vrot.slane %v2759_v33, 4  ;;  %v3465_v13 = vrot.slane %v17103_v18, 5  ;;  %v17195_v58 = vld [vmem:[#allocation2 + $0x2c] sm:$0x1] }
  0xd3   : > { %15297 = vmatprep.mubr.msk.bf16.mxu1 %vm1349_vm6, %v16018_v21  ;;  %v2734_v17 = vsel %vm16509_vm10, %v2729_v28, %v2733_v46  ;;  %v2752_v43 = vor.u32 %v2751_v34, %v2748_v62  ;;  %v2767_v2 = vrot.slane %v2765_v54, 5  ;;  %v3468_v40 = vrot.slane %v17140_v52, 5  ;;  %v16019_v38 = vld [vmem:[#allocation2 + $0x78] sm:$0xff]   ;;  %v2682_v33 = vld [vmem:[#allocation2 + $0x30] sm:$0xf]  ;;  %v16020_v34 = vld [vmem:[#allocation2 + $0x84] sm:$0xff]  }
  0xd4   : > { %v2744_v47 = vsel %vm16509_vm10, %v2739_v48, %v2743_v37  ;;  %v2762_v0 = vor.u32 %v2761_v3, %v2757_v31  ;;  %v17191_v8 = vsel %vm16848_vm0, %v14018_v6, %v3465_v13  ;;  %v3467_v18 = vrot.slane %v3465_v13, 4 }
  0xd5   : > { %v2753_v19 = vrot.slane %v2752_v43, 4  ;;  %v14019_v46 = vrot.slane %v3400_v51, 9  ;;  %v3472_v21 = vrot.slane %v17152_v63, 5  ;;  %v3475_v52 = vrot.slane %v17160_v25, 5  ;;  %v17209_v25 = vld [vmem:[#allocation2 + $0x34] sm:$0xf] }
  0xd6   : > { %v2763_v28 = vrot.slane %v2762_v0, 4  ;;  %v17201_v37 = vsel %vm16848_vm0, %v3467_v18, %v3468_v40  ;;  %v2770_v16 = vshrl.u32 %v2679_v39, 16  ;;  %v2773_v62 = vshll.u32 %v2679_v39, 16  ;;  %v17218_v43 = vld [vmem:[#allocation2 + $0x38] sm:$0x1] }
  0xd7   : > { %v17203_v54 = vcombine.low %v2734_v17, %v2744_v47  ;;  %v2758_v6 = vsel %vm16509_vm10, %v2753_v19, %v2757_v31  ;;  %v14035_v63 = vcombine.low %v17191_v8, %v17201_v37  ;;  %v3474_v48 = vrot.slane %v3472_v21, 4 }
  0xd8   : > { %15260 = vmatmul.mubr.msk.bf16.gmra.mxu0 %vm1349_vm6, %v13927_v57  ;;  %v2768_v3 = vsel %vm16509_vm10, %v2763_v28, %v2767_v2  ;;  %v2772_v13 = vrot.slane %v2770_v16, 4  ;;  %v2775_v51 = vrot.slane %v2773_v62, 5  ;;  %v2779_v17 = vshll.u32 %v17193_v53, 16  ;;  %v3401_v2 = vld [vmem:[#allocation2 + $0x24] sm:$0xe] }
  0xd9   : > { %15263 = vmatprep.mubr.msk.bf16.mxu0 %vm1349_vm6, %v13928_v7  ;;  %v17224_v31 = vcombine.low %v2758_v6, %v2768_v3  ;;  %v17228_v22 = vsel %vm16848_vm0, %v14019_v46, %v3472_v21  ;;  %v2783_v50 = vshrl.u32 %v17193_v53, 16  ;;  %v2789_v57 = vshll.u32 %v17195_v58, 16  ;;  %v3402_v28 = vld [vmem:[#allocation2 + $0x30] sm:$0xe] }
  0xda   : > { %15298 = vmatmul.mubr.msk.bf16.gmra.mxu1 %vm1349_vm6, %v16019_v38  ;;  %v17235_v40 = vsel %vm16848_vm0, %v3474_v48, %v3475_v52  ;;  %v2776_v10 = vor.u32 %v2775_v51, %v2772_v13  ;;  %v2781_v55 = vrot.slane %v2779_v17, 5  ;;  %v2794_v7 = vshrl.u32 %v2682_v33, 16  ;;  %v16021_v48 = vld [vmem:[#allocation2 + $0x90] sm:$0xff]   ;;  %v2685_v51 = vld [vmem:[#allocation2 + $0x3c] sm:$0xf] }
  0xdb   : > { %15301 = vmatprep.mubr.msk.bf16.mxu1 %vm1349_vm6, %v16020_v34  ;;  %v2785_v39 = vrot.slane %v2783_v50, 4  ;;  %v2791_v47 = vrot.slane %v2789_v57, 5  ;;  %v2797_v0 = vshll.u32 %v2682_v33, 16  ;;  %v2803_v18 = vshll.u32 %v17209_v25, 16  ;;  %v16022_v17 = vld [vmem:[#allocation2 + $0x9c] sm:$0xff]  }
  0xdc   : > { %v2777_v19 = vrot.slane %v2776_v10, 4  ;;  %v2796_v46 = vrot.slane %v2794_v7, 4  ;;  %v2807_v21 = vshrl.u32 %v17209_v25, 16  ;;  %v2813_v38 = vshll.u32 %v17218_v43, 16 }
  0xdd   : > { %v2786_v16 = vor.u32 %v2785_v39, %v2781_v55  ;;  %v2799_v52 = vrot.slane %v2797_v0, 5  ;;  %v2805_v62 = vrot.slane %v2803_v18, 5  ;;  %v14020_v6 = vrot.slane %v3401_v2, 9  ;;  %v17247_v39 = vld [vmem:[#allocation2 + $0x40] sm:$0xf] }
  0xde   : > { %v14036_v34 = vcombine.low %v17228_v22, %v17235_v40  ;;  %v2782_v33 = vsel %vm16509_vm10, %v2777_v19, %v2781_v55  ;;  %v2809_v3 = vrot.slane %v2807_v21, 4  ;;  %v3479_v13 = vrot.slane %v17193_v53, 5  ;;  %v17254_v53 = vld [vmem:[#allocation2 + $0x44] sm:$0x1] }
  0xdf   : > { %v2787_v50 = vrot.slane %v2786_v16, 4  ;;  %v2800_v57 = vor.u32 %v2799_v52, %v2796_v46  ;;  %v3482_v10 = vrot.slane %v17195_v58, 5  ;;  %v14021_v7 = vrot.slane %v3402_v28, 9 }
  0xe0   : > { %15264 = vmatmul.mubr.msk.bf16.gmra.mxu0 %vm1349_vm6, %v13929_v12  ;;  %v2810_v2 = vor.u32 %v2809_v3, %v2805_v62  ;;  %v2815_v0 = vrot.slane %v2813_v38, 5  ;;  %v3481_v55 = vrot.slane %v3479_v13, 4  ;;  %v3486_v18 = vrot.slane %v17209_v25, 5  ;;  %v2688_v12 = vld [vmem:[#allocation2 + $0x48] sm:$0xf] }
  0xe1   : > { %15267 = vmatprep.mubr.msk.bf16.mxu0 %vm1349_vm6, %v13930_v23  ;;  %v2792_v58 = vsel %vm16509_vm10, %v2787_v50, %v2791_v47  ;;  %v2801_v19 = vrot.slane %v2800_v57, 4  ;;  %v17264_v9 = vsel %vm16848_vm0, %v14020_v6, %v3479_v13  ;;  %v2818_v35 = vshrl.u32 %v2685_v51, 16  ;;  %v17292_v3 = vld [vmem:[#allocation2 + $0x50] sm:$0x1] }
  0xe2   : > { %15302 = vmatmul.mubr.msk.bf16.gmra.mxu1 %vm1349_vm6, %v16021_v48  ;;  %v17267_v25 = vcombine.low %v2782_v33, %v2792_v58  ;;  %v2811_v46 = vrot.slane %v2810_v2, 4  ;;  %v17271_v4 = vsel %vm16848_vm0, %v3481_v55, %v3482_v10  ;;  %v3489_v32 = vrot.slane %v17218_v43, 5  ;;  %v17285_v43 = vld [vmem:[#allocation2 + $0x4c] sm:$0xf]  ;;  %v16024_v2 = vld [vmem:[#allocation2 + $0xb4] sm:$0xff]  }
  0xe3   : > { %15305 = vmatprep.mubr.msk.bf16.mxu1 %vm1349_vm6, %v16022_v17  ;;  %v2806_v23 = vsel %vm16509_vm10, %v2801_v19, %v2805_v62  ;;  %v17279_v47 = vsel %vm16848_vm0, %v14021_v7, %v3486_v18  ;;  %v3488_v21 = vrot.slane %v3486_v18, 4  ;;  %v2820_v38 = vrot.slane %v2818_v35, 4  ;;  %v16023_v17 = vld [vmem:[#allocation2 + $0xa8] sm:$0xff]   ;;  %v3403_v7 = vld [vmem:[#allocation2 + $0x3c] sm:$0xe] }
  0xe4   : > { %v2816_v28 = vsel %vm16509_vm10, %v2811_v46, %v2815_v0  ;;  %v2821_v16 = vshll.u32 %v2685_v51, 16  ;;  %v2827_v52 = vshll.u32 %v17247_v39, 16  ;;  %v2831_v6 = vshrl.u32 %v17247_v39, 16 }
  0xe5   : > { %v17287_v48 = vcombine.low %v2806_v23, %v2816_v28  ;;  %v14037_v62 = vcombine.low %v17264_v9, %v17271_v4  ;;  %v2837_v33 = vshll.u32 %v17254_v53, 16  ;;  %v2842_v13 = vshrl.u32 %v2688_v12, 16  ;;  %v3404_v23 = vld [vmem:[#allocation2 + $0x48] sm:$0xe]  ;;  %v3407_v4 = vld [vmem:[#allocation2 + $0x6c] sm:$0xe] }
  0xe6   : > { %v17296_v51 = vsel %vm16848_vm0, %v3488_v21, %v3489_v32  ;;  %v2823_v50 = vrot.slane %v2821_v16, 5  ;;  %v2829_v57 = vrot.slane %v2827_v52, 5  ;;  %v2833_v10 = vrot.slane %v2831_v6, 4 }
  0xe7   : > { %v2839_v0 = vrot.slane %v2837_v33, 5  ;;  %v2844_v55 = vrot.slane %v2842_v13, 4  ;;  %v2845_v18 = vshll.u32 %v2688_v12, 16  ;;  %v2851_v58 = vshll.u32 %v17285_v43, 16 }
  0xe8   : > { %15268 = vmatmul.mubr.msk.bf16.gmra.mxu0 %vm1349_vm6, %v13931_v27  ;;  %v2824_v19 = vor.u32 %v2823_v50, %v2820_v38  ;;  %v2834_v35 = vor.u32 %v2833_v10, %v2829_v57  ;;  %v2855_v46 = vshrl.u32 %v17285_v43, 16  ;;  %v2861_v32 = vshll.u32 %v17292_v3, 16  ;;  %v2692_v50 = vld [vmem:[#allocation2 + $0x58] sm:$0xf]  ;;  %v17323_v10 = vld [vmem:[#allocation2 + $0x5c] sm:$0x1] }
  0xe9   : > { %15271 = vmatprep.mubr.msk.bf16.mxu0 %vm1349_vm6, %v13932_v1  ;;  %v2847_v12 = vrot.slane %v2845_v18, 5  ;;  %v2853_v21 = vrot.slane %v2851_v58, 5  ;;  %v14022_v28 = vrot.slane %v3403_v7, 9  ;;  %v3493_v16 = vrot.slane %v17247_v39, 5  ;;  %v2691_v1 = vld [vmem:[#allocation2 + $0x54] sm:$0xf] }
  0xea   : > { %15306 = vmatmul.mubr.msk.bf16.gmra.mxu1 %vm1349_vm6, %v16023_v17  ;;  %v14038_v24 = vcombine.low %v17279_v47, %v17296_v51  ;;  %v2825_v42 = vrot.slane %v2824_v19, 4  ;;  %v2835_v27 = vrot.slane %v2834_v35, 4  ;;  %v2857_v38 = vrot.slane %v2855_v46, 4  ;;  %v16025_v18 = vld [vmem:[#allocation2 + $0xc0] sm:$0xff]  }
  0xeb   : > { %15309 = vmatprep.mubr.msk.bf16.mxu1 %vm1349_vm6, %v16024_v2  ;;  %v2848_v52 = vor.u32 %v2847_v12, %v2844_v55  ;;  %v2863_v6 = vrot.slane %v2861_v32, 5  ;;  %v3495_v59 = vrot.slane %v3493_v16, 4  ;;  %v3496_v61 = vrot.slane %v17254_v53, 5  ;;  %v17333_v46 = vld [vmem:[#allocation2 + $0x64] sm:$0xf] }
  0xec   : > { %v2830_v33 = vsel %vm16509_vm10, %v2825_v42, %v2829_v57  ;;  %v2840_v39 = vsel %vm16509_vm10, %v2835_v27, %v2839_v0  ;;  %v2858_v13 = vor.u32 %v2857_v38, %v2853_v21  ;;  %v17321_v17 = vsel %vm16848_vm0, %v14022_v28, %v3493_v16  ;;  %v2694_v57 = vld [vmem:[#allocation2 + $0x60] sm:$0xf] }
  0xed   : > { %v2849_v7 = vrot.slane %v2848_v52, 4  ;;  %v17327_v2 = vsel %vm16848_vm0, %v3495_v59, %v3496_v61  ;;  %v14023_v53 = vrot.slane %v3404_v23, 9  ;;  %v3500_v55 = vrot.slane %v17285_v43, 5  ;;  %v3405_v59 = vld [vmem:[#allocation2 + $0x54] sm:$0xe] }
  0xee   : > { %v17330_v58 = vcombine.low %v2830_v33, %v2840_v39  ;;  %v2859_v0 = vrot.slane %v2858_v13, 4  ;;  %v3503_v19 = vrot.slane %v17292_v3, 5  ;;  %v2866_v35 = vshrl.u32 %v2691_v1, 16 }
  0xef   : > { %v2854_v32 = vsel %vm16509_vm10, %v2849_v7, %v2853_v21  ;;  %v14039_v12 = vcombine.low %v17321_v17, %v17327_v2  ;;  %v3502_v28 = vrot.slane %v3500_v55, 4  ;;  %v2869_v23 = vshll.u32 %v2691_v1, 16 }
  0xf0   : > { %15272 = vmatmul.mubr.msk.bf16.gmra.mxu0 %vm1349_vm6, %v13933_v30  ;;  %v2864_v43 = vsel %vm16509_vm10, %v2859_v0, %v2863_v6  ;;  %v2868_v3 = vrot.slane %v2866_v35, 4  ;;  %v2875_v16 = vshll.u32 %v2692_v50, 16  ;;  %v2879_v42 = vshrl.u32 %v2692_v50, 16  ;;  %v17356_v30 = vld [vmem:[#allocation2 + $0x68] sm:$0x1] }
  0xf1   : > { %v21986_v27 = vcombine.low %v17107_v11, %v17123_v26  ;;  %v17349_v21 = vcombine.low %v2854_v32, %v2864_v43  ;;  %v17353_v38 = vsel %vm16848_vm0, %v14023_v53, %v3500_v55  ;;  %v2871_v36 = vrot.slane %v2869_v23, 5 }
  0xf2   : > { %v2885_v20 = vshll.u32 %v17323_v10, 16  ;;  %15310 = vmatmul.mubr.msk.bf16.gmra.mxu1 %vm1349_vm6, %v16025_v18  ;;  %v17361_v52 = vsel %vm16848_vm0, %v3502_v28, %v3503_v19  ;;  %v2877_v11 = vrot.slane %v2875_v16, 5  ;;  %v2881_v26 = vrot.slane %v2879_v42, 4  ;;  %v3406_v18 = vld [vmem:[#allocation2 + $0x60] sm:$0xe] }
  0xf3   : > { %15275 = vmatprep.mubr.msk.bf16.mxu0 %vm1349_vm6, %v21986_v27  ;;  %v2890_v6 = vshrl.u32 %v2694_v57, 16  ;;  %15349 = vmatprep.mubr.msk.bf16.mxu1 %vm1349_vm6, %v14035_v63  ;;  %v2872_v61 = vor.u32 %v2871_v36, %v2868_v3  ;;  %v2893_v33 = vshll.u32 %v2694_v57, 16  ;;  %v2899_v39 = vshll.u32 %v17333_v46, 16  ;;  %v2697_v28 = vld [vmem:[#allocation2 + $0x6c] sm:$0xf] }
  0xf4   : > { %v2887_v1 = vrot.slane %v2885_v20, 5  ;;  %v2882_v13 = vor.u32 %v2881_v26, %v2877_v11  ;;  %v2903_v53 = vshrl.u32 %v17333_v46, 16  ;;  %v2909_v55 = vshll.u32 %v17356_v30, 16  ;;  %v17385_v26 = vld [vmem:[#allocation2 + $0x70] sm:$0xf] }
  0xf5   : > { %v2892_v7 = vrot.slane %v2890_v6, 4  ;;  %v2873_v0 = vrot.slane %v2872_v61, 4  ;;  %v2895_v19 = vrot.slane %v2893_v33, 5  ;;  %v2901_v35 = vrot.slane %v2899_v39, 5  ;;  %v17391_v6 = vld [vmem:[#allocation2 + $0x74] sm:$0x1] }
  0xf6   : > { %v14024_v32 = vrot.slane %v3405_v59, 9  ;;  %v14040_v8 = vcombine.low %v17353_v38, %v17361_v52  ;;  %v2883_v37 = vrot.slane %v2882_v13, 4  ;;  %v2905_v63 = vrot.slane %v2903_v53, 4  ;;  %v2700_v33 = vld [vmem:[#allocation2 + $0x78] sm:$0xf] }
  0xf7   : > { %v3507_v57 = vrot.slane %v2692_v50, 5  ;;  %v2878_v23 = vsel %vm16509_vm10, %v2873_v0, %v2877_v11  ;;  %v2896_v43 = vor.u32 %v2895_v19, %v2892_v7  ;;  %v2911_v3 = vrot.slane %v2909_v55, 5  ;;  %v17411_v39 = vld [vmem:[#allocation2 + $0x80] sm:$0x1]  ;;  %v3410_v38 = vld [vmem:[#allocation2 + $0x90] sm:$0xe] }
  0xf8   : > { %v3510_v16 = vrot.slane %v17323_v10, 5  ;;  %v21987_v42 = vcombine.low %v17127_v56, %v17138_v60  ;;  %v2888_v27 = vsel %vm16509_vm10, %v2883_v37, %v2887_v1  ;;  %v2906_v36 = vor.u32 %v2905_v63, %v2901_v35 }
  0xf9   : > { %v17383_v20 = vsel %vm16848_vm0, %v14024_v32, %v3507_v57  ;;  %v3509_v50 = vrot.slane %v3507_v57, 4  ;;  %v2897_v10 = vrot.slane %v2896_v43, 4  ;;  %v14025_v11 = vrot.slane %v3406_v18, 9 }
  0xfa   : > { %15276 = vmatmul.mubr.msk.bf16.gmra.mxu0 %vm1349_vm6, %v21987_v42  ;;  %v3514_v56 = vrot.slane %v17333_v46, 5  ;;  %v3517_v60 = vrot.slane %v17356_v30, 5  ;;  %15350 = vmatmul.mubr.msk.bf16.vlgmr.msra.gmra.mxu1 %vm1349_vm6, %v14036_v34  ;;  %v2907_v59 = vrot.slane %v2906_v36, 4  ;;  %v2914_v1 = vshrl.u32 %v2697_v28, 16  ;;  %v2701_v30 = vld [vmem:[#allocation2 + $0x7c] sm:$0xf] }
  0xfb   : > { %15315 = vmatprep.mubr.msk.bf16.mxu0 %vm1349_vm6, %v17203_v54  ;;  %v17399_v61 = vsel %vm16848_vm0, %v3509_v50, %v3510_v16  ;;  %v2917_v54 = vshll.u32 %v2697_v28, 16  ;;  %15353 = vmatprep.mubr.msk.bf16.mxu1 %vm1349_vm6, %v14037_v62  ;;  %v17405_v46 = vcombine.low %v2878_v23, %v2888_v27  ;;  %v2902_v22 = vsel %vm16509_vm10, %v2897_v10, %v2901_v35  ;;  %v3408_v27 = vld [vmem:[#allocation2 + $0x78] sm:$0xe] }
  0xfc   : > { %v14041_v40 = vcombine.low %v17383_v20, %v17399_v61  ;;  %v3516_v34 = vrot.slane %v3514_v56, 4  ;;  %v2912_v13 = vsel %vm16509_vm10, %v2907_v59, %v2911_v3  ;;  %v2916_v7 = vrot.slane %v2914_v1, 4  ;;  %v2703_v59 = vld [vmem:[#allocation2 + $0x84] sm:$0xf] }
  0xfd   : > { %v2919_v53 = vrot.slane %v2917_v54, 5  ;;  %v2923_v9 = vshll.u32 %v17385_v26, 16  ;;  %v17416_v62 = vcombine.low %v2902_v22, %v2912_v13  ;;  %v17420_v55 = vsel %vm16848_vm0, %v14025_v11, %v3514_v56  ;;  %v17448_v13 = vld [vmem:[#allocation2 + $0x8c] sm:$0x1] }
  0xfe   : > { %v2927_v18 = vshrl.u32 %v17385_v26, 16  ;;  %v2933_v0 = vshll.u32 %v17391_v6, 16  ;;  %v17426_v19 = vsel %vm16848_vm0, %v3516_v34, %v3517_v60  ;;  %v2938_v28 = vshrl.u32 %v2700_v33, 16 }
  0xff   : > { %v2920_v35 = vor.u32 %v2919_v53, %v2916_v7  ;;  %v2925_v32 = vrot.slane %v2923_v9, 5  ;;  %v2941_v57 = vshll.u32 %v2700_v33, 16  ;;  %v2947_v23 = vshll.u32 %v2701_v30, 16 }
 0x100   : > { %v2929_v37 = vrot.slane %v2927_v18, 4  ;;  %v2935_v63 = vrot.slane %v2933_v0, 5  ;;  %v2940_v3 = vrot.slane %v2938_v28, 4  ;;  %v2951_v16 = vshrl.u32 %v2701_v30, 16  ;;  %v17471_v28 = vld [vmem:[#allocation2 + $0x98] sm:$0x1] }
 0x101   : > { %v2921_v43 = vrot.slane %v2920_v35, 4  ;;  %v2957_v42 = vshll.u32 %v17411_v39, 16  ;;  %v2943_v50 = vrot.slane %v2941_v57, 5  ;;  %v2949_v10 = vrot.slane %v2947_v23, 5  ;;  %v3409_v23 = vld [vmem:[#allocation2 + $0x84] sm:$0xe] }
 0x102   : > { %15316 = vmatmul.mubr.msk.bf16.vlgmr.msra.gmra.mxu0 %vm1349_vm6, %v17224_v31  ;;  %v2930_v36 = vor.u32 %v2929_v37, %v2925_v32  ;;  %v14026_v11 = vrot.slane %v3407_v4, 9  ;;  %15354 = vmatmul.mubr.msk.bf16.gmra.mxu1 %vm1349_vm6, %v14038_v24  ;;  %v14042_v31 = vcombine.low %v17420_v55, %v17426_v19  ;;  %v2953_v60 = vrot.slane %v2951_v16, 4  ;;  %v2704_v24 = vld [vmem:[#allocation2 + $0x88] sm:$0xf]  ;;  %v17463_v4 = vld [vmem:[#allocation2 + $0x94] sm:$0xf] }
 0x103   : > { %15382 = vmatpush3.bf16.msra.mxu0 %v17163_v14  ;;  %15319 = vmatprep.mubr.msk.bf16.mxu0 %vm1349_vm6, %v17267_v25  ;;  %v2926_v56 = vsel %vm16509_vm10, %v2921_v43, %v2925_v32  ;;  %v3521_v14 = vrot.slane %v17385_v26, 5  ;;  %v2944_v1 = vor.u32 %v2943_v50, %v2940_v3  ;;  %v3524_v47 = vrot.slane %v17391_v6, 5  ;;  %v17542_v55 = vld [vmem:[#allocation2 + $0xb0] sm:$0x1] }
 0x104   : > { %15357 = vmatprep.mubr.msk.bf16.mxu1 %vm1349_vm6, %v14039_v12  ;;  %v2931_v25 = vrot.slane %v2930_v36, 4  ;;  %v14027_v51 = vrot.slane %v3408_v27, 9  ;;  %v2954_v54 = vor.u32 %v2953_v60, %v2949_v10  ;;  %v2959_v33 = vrot.slane %v2957_v42, 5  ;;  %v2706_v12 = vld [vmem:[#allocation2 + $0x90] sm:$0xf]  ;;  %v17477_v43 = vpop.f32.mrf.mxu1 }
 0x105   : > { %v3523_v22 = vrot.slane %v3521_v14, 4  ;;  %v3528_v34 = vrot.slane %v2701_v30, 5  ;;  %v2945_v7 = vrot.slane %v2944_v1, 4  ;;  %v17454_v17 = vsel %vm16848_vm0, %v14026_v11, %v3521_v14 }
 0x106   : > { %v2936_v26 = vsel %vm16509_vm10, %v2931_v25, %v2935_v63  ;;  %v2962_v2 = vshrl.u32 %v2703_v59, 16  ;;  %v2955_v6 = vrot.slane %v2954_v54, 4  ;;  %v3531_v30 = vrot.slane %v17411_v39, 5  ;;  %v17501_v25 = vpop.f32.mrf.mxu1 }
 0x107   : > { %v17456_v53 = vcombine.low %v2926_v56, %v2936_v26  ;;  %v17460_v9 = vsel %vm16848_vm0, %v3523_v22, %v3524_v47  ;;  %v2950_v18 = vsel %vm16509_vm10, %v2945_v7, %v2949_v10  ;;  %v17469_v0 = vsel %vm16848_vm0, %v14027_v51, %v3528_v34  ;;  %v2709_v22 = vld [vmem:[#allocation2 + $0x9c] sm:$0xf] }
 0x108   : > { %v3530_v35 = vrot.slane %v3528_v34, 4  ;;  %v2964_v32 = vrot.slane %v2962_v2, 4  ;;  %v2960_v37 = vsel %vm16509_vm10, %v2955_v6, %v2959_v33  ;;  %v2965_v39 = vshll.u32 %v2703_v59, 16  ;;  %v17508_v2 = vld [vmem:[#allocation2 + $0xa0] sm:$0xf] }
 0x109   : > { %v2971_v63 = vshll.u32 %v2704_v24, 16  ;;  %v2975_v57 = vshrl.u32 %v2704_v24, 16  ;;  %v17481_v3 = vcombine.low %v2950_v18, %v2960_v37  ;;  %v14043_v16 = vcombine.low %v17454_v17, %v17460_v9  ;;  %v17518_v18 = vpop.f32.mrf.mxu1  ;;  %v2712_v37 = vld [vmem:[#allocation2 + $0xa8] sm:$0xf] }
 0x10a   : > { %15320 = vmatmul.mubr.msk.bf16.gmra.mxu0 %vm1349_vm6, %v17287_v48  ;;  %v2981_v42 = vshll.u32 %v17448_v13, 16  ;;  %v2986_v48 = vshrl.u32 %v2706_v12, 16  ;;  %15358 = vmatmul.mubr.msk.bf16.gmra.mxu1 %vm1349_vm6, %v14040_v8  ;;  %v17492_v27 = vsel %vm16848_vm0, %v3530_v35, %v3531_v30  ;;  %v2967_v36 = vrot.slane %v2965_v39, 5  ;;  %v17516_v30 = vld [vmem:[#allocation2 + $0xa4] sm:$0x1] }
 0x10b   : > { %15323 = vmatprep.mubr.msk.bf16.mxu0 %vm1349_vm6, %v17330_v58  ;;  %v2973_v50 = vrot.slane %v2971_v63, 5  ;;  %v2977_v58 = vrot.slane %v2975_v57, 4  ;;  %15361 = vmatprep.mubr.msk.bf16.mxu1 %vm1349_vm6, %v14041_v40  ;;  %v2989_v56 = vshll.u32 %v2706_v12, 16  ;;  %v2995_v60 = vshll.u32 %v17463_v4, 16 }
 0x10c   : > { %v2983_v10 = vrot.slane %v2981_v42, 5  ;;  %v2988_v11 = vrot.slane %v2986_v48, 4  ;;  %v2968_v52 = vor.u32 %v2967_v36, %v2964_v32  ;;  %v2999_v14 = vshrl.u32 %v17463_v4, 16  ;;  %v17527_v39 = vpop.f32.mrf.mxu0 }
 0x10d   : > { %v2978_v8 = vor.u32 %v2977_v58, %v2973_v50  ;;  %v3005_v59 = vshll.u32 %v17471_v28, 16  ;;  %v2991_v1 = vrot.slane %v2989_v56, 5  ;;  %v2997_v47 = vrot.slane %v2995_v60, 5 }
 0x10e   : > { %v14028_v51 = vrot.slane %v3409_v23, 9  ;;  %v3535_v20 = vrot.slane %v2704_v24, 5  ;;  %v2969_v61 = vrot.slane %v2968_v52, 4  ;;  %v3001_v54 = vrot.slane %v2999_v14, 4  ;;  %v17536_v23 = vld [vmem:[#allocation2 + $0xac] sm:$0xf]  ;;  %v17557_v56 = vpop.f32.mrf.mxu0 }
 0x10f   : > { %v2979_v40 = vrot.slane %v2978_v8, 4  ;;  %v3007_v33 = vrot.slane %v3005_v59, 5  ;;  %v2992_v34 = vor.u32 %v2991_v1, %v2988_v11  ;;  %v3538_v17 = vrot.slane %v17448_v13, 5  ;;  %v3411_v14 = vld [vmem:[#allocation2 + $0x9c] sm:$0xe] }
 0x110   : > { %v17505_v26 = vsel %vm16848_vm0, %v14028_v51, %v3535_v20  ;;  %v3537_v7 = vrot.slane %v3535_v20, 4  ;;  %v2974_v24 = vsel %vm16509_vm10, %v2969_v61, %v2973_v50  ;;  %v3002_v6 = vor.u32 %v3001_v54, %v2997_v47  ;;  %v17548_v50 = vpop.f32.mrf.mxu1  ;;  %v3412_v20 = vld [vmem:[#allocation2 + $0xa8] sm:$0xe] }
 0x111   : > { %v2984_v12 = vsel %vm16509_vm10, %v2979_v40, %v2983_v10  ;;  %v14029_v9 = vrot.slane %v3410_v38, 9  ;;  %v14044_v13 = vcombine.low %v17469_v0, %v17492_v27  ;;  %v2993_v35 = vrot.slane %v2992_v34, 4  ;;  %21988 = vst [vmem:[#allocation19_spill] sm:$0xff] %v17548_v50 }
 0x112   : > { %15324 = vmatmul.mubr.msk.bf16.gmra.mxu0 %vm1349_vm6, %v17349_v21  ;;  %v3539_v21 = vsel %vm16848_vm0, %v3537_v7, %v3538_v17  ;;  %v3542_v32 = vrot.slane %v17463_v4, 5  ;;  %15362 = vmatmul.mubr.msk.bf16.gmra.mxu1 %vm1349_vm6, %v14042_v31  ;;  %v17533_v63 = vcombine.low %v2974_v24, %v2984_v12  ;;  %v3545_v57 = vrot.slane %v17471_v28, 5  ;;  %v2715_v24 = vld [vmem:[#allocation2 + $0xb4] sm:$0xf]  ;;  %v17574_v12 = vpop.f32.mrf.mxu0 }
 0x113   : > { %15327 = vmatprep.mubr.msk.bf16.mxu0 %vm1349_vm6, %v17405_v46  ;;  %v3003_v46 = vrot.slane %v3002_v6, 4  ;;  %v3010_v0 = vshrl.u32 %v2709_v22, 16  ;;  %15365 = vmatprep.mubr.msk.bf16.mxu1 %vm1349_vm6, %v14043_v16  ;;  %v2998_v4 = vsel %vm16509_vm10, %v2993_v35, %v2997_v47  ;;  %v14045_v42 = vcombine.low %v17505_v26, %v3539_v21 }
 0x114   : > { %v3544_v48 = vrot.slane %v3542_v32, 4  ;;  %v3013_v27 = vshll.u32 %v2709_v22, 16  ;;  %v3019_v28 = vshll.u32 %v17508_v2, 16  ;;  %v3023_v36 = vshrl.u32 %v17508_v2, 16  ;;  %v17568_v22 = vpop.f32.mrf.mxu1 }
 0x115   : > { %v3008_v19 = vsel %vm16509_vm10, %v3003_v46, %v3007_v33  ;;  %v3012_v31 = vrot.slane %v3010_v0, 4  ;;  %v17554_v58 = vsel %vm16848_vm0, %v14029_v9, %v3542_v32  ;;  %v3029_v11 = vshll.u32 %v17516_v30, 16  ;;  %v17584_v46 = vld [vmem:[#allocation2 + $0xb8] sm:$0xf] }
 0x116   : > { %v17550_v16 = vcombine.low %v2998_v4, %v3008_v19  ;;  %v3015_v10 = vrot.slane %v3013_v27, 5  ;;  %v17561_v60 = vsel %vm16848_vm0, %v3544_v48, %v3545_v57  ;;  %v3021_v38 = vrot.slane %v3019_v28, 5  ;;  %v17591_v4 = vld [vmem:[#allocation2 + $0xbc] sm:$0x1]  ;;  %v17601_v28 = vpop.f32.mrf.mxu0 }
 0x117   : > { %v3025_v52 = vrot.slane %v3023_v36, 4  ;;  %v3034_v8 = vshrl.u32 %v2712_v37, 16  ;;  %v3031_v1 = vrot.slane %v3029_v11, 5  ;;  %v3037_v47 = vshll.u32 %v2712_v37, 16  ;;  %21989 = vst [vmem:[#allocation20_spill] sm:$0xff] %v17601_v28 }
 0x118   : > { %v3016_v59 = vor.u32 %v3015_v10, %v3012_v31  ;;  %v3043_v51 = vshll.u32 %v17536_v23, 16  ;;  %v3047_v54 = vshrl.u32 %v17536_v23, 16  ;;  %v3053_v33 = vshll.u32 %v17542_v55, 16  ;;  %v860_v31 = vld [vmem:[#allocation2 + $0xc8] sm:$0x1] }
 0x119   : > { %v3026_v61 = vor.u32 %v3025_v52, %v3021_v38  ;;  %v3036_v40 = vrot.slane %v3034_v8, 4  ;;  %v3039_v26 = vrot.slane %v3037_v47, 5  ;;  %v14030_v17 = vrot.slane %v3411_v14, 9  ;;  %v17611_v14 = vld [vmem:[#allocation2 + $0xc4] sm:$0xf] }
 0x11a   : > { %15328 = vmatmul.mubr.msk.bf16.gmra.mxu0 %vm1349_vm6, %v17416_v62  ;;  %v3017_v34 = vrot.slane %v3016_v59, 4  ;;  %v17572_v7 = vrot.slane %v3043_v51, 5  ;;  %15366 = vmatmul.mubr.msk.bf16.gmra.mxu1 %vm1349_vm6, %v14044_v13  ;;  %v14046_v62 = vcombine.low %v17554_v58, %v17561_v60  ;;  %v3049_v9 = vrot.slane %v3047_v54, 4  ;;  %v2718_v60 = vld [vmem:[#allocation2 + $0xc0] sm:$0xf] }
 0x11b   : > { %15331 = vmatprep.mubr.msk.bf16.mxu0 %vm1349_vm6, %v17456_v53  ;;  %v3027_v6 = vrot.slane %v3026_v61, 4  ;;  %v3549_v35 = vrot.slane %v17508_v2, 5  ;;  %15369 = vmatprep.mubr.msk.bf16.mxu1 %vm1349_vm6, %v14045_v42  ;;  %v3040_v21 = vor.u32 %v3039_v26, %v3036_v40  ;;  %v3552_v32 = vrot.slane %v17516_v30, 5  ;;  %v17593_v42 = vpop.f32.mrf.mxu1 }
 0x11c   : > { %v3022_v53 = vsel %vm16509_vm10, %v3017_v34, %v3021_v38  ;;  %v14031_v37 = vrot.slane %v3412_v20, 9  ;;  %v3050_v57 = vor.u32 %v3049_v9, %v17572_v7  ;;  %v17597_v27 = vrot.slane %v3053_v33, 5  ;;  %v17632_v33 = vpop.f32.mrf.mxu0 }
 0x11d   : > { %v3032_v13 = vsel %vm16509_vm10, %v3027_v6, %v3031_v1  ;;  %v3550_v0 = vsel %vm16848_vm0, %v14030_v17, %v3549_v35  ;;  %v3551_v2 = vrot.slane %v3549_v35, 4  ;;  %v17595_v48 = vrot.slane %v3040_v21, 4  ;;  %v17620_v20 = vpop.f32.mrf.mxu1  ;;  %v3414_v35 = vld [vmem:[#allocation2 + $0xc0] sm:$0xe] }
 0x11e   : > { %v3556_v30 = vrot.slane %v17536_v23, 5  ;;  %v3559_v19 = vrot.slane %v17542_v55, 5  ;;  %v17603_v36 = vrot.slane %v3050_v57, 4  ;;  %v3058_v10 = vshrl.u32 %v2715_v24, 16  ;;  %v3413_v55 = vld [vmem:[#allocation2 + $0xb4] sm:$0xe] }
 0x11f   : > { %v3553_v58 = vsel %vm16848_vm0, %v3551_v2, %v3552_v32  ;;  %v3061_v11 = vshll.u32 %v2715_v24, 16  ;;  %v13998_v38 = vcombine.low %v3022_v53, %v3032_v13  ;;  %v3046_v59 = vsel %vm16509_vm10, %v17595_v48, %v17572_v7  ;;  %v17646_v49 = vpop.f32.mrf.mxu1 }
 0x120   : > { %v14047_v52 = vcombine.low %v3550_v0, %v3553_v58  ;;  %v17609_v8 = vsel %vm16848_vm0, %v14031_v37, %v3556_v30  ;;  %v3558_v23 = vrot.slane %v3556_v30, 4  ;;  %v3060_v1 = vrot.slane %v3058_v10, 4  ;;  %v17649_v0 = vpop.f32.mrf.mxu0  ;;  %v4228_v10 = vld [vmem:[#allocation2 + $0x18] sm:$0xf] }
 0x121   : > { %v3063_v47 = vrot.slane %v3061_v11, 5  ;;  %v3067_v51 = vshll.u32 %v17584_v46, 16  ;;  %v3056_v61 = vsel %vm16509_vm10, %v17603_v36, %v17597_v27  ;;  %v3071_v40 = vshrl.u32 %v17584_v46, 16 }
 0x122   : > { %15332 = vmatmul.mubr.msk.bf16.gmra.mxu0 %vm1349_vm6, %v17481_v3  ;;  %v3560_v3 = vsel %vm16848_vm0, %v3558_v23, %v3559_v19  ;;  %v3077_v54 = vshll.u32 %v17591_v4, 16  ;;  %15370 = vmatmul.mubr.msk.bf16.gmra.mxu1 %vm1349_vm6, %v14046_v62  ;;  %v861_v7 = vsel %vm16529_vm13, %v696_v44, %v860_v31  ;;  %v3082_v6 = vshrl.u32 %v2718_v60, 16  ;;  %v14100_v62 = vld [vmem:[%s21930_s1 + $0xe] sm:$0x3]  ;;  %v14149_v19 = vld [vmem:[%s21930_s1 + $0x10] sm:$0x3] }
 0x123   : > { %15335 = vmatprep.mubr.msk.bf16.mxu0 %vm1349_vm6, %v17533_v63  ;;  %v14048_v34 = vcombine.low %v17609_v8, %v3560_v3  ;;  %v3064_v26 = vor.u32 %v3063_v47, %v3060_v1  ;;  %v3069_v63 = vrot.slane %v3067_v51, 5  ;;  %15373 = vmatprep.mubr.msk.bf16.mxu1 %vm1349_vm6, %v14047_v52  ;;  %v3073_v17 = vrot.slane %v3071_v40, 4  ;;  %862 = vst [vmem:[#allocation2 + $0xc8] sm:$0x1] %v861_v7  ;;  %v17676_v47 = vld [vmem:[#allocation2 + $0x1c] sm:$0xf]  ;;  %v17678_v51 = vpop.f32.mrf.mxu0 }
 0x124   : > { %v3079_v24 = vrot.slane %v3077_v54, 5  ;;  %v3085_v9 = vshll.u32 %v2718_v60, 16  ;;  %v3091_v21 = vshll.u32 %v17611_v14, 16  ;;  %v3095_v15 = vshrl.u32 %v17611_v14, 16  ;;  %v17666_v8 = vpop.f32.mrf.mxu1  ;;  %v4231_v7 = vld [vmem:[#allocation2 + $0x24] sm:$0xf] }
 0x125   : > { %v3065_v53 = vrot.slane %v3064_v26, 4  ;;  %v14032_v32 = vrot.slane %v3413_v55, 9  ;;  %v3074_v44 = vor.u32 %v3073_v17, %v3069_v63  ;;  %v3084_v37 = vrot.slane %v3082_v6, 4 }
 0x126   : > { %v3087_v13 = vrot.slane %v3085_v9, 5  ;;  %v3563_v57 = vrot.slane %v17584_v46, 5  ;;  %v17653_v48 = vrot.slane %v3091_v21, 5  ;;  %v3097_v27 = vrot.slane %v3095_v15, 4  ;;  %v17686_v17 = vpop.f32.mrf.mxu1 }
 0x127   : > { %v3070_v2 = vsel %vm16509_vm10, %v3065_v53, %v3069_v63  ;;  %v3566_v30 = vrot.slane %v17591_v4, 5  ;;  %v3075_v31 = vrot.slane %v3074_v44, 4  ;;  %v14033_v60 = vrot.slane %v3414_v35, 9  ;;  %v17694_v35 = vld [vmem:[#allocation2 + $0x28] sm:$0xf] }
 0x128   : > { %v3088_v36 = vor.u32 %v3087_v13, %v3084_v37  ;;  %v3564_v58 = vsel %vm16848_vm0, %v14032_v32, %v3563_v57  ;;  %v3565_v46 = vrot.slane %v3563_v57, 4  ;;  %v3098_v11 = vor.u32 %v3097_v27, %v17653_v48  ;;  %v17700_v32 = vpop.f32.mrf.mxu0  ;;  %v17702_v13 = vld [vmem:[#allocation2 + $0x2c] sm:$0x1] }
 0x129   : > { %v3570_v52 = vrot.slane %v17611_v14, 5  ;;  %v4759_v4 = vand.u32 %v14100_v62, %v16371_v5  ;;  %v13999_v23 = vcombine.low %v3046_v59, %v3056_v61  ;;  %v3080_v55 = vsel %vm16509_vm10, %v3075_v31, %v3079_v24  ;;  %v17681_v61 = vld [vmem:[#allocation2 + $0x20] sm:$0x1] }
 0x12a   : > { %15336 = vmatmul.mubr.msk.bf16.gmra.mxu0 %vm1349_vm6, %v17550_v16  ;;  %v3567_v1 = vsel %vm16848_vm0, %v3565_v46, %v3566_v30  ;;  %v17674_v16 = vand.u32 %v14149_v19, %v16371_v5  ;;  %15374 = vmatmul.mubr.msk.bf16.gmra.mxu1 %vm1349_vm6, %v14048_v34  ;;  %v14000_v14 = vcombine.low %v3070_v2, %v3080_v55  ;;  %v2720_v3 = vld [vmem:[#allocation2 + $0xc8] sm:$0x1]  ;;  %v3089_v40 = vrot.slane %v3088_v36, 4  ;;  %v17711_v19 = vpop.f32.mrf.mxu1  ;;  %v17723_v55 = vld [vmem:[#allocation2 + $0x34] sm:$0xf] }
 0x12b   : > { %15339 = vmatprep.mubr.msk.bf16.mxu0 %vm1349_vm6, %v13998_v38  ;;  %v3099_v38 = vrot.slane %v3098_v11, 4  ;;  %v14049_v59 = vcombine.low %v3564_v58, %v3567_v1  ;;  %15415 = vmatprep.subr.bf16.mxu1 %v4759_v4  ;;  %v3101_v54 = vshll.u32 %v2720_v3, 16  ;;  %v3571_v26 = vsel %vm16848_vm0, %v14033_v60, %v3570_v52  ;;  %v17725_v1 = vld [vmem:[#allocation2 + $0x38] sm:$0x1] }
 0x12c   : > { %v3572_v5 = vrot.slane %v3570_v52, 4  ;;  %v3573_v63 = vrot.slane %v2720_v3, 5  ;;  %15416 = vmatpush3.bf16.msra.mxu1 %v4759_v4  ;;  %15449 = vmatprep.subr.bf16.mxu0 %v17674_v16  ;;  %v17691_v34 = vadd.f32 %v17477_v43, %v17527_v39  ;;  %v4277_v24 = vshrl.u32 %v4228_v10, 16 }
 0x12d   : > { %15377 = vmatprep.mubr.msk.bf16.mxu1 %vm1349_vm6, %v14049_v59  ;;  %v4280_v6 = vshll.u32 %v4228_v10, 16  ;;  %v4286_v9 = vshll.u32 %v17676_v47, 16  ;;  %v3103_v62 = vrot.slane %v3101_v54, 5  ;;  %v4290_v21 = vshrl.u32 %v17676_v47, 16  ;;  %v17729_v54 = vpop.f32.mrf.mxu1 }
 0x12e   : > { %v3574_v53 = vsel %vm16848_vm0, %v3572_v5, %v3573_v63  ;;  %v4296_v15 = vshll.u32 %v17681_v61, 16  ;;  %v4279_v37 = vrot.slane %v4277_v24, 4  ;;  %v3094_v57 = vsel %vm16509_vm10, %v3089_v40, %v17653_v48  ;;  %v17720_v60 = vpop.f32.mrf.mxu0  ;;  %21990 = vst [vmem:[#allocation21_spill] sm:$0xff] %v17729_v54  ;;  %v17980_v54 = vld [vmem:[#allocation2 + $0xd0] sm:$0xf] }
 0x12f   : > { %v14050_v44 = vcombine.low %v3571_v26, %v3574_v53  ;;  %v4282_v43 = vrot.slane %v4280_v6, 5  ;;  %v4288_v39 = vrot.slane %v4286_v9, 5  ;;  %v4292_v2 = vrot.slane %v4290_v21, 4  ;;  %v16026_v26 = vld [vmem:[#allocation2 + $0x18] sm:$0xff]  }
 0x130   : > { %v4298_v27 = vrot.slane %v4296_v15, 5  ;;  %v17709_v30 = vadd.f32 %v17501_v25, %v17557_v56  ;;  %v3104_v31 = vsel %vm16509_vm10, %v3099_v38, %v3103_v62  ;;  %v4301_v58 = vshrl.u32 %v4231_v7, 16  ;;  %v4234_v56 = vld [vmem:[#allocation2 + $0x30] sm:$0xf]  ;;  %v17727_v59 = vpop.f32.mrf.mxu0  ;;  %v4237_v53 = vld [vmem:[#allocation2 + $0x3c] sm:$0xf] }
 0x131   : > { %v4283_v36 = vor.u32 %v4282_v43, %v4279_v37  ;;  %v4304_v46 = vshll.u32 %v4231_v7, 16  ;;  %v4293_v10 = vor.u32 %v4292_v2, %v4288_v39  ;;  %v4310_v48 = vshll.u32 %v17694_v35, 16  ;;  %v17743_v43 = vld [vmem:[#allocation2 + $0x40] sm:$0xf]  ;;  %v17748_v2 = vld [vmem:[#allocation2 + $0x44] sm:$0x1] }
 0x132   : > { %15340 = vmatmul.mubr.msk.bf16.gmra.mxu0 %vm1349_vm6, %v13999_v23  ;;  %v4314_v11 = vshrl.u32 %v17694_v35, 16  ;;  %v4320_v25 = vshll.u32 %v17702_v13, 16  ;;  %15378 = vmatmul.mubr.msk.bf16.gmra.mxu1 %vm1349_vm6, %v14050_v44  ;;  %v4303_v4 = vrot.slane %v4301_v58, 4  ;;  %v17735_v24 = vadd.f32 %v17518_v18, %v17574_v12 }
 0x133   : > { %15343 = vmatprep.mubr.msk.bf16.mxu0 %vm1349_vm6, %v14000_v14  ;;  %v4284_v52 = vrot.slane %v4283_v36, 4  ;;  %v4306_v23 = vrot.slane %v4304_v46, 5  ;;  %v14001_v14 = vcombine.low %v3094_v57, %v3104_v31  ;;  %v4294_v3 = vrot.slane %v4293_v10, 4 }
 0x134   : > { %v4312_v40 = vrot.slane %v4310_v48, 5  ;;  %v4316_v38 = vrot.slane %v4314_v11, 4  ;;  %v4322_v7 = vrot.slane %v4320_v25, 5  ;;  %v17741_v62 = vadd.f32 %v17568_v22, %v17632_v33  ;;  %v17752_v22 = vpop.f32.mrf.mxu1 }
 0x135   : > { %v4289_v5 = vsel %vm16509_vm10, %v4284_v52, %v4288_v39  ;;  %v4307_v63 = vor.u32 %v4306_v23, %v4303_v4  ;;  %v4299_v6 = vsel %vm16509_vm10, %v4294_v3, %v4298_v27  ;;  %v4325_v44 = vshrl.u32 %v4234_v56, 16  ;;  %v17750_v27 = vpop.f32.mrf.mxu0  ;;  %v4240_v23 = vld [vmem:[#allocation2 + $0x48] sm:$0xf] }
 0x136   : > { %v4317_v9 = vor.u32 %v4316_v38, %v4312_v40  ;;  %v14101_v21 = vcombine.low %v4289_v5, %v4299_v6  ;;  %v4328_v37 = vshll.u32 %v4234_v56, 16  ;;  %v4334_v57 = vshll.u32 %v17723_v55, 16  ;;  %v17768_v38 = vld [vmem:[#allocation2 + $0x4c] sm:$0xf]  ;;  %v17772_v5 = vpop.f32.mrf.mxu1 }
 0x137   : > { %v4308_v15 = vrot.slane %v4307_v63, 4  ;;  %v4338_v18 = vshrl.u32 %v17723_v55, 16  ;;  %v4344_v12 = vshll.u32 %v17725_v1, 16  ;;  %v4327_v31 = vrot.slane %v4325_v44, 4  ;;  %v16028_v63 = vld [vmem:[#allocation2 + $0x30] sm:$0xff]  }
 0x138   : > { %v4318_v39 = vrot.slane %v4317_v9, 4  ;;  %15417 = vmatprep.mubr.msk.bf16.mxu1 %vm1349_vm6, %v14101_v21  ;;  %v4330_v36 = vrot.slane %v4328_v37, 5  ;;  %v17760_v58 = vadd.f32 %v17593_v42, %v17649_v0  ;;  %v4336_v10 = vrot.slane %v4334_v57, 5 }
 0x139   : > { %v4313_v33 = vsel %vm16509_vm10, %v4308_v15, %v4312_v40  ;;  %v4340_v48 = vrot.slane %v4338_v18, 4  ;;  %v4346_v11 = vrot.slane %v4344_v12, 5  ;;  %v4349_v52 = vshrl.u32 %v4237_v53, 16  ;;  %v4243_v12 = vld [vmem:[#allocation2 + $0x54] sm:$0xf] }
 0x13a   : > { %15344 = vmatmul.mubr.msk.bf16.gmra.mxu0 %vm1349_vm6, %v14001_v14  ;;  %v4323_v46 = vsel %vm16509_vm10, %v4318_v39, %v4322_v7  ;;  %v4331_v56 = vor.u32 %v4330_v36, %v4327_v31  ;;  %v4352_v4 = vshll.u32 %v4237_v53, 16  ;;  %v16027_v14 = vld [vmem:[#allocation2 + $0x24] sm:$0xff]   ;;  %v4358_v40 = vshll.u32 %v17743_v43, 16  ;;  %v17775_v53 = vld [vmem:[#allocation2 + $0x50] sm:$0x1] }
 0x13b   : > { %15383 = vmatprep.mubr.msk.bf16.mxu0 %vm1349_vm6, %v16026_v26  ;;  %v14102_v25 = vcombine.low %v4313_v33, %v4323_v46  ;;  %v4341_v3 = vor.u32 %v4340_v48, %v4336_v10  ;;  %v4362_v42 = vshrl.u32 %v17743_v43, 16  ;;  %v4368_v0 = vshll.u32 %v17748_v2, 16  ;;  %v17770_v26 = vpop.f32.mrf.mxu0  ;;  %v17789_v48 = vld [vmem:[#allocation2 + $0x58] sm:$0xf] }
 0x13c   : > { %v4332_v7 = vrot.slane %v4331_v56, 4  ;;  %v4351_v6 = vrot.slane %v4349_v52, 4  ;;  %v4354_v9 = vrot.slane %v4352_v4, 5  ;;  %v4360_v15 = vrot.slane %v4358_v40, 5  ;;  %v17791_v56 = vpop.f32.mrf.mxu1  ;;  %v17795_v4 = vld [vmem:[#allocation2 + $0x5c] sm:$0x1] }
 0x13d   : > { %15418 = vmatmul.mubr.msk.bf16.vlgmr.msra.gmra.mxu1 %vm1349_vm6, %v14102_v25  ;;  %v4342_v21 = vrot.slane %v4341_v3, 4  ;;  %v4364_v44 = vrot.slane %v4362_v42, 4  ;;  %v4370_v37 = vrot.slane %v4368_v0, 5  ;;  %v17781_v18 = vadd.f32 %v17620_v20, %v17678_v51  ;;  %v15193_v25 = vpop.f32.mrf.mxu0 }
 0x13e   : > { %v4337_v39 = vsel %vm16509_vm10, %v4332_v7, %v4336_v10  ;;  %v4355_v57 = vor.u32 %v4354_v9, %v4351_v6  ;;  %v17787_v36 = vadd.f32 %v17666_v8, %v17720_v60  ;;  %v4373_v46 = vshrl.u32 %v4240_v23, 16  ;;  %v17810_v9 = vpop.f32.mrf.mxu1 }
 0x13f   : > { %v4347_v33 = vsel %vm16509_vm10, %v4342_v21, %v4346_v11  ;;  %v4365_v31 = vor.u32 %v4364_v44, %v4360_v15  ;;  %v4376_v51 = vshll.u32 %v4240_v23, 16  ;;  %v4382_v52 = vshll.u32 %v17768_v38, 16  ;;  %v1487_v6 = vpop.f32.mrf.mxu0  ;;  %v16029_v21 = vld [vmem:[#allocation2 + $0x3c] sm:$0xff]  }
 0x140   : > { %v14103_v10 = vcombine.low %v4337_v39, %v4347_v33  ;;  %v4356_v20 = vrot.slane %v4355_v57, 4  ;;  %v4375_v60 = vrot.slane %v4373_v46, 4  ;;  %v4386_v11 = vshrl.u32 %v17768_v38, 16  ;;  %v16030_v33 = vld [vmem:[#allocation2 + $0x48] sm:$0xff]  }
 0x141   : > { %v4366_v8 = vrot.slane %v4365_v31, 4  ;;  %v4392_v3 = vshll.u32 %v17775_v53, 16  ;;  %v4378_v23 = vrot.slane %v4376_v51, 5  ;;  %v4384_v40 = vrot.slane %v4382_v52, 5  ;;  %v4246_v51 = vld [vmem:[#allocation2 + $0x60] sm:$0xf] }
 0x142   : > { %15384 = vmatmul.mubr.msk.bf16.vlgmr.msra.gmra.mxu0 %vm1349_vm6, %v16027_v14  ;;  %15421 = vmatprep.mubr.msk.bf16.mxu1 %vm1349_vm6, %v14103_v10  ;;  %v4361_v14 = vsel %vm16509_vm10, %v4356_v20, %v4360_v15  ;;  %v17806_v42 = vadd.f32 %v17686_v17, %v17727_v59  ;;  %v4388_v0 = vrot.slane %v4386_v11, 4  ;;  %v4397_v7 = vshrl.u32 %v4243_v12, 16  ;;  %v15194_v11 = vpop.f32.mrf.mxu0 }
 0x143   : > { %15450 = vmatpush3.bf16.msra.mxu0 %v17674_v16  ;;  %15387 = vmatprep.mubr.msk.bf16.mxu0 %vm1349_vm6, %v16028_v63  ;;  %v4371_v16 = vsel %vm16509_vm10, %v4366_v8, %v4370_v37  ;;  %v4394_v63 = vrot.slane %v4392_v3, 5  ;;  %v4379_v39 = vor.u32 %v4378_v23, %v4375_v60  ;;  %v4400_v57 = vshll.u32 %v4243_v12, 16  ;;  %v17820_v60 = vld [vmem:[#allocation2 + $0x64] sm:$0xf]  ;;  %v17822_v3 = vpop.f32.mrf.mxu1 }
 0x144   : > { %v14104_v44 = vcombine.low %v4361_v14, %v4371_v16  ;;  %v4406_v15 = vshll.u32 %v17789_v48, 16  ;;  %v4389_v31 = vor.u32 %v4388_v0, %v4384_v40  ;;  %v4399_v46 = vrot.slane %v4397_v7, 4  ;;  %v17830_v7 = vld [vmem:[#allocation2 + $0x68] sm:$0x1] }
 0x145   : > { %v4410_v17 = vshrl.u32 %v17789_v48, 16  ;;  %v4416_v59 = vshll.u32 %v17795_v4, 16  ;;  %v4380_v37 = vrot.slane %v4379_v39, 4  ;;  %v4402_v10 = vrot.slane %v4400_v57, 5 }
 0x146   : > { %15422 = vmatmul.mubr.msk.bf16.gmra.mxu1 %vm1349_vm6, %v14104_v44  ;;  %v4408_v20 = vrot.slane %v4406_v15, 5  ;;  %v4390_v52 = vrot.slane %v4389_v31, 4  ;;  %v17818_v12 = vadd.f32 %v17711_v19, %v17750_v27  ;;  %v17828_v0 = vadd.f32 %v17752_v22, %v15193_v25  ;;  %v4249_v31 = vld [vmem:[#allocation2 + $0x6c] sm:$0xf] }
 0x147   : > { %v4412_v8 = vrot.slane %v4410_v17, 4  ;;  %v4385_v14 = vsel %vm16509_vm10, %v4380_v37, %v4384_v40  ;;  %v4403_v23 = vor.u32 %v4402_v10, %v4399_v46  ;;  %v4418_v16 = vrot.slane %v4416_v59, 5  ;;  %v17838_v59 = vld [vmem:[#allocation2 + $0x70] sm:$0xf]  ;;  %v1795_v37 = vpop.f32.mrf.mxu1 }
 0x148   : > { %21991 = vst [vmem:[#allocation22_spill] sm:$0xff] %v17818_v12  ;;  %21992 = vst [vmem:[#allocation23_spill] sm:$0xff] %v17828_v0  ;;  %v4395_v19 = vsel %vm16509_vm10, %v4390_v52, %v4394_v63  ;;  %v4421_v44 = vshrl.u32 %v4246_v51, 16  ;;  %v4424_v39 = vshll.u32 %v4246_v51, 16  ;;  %v4430_v15 = vshll.u32 %v17820_v60, 16  ;;  %v16031_v63 = vld [vmem:[#allocation2 + $0x54] sm:$0xff]  }
 0x149   : > { %v4413_v27 = vor.u32 %v4412_v8, %v4408_v20  ;;  %v14105_v57 = vcombine.low %v4385_v14, %v4395_v19  ;;  %v4434_v40 = vshrl.u32 %v17820_v60, 16  ;;  %v4440_v17 = vshll.u32 %v17830_v7, 16  ;;  %v17846_v14 = vld [vmem:[#allocation2 + $0x74] sm:$0x1]  ;;  %v16032_v19 = vld [vmem:[#allocation2 + $0x60] sm:$0xff]  }
 0x14a   : > { %15388 = vmatmul.mubr.msk.bf16.gmra.mxu0 %vm1349_vm6, %v16029_v21  ;;  %v4404_v21 = vrot.slane %v4403_v23, 4  ;;  %v4423_v22 = vrot.slane %v4421_v44, 4  ;;  %v4426_v25 = vrot.slane %v4424_v39, 5  ;;  %v4432_v51 = vrot.slane %v4430_v15, 5  ;;  %v17916_v12 = vld [vmem:[#allocation2 + $0xa0] sm:$0xf] }
 0x14b   : > { %15391 = vmatprep.mubr.msk.bf16.mxu0 %vm1349_vm6, %v16030_v33  ;;  %v4414_v46 = vrot.slane %v4413_v27, 4  ;;  %v1490_v33 = vpop.f32.mrf.mxu0  ;;  %15425 = vmatprep.mubr.msk.bf16.mxu1 %vm1349_vm6, %v14105_v57  ;;  %v4436_v52 = vrot.slane %v4434_v40, 4  ;;  %v17844_v8 = vadd.f32 %v17772_v5, %v1487_v6  ;;  %v4442_v44 = vrot.slane %v4440_v17, 5  ;;  %v17853_v40 = vpop.f32.mrf.mxu1  ;;  %22004 = vst [vmem:[#allocation35_spill] sm:$0xff] %v17916_v12 }
 0x14c   : > { %v4409_v10 = vsel %vm16509_vm10, %v4404_v21, %v4408_v20  ;;  %v4427_v27 = vor.u32 %v4426_v25, %v4423_v22  ;;  %v4445_v39 = vshrl.u32 %v4249_v31, 16  ;;  %v4448_v57 = vshll.u32 %v4249_v31, 16  ;;  %v4252_v25 = vld [vmem:[#allocation2 + $0x78] sm:$0xf] }
 0x14d   : > { %21993 = vst [vmem:[#allocation24_spill] sm:$0xff] %v17844_v8  ;;  %v4419_v23 = vsel %vm16509_vm10, %v4414_v46, %v4418_v16  ;;  %v4437_v50 = vor.u32 %v4436_v52, %v4432_v51  ;;  %v4454_v28 = vshll.u32 %v17838_v59, 16  ;;  %v4458_v15 = vshrl.u32 %v17838_v59, 16  ;;  %v15197_v6 = vpop.f32.mrf.mxu0 }
 0x14e   : > { %v14106_v41 = vcombine.low %v4409_v10, %v4419_v23  ;;  %v4428_v20 = vrot.slane %v4427_v27, 4  ;;  %v4447_v21 = vrot.slane %v4445_v39, 4  ;;  %v4464_v5 = vshll.u32 %v17846_v14, 16  ;;  %v17863_v23 = vld [vmem:[#allocation2 + $0x7c] sm:$0xf] }
 0x14f   : > { %v4438_v16 = vrot.slane %v4437_v50, 4  ;;  %v4450_v46 = vrot.slane %v4448_v57, 5  ;;  %v4456_v22 = vrot.slane %v4454_v28, 5  ;;  %v4460_v17 = vrot.slane %v4458_v15, 4  ;;  %v17865_v27 = vld [vmem:[#allocation2 + $0x80] sm:$0x1]  ;;  %v17875_v15 = vpop.f32.mrf.mxu1 }
 0x150   : > { %15426 = vmatmul.mubr.msk.bf16.gmra.mxu1 %vm1349_vm6, %v14106_v41  ;;  %v4433_v31 = vsel %vm16509_vm10, %v4428_v20, %v4432_v51  ;;  %v4466_v10 = vrot.slane %v4464_v5, 5  ;;  %v17861_v52 = vadd.f32 %v17791_v56, %v15194_v11  ;;  %v17870_v28 = vadd.f32 %v17810_v9, %v1490_v33  ;;  %v16033_v51 = vld [vmem:[#allocation2 + $0x6c] sm:$0xff]   ;;  %21997 = vst [vmem:[#allocation28_spill] sm:$0xff] %v17875_v15  ;;  %v4255_v9 = vld [vmem:[#allocation2 + $0x84] sm:$0xf]  ;;  %v16034_v33 = vld [vmem:[#allocation2 + $0x78] sm:$0xff]  }
 0x151   : > { %v4443_v41 = vsel %vm16509_vm10, %v4438_v16, %v4442_v44  ;;  %v4451_v50 = vor.u32 %v4450_v46, %v4447_v21  ;;  %v4461_v57 = vor.u32 %v4460_v17, %v4456_v22  ;;  %v4469_v56 = vshrl.u32 %v4252_v25, 16 }
 0x152   : > { %15392 = vmatmul.mubr.msk.bf16.gmra.mxu0 %vm1349_vm6, %v16031_v63  ;;  %21994 = vst [vmem:[#allocation25_spill] sm:$0xff] %v17861_v52  ;;  %v1503_v63 = vpop.f32.mrf.mxu0  ;;  %21995 = vst [vmem:[#allocation26_spill] sm:$0xff] %v17870_v28  ;;  %v14107_v39 = vcombine.low %v4433_v31, %v4443_v41  ;;  %v4472_v11 = vshll.u32 %v4252_v25, 16  ;;  %v4478_v52 = vshll.u32 %v17863_v23, 16  ;;  %v4482_v44 = vshrl.u32 %v17863_v23, 16  ;;  %v16035_v28 = vld [vmem:[#allocation2 + $0x84] sm:$0xff]  }
 0x153   : > { %15395 = vmatprep.mubr.msk.bf16.mxu0 %vm1349_vm6, %v16032_v19  ;;  %v17873_v19 = vadd.f32 %v17822_v3, %v15197_v6  ;;  %v4452_v5 = vrot.slane %v4451_v50, 4  ;;  %v4488_v21 = vshll.u32 %v17865_v27, 16  ;;  %v4462_v3 = vrot.slane %v4461_v57, 4  ;;  %v17883_v25 = vld [vmem:[#allocation2 + $0x88] sm:$0xf] }
 0x154   : > { %v15198_v20 = vpop.f32.mrf.mxu0  ;;  %15429 = vmatprep.mubr.msk.bf16.mxu1 %vm1349_vm6, %v14107_v39  ;;  %v4471_v6 = vrot.slane %v4469_v56, 4  ;;  %v4474_v16 = vrot.slane %v4472_v11, 5  ;;  %v17881_v46 = vadd.f32 %v1795_v37, %v1503_v63  ;;  %v4480_v41 = vrot.slane %v4478_v52, 5  ;;  %v15235_v37 = vpop.f32.mrf.mxu1 }
 0x155   : > { %21996 = vst [vmem:[#allocation27_spill] sm:$0xff] %v17873_v19  ;;  %v4457_v17 = vsel %vm16509_vm10, %v4452_v5, %v4456_v22  ;;  %v4484_v50 = vrot.slane %v4482_v44, 4  ;;  %v4490_v15 = vrot.slane %v4488_v21, 5  ;;  %v17889_v19 = vld [vmem:[#allocation2 + $0x8c] sm:$0x1]  ;;  %v4467_v39 = vsel %vm16509_vm10, %v4462_v3, %v4466_v10 }
 0x156   : > { %21998 = vst [vmem:[#allocation29_spill] sm:$0xff] %v17881_v46  ;;  %v17885_v31 = vpop.f32.mrf.mxu0  ;;  %22000 = vst [vmem:[#allocation31_spill] sm:$0xff] %v17889_v19  ;;  %v4475_v57 = vor.u32 %v4474_v16, %v4471_v6  ;;  %v4493_v56 = vshrl.u32 %v4255_v9, 16  ;;  %v4496_v11 = vshll.u32 %v4255_v9, 16  ;;  %v14108_v63 = vcombine.low %v4457_v17, %v4467_v39  ;;  %v4258_v3 = vld [vmem:[#allocation2 + $0x90] sm:$0xf] }
 0x157   : > { %21999 = vst [vmem:[#allocation30_spill] sm:$0xff] %v17885_v31  ;;  %v4485_v46 = vor.u32 %v4484_v50, %v4480_v41  ;;  %v4502_v31 = vshll.u32 %v17883_v25, 16  ;;  %v4506_v22 = vshrl.u32 %v17883_v25, 16  ;;  %v4512_v10 = vshll.u32 %v17889_v19, 16  ;;  %v17902_v17 = vld [vmem:[#allocation2 + $0x94] sm:$0xf] }
 0x158   : > { %v15201_v52 = vpop.f32.mrf.mxu0  ;;  %v4476_v5 = vrot.slane %v4475_v57, 4  ;;  %v4495_v44 = vrot.slane %v4493_v56, 4  ;;  %v4498_v21 = vrot.slane %v4496_v11, 5  ;;  %15430 = vmatmul.mubr.msk.bf16.gmra.mxu1 %vm1349_vm6, %v14108_v63  ;;  %v17900_v16 = vadd.f32 %v17853_v40, %v15198_v20  ;;  %v17907_v56 = vld [vmem:[#allocation2 + $0x98] sm:$0x1]  ;;  %v1811_v11 = vpop.f32.mrf.mxu1  ;;  %v16036_v50 = vld [vmem:[#allocation2 + $0x90] sm:$0xff]  }
 0x159   : > { %v4486_v9 = vrot.slane %v4485_v46, 4  ;;  %v4504_v6 = vrot.slane %v4502_v31, 5  ;;  %v4514_v57 = vrot.slane %v4512_v10, 5  ;;  %22002 = vst [vmem:[#allocation33_spill] sm:$0xff] %v17907_v56  ;;  %v17911_v63 = vadd.f32 %v15235_v37, %v15201_v52 }
 0x15a   : > { %15396 = vmatmul.mubr.msk.bf16.gmra.mxu0 %vm1349_vm6, %v16033_v51  ;;  %v4508_v51 = vrot.slane %v4506_v22, 4  ;;  %22001 = vst [vmem:[#allocation32_spill] sm:$0xff] %v17900_v16  ;;  %v4499_v39 = vor.u32 %v4498_v21, %v4495_v44  ;;  %v4517_v40 = vshrl.u32 %v4258_v3, 16  ;;  %v1519_v20 = vpop.f32.mrf.mxu0  ;;  %v4520_v8 = vshll.u32 %v4258_v3, 16  ;;  %v17923_v3 = vld [vmem:[#allocation2 + $0xa4] sm:$0x1] }
 0x15b   : > { %15399 = vmatprep.mubr.msk.bf16.mxu0 %vm1349_vm6, %v16034_v33  ;;  %v4481_v33 = vsel %vm16509_vm10, %v4476_v5, %v4480_v41  ;;  %v4491_v46 = vsel %vm16509_vm10, %v4486_v9, %v4490_v15  ;;  %22003 = vst [vmem:[#allocation34_spill] sm:$0xff] %v17911_v63  ;;  %v4526_v41 = vshll.u32 %v17902_v17, 16  ;;  %v4261_v5 = vld [vmem:[#allocation2 + $0x9c] sm:$0xf]  ;;  %v4530_v10 = vshrl.u32 %v17902_v17, 16  ;;  %22006 = vst [vmem:[#allocation37_spill] sm:$0xff] %v17923_v3 }
 0x15c   : > { %v4509_v31 = vor.u32 %v4508_v51, %v4504_v6  ;;  %v14109_v22 = vcombine.low %v4481_v33, %v4491_v46  ;;  %v4500_v16 = vrot.slane %v4499_v39, 4  ;;  %v4519_v21 = vrot.slane %v4517_v40, 4  ;;  %v15236_v51 = vpop.f32.mrf.mxu1  ;;  %v15202_v40 = vpop.f32.mrf.mxu0 }
 0x15d   : > { %v4536_v0 = vshll.u32 %v17907_v56, 16  ;;  %v4522_v37 = vrot.slane %v4520_v8, 5  ;;  %v4528_v52 = vrot.slane %v4526_v41, 5  ;;  %v17921_v9 = vadd.f32 %v1811_v11, %v1519_v20 }
 0x15e   : > { %v4510_v44 = vrot.slane %v4509_v31, 4  ;;  %15433 = vmatprep.mubr.msk.bf16.mxu1 %vm1349_vm6, %v14109_v22  ;;  %v4505_v15 = vsel %vm16509_vm10, %v4500_v16, %v4504_v6  ;;  %v4532_v39 = vrot.slane %v4530_v10, 4  ;;  %v4541_v31 = vshrl.u32 %v4261_v5, 16 }
 0x15f   : > { %22005 = vst [vmem:[#allocation36_spill] sm:$0xff] %v17921_v9  ;;  %v4538_v46 = vrot.slane %v4536_v0, 5  ;;  %v4523_v6 = vor.u32 %v4522_v37, %v4519_v21  ;;  %v4544_v8 = vshll.u32 %v4261_v5, 16  ;;  %v4550_v16 = vshll.u32 %v17916_v12, 16  ;;  %v4264_v9 = vld [vmem:[#allocation2 + $0xa8] sm:$0xf] }
 0x160   : > { %v4515_v33 = vsel %vm16509_vm10, %v4510_v44, %v4514_v57  ;;  %v4533_v11 = vor.u32 %v4532_v39, %v4528_v52  ;;  %v4543_v20 = vrot.slane %v4541_v31, 4  ;;  %v4554_v41 = vshrl.u32 %v17916_v12, 16  ;;  %v16037_v21 = vld [vmem:[#allocation2 + $0x9c] sm:$0xff]  }
 0x161   : > { %v14110_v22 = vcombine.low %v4505_v15, %v4515_v33  ;;  %v4524_v57 = vrot.slane %v4523_v6, 4  ;;  %v4546_v0 = vrot.slane %v4544_v8, 5  ;;  %v4552_v44 = vrot.slane %v4550_v16, 5  ;;  %v17935_v15 = vpop.f32.mrf.mxu1  ;;  %v17942_v6 = vld [vmem:[#allocation2 + $0xb0] sm:$0x1] }
 0x162   : > { %15400 = vmatmul.mubr.msk.bf16.gmra.mxu0 %vm1349_vm6, %v16035_v28  ;;  %v4560_v28 = vshll.u32 %v17923_v3, 16  ;;  %v17933_v10 = vadd.f32 %v15236_v51, %v15202_v40  ;;  %22008 = vst [vmem:[#allocation39_spill] sm:$0xff] %v17935_v15  ;;  %v4534_v37 = vrot.slane %v4533_v11, 4  ;;  %v4556_v33 = vrot.slane %v4554_v41, 4  ;;  %22010 = vst [vmem:[#allocation41_spill] sm:$0xff] %v17942_v6 }
 0x163   : > { %15403 = vmatprep.mubr.msk.bf16.mxu0 %vm1349_vm6, %v16036_v50  ;;  %15434 = vmatmul.mubr.msk.bf16.gmra.mxu1 %vm1349_vm6, %v14110_v22  ;;  %v17937_v50 = vld [vmem:[#allocation2 + $0xac] sm:$0xf]  ;;  %v4529_v31 = vsel %vm16509_vm10, %v4524_v57, %v4528_v52  ;;  %v4547_v63 = vor.u32 %v4546_v0, %v4543_v20  ;;  %v4565_v8 = vshrl.u32 %v4264_v9, 16  ;;  %v4568_v51 = vshll.u32 %v4264_v9, 16  ;;  %v4267_v11 = vld [vmem:[#allocation2 + $0xb4] sm:$0xf] }
 0x164   : > { %22007 = vst [vmem:[#allocation38_spill] sm:$0xff] %v17933_v10  ;;  %22009 = vst [vmem:[#allocation40_spill] sm:$0xff] %v17937_v50  ;;  %v4562_v39 = vrot.slane %v4560_v28, 5  ;;  %v16038_v22 = vld [vmem:[#allocation2 + $0xa8] sm:$0xff]   ;;  %v4539_v40 = vsel %vm16509_vm10, %v4534_v37, %v4538_v46  ;;  %v4557_v16 = vor.u32 %v4556_v33, %v4552_v44  ;;  %v4574_v15 = vshll.u32 %v17937_v50, 16 }
 0x165   : > { %v4578_v5 = vshrl.u32 %v17937_v50, 16  ;;  %v14111_v41 = vcombine.low %v4529_v31, %v4539_v40  ;;  %v4548_v28 = vrot.slane %v4547_v63, 4  ;;  %v4567_v3 = vrot.slane %v4565_v8, 4  ;;  %v17948_v20 = vld [vmem:[#allocation2 + $0xb8] sm:$0xf] }
 0x166   : > { %v4570_v52 = vrot.slane %v4568_v51, 5  ;;  %22011 = vst [vmem:[#allocation42_spill] sm:$0xff] %v17948_v20  ;;  %v4558_v57 = vrot.slane %v4557_v16, 4  ;;  %v4576_v9 = vrot.slane %v4574_v15, 5  ;;  %v4584_v46 = vshll.u32 %v17942_v6, 16 }
 0x167   : > { %v15239_v10 = vpop.f32.mrf.mxu1  ;;  %v4580_v0 = vrot.slane %v4578_v5, 4  ;;  %15437 = vmatprep.mubr.msk.bf16.mxu1 %vm1349_vm6, %v14111_v41  ;;  %v4553_v37 = vsel %vm16509_vm10, %v4548_v28, %v4552_v44  ;;  %v17956_v31 = vld [vmem:[#allocation2 + $0xbc] sm:$0x1]  ;;  %v4589_v8 = vshrl.u32 %v4267_v11, 16  ;;  %v4592_v51 = vshll.u32 %v4267_v11, 16 }
 0x168   : > { %v4571_v63 = vor.u32 %v4570_v52, %v4567_v3  ;;  %22012 = vst [vmem:[#allocation43_spill] sm:$0xff] %v17956_v31  ;;  %v4586_v5 = vrot.slane %v4584_v46, 5  ;;  %v4598_v40 = vshll.u32 %v17948_v20, 16  ;;  %v4270_v16 = vld [vmem:[#allocation2 + $0xc0] sm:$0xf]  ;;  %v17963_v3 = vpop.f32.mrf.mxu0  ;;  %v16039_v52 = vld [vmem:[#allocation2 + $0xb4] sm:$0xff]  }
 0x169   : > { %v1827_v33 = vpop.f32.mrf.mxu1  ;;  %v4581_v15 = vor.u32 %v4580_v0, %v4576_v9  ;;  %v4591_v50 = vrot.slane %v4589_v8, 4  ;;  %v4594_v44 = vrot.slane %v4592_v51, 5  ;;  %22013 = vst [vmem:[#allocation44_spill] sm:$0xff] %v17963_v3  ;;  %v4602_v56 = vshrl.u32 %v17948_v20, 16 }
 0x16a   : > { %15404 = vmatmul.mubr.msk.bf16.gmra.mxu0 %vm1349_vm6, %v16037_v21  ;;  %v4563_v21 = vsel %vm16509_vm10, %v4558_v57, %v4562_v39  ;;  %v4572_v6 = vrot.slane %v4571_v63, 4  ;;  %v4600_v11 = vrot.slane %v4598_v40, 5  ;;  %v4608_v39 = vshll.u32 %v17956_v31, 16  ;;  %v17972_v63 = vld [vmem:[#allocation2 + $0xc8] sm:$0x1] }
 0x16b   : > { %15407 = vmatprep.mubr.msk.bf16.mxu0 %vm1349_vm6, %v16038_v22  ;;  %v14112_v41 = vcombine.low %v4553_v37, %v4563_v21  ;;  %v15240_v28 = vpop.f32.mrf.mxu1  ;;  %v17961_v22 = vld [vmem:[#allocation2 + $0xc4] sm:$0xf]  ;;  %v4582_v12 = vrot.slane %v4581_v15, 4  ;;  %v4595_v0 = vor.u32 %v4594_v44, %v4591_v50  ;;  %22015 = vst [vmem:[#allocation46_spill] sm:$0xff] %v17972_v63  ;;  %v4613_v8 = vshrl.u32 %v4270_v16, 16 }
 0x16c   : > { %v4577_v57 = vsel %vm16509_vm10, %v4572_v6, %v4576_v9  ;;  %v16040_v37 = vld [vmem:[#allocation2 + $0xc0] sm:$0xff]   ;;  %v4616_v51 = vshll.u32 %v4270_v16, 16  ;;  %v4604_v15 = vrot.slane %v4602_v56, 4  ;;  %v4610_v40 = vrot.slane %v4608_v39, 5  ;;  %v4273_v31 = vld [vmem:[#allocation2 + $0xcc] sm:$0xf] }
 0x16d   : > { %15438 = vmatmul.mubr.msk.bf16.gmra.mxu1 %vm1349_vm6, %v14112_v41  ;;  %v17970_v46 = vpop.f32.mrf.mxu1  ;;  %v4587_v21 = vsel %vm16509_vm10, %v4582_v12, %v4586_v5  ;;  %v4622_v3 = vshll.u32 %v17961_v22, 16  ;;  %v4596_v20 = vrot.slane %v4595_v0, 4  ;;  %v4615_v19 = vrot.slane %v4613_v8, 4 }
 0x16e   : > { %22014 = vst [vmem:[#allocation45_spill] sm:$0xff] %v17970_v46  ;;  %v14113_v41 = vcombine.low %v4577_v57, %v4587_v21  ;;  %v4618_v6 = vrot.slane %v4616_v51, 5  ;;  %v4605_v9 = vor.u32 %v4604_v15, %v4600_v11  ;;  %v4626_v46 = vshrl.u32 %v17961_v22, 16 }
 0x16f   : > { %v4624_v44 = vrot.slane %v4622_v3, 5  ;;  %v4632_v16 = vshll.u32 %v17972_v63, 16  ;;  %v4601_v56 = vsel %vm16509_vm10, %v4596_v20, %v4600_v11  ;;  %v4640_v51 = vshll.u32 %v4273_v31, 16 }
 0x170   : > { %v15205_v50 = vpop.f32.mrf.mxu0  ;;  %15441 = vmatprep.mubr.msk.bf16.mxu1 %vm1349_vm6, %v14113_v41  ;;  %v4619_v39 = vor.u32 %v4618_v6, %v4615_v19  ;;  %v4606_v3 = vrot.slane %v4605_v9, 4  ;;  %v4628_v0 = vrot.slane %v4626_v46, 4  ;;  %v16041_v19 = vld [vmem:[#allocation2 + $0xcc] sm:$0xff]   ;;  %v4650_v46 = vshrl.u32 %v17980_v54, 16  ;;  %v4954_v9 = vld [vmem:[#allocation2 + $0x18] sm:$0xe] }
 0x171   : > { %v17982_v12 = vadd.f32 %v15239_v10, %v15205_v50  ;;  %v15243_v5 = vpop.f32.mrf.mxu1  ;;  %v4634_v8 = vrot.slane %v4632_v16, 5  ;;  %v17990_v50 = vld [vmem:[#allocation2 + $0xd4] sm:$0x1]  ;;  %v4642_v6 = vrot.slane %v4640_v51, 5  ;;  %vm5498_vm2 = vcmask 122880  }
 0x172   : > { %15408 = vmatmul.mubr.msk.bf16.gmra.mxu0 %vm1349_vm6, %v16039_v52  ;;  %v4637_v52 = vshrl.u32 %v4273_v31, 16  ;;  %v1535_v57 = vpop.f32.mrf.mxu0  ;;  %v4620_v15 = vrot.slane %v4619_v39, 4  ;;  %v4611_v20 = vsel %vm16509_vm10, %v4606_v3, %v4610_v40  ;;  %v4652_v40 = vrot.slane %v4650_v46, 4  ;;  %vm18805_vm5 = vmand %vm5498_vm2, %vm422_vm7 }
 0x173   : > { %22016 = vst [vmem:[#allocation47_spill] sm:$0xff] %v17982_v12  ;;  %15411 = vmatprep.mubr.msk.bf16.mxu0 %vm1349_vm6, %v16040_v37  ;;  %v17988_v21 = vadd.f32 %v1827_v33, %v1535_v57  ;;  %v1843_v10 = vpop.f32.mrf.mxu1  ;;  %v4646_v12 = vshll.u32 %v17980_v54, 16  ;;  %v4629_v37 = vor.u32 %v4628_v0, %v4624_v44  ;;  %v14114_v31 = vcombine.low %v4601_v56, %v4611_v20 }
 0x174   : > { %v4639_v41 = vrot.slane %v4637_v52, 4  ;;  %v15206_v11 = vpop.f32.mrf.mxu0  ;;  %v4625_v16 = vsel %vm16509_vm10, %v4620_v15, %v4624_v44  ;;  %v4656_v3 = vshll.u32 %v17990_v50, 16  ;;  %v5020_v56 = vrot.slane %v17676_v47, 5 }
 0x175   : > { %22017 = vst [vmem:[#allocation48_spill] sm:$0xff] %v17988_v21  ;;  %v17996_v33 = vadd.f32 %v15240_v28, %v15206_v11  ;;  %v4648_v39 = vrot.slane %v4646_v12, 5  ;;  %v15244_v52 = vpop.f32.mrf.mxu1  ;;  %v4630_v21 = vrot.slane %v4629_v37, 4  ;;  %15442 = vmatmul.mubr.msk.bf16.gmra.mxu1 %vm1349_vm6, %v14114_v31  ;;  %v14133_v28 = vrot.slane %v4954_v9, 9  ;;  %v4955_v12 = vld [vmem:[#allocation2 + $0x24] sm:$0xe] }
 0x176   : > { %v18000_v57 = vpop.f32.mrf.mxu0  ;;  %v4643_v63 = vor.u32 %v4642_v6, %v4639_v41  ;;  %v5023_v44 = vrot.slane %v17681_v61, 5  ;;  %v4658_v37 = vrot.slane %v4656_v3, 5  ;;  %v4956_v6 = vld [vmem:[#allocation2 + $0x30] sm:$0xe]  ;;  %v5022_v47 = vrot.slane %v5020_v56, 4 }
 0x177   : > { %22018 = vst [vmem:[#allocation49_spill] sm:$0xff] %v18000_v57  ;;  %v18005_v51 = vpop.f32.mrf.mxu1  ;;  %v4635_v41 = vsel %vm16509_vm10, %v4630_v21, %v4634_v8  ;;  %v4653_v11 = vor.u32 %v4652_v40, %v4648_v39  ;;  %v5021_v9 = vsel %vm16848_vm0, %v14133_v28, %v5020_v56  ;;  %v14134_v57 = vrot.slane %v4955_v12, 9  ;;  %v4957_v28 = vld [vmem:[#allocation2 + $0x3c] sm:$0xe] }
 0x178   : > { %22019 = vst [vmem:[#allocation50_spill] sm:$0xff] %v18005_v51  ;;  %v15209_v15 = vpop.f32.mrf.mxu0  ;;  %v4644_v20 = vrot.slane %v4643_v63, 4  ;;  %v14115_v31 = vcombine.low %v4625_v16, %v4635_v41  ;;  %v22020_v8 = vrot.slane %v17694_v35, 5  ;;  %v14135_v40 = vrot.slane %v4956_v6, 9 }
 0x179   : > { %v18012_v46 = vadd.f32 %v15243_v5, %v15209_v15  ;;  %v15283_v0 = vpop.f32.mrf.mxu1  ;;  %v5024_v5 = vsel %vm16848_vm0, %v5022_v47, %v5023_v44  ;;  %v5034_v3 = vrot.slane %v17723_v55, 5  ;;  %vm10758_vm7 = vcmask 261120  }
 0x17a   : > { %15412 = vmatmul.mubr.msk.bf16.gmra.mxu0 %vm1349_vm6, %v16041_v19  ;;  %v1551_v61 = vpop.f32.mrf.mxu0  ;;  %v4649_v51 = vsel %vm16509_vm10, %v4644_v20, %v4648_v39  ;;  %v4654_v19 = vrot.slane %v4653_v11, 4  ;;  %v5029_v63 = vrot.slane %v22020_v8, 4  ;;  %15445 = vmatprep.mubr.msk.bf16.mxu1 %vm1349_vm6, %v14115_v31  ;;  %v14150_v12 = vcombine.low %v5021_v9, %v5024_v5  ;;  %v4958_v20 = vld [vmem:[#allocation2 + $0x48] sm:$0xe]  ;;  %v4959_v9 = vld [vmem:[#allocation2 + $0x54] sm:$0xe] }
 0x17b   : > { %v18021_v21 = vadd.f32 %v1843_v10, %v1551_v61  ;;  %v2514_v16 = vpop.f32.mrf.mxu1  ;;  %v22021_v15 = vmov %v22020_v8  ;;  %v22022_v10 = vrot.slane %v17702_v13, 5  ;;  %v5036_v35 = vrot.slane %v5034_v3, 4 }
 0x17c   : > { %v4659_v39 = vsel %vm16509_vm10, %v4654_v19, %v4658_v37  ;;  %v15210_v56 = vpop.f32.mrf.mxu0  ;;  %v5028_v41 = vsel %vm16848_vm0, %v14134_v57, %v22021_v15  ;;  %v5035_v37 = vsel %vm16848_vm0, %v14135_v40, %v5034_v3  ;;  %15451 = vmatprep.mubr.msk.bf16.mxu0 %vm1349_vm6, %v14150_v12  ;;  %v5037_v13 = vrot.slane %v17725_v1, 5 }
 0x17d   : > { %v5031_v44 = vsel %vm16848_vm0, %v5029_v63, %v22022_v10  ;;  %v14116_v11 = vcombine.low %v4649_v51, %v4659_v39  ;;  %v18036_v6 = vadd.f32 %v15244_v52, %v15210_v56  ;;  %v15284_v31 = vpop.f32.mrf.mxu1  ;;  %v14136_v57 = vrot.slane %v4957_v28, 9 }
 0x17e   : > { %v14151_v55 = vcombine.low %v5028_v41, %v5031_v44  ;;  %v18040_v47 = vpop.f32.mrf.mxu0  ;;  %v5041_v61 = vrot.slane %v17743_v43, 5  ;;  %v14137_v51 = vrot.slane %v4958_v20, 9  ;;  %v5048_v19 = vrot.slane %v17768_v38, 5  ;;  %v4960_v38 = vld [vmem:[#allocation2 + $0x60] sm:$0xe] }
 0x17f   : > { %15446 = vmatmul.mubr.msk.bf16.gmra.mxu1 %vm1349_vm6, %v14116_v11  ;;  %v18046_v52 = vpop.f32.mrf.mxu1  ;;  %v5051_v8 = vrot.slane %v17775_v53, 5  ;;  %v5058_v63 = vrot.slane %v17795_v4, 5  ;;  %v5038_v1 = vsel %vm16848_vm0, %v5036_v35, %v5037_v13  ;;  %v14138_v3 = vrot.slane %v4959_v9, 9 }
 0x180   : > { %v15249_v5 = vpop.f32.mrf.mxu0  ;;  %v5043_v40 = vrot.slane %v5041_v61, 4  ;;  %v14152_v28 = vcombine.low %v5035_v37, %v5038_v1  ;;  %v5042_v39 = vsel %vm16848_vm0, %v14136_v57, %v5041_v61  ;;  %v5050_v56 = vrot.slane %v5048_v19, 4 }
 0x181   : > { %v2285_v43 = vadd.f32 %v15249_v5, %v17691_v34  ;;  %v22023_v53 = vrot.slane %v17748_v2, 5  ;;  %v5049_v41 = vsel %vm16848_vm0, %v14137_v51, %v5048_v19  ;;  %v5055_v10 = vrot.slane %v17789_v48, 5 }
 0x182   : > { %15452 = vmatmul.mubr.msk.bf16.vlgmr.msra.gmra.mxu0 %vm1349_vm6, %v14151_v55  ;;  %v2156_v12 = vpop.f32.mrf.mxu0  ;;  %v15287_v15 = vpop.f32.mrf.mxu1  ;;  %v5062_v34 = vrot.slane %v17820_v60, 5  ;;  %v5072_v44 = vrot.slane %v17846_v14, 5  ;;  %v5052_v2 = vsel %vm16848_vm0, %v5050_v56, %v5051_v8  ;;  %v4961_v55 = vld [vmem:[#allocation2 + $0x6c] sm:$0xe]  ;;  %v14139_v60 = vrot.slane %v4960_v38, 9 }
 0x183   : > { %v5045_v4 = vsel %vm16848_vm0, %v5043_v40, %v22023_v53  ;;  %v2283_v20 = vadd.f32 %v2156_v12, %v17709_v30  ;;  %v18067_v11 = vadd.f32 %v15283_v0, %v2285_v43  ;;  %15455 = vmatprep.mubr.msk.bf16.mxu0 %vm1349_vm6, %v14152_v28  ;;  %v5056_v48 = vsel %vm16848_vm0, %v14138_v3, %v5055_v10 }
 0x184   : > { %v15250_v37 = vpop.f32.mrf.mxu0  ;;  %v14153_v9 = vcombine.low %v5042_v39, %v5045_v4  ;;  %v2530_v35 = vpop.f32.mrf.mxu1  ;;  %v5057_v13 = vrot.slane %v5055_v10, 4  ;;  %v14154_v30 = vcombine.low %v5049_v41, %v5052_v2  ;;  %v5064_v0 = vrot.slane %v5062_v34, 4  ;;  %v4962_v4 = vld [vmem:[#allocation2 + $0x78] sm:$0xe] }
 0x185   : > { %v2286_v14 = vadd.f32 %v15250_v37, %v17735_v24  ;;  %v18075_v57 = vadd.f32 %v2514_v16, %v2283_v20  ;;  %v5065_v8 = vrot.slane %v17830_v7, 5  ;;  %v14140_v5 = vrot.slane %v4961_v55, 9 }
 0x186   : > { %v18077_v61 = vpop.f32.mrf.mxu0  ;;  %v15288_v51 = vpop.f32.mrf.mxu1  ;;  %v5059_v19 = vsel %vm16848_vm0, %v5057_v13, %v5058_v63  ;;  %v5069_v1 = vrot.slane %v17838_v59, 5  ;;  %v5063_v59 = vsel %vm16848_vm0, %v14139_v60, %v5062_v34  ;;  %v5076_v38 = vrot.slane %v17863_v23, 5 }
 0x187   : > { %v18083_v40 = vadd.f32 %v15284_v31, %v2286_v14  ;;  %v14155_v3 = vcombine.low %v5056_v48, %v5059_v19  ;;  %v5066_v31 = vsel %vm16848_vm0, %v5064_v0, %v5065_v8  ;;  %v1751_v20 = vadd.f32 %v17646_v49, %v17700_v32  ;;  %v4963_v32 = vld [vmem:[#allocation2 + $0x84] sm:$0xe] }
 0x188   : > { %v15253_v43 = vpop.f32.mrf.mxu0  ;;  %v18086_v24 = vpop.f32.mrf.mxu1  ;;  %v5070_v16 = vsel %vm16848_vm0, %v14140_v5, %v5069_v1  ;;  %v5071_v28 = vrot.slane %v5069_v1, 4  ;;  %v14156_v55 = vcombine.low %v5063_v59, %v5066_v31  ;;  %v5078_v23 = vrot.slane %v5076_v38, 4  ;;  %v22024_v8 = vld [vmem:[#allocation21_spill] sm:$0xff] }
 0x189   : > { %v2289_v39 = vadd.f32 %v15253_v43, %v17741_v62  ;;  %v5090_v0 = vrot.slane %v17902_v17, 5  ;;  %v1767_v5 = vadd.f32 %v22024_v8, %v17770_v26  ;;  %v22025_v43 = vld [vmem:[#allocation31_spill] sm:$0xff]  ;;  %vm12430_vm11 = vcmask 256000  }
 0x18a   : > { %15456 = vmatmul.mubr.msk.bf16.gmra.mxu0 %vm1349_vm6, %v14153_v9  ;;  %v2172_v7 = vpop.f32.mrf.mxu0  ;;  %v15291_v63 = vpop.f32.mrf.mxu1  ;;  %v5073_v56 = vsel %vm16848_vm0, %v5071_v28, %v5072_v44  ;;  %v14141_v9 = vrot.slane %v4962_v4, 9  ;;  %v22026_v28 = vld [vmem:[#allocation22_spill] sm:$0xff]  ;;  %vm12452_vm14 = vcmask 254976   ;;  %vm12518_vm15 = vsmask.f32 1280 }
 0x18b   : > { %15459 = vmatprep.mubr.msk.bf16.mxu0 %vm1349_vm6, %v14154_v30  ;;  %v2287_v12 = vadd.f32 %v2172_v7, %v17760_v58  ;;  %v18100_v53 = vadd.f32 %v15287_v15, %v2289_v39  ;;  %v14157_v62 = vcombine.low %v5070_v16, %v5073_v56  ;;  %v5079_v58 = vrot.slane %v17865_v27, 5 }
 0x18c   : > { %v15254_v41 = vpop.f32.mrf.mxu0  ;;  %v2546_v10 = vpop.f32.mrf.mxu1  ;;  %v5077_v27 = vsel %vm16848_vm0, %v14141_v9, %v5076_v38  ;;  %v5086_v16 = vrot.slane %v22025_v43, 5  ;;  %v22027_v38 = vld [vmem:[#allocation33_spill] sm:$0xff] }
 0x18d   : > { %v2290_v34 = vadd.f32 %v15254_v41, %v17781_v18  ;;  %v18105_v2 = vadd.f32 %v2530_v35, %v2287_v12  ;;  %v5083_v18 = vrot.slane %v17883_v25, 5  ;;  %v5080_v30 = vsel %vm16848_vm0, %v5078_v23, %v5079_v58  ;;  %v4965_v58 = vld [vmem:[#allocation2 + $0x9c] sm:$0xe]  ;;  %v22032_v43 = vld [vmem:[#allocation25_spill] sm:$0xff] }
 0x18e   : > { %v2175_v37 = vpop.f32.mrf.mxu0  ;;  %v15292_v44 = vpop.f32.mrf.mxu1  ;;  %v14158_v59 = vcombine.low %v5077_v27, %v5080_v30  ;;  %v5093_v12 = vrot.slane %v22027_v38, 5  ;;  %v22031_v27 = vld [vmem:[#allocation24_spill] sm:$0xff]  ;;  %v22034_v38 = vld [vmem:[#allocation41_spill] sm:$0xff] }
 0x18f   : > { %v18108_v15 = vadd.f32 %v2175_v37, %v1751_v20  ;;  %v18110_v48 = vadd.f32 %v15288_v51, %v2290_v34  ;;  %v5085_v31 = vrot.slane %v5083_v18, 4  ;;  %v22028_v34 = vld [vmem:[#allocation35_spill] sm:$0xff] }
 0x190   : > { %v15257_v13 = vpop.f32.mrf.mxu0  ;;  %v18113_v60 = vpop.f32.mrf.mxu1 }
 0x191   : > { %v2293_v49 = vadd.f32 %v15257_v13, %v17787_v36  ;;  %v4964_v36 = vld [vmem:[#allocation2 + $0x90] sm:$0xe]  ;;  %v5087_v23 = vsel %vm16848_vm0, %v5085_v31, %v5086_v16 }
 0x192   : > { %15460 = vmatmul.mubr.msk.bf16.gmra.mxu0 %vm1349_vm6, %v14155_v3  ;;  %v2188_v35 = vpop.f32.mrf.mxu0  ;;  %v15295_v14 = vpop.f32.mrf.mxu1  ;;  %v14142_v3 = vrot.slane %v4963_v32, 9  ;;  %v22030_v32 = vld [vmem:[#allocation40_spill] sm:$0xff] }
 0x193   : > { %15463 = vmatprep.mubr.msk.bf16.mxu0 %vm1349_vm6, %v14156_v55  ;;  %v2291_v51 = vadd.f32 %v2188_v35, %v17806_v42  ;;  %v18124_v19 = vadd.f32 %v15291_v63, %v2293_v49  ;;  %v14143_v42 = vrot.slane %v4964_v36, 9  ;;  %v5092_v63 = vrot.slane %v5090_v0, 4  ;;  %v22029_v55 = vld [vmem:[#allocation23_spill] sm:$0xff]  ;;  %v4966_v36 = vld [vmem:[#allocation2 + $0xa8] sm:$0xe] }
 0x194   : > { %v15258_v1 = vpop.f32.mrf.mxu0  ;;  %v2562_v25 = vpop.f32.mrf.mxu1  ;;  %v5084_v9 = vsel %vm16848_vm0, %v14142_v3, %v5083_v18  ;;  %v5104_v35 = vrot.slane %v22030_v32, 5 }
 0x195   : > { %v2294_v39 = vadd.f32 %v15258_v1, %v22026_v28  ;;  %v18130_v7 = vadd.f32 %v2546_v10, %v2291_v51  ;;  %v5097_v10 = vrot.slane %v22028_v34, 5  ;;  %v5094_v49 = vsel %vm16848_vm0, %v5092_v63, %v5093_v12  ;;  %v22035_v12 = vld [vmem:[#allocation26_spill] sm:$0xff] }
 0x196   : > { %v2191_v17 = vpop.f32.mrf.mxu0  ;;  %v15296_v56 = vpop.f32.mrf.mxu1  ;;  %v14159_v8 = vcombine.low %v5084_v9, %v5087_v23  ;;  %v14144_v1 = vrot.slane %v4965_v58, 9  ;;  %v5106_v63 = vrot.slane %v5104_v35, 4 }
 0x197   : > { %v18133_v4 = vadd.f32 %v2191_v17, %v1767_v5  ;;  %v18135_v26 = vadd.f32 %v15292_v44, %v2294_v39  ;;  %v5099_v3 = vrot.slane %v5097_v10, 4  ;;  %v22033_v39 = vld [vmem:[#allocation37_spill] sm:$0xff] }
 0x198   : > { %v15261_v41 = vpop.f32.mrf.mxu0  ;;  %v18138_v20 = vpop.f32.mrf.mxu1  ;;  %v5098_v23 = vsel %vm16848_vm0, %v14144_v1, %v5097_v10  ;;  %v4968_v10 = vld [vmem:[#allocation2 + $0xc0] sm:$0xe] }
 0x199   : > { %v2297_v37 = vadd.f32 %v15261_v41, %v22029_v55 }
 0x19a   : > { %15464 = vmatmul.mubr.msk.bf16.gmra.mxu0 %vm1349_vm6, %v14157_v62  ;;  %v2204_v44 = vpop.f32.mrf.mxu0  ;;  %v15299_v13 = vpop.f32.mrf.mxu1  ;;  %v5091_v62 = vsel %vm16848_vm0, %v14143_v42, %v5090_v0  ;;  %v14145_v42 = vrot.slane %v4966_v36, 9  ;;  %v5118_v36 = vrot.slane %v17961_v22, 5 }
 0x19b   : > { %15467 = vmatprep.mubr.msk.bf16.mxu0 %vm1349_vm6, %v14158_v59  ;;  %v2295_v30 = vadd.f32 %v2204_v44, %v22031_v27  ;;  %v18153_v51 = vadd.f32 %v15295_v14, %v2297_v37  ;;  %v14160_v0 = vcombine.low %v5091_v62, %v5094_v49  ;;  %v5100_v59 = vrot.slane %v22033_v39, 5  ;;  %v4967_v44 = vld [vmem:[#allocation2 + $0xb4] sm:$0xe]  ;;  %v22037_v62 = vld [vmem:[#allocation42_spill] sm:$0xff] }
 0x19c   : > { %v15262_v18 = vpop.f32.mrf.mxu0  ;;  %v2578_v5 = vpop.f32.mrf.mxu1  ;;  %v5107_v14 = vrot.slane %v22034_v38, 5  ;;  %v5111_v49 = vrot.slane %v22037_v62, 5  ;;  %v5105_v27 = vsel %vm16848_vm0, %v14145_v42, %v5104_v35  ;;  %v22039_v39 = vld [vmem:[#allocation43_spill] sm:$0xff] }
 0x19d   : > { %v2298_v16 = vadd.f32 %v15262_v18, %v22032_v43  ;;  %v18156_v28 = vadd.f32 %v2562_v25, %v2295_v30  ;;  %v22036_v25 = vld [vmem:[#allocation27_spill] sm:$0xff]  ;;  %v5101_v58 = vsel %vm16848_vm0, %v5099_v3, %v5100_v59  ;;  %v22038_v18 = vld [vmem:[#allocation29_spill] sm:$0xff]  ;;  %v5114_v59 = vrot.slane %v22039_v39, 5 }
 0x19e   : > { %v2207_v31 = vpop.f32.mrf.mxu0  ;;  %v15300_v17 = vpop.f32.mrf.mxu1  ;;  %v5108_v30 = vsel %vm16848_vm0, %v5106_v63, %v5107_v14  ;;  %v14161_v3 = vcombine.low %v5098_v23, %v5101_v58  ;;  %v5113_v42 = vrot.slane %v5111_v49, 4  ;;  %v14147_v14 = vrot.slane %v4968_v10, 9 }
 0x19f   : > { %v18161_v41 = vadd.f32 %v2207_v31, %v22035_v12  ;;  %v18163_v34 = vadd.f32 %v15296_v56, %v2298_v16  ;;  %v22040_v31 = vld [vmem:[#allocation32_spill] sm:$0xff]  ;;  %v14162_v35 = vcombine.low %v5105_v27, %v5108_v30  ;;  %v4969_v27 = vld [vmem:[#allocation2 + $0xcc] sm:$0xe]  ;;  %v5125_v30 = vrot.slane %v17980_v54, 5 }
 0x1a0   : > { %v15265_v55 = vpop.f32.mrf.mxu0  ;;  %v18166_v37 = vpop.f32.mrf.mxu1  ;;  %v14148_v54 = vrot.slane %v4969_v27, 9 }
 0x1a1   : > { %v2301_v9 = vadd.f32 %v15265_v55, %v22036_v25  ;;  %v5120_v55 = vrot.slane %v5118_v36, 4 }
 0x1a2   : > { %15468 = vmatmul.mubr.msk.bf16.gmra.mxu0 %vm1349_vm6, %v14159_v8  ;;  %v2220_v56 = vpop.f32.mrf.mxu0  ;;  %v15303_v32 = vpop.f32.mrf.mxu1 }
 0x1a3   : > { %15471 = vmatprep.mubr.msk.bf16.mxu0 %vm1349_vm6, %v14160_v0  ;;  %v2299_v8 = vadd.f32 %v2220_v56, %v22038_v18  ;;  %v18181_v43 = vadd.f32 %v15299_v13, %v2301_v9  ;;  %v14146_v0 = vrot.slane %v4967_v44, 9  ;;  %v22041_v13 = vld [vmem:[#allocation46_spill] sm:$0xff]  ;;  %v5115_v56 = vsel %vm16848_vm0, %v5113_v42, %v5114_v59 }
 0x1a4   : > { %v15266_v1 = vpop.f32.mrf.mxu0  ;;  %v2594_v16 = vpop.f32.mrf.mxu1  ;;  %v5121_v25 = vrot.slane %v22041_v13, 5  ;;  %v22042_v44 = vld [vmem:[#allocation34_spill] sm:$0xff] }
 0x1a5   : > { %v2302_v38 = vadd.f32 %v15266_v1, %v22040_v31  ;;  %v18185_v12 = vadd.f32 %v2578_v5, %v2299_v8  ;;  %v5112_v5 = vsel %vm16848_vm0, %v14146_v0, %v5111_v49  ;;  %v5119_v8 = vsel %vm16848_vm0, %v14147_v14, %v5118_v36  ;;  %v16042_v1 = vld [vmem:[%s21932_s3 + $0x8] sm:$0xff]  }
 0x1a6   : > { %v18187_v63 = vpop.f32.mrf.mxu0  ;;  %v15304_v22 = vpop.f32.mrf.mxu1  ;;  %v5122_v10 = vsel %vm16848_vm0, %v5120_v55, %v5121_v25  ;;  %v14163_v59 = vcombine.low %v5112_v5, %v5115_v56  ;;  %15483 = vmatprep.subr.bf16.mxu1 %v16042_v1  ;;  %v5127_v55 = vrot.slane %v5125_v30, 4 }
 0x1a7   : > { %v18190_v9 = vadd.f32 %v15300_v17, %v2302_v38  ;;  %v5128_v38 = vrot.slane %v17990_v50, 5  ;;  %v14164_v14 = vcombine.low %v5119_v8, %v5122_v10  ;;  %15484 = vmatpush3.bf16.msra.mxu1 %v16042_v1 }
 0x1a8   : > { %v15269_v23 = vpop.f32.mrf.mxu0  ;;  %v18193_v58 = vpop.f32.mrf.mxu1 }
 0x1a9   : > { %v2305_v62 = vadd.f32 %v15269_v23, %v22042_v44  ;;  %v5129_v5 = vsel %vm16848_vm0, %v5127_v55, %v5128_v38 }
 0x1aa   : > { %15472 = vmatmul.mubr.msk.bf16.gmra.mxu0 %vm1349_vm6, %v14161_v3  ;;  %v2236_v17 = vpop.f32.mrf.mxu0  ;;  %v15307_v18 = vpop.f32.mrf.mxu1  ;;  %v22043_v3 = vld [vmem:[#allocation36_spill] sm:$0xff] }
 0x1ab   : > { %15475 = vmatprep.mubr.msk.bf16.mxu0 %vm1349_vm6, %v14162_v35  ;;  %v2303_v49 = vadd.f32 %v2236_v17, %v22043_v3  ;;  %v18210_v0 = vadd.f32 %v15303_v32, %v2305_v62  ;;  %v22044_v35 = vld [vmem:[#allocation38_spill] sm:$0xff]  ;;  %v22045_v62 = vld [vmem:[#allocation47_spill] sm:$0xff]  ;;  %v22046_v17 = vld [vmem:[#allocation48_spill] sm:$0xff] }
 0x1ac   : > { %v15270_v39 = vpop.f32.mrf.mxu0  ;;  %v2610_v31 = vpop.f32.mrf.mxu1 }
 0x1ad   : > { %v2306_v36 = vadd.f32 %v15270_v39, %v22044_v35  ;;  %v18214_v42 = vadd.f32 %v2594_v16, %v2303_v49  ;;  %v5126_v16 = vsel %vm16848_vm0, %v14148_v54, %v5125_v30 }
 0x1ae   : > { %v18216_v13 = vpop.f32.mrf.mxu0  ;;  %v15308_v25 = vpop.f32.mrf.mxu1  ;;  %v14165_v1 = vcombine.low %v5126_v16, %v5129_v5 }
 0x1af   : > { %v18218_v23 = vadd.f32 %v15304_v22, %v2306_v36 }
 0x1b0   : > { %v15273_v32 = vpop.f32.mrf.mxu0  ;;  %v18221_v44 = vpop.f32.mrf.mxu1 }
 0x1b1   : > { %v2309_v50 = vadd.f32 %v15273_v32, %v22045_v62 }
 0x1b2   : > { %15476 = vmatmul.mubr.msk.bf16.gmra.mxu0 %vm1349_vm6, %v14163_v59  ;;  %v2252_v56 = vpop.f32.mrf.mxu0  ;;  %v15311_v27 = vpop.f32.mrf.mxu1 }
 0x1b3   : > { %15479 = vmatprep.mubr.msk.bf16.mxu0 %vm1349_vm6, %v14164_v14  ;;  %v2307_v22 = vadd.f32 %v2252_v56, %v22046_v17  ;;  %v18230_v8 = vadd.f32 %v15307_v18, %v2309_v50 }
 0x1b4   : > { %v15274_v10 = vpop.f32.mrf.mxu0  ;;  %v2626_v3 = vpop.f32.mrf.mxu1 }
 0x1b5   : > { %v2310_v49 = vadd.f32 %v15274_v10, %v17996_v33  ;;  %v18233_v39 = vadd.f32 %v2610_v31, %v2307_v22 }
 0x1b6   : > { %v18235_v59 = vpop.f32.mrf.mxu0  ;;  %v15312_v35 = vpop.f32.mrf.mxu1 }
 0x1b7   : > { %v18237_v30 = vadd.f32 %v15308_v25, %v2310_v49 }
 0x1b8   : > { %v18240_v38 = vpop.f32.mrf.mxu1 }
 0x1ba   : > { %v15277_v54 = vpop.f32.mrf.mxu0  ;;  %15480 = vmatmul.mubr.msk.bf16.gmra.mxu0 %vm1349_vm6, %v14165_v1  ;;  %v18243_v14 = vpop.f32.mrf.mxu1  ;;  %vm10814_vm6 = vcmask 257024  }
 0x1bb   : > { %v2313_v18 = vadd.f32 %v15277_v54, %v18012_v46  ;;  %22047 = vst [vmem:[#allocation21_spill] sm:$0xff] %v18243_v14 }
 0x1bc   : > { %v2268_v36 = vpop.f32.mrf.mxu0  ;;  %v18248_v32 = vpop.f32.mrf.mxu1 }
 0x1bd   : > { %v2311_v55 = vadd.f32 %v2268_v36, %v18021_v21  ;;  %v18246_v33 = vadd.f32 %v15311_v27, %v2313_v18  ;;  %22048 = vst [vmem:[#allocation31_spill] sm:$0xff] %v18248_v32 }
 0x1be   : > { %v15278_v31 = vpop.f32.mrf.mxu0  ;;  %v18255_v16 = vpop.f32.mrf.mxu1 }
 0x1bf   : > { %v2314_v25 = vadd.f32 %v15278_v31, %v18036_v6  ;;  %v18251_v62 = vadd.f32 %v2626_v3, %v2311_v55  ;;  %22049 = vst [vmem:[#allocation22_spill] sm:$0xff] %v18255_v16 }
 0x1c0   : > { %v18253_v50 = vpop.f32.mrf.mxu0  ;;  %v18259_v56 = vpop.f32.mrf.mxu1 }
 0x1c1   : > { %v18257_v5 = vadd.f32 %v15312_v35, %v2314_v25  ;;  %22050 = vst [vmem:[#allocation33_spill] sm:$0xff] %v18259_v56  ;;  %v22055_v35 = vmov 0  }
 0x1c2   : > { %v15317_v46 = vpop.f32.mrf.mxu0  ;;  %v18264_v17 = vpop.f32.mrf.mxu1  ;;  %5503 = vst.msk [vmem:[#allocation3 + $0x18] sm:$0xf] %vm5495_vm1, %v22055_v35  ;;  %5496 = vst.msk [vmem:[#allocation3] sm:$0xf] %vm5495_vm1, %v22055_v35 }
 0x1c3   : > { %v18262_v21 = vadd.f32 %v15317_v46, %v18067_v11  ;;  %22051 = vst [vmem:[#allocation35_spill] sm:$0xff] %v18264_v17  ;;  %5497 = vst.msk [vmem:[#allocation3 + $0x4] sm:$0xf] %vm5495_vm1, %v22055_v35 }
 0x1c4   : > { %v3240_v27 = vpop.f32.mrf.mxu0  ;;  %v18269_v10 = vpop.f32.mrf.mxu1  ;;  %5500 = vst.msk [vmem:[#allocation3 + $0xc] sm:$0xf] %vm5495_vm1, %v22055_v35  ;;  %5501 = vst.msk [vmem:[#allocation3 + $0x10] sm:$0xf] %vm5495_vm1, %v22055_v35 }
 0x1c5   : > { %v18267_v22 = vadd.f32 %v3240_v27, %v18075_v57  ;;  %22053 = vst [vmem:[#allocation40_spill] sm:$0xff] %v18269_v10  ;;  %5504 = vst.msk [vmem:[#allocation3 + $0x1c] sm:$0xf] %vm5495_vm1, %v22055_v35 }
 0x1c6   : > { %v15318_v6 = vpop.f32.mrf.mxu0  ;;  %v15356_v49 = vpop.f32.mrf.mxu1  ;;  %5506 = vst.msk [vmem:[#allocation3 + $0x24] sm:$0xf] %vm5495_vm1, %v22055_v35  ;;  %5507 = vst.msk [vmem:[#allocation3 + $0x28] sm:$0xf] %vm5495_vm1, %v22055_v35 }
 0x1c7   : > { %22052 = vst [vmem:[#allocation23_spill] sm:$0xff] %v18267_v22  ;;  %v18272_v1 = vadd.f32 %v15318_v6, %v18083_v40  ;;  %5509 = vst.msk [vmem:[#allocation3 + $0x30] sm:$0xf] %vm5495_vm1, %v22055_v35 }
 0x1c8   : > { %v18274_v3 = vpop.f32.mrf.mxu0  ;;  %5510 = vst.msk [vmem:[#allocation3 + $0x34] sm:$0xf] %vm5495_vm1, %v22055_v35  ;;  %5512 = vst.msk [vmem:[#allocation3 + $0x3c] sm:$0xf] %vm5495_vm1, %v22055_v35  ;;  %v18348_v57 = vpop.f32.mrf.mxu1 }
 0x1c9   : > { %22054 = vst [vmem:[#allocation24_spill] sm:$0xff] %v18272_v1  ;;  %5513 = vst.msk [vmem:[#allocation3 + $0x40] sm:$0xf] %vm5495_vm1, %v22055_v35 }
 0x1ca   : > { %5515 = vst.msk [vmem:[#allocation3 + $0x48] sm:$0xf] %vm5495_vm1, %v22055_v35  ;;  %5516 = vst.msk [vmem:[#allocation3 + $0x4c] sm:$0xf] %vm5495_vm1, %v22055_v35  ;;  %v15321_v11 = vpop.f32.mrf.mxu0  ;;  %v15359_v18 = vpop.f32.mrf.mxu1 }
 0x1cb   : > { %5518 = vst.msk [vmem:[#allocation3 + $0x54] sm:$0xf] %vm5495_vm1, %v22055_v35  ;;  %5519 = vst.msk [vmem:[#allocation3 + $0x58] sm:$0xf] %vm5495_vm1, %v22055_v35  ;;  %v18351_v40 = vadd.f32 %v15321_v11, %v18100_v53 }
 0x1cc   : > { %5521 = vst.msk [vmem:[#allocation3 + $0x60] sm:$0xf] %vm5495_vm1, %v22055_v35  ;;  %5522 = vst.msk [vmem:[#allocation3 + $0x64] sm:$0xf] %vm5495_vm1, %v22055_v35  ;;  %v3256_v54 = vpop.f32.mrf.mxu0  ;;  %v3742_v31 = vpop.f32.mrf.mxu1 }
 0x1cd   : > { %5524 = vst.msk [vmem:[#allocation3 + $0x6c] sm:$0xf] %vm5495_vm1, %v22055_v35  ;;  %5525 = vst.msk [vmem:[#allocation3 + $0x70] sm:$0xf] %vm5495_vm1, %v22055_v35  ;;  %v18354_v36 = vadd.f32 %v3256_v54, %v18105_v2 }
 0x1ce   : > { %5527 = vst.msk [vmem:[#allocation3 + $0x78] sm:$0xf] %vm5495_vm1, %v22055_v35  ;;  %5528 = vst.msk [vmem:[#allocation3 + $0x7c] sm:$0xf] %vm5495_vm1, %v22055_v35  ;;  %v15322_v55 = vpop.f32.mrf.mxu0  ;;  %v15360_v27 = vpop.f32.mrf.mxu1 }
 0x1cf   : > { %5530 = vst.msk [vmem:[#allocation3 + $0x84] sm:$0xf] %vm5495_vm1, %v22055_v35  ;;  %5531 = vst.msk [vmem:[#allocation3 + $0x88] sm:$0xf] %vm5495_vm1, %v22055_v35  ;;  %v3374_v25 = vadd.f32 %v15322_v55, %v18110_v48 }
 0x1d0   : > { %5533 = vst.msk [vmem:[#allocation3 + $0x90] sm:$0xf] %vm5495_vm1, %v22055_v35  ;;  %5534 = vst.msk [vmem:[#allocation3 + $0x94] sm:$0xf] %vm5495_vm1, %v22055_v35  ;;  %v18357_v46 = vpop.f32.mrf.mxu0 }
 0x1d1   : > { %5536 = vst.msk [vmem:[#allocation3 + $0x9c] sm:$0xf] %vm5495_vm1, %v22055_v35  ;;  %5537 = vst.msk [vmem:[#allocation3 + $0xa0] sm:$0xf] %vm5495_vm1, %v22055_v35  ;;  %v18359_v6 = vadd.f32 %v15356_v49, %v3374_v25 }
 0x1d2   : > { %5539 = vst.msk [vmem:[#allocation3 + $0xa8] sm:$0xf] %vm5495_vm1, %v22055_v35  ;;  %5540 = vst.msk [vmem:[#allocation3 + $0xac] sm:$0xf] %vm5495_vm1, %v22055_v35  ;;  %v15325_v45 = vpop.f32.mrf.mxu0 }
 0x1d3   : > { %5542 = vst.msk [vmem:[#allocation3 + $0xb4] sm:$0xf] %vm5495_vm1, %v22055_v35  ;;  %5543 = vst.msk [vmem:[#allocation3 + $0xb8] sm:$0xf] %vm5495_vm1, %v22055_v35  ;;  %v3377_v53 = vadd.f32 %v15325_v45, %v18124_v19 }
 0x1d4   : > { %5545 = vst.msk [vmem:[#allocation3 + $0xc0] sm:$0xf] %vm5495_vm1, %v22055_v35  ;;  %5546 = vst.msk [vmem:[#allocation3 + $0xc4] sm:$0xf] %vm5495_vm1, %v22055_v35  ;;  %v3272_v2 = vpop.f32.mrf.mxu0 }
 0x1d5   : > { %5548 = vst.msk [vmem:[#allocation3 + $0xcc] sm:$0xf] %vm5495_vm1, %v22055_v35  ;;  %5549 = vst.msk [vmem:[#allocation3 + $0xd0] sm:$0xf] %vm5495_vm1, %v22055_v35  ;;  %v3375_v49 = vadd.f32 %v3272_v2, %v18130_v7  ;;  %v18401_v11 = vadd.f32 %v15359_v18, %v3377_v53 }
 0x1d6   : > { %22056 = vst [vmem:[#allocation25_spill] sm:$0xff] %v18348_v57  ;;  %22057 = vst [vmem:[#allocation37_spill] sm:$0xff] %v18351_v40  ;;  %v18361_v57 = vpop.f32.mrf.mxu1  ;;  %v15326_v54 = vpop.f32.mrf.mxu0 }
 0x1d7   : > { %22058 = vst [vmem:[#allocation41_spill] sm:$0xff] %v18354_v36  ;;  %22059 = vst [vmem:[#allocation26_spill] sm:$0xff] %v18361_v57  ;;  %v3378_v25 = vadd.f32 %v15326_v54, %v18135_v26  ;;  %v18404_v57 = vadd.f32 %v3742_v31, %v3375_v49 }
 0x1d8   : > { %5505 = vst.msk [vmem:[#allocation3 + $0x20] sm:$0x1] %vm5498_vm2, %v22055_v35  ;;  %5499 = vst.msk [vmem:[#allocation3 + $0x8] sm:$0x1] %vm5498_vm2, %v22055_v35  ;;  %v15363_v48 = vpop.f32.mrf.mxu1  ;;  %v18406_v10 = vpop.f32.mrf.mxu0 }
 0x1d9   : > { %5502 = vst.msk [vmem:[#allocation3 + $0x14] sm:$0x1] %vm5498_vm2, %v22055_v35  ;;  %5508 = vst.msk [vmem:[#allocation3 + $0x2c] sm:$0x1] %vm5498_vm2, %v22055_v35  ;;  %v18408_v17 = vadd.f32 %v15360_v27, %v3378_v25 }
 0x1da   : > { %5511 = vst.msk [vmem:[#allocation3 + $0x38] sm:$0x1] %vm5498_vm2, %v22055_v35  ;;  %5514 = vst.msk [vmem:[#allocation3 + $0x44] sm:$0x1] %vm5498_vm2, %v22055_v35  ;;  %v3758_v55 = vpop.f32.mrf.mxu1 }
 0x1db   : > { %5517 = vst.msk [vmem:[#allocation3 + $0x50] sm:$0x1] %vm5498_vm2, %v22055_v35  ;;  %5520 = vst.msk [vmem:[#allocation3 + $0x5c] sm:$0x1] %vm5498_vm2, %v22055_v35 }
 0x1dc   : > { %5523 = vst.msk [vmem:[#allocation3 + $0x68] sm:$0x1] %vm5498_vm2, %v22055_v35  ;;  %5526 = vst.msk [vmem:[#allocation3 + $0x74] sm:$0x1] %vm5498_vm2, %v22055_v35  ;;  %v15364_v36 = vpop.f32.mrf.mxu1 }
 0x1dd   : > { %5529 = vst.msk [vmem:[#allocation3 + $0x80] sm:$0x1] %vm5498_vm2, %v22055_v35  ;;  %5532 = vst.msk [vmem:[#allocation3 + $0x8c] sm:$0x1] %vm5498_vm2, %v22055_v35 }
 0x1de   : > { %5535 = vst.msk [vmem:[#allocation3 + $0x98] sm:$0x1] %vm5498_vm2, %v22055_v35  ;;  %5538 = vst.msk [vmem:[#allocation3 + $0xa4] sm:$0x1] %vm5498_vm2, %v22055_v35  ;;  %v18410_v40 = vpop.f32.mrf.mxu1 }
 0x1df   : > { %5541 = vst.msk [vmem:[#allocation3 + $0xb0] sm:$0x1] %vm5498_vm2, %v22055_v35  ;;  %5544 = vst.msk [vmem:[#allocation3 + $0xbc] sm:$0x1] %vm5498_vm2, %v22055_v35 }
 0x1e0   : > { %5547 = vst.msk [vmem:[#allocation3 + $0xc8] sm:$0x1] %vm5498_vm2, %v22055_v35  ;;  %5550 = vst.msk [vmem:[#allocation3 + $0xd4] sm:$0x1] %vm5498_vm2, %v22055_v35  ;;  %v15329_v35 = vpop.f32.mrf.mxu0  ;;  %v15367_v7 = vpop.f32.mrf.mxu1  ;;  %vm12523_vm2 = vsmask.f32 7448 }
 0x1e1   : > { %22060 = vst [vmem:[#allocation27_spill] sm:$0xff] %v18406_v10  ;;  %22061 = vst [vmem:[#allocation42_spill] sm:$0xff] %v18410_v40  ;;  %v3381_v45 = vadd.f32 %v15329_v35, %v18153_v51 }
 0x1e2   : > { %v3288_v19 = vpop.f32.mrf.mxu0  ;;  %v3774_v26 = vpop.f32.mrf.mxu1 }
 0x1e3   : > { %v3379_v18 = vadd.f32 %v3288_v19, %v18156_v28  ;;  %v18414_v53 = vadd.f32 %v15363_v48, %v3381_v45 }
 0x1e4   : > { %v15330_v2 = vpop.f32.mrf.mxu0  ;;  %v15368_v27 = vpop.f32.mrf.mxu1 }
 0x1e5   : > { %v3382_v31 = vadd.f32 %v15330_v2, %v18163_v34  ;;  %v18417_v49 = vadd.f32 %v3758_v55, %v3379_v18  ;;  %v16043_v34 = vld [vmem:[%s21932_s3] sm:$0xff]  }
 0x1e6   : > { %v18419_v54 = vpop.f32.mrf.mxu0  ;;  %v18423_v56 = vpop.f32.mrf.mxu1  ;;  %15517 = vmatprep.subr.bf16.mxu0 %v16043_v34 }
 0x1e7   : > { %22062 = vst [vmem:[#allocation29_spill] sm:$0xff] %v18419_v54  ;;  %v18421_v25 = vadd.f32 %v15364_v36, %v3382_v31  ;;  %22063 = vst [vmem:[#allocation43_spill] sm:$0xff] %v18423_v56  ;;  %15518 = vmatpush3.bf16.msra.mxu0 %v16043_v34  ;;  %v6085_v31 = vld [vmem:[#allocation3 + $0x4] sm:$0xf] }
 0x1e8   : > { %v15333_v40 = vpop.f32.mrf.mxu0  ;;  %v15371_v28 = vpop.f32.mrf.mxu1 }
 0x1e9   : > { %v3385_v51 = vadd.f32 %v15333_v40, %v18181_v43  ;;  %v6084_v40 = vld [vmem:[#allocation3] sm:$0xf] }
 0x1ea   : > { %v3304_v35 = vpop.f32.mrf.mxu0  ;;  %v3790_v19 = vpop.f32.mrf.mxu1 }
 0x1eb   : > { %v3383_v48 = vadd.f32 %v3304_v35, %v18185_v12  ;;  %v18427_v45 = vadd.f32 %v15367_v7, %v3385_v51  ;;  %v14250_v35 = vcombine.low %v6084_v40, %v6085_v31 }
 0x1ec   : > { %v15334_v55 = vpop.f32.mrf.mxu0  ;;  %v15372_v43 = vpop.f32.mrf.mxu1 }
 0x1ed   : > { %v3386_v36 = vadd.f32 %v15334_v55, %v18190_v9  ;;  %v18433_v18 = vadd.f32 %v3774_v26, %v3383_v48  ;;  %15519 = vmatprep.mubr.msk.bf16.mxu0 %vm6575_vm3, %v14250_v35 }
 0x1ee   : > { %v18435_v2 = vpop.f32.mrf.mxu0  ;;  %v18439_v51 = vpop.f32.mrf.mxu1 }
 0x1ef   : > { %22064 = vst [vmem:[#allocation32_spill] sm:$0xff] %v18435_v2  ;;  %v18437_v12 = vadd.f32 %v15368_v27, %v3386_v36  ;;  %22065 = vst [vmem:[#allocation46_spill] sm:$0xff] %v18439_v51 }
 0x1f0   : > { %v15337_v7 = vpop.f32.mrf.mxu0  ;;  %v15375_v9 = vpop.f32.mrf.mxu1 }
 0x1f1   : > { %v3389_v56 = vadd.f32 %v15337_v7, %v18210_v0 }
 0x1f2   : > { %v3320_v54 = vpop.f32.mrf.mxu0  ;;  %v3806_v55 = vpop.f32.mrf.mxu1 }
 0x1f3   : > { %v3387_v26 = vadd.f32 %v3320_v54, %v18214_v42  ;;  %v18444_v48 = vadd.f32 %v15371_v28, %v3389_v56 }
 0x1f4   : > { %v15338_v34 = vpop.f32.mrf.mxu0  ;;  %v15376_v51 = vpop.f32.mrf.mxu1 }
 0x1f5   : > { %v3390_v27 = vadd.f32 %v15338_v34, %v18218_v23  ;;  %v18447_v36 = vadd.f32 %v3790_v19, %v3387_v26  ;;  %v6135_v19 = vshrl.u32 %v6084_v40, 16  ;;  %v6138_v26 = vshll.u32 %v6084_v40, 16 }
 0x1f6   : > { %v18449_v2 = vpop.f32.mrf.mxu0  ;;  %v18453_v7 = vpop.f32.mrf.mxu1 }
 0x1f7   : > { %22066 = vst [vmem:[#allocation34_spill] sm:$0xff] %v18449_v2  ;;  %v18451_v16 = vadd.f32 %v15372_v43, %v3390_v27  ;;  %22067 = vst [vmem:[#allocation36_spill] sm:$0xff] %v18453_v7  ;;  %v6148_v7 = vshrl.u32 %v6085_v31, 16 }
 0x1f8   : > { %v15341_v0 = vpop.f32.mrf.mxu0  ;;  %v15379_v42 = vpop.f32.mrf.mxu1 }
 0x1f9   : > { %v3393_v35 = vadd.f32 %v15341_v0, %v18230_v8  ;;  %v6150_v10 = vrot.slane %v6148_v7, 4 }
 0x1fa   : > { %v3336_v1 = vpop.f32.mrf.mxu0  ;;  %v3822_v23 = vpop.f32.mrf.mxu1 }
 0x1fb   : > { %v3391_v56 = vadd.f32 %v3336_v1, %v18233_v39  ;;  %v18457_v54 = vadd.f32 %v15375_v9, %v3393_v35  ;;  %v6137_v39 = vrot.slane %v6135_v19, 4  ;;  %v6140_v1 = vrot.slane %v6138_v26, 5 }
 0x1fc   : > { %v15342_v28 = vpop.f32.mrf.mxu0  ;;  %v15380_v27 = vpop.f32.mrf.mxu1  ;;  %v6144_v9 = vshll.u32 %v6085_v31, 16 }
 0x1fd   : > { %v3394_v34 = vadd.f32 %v15342_v28, %v18237_v30  ;;  %v18460_v2 = vadd.f32 %v3806_v55, %v3391_v56  ;;  %v6118_v56 = vld [vmem:[#allocation3 + $0x8] sm:$0x1] }
 0x1fe   : > { %v18462_v43 = vpop.f32.mrf.mxu0  ;;  %v18466_v0 = vpop.f32.mrf.mxu1  ;;  %v6146_v40 = vrot.slane %v6144_v9, 5  ;;  %v6154_v14 = vshll.u32 %v6118_v56, 16 }
 0x1ff   : > { %22068 = vst [vmem:[#allocation38_spill] sm:$0xff] %v18462_v43  ;;  %v18464_v32 = vadd.f32 %v15376_v51, %v3394_v34  ;;  %v6141_v51 = vor.u32 %v6140_v1, %v6137_v39 }
 0x200   : > { %v15345_v8 = vpop.f32.mrf.mxu0  ;;  %v18472_v43 = vpop.f32.mrf.mxu1  ;;  %v6151_v34 = vor.u32 %v6150_v10, %v6146_v40 }
 0x201   : > { %v3397_v35 = vadd.f32 %v15345_v8, %v18246_v33  ;;  %v6142_v7 = vrot.slane %v6141_v51, 4 }
 0x202   : > { %v3352_v22 = vpop.f32.mrf.mxu0  ;;  %v18479_v33 = vpop.f32.mrf.mxu1  ;;  %v6152_v8 = vrot.slane %v6151_v34, 4 }
 0x203   : > { %v3395_v30 = vadd.f32 %v3352_v22, %v18251_v62  ;;  %v18470_v55 = vadd.f32 %v15379_v42, %v3397_v35  ;;  %v6156_v62 = vrot.slane %v6154_v14, 5  ;;  %v6147_v10 = vsel %vm16509_vm10, %v6142_v7, %v6146_v40  ;;  %v16048_v40 = vld [vmem:[%s21932_s3 + $0x10] sm:$0xff]  }
 0x204   : > { %v15346_v28 = vpop.f32.mrf.mxu0  ;;  %v18485_v9 = vpop.f32.mrf.mxu1  ;;  %15551 = vmatprep.subr.bf16.mxu1 %v16048_v40 }
 0x205   : > { %v3398_v19 = vadd.f32 %v15346_v28, %v18257_v5  ;;  %v18475_v26 = vadd.f32 %v3822_v23, %v3395_v30  ;;  %v6157_v5 = vsel %vm16509_vm10, %v6152_v8, %v6156_v62 }
 0x206   : > { %v18477_v31 = vpop.f32.mrf.mxu0  ;;  %v14217_v23 = vcombine.low %v6147_v10, %v6157_v5  ;;  %v18493_v1 = vpop.f32.mrf.mxu1 }
 0x207   : > { %v18481_v22 = vadd.f32 %v15380_v27, %v3398_v19 }
 0x208   : > { %v18483_v42 = vpop.f32.mrf.mxu0  ;;  %15485 = vmatprep.mubr.msk.bf16.mxu1 %vm6575_vm3, %v14217_v23  ;;  %v18500_v35 = vpop.f32.mrf.mxu1 }
 0x20a   : > { %v18491_v39 = vpop.f32.mrf.mxu0  ;;  %v18507_v56 = vpop.f32.mrf.mxu1 }
 0x20b   : > { %22069 = vst [vmem:[#allocation47_spill] sm:$0xff] %v18507_v56 }
 0x20c   : > { %v18496_v14 = vpop.f32.mrf.mxu0  ;;  %v18511_v51 = vpop.f32.mrf.mxu1 }
 0x20d   : > { %22070 = vst [vmem:[#allocation48_spill] sm:$0xff] %v18511_v51 }
 0x20e   : > { %v18498_v27 = vpop.f32.mrf.mxu0  ;;  %v18513_v19 = vpop.f32.mrf.mxu1 }
 0x20f   : > { %22071 = vst [vmem:[#allocation51_spill] sm:$0xff] %v18513_v19 }
 0x210   : > { %v18505_v30 = vpop.f32.mrf.mxu0  ;;  %v18520_v10 = vpop.f32.mrf.mxu1 }
 0x211   : > { %22072 = vst [vmem:[#allocation52_spill] sm:$0xff] %v18520_v10 }
 0x212   : > { %v18509_v28 = vpop.f32.mrf.mxu0  ;;  %v18525_v40 = vpop.f32.mrf.mxu1 }
 0x213   : > { %22074 = vst [vmem:[#allocation54_spill] sm:$0xff] %v18525_v40 }
 0x214   : > { %v15390_v34 = vpop.f32.mrf.mxu0  ;;  %v18530_v56 = vpop.f32.mrf.mxu1 }
 0x215   : > { %v18516_v7 = vadd.f32 %v15390_v34, %v18359_v6  ;;  %22075 = vst [vmem:[#allocation55_spill] sm:$0xff] %v18530_v56 }
 0x216   : > { %v18518_v8 = vpop.f32.mrf.mxu0  ;;  %v18537_v19 = vpop.f32.mrf.mxu1 }
 0x217   : > { %22077 = vst [vmem:[#allocation57_spill] sm:$0xff] %v18537_v19 }
 0x218   : > { %v15393_v62 = vpop.f32.mrf.mxu0 }
 0x219   : > { %v18523_v5 = vadd.f32 %v15393_v62, %v18401_v11 }
 0x21a   : > { %v4101_v23 = vpop.f32.mrf.mxu0 }
 0x21b   : > { %22073 = vst [vmem:[#allocation53_spill] sm:$0xff] %v18523_v5  ;;  %v18528_v29 = vadd.f32 %v4101_v23, %v18404_v57  ;;  %v18542_v5 = vpop.f32.mrf.mxu1 }
 0x21c   : > { %v15394_v51 = vpop.f32.mrf.mxu0  ;;  %22078 = vst [vmem:[#allocation58_spill] sm:$0xff] %v18542_v5 }
 0x21d   : > { %v18533_v6 = vadd.f32 %v15394_v51, %v18408_v17  ;;  %v18547_v40 = vpop.f32.mrf.mxu1 }
 0x21e   : > { %v18535_v34 = vpop.f32.mrf.mxu0  ;;  %22080 = vst [vmem:[#allocation60_spill] sm:$0xff] %v18547_v40 }
 0x21f   : > { %22076 = vst [vmem:[#allocation56_spill] sm:$0xff] %v18533_v6  ;;  %v18554_v56 = vpop.f32.mrf.mxu1 }
 0x220   : > { %v15397_v10 = vpop.f32.mrf.mxu0  ;;  %22082 = vst [vmem:[#allocation62_spill] sm:$0xff] %v18554_v56 }
 0x221   : > { %v18540_v11 = vadd.f32 %v15397_v10, %v18414_v53  ;;  %v18556_v6 = vpop.f32.mrf.mxu1 }
 0x222   : > { %v4117_v62 = vpop.f32.mrf.mxu0  ;;  %22083 = vst [vmem:[#allocation63_spill] sm:$0xff] %v18556_v6 }
 0x223   : > { %v18545_v57 = vadd.f32 %v4117_v62, %v18417_v49  ;;  %v18564_v62 = vpop.f32.mrf.mxu1 }
 0x224   : > { %v15398_v23 = vpop.f32.mrf.mxu0  ;;  %22086 = vst [vmem:[#allocation66_spill] sm:$0xff] %v18564_v62 }
 0x225   : > { %22079 = vst [vmem:[#allocation59_spill] sm:$0xff] %v18545_v57  ;;  %v18550_v17 = vadd.f32 %v15398_v23, %v18421_v25  ;;  %v18569_v23 = vpop.f32.mrf.mxu1  ;;  %v22100_v57 = vld [vmem:[#allocation39_spill] sm:$0xff] }
 0x226   : > { %v18552_v51 = vpop.f32.mrf.mxu0  ;;  %22088 = vst [vmem:[#allocation68_spill] sm:$0xff] %v18569_v23 }
 0x227   : > { %22081 = vst [vmem:[#allocation61_spill] sm:$0xff] %v18550_v17  ;;  %v18573_v56 = vpop.f32.mrf.mxu1 }
 0x228   : > { %v15401_v19 = vpop.f32.mrf.mxu0  ;;  %22089 = vst [vmem:[#allocation69_spill] sm:$0xff] %v18573_v56 }
 0x229   : > { %v18559_v53 = vadd.f32 %v15401_v19, %v18427_v45  ;;  %v18578_v19 = vpop.f32.mrf.mxu1 }
 0x22a   : > { %v4133_v10 = vpop.f32.mrf.mxu0  ;;  %22091 = vst [vmem:[#allocation71_spill] sm:$0xff] %v18578_v19  ;;  %v22099_v19 = vld [vmem:[#allocation44_spill] sm:$0xff] }
 0x22b   : > { %22084 = vst [vmem:[#allocation64_spill] sm:$0xff] %v18559_v53  ;;  %v18562_v49 = vadd.f32 %v4133_v10, %v18433_v18  ;;  %v22092_v10 = vld [vmem:[#allocation20_spill] sm:$0xff]  ;;  %v1815_v5 = vadd.f32 %v22100_v57, %v22099_v19 }
 0x22c   : > { %v15402_v40 = vpop.f32.mrf.mxu0 }
 0x22d   : > { %22085 = vst [vmem:[#allocation65_spill] sm:$0xff] %v18562_v49  ;;  %v18567_v25 = vadd.f32 %v15402_v40, %v18437_v12  ;;  %v22093_v49 = vld [vmem:[#allocation19_spill] sm:$0xff] }
 0x22e   : > { %v18571_v17 = vpop.f32.mrf.mxu0  ;;  %v1735_v62 = vadd.f32 %v22093_v49, %v22092_v10 }
 0x22f   : > { %22087 = vst [vmem:[#allocation67_spill] sm:$0xff] %v18567_v25  ;;  %v18586_v25 = vpop.f32.mrf.mxu1 }
 0x230   : > { %v15405_v6 = vpop.f32.mrf.mxu0  ;;  %v2284_v40 = vadd.f32 %v18077_v61, %v1735_v62  ;;  %22095 = vst [vmem:[#allocation19_spill] sm:$0xff] %v18586_v25  ;;  %v22103_v61 = vld [vmem:[#allocation50_spill] sm:$0xff] }
 0x231   : > { %v18576_v45 = vadd.f32 %v15405_v6, %v18444_v48  ;;  %v22097_v48 = vld [vmem:[#allocation30_spill] sm:$0xff]  ;;  %v22098_v6 = vld [vmem:[#allocation28_spill] sm:$0xff]  ;;  %v18597_v49 = vpop.f32.mrf.mxu1  ;;  %v1847_v62 = vadd.f32 %v22103_v61, %v18040_v47  ;;  %v2646_v47 = vadd.f32 %v18086_v24, %v18108_v15  ;;  %v22112_v61 = vld [vmem:[#allocation35_spill] sm:$0xff] }
 0x232   : > { %v4149_v18 = vpop.f32.mrf.mxu0 }
 0x233   : > { %22090 = vst [vmem:[#allocation70_spill] sm:$0xff] %v18576_v45  ;;  %v18583_v53 = vadd.f32 %v4149_v18, %v18447_v36  ;;  %v1799_v45 = vadd.f32 %v22098_v6, %v22097_v48  ;;  %v22101_v36 = vld [vmem:[#allocation49_spill] sm:$0xff]  ;;  %v18606_v25 = vpop.f32.mrf.mxu1  ;;  %v2312_v19 = vadd.f32 %v18253_v50, %v1847_v62  ;;  %v3372_v24 = vadd.f32 %v18357_v46, %v2646_v47  ;;  %v22117_v47 = vld [vmem:[#allocation34_spill] sm:$0xff] }
 0x234   : > { %v15406_v12 = vpop.f32.mrf.mxu0  ;;  %v22102_v18 = vld [vmem:[#allocation45_spill] sm:$0xff] }
 0x235   : > { %22094 = vst [vmem:[#allocation20_spill] sm:$0xff] %v18583_v53  ;;  %v18589_v56 = vadd.f32 %v15406_v12, %v18451_v16  ;;  %v1831_v10 = vadd.f32 %v22102_v18, %v22101_v36  ;;  %v2642_v16 = vadd.f32 %v18046_v52, %v2284_v40  ;;  %v2300_v12 = vadd.f32 %v18187_v63, %v1799_v45  ;;  %v18616_v52 = vpop.f32.mrf.mxu1  ;;  %v22110_v18 = vld [vmem:[#allocation33_spill] sm:$0xff] }
 0x236   : > { %v18591_v23 = vpop.f32.mrf.mxu0 }
 0x237   : > { %22096 = vst [vmem:[#allocation72_spill] sm:$0xff] %v18589_v56  ;;  %v2304_v56 = vadd.f32 %v18216_v13, %v1815_v5  ;;  %v2308_v57 = vadd.f32 %v18235_v59, %v1831_v10  ;;  %v3368_v36 = vadd.f32 %v18274_v3, %v2642_v16  ;;  %v2650_v13 = vadd.f32 %v18113_v60, %v18133_v4  ;;  %v22105_v4 = vld [vmem:[#allocation27_spill] sm:$0xff]  ;;  %v22111_v10 = vld [vmem:[#allocation37_spill] sm:$0xff]  ;;  %v18645_v62 = vpop.f32.mrf.mxu1  ;;  %v22114_v16 = vld [vmem:[#allocation40_spill] sm:$0xff] }
 0x238   : > { %v15409_v53 = vpop.f32.mrf.mxu0  ;;  %v2658_v50 = vadd.f32 %v18166_v37, %v2300_v12  ;;  %v22107_v37 = vld [vmem:[#allocation31_spill] sm:$0xff]  ;;  %v22115_v12 = vld [vmem:[#allocation29_spill] sm:$0xff] }
 0x239   : > { %v18609_v48 = vadd.f32 %v15409_v53, %v18457_v54  ;;  %v2654_v54 = vadd.f32 %v18138_v20, %v18161_v41  ;;  %v2662_v5 = vadd.f32 %v18193_v58, %v2304_v56  ;;  %v2666_v3 = vadd.f32 %v18221_v44, %v2308_v57  ;;  %v22104_v53 = vld [vmem:[#allocation21_spill] sm:$0xff]  ;;  %v22106_v41 = vld [vmem:[#allocation23_spill] sm:$0xff]  ;;  %v22108_v58 = vld [vmem:[#allocation24_spill] sm:$0xff] }
 0x23a   : > { %v4165_v6 = vpop.f32.mrf.mxu0  ;;  %v3839_v60 = vadd.f32 %v22104_v53, %v18262_v21  ;;  %v3376_v45 = vadd.f32 %v22105_v4, %v2650_v13  ;;  %v3837_v40 = vadd.f32 %v22107_v37, %v22106_v41  ;;  %v22109_v56 = vld [vmem:[#allocation22_spill] sm:$0xff]  ;;  %v3843_v44 = vadd.f32 %v22112_v61, %v22111_v10  ;;  %v22118_v53 = vld [vmem:[#allocation25_spill] sm:$0xff] }
 0x23b   : > { %v18619_v63 = vadd.f32 %v4165_v6, %v18460_v2  ;;  %v2670_v2 = vadd.f32 %v18240_v38, %v2312_v19  ;;  %v3840_v46 = vadd.f32 %v22109_v56, %v22108_v58  ;;  %v22113_v38 = vld [vmem:[#allocation41_spill] sm:$0xff]  ;;  %v3380_v57 = vadd.f32 %v22115_v12, %v2654_v54  ;;  %v22116_v19 = vld [vmem:[#allocation32_spill] sm:$0xff]  ;;  %v22119_v41 = vld [vmem:[#allocation38_spill] sm:$0xff]  ;;  %v18655_v58 = vpop.f32.mrf.mxu1 }
 0x23c   : > { %v15410_v59 = vpop.f32.mrf.mxu0  ;;  %v3841_v21 = vadd.f32 %v22114_v16, %v22113_v38  ;;  %v3384_v6 = vadd.f32 %v22116_v19, %v2658_v50  ;;  %v3388_v13 = vadd.f32 %v22117_v47, %v2662_v5  ;;  %v3842_v4 = vadd.f32 %v22118_v53, %v3372_v24  ;;  %v22121_v38 = vld [vmem:[#allocation42_spill] sm:$0xff]  ;;  %v22122_v16 = vld [vmem:[#allocation43_spill] sm:$0xff] }
 0x23d   : > { %v18629_v15 = vadd.f32 %v15410_v59, %v18464_v32  ;;  %v3838_v32 = vadd.f32 %v22110_v18, %v3368_v36  ;;  %v3392_v37 = vadd.f32 %v22119_v41, %v2666_v3  ;;  %v3396_v36 = vadd.f32 %v18477_v31, %v2670_v2  ;;  %v22120_v18 = vld [vmem:[#allocation26_spill] sm:$0xff]  ;;  %v18667_v2 = vpop.f32.mrf.mxu1  ;;  %v22125_v47 = vld [vmem:[#allocation47_spill] sm:$0xff]  ;;  %v22131_v41 = vld [vmem:[#allocation56_spill] sm:$0xff] }
 0x23e   : > { %v18636_v20 = vpop.f32.mrf.mxu0  ;;  %v3846_v10 = vadd.f32 %v22120_v18, %v3376_v45  ;;  %v4198_v54 = vadd.f32 %v18483_v42, %v3839_v60  ;;  %v4196_v50 = vadd.f32 %v18491_v39, %v3837_v40  ;;  %v4199_v5 = vadd.f32 %v18496_v14, %v3840_v46  ;;  %v22123_v60 = vld [vmem:[#allocation46_spill] sm:$0xff]  ;;  %v22124_v46 = vld [vmem:[#allocation36_spill] sm:$0xff]  ;;  %v22133_v18 = vld [vmem:[#allocation57_spill] sm:$0xff] }
 0x23f   : > { %v4197_v24 = vadd.f32 %v18498_v27, %v3838_v32  ;;  %v4202_v3 = vadd.f32 %v18505_v30, %v3843_v44  ;;  %v4200_v31 = vadd.f32 %v18509_v28, %v3841_v21  ;;  %v3850_v45 = vadd.f32 %v22121_v38, %v3380_v57  ;;  %v4894_v32 = vpop.f32.mrf.mxu1 }
 0x240   : > { %v15413_v59 = vpop.f32.mrf.mxu0  ;;  %v3854_v42 = vadd.f32 %v22122_v16, %v3384_v6  ;;  %v3858_v39 = vadd.f32 %v22123_v60, %v3388_v13  ;;  %v4201_v14 = vadd.f32 %v18518_v8, %v3842_v4  ;;  %v3862_v27 = vadd.f32 %v22124_v46, %v3392_v37  ;;  %v22132_v37 = vld [vmem:[#allocation55_spill] sm:$0xff]  ;;  %v22142_v46 = vld [vmem:[#allocation65_spill] sm:$0xff] }
 0x241   : > { %v18658_v56 = vadd.f32 %v15413_v59, %v18470_v55  ;;  %v3866_v30 = vadd.f32 %v18466_v0, %v3396_v36  ;;  %v4205_v28 = vadd.f32 %v18535_v34, %v3846_v10  ;;  %v4922_v21 = vadd.f32 %v18479_v33, %v4196_v50  ;;  %v22126_v34 = vld [vmem:[#allocation48_spill] sm:$0xff]  ;;  %v22128_v33 = vld [vmem:[#allocation53_spill] sm:$0xff] }
 0x242   : > { %v4181_v61 = vpop.f32.mrf.mxu0  ;;  %v4925_v12 = vadd.f32 %v18485_v9, %v4199_v5  ;;  %v4209_v57 = vadd.f32 %v18552_v51, %v3850_v45  ;;  %v4923_v8 = vadd.f32 %v18493_v1, %v4197_v24  ;;  %v4928_v6 = vadd.f32 %v18500_v35, %v4202_v3  ;;  %v22129_v9 = vld [vmem:[#allocation52_spill] sm:$0xff]  ;;  %v22130_v51 = vld [vmem:[#allocation54_spill] sm:$0xff]  ;;  %v22137_v3 = vld [vmem:[#allocation61_spill] sm:$0xff] }
 0x243   : > { %v18670_v55 = vadd.f32 %v4181_v61, %v18475_v26  ;;  %v4924_v26 = vadd.f32 %v18472_v43, %v4198_v54  ;;  %v18687_v0 = vadd.f32 %v22125_v47, %v4200_v31  ;;  %v18691_v13 = vadd.f32 %v22126_v34, %v18516_v7  ;;  %v22127_v43 = vld [vmem:[#allocation51_spill] sm:$0xff]  ;;  %v18708_v7 = vld [vmem:[%s21931_s2] ss:$0 sm:$0xff]  ;;  %v22134_v54 = vld [vmem:[#allocation58_spill] sm:$0xff] }
 0x244   : > { %v15414_v40 = vpop.f32.mrf.mxu0  ;;  %v18694_v59 = vadd.f32 %v22127_v43, %v4201_v14  ;;  %v18698_v53 = vadd.f32 %v22129_v9, %v22128_v33  ;;  %v18702_v1 = vadd.f32 %v22130_v51, %v18528_v29  ;;  %v4213_v35 = vadd.f32 %v18571_v17, %v3854_v42  ;;  %v22135_v17 = vld [vmem:[#allocation59_spill] sm:$0xff]  ;;  %v22136_v61 = vld [vmem:[#allocation60_spill] sm:$0xff]  ;;  %v22138_v31 = vld [vmem:[#allocation62_spill] sm:$0xff] }
 0x245   : > { %v4227_v44 = vadd.f32 %v15414_v40, %v18481_v22  ;;  %v15447_v22 = vpop.f32.mrf.mxu1  ;;  %v18712_v36 = vadd.f32 %v22132_v37, %v22131_v41  ;;  %v18715_v10 = vadd.f32 %v22133_v18, %v4205_v28  ;;  %v18719_v50 = vadd.f32 %v22134_v54, %v18540_v11  ;;  %v22139_v45 = vld [vmem:[#allocation63_spill] sm:$0xff]  ;;  %v22140_v14 = vld [vmem:[#allocation64_spill] sm:$0xff]  ;;  %v22141_v40 = vld [vmem:[#allocation66_spill] sm:$0xff] }
 0x246   : > { %v4184_v19 = vpop.f32.mrf.mxu0  ;;  %v18723_v24 = vadd.f32 %v22136_v61, %v22135_v17  ;;  %v18727_v38 = vadd.f32 %v22138_v31, %v22137_v3  ;;  %v18730_v16 = vadd.f32 %v22139_v45, %v4209_v57  ;;  %v4217_v42 = vadd.f32 %v18591_v23, %v3858_v39  ;;  %v22143_v28 = vld [vmem:[#allocation68_spill] sm:$0xff]  ;;  %v22144_v33 = vld [vmem:[#allocation67_spill] sm:$0xff]  ;;  %v22145_v9 = vld [vmem:[#allocation69_spill] sm:$0xff] }
 0x247   : > { %v4907_v29 = vpop.f32.mrf.mxu1  ;;  %v18735_v11 = vadd.f32 %v22141_v40, %v22140_v14  ;;  %v18744_v51 = vadd.f32 %v22145_v9, %v22144_v33  ;;  %v22146_v57 = vld [vmem:[#allocation71_spill] sm:$0xff]  ;;  %v22147_v23 = vld [vmem:[#allocation70_spill] sm:$0xff]  ;;  %v4221_v37 = vadd.f32 %v18636_v20, %v3862_v27  ;;  %v22149_v54 = vld [vmem:[#allocation20_spill] sm:$0xff]  ;;  %v18768_v45 = vadd.f32 %v18645_v62, %v18609_v48 }
 0x248   : > { %v15453_v4 = vpop.f32.mrf.mxu0  ;;  %v22148_v39 = vld [vmem:[#allocation19_spill] sm:$0xff]  ;;  %v18756_v17 = vadd.f32 %v18597_v49, %v22149_v54  ;;  %v22150_v3 = vld [vmem:[#allocation72_spill] sm:$0xff]  ;;  %v4225_v20 = vadd.f32 %v4184_v19, %v3866_v30  ;;  %v18782_v48 = vadd.f32 %v15447_v22, %v18658_v56  ;;  %v18785_v30 = vadd.f32 %v4907_v29, %v18670_v55 }
 0x249   : > { %v5394_v5 = vadd.f32 %v15453_v4, %v4924_v26  ;;  %v18739_v26 = vadd.f32 %v22143_v28, %v22142_v46  ;;  %v15448_v47 = vpop.f32.mrf.mxu1  ;;  %v18747_v4 = vadd.f32 %v22146_v57, %v4213_v35  ;;  %v18751_v41 = vadd.f32 %v22148_v39, %v22147_v23  ;;  %v5979_v22 = vld [vmem:[#allocation3 + $0x18] sm:$0xf] }
 0x24a   : > { %v5265_v60 = vpop.f32.mrf.mxu0  ;;  %v18761_v31 = vadd.f32 %v18606_v25, %v22150_v3  ;;  %v18764_v35 = vadd.f32 %v18616_v52, %v4217_v42  ;;  %v18777_v25 = vadd.f32 %v18667_v2, %v18629_v15  ;;  %v18779_v52 = vadd.f32 %v4894_v32, %v4221_v37  ;;  %v5970_v37 = vld [vmem:[#allocation3 + $0xc] sm:$0xf] }
 0x24b   : > { %v5433_v34 = vadd.f32 %v18708_v7, %v5394_v5  ;;  %v5392_v43 = vadd.f32 %v5265_v60, %v4922_v21  ;;  %v4910_v60 = vpop.f32.mrf.mxu1  ;;  %v18787_v28 = vadd.f32 %v15448_v47, %v4227_v44 }
 0x24c   : > { %v15454_v18 = vpop.f32.mrf.mxu0 }
 0x24d   : > { %v5465_v5 = vmax.f32 %v5433_v34, 0.0  ;;  %v5431_v21 = vadd.f32 %v18708_v7, %v5392_v43  ;;  %v5395_v61 = vadd.f32 %v15454_v18, %v4925_v12  ;;  %v18773_v12 = vadd.f32 %v18655_v58, %v18619_v63 }
 0x24e   : > { %v5268_v27 = vpop.f32.mrf.mxu0  ;;  %v18789_v63 = vadd.f32 %v4910_v60, %v4225_v20 }
 0x24f   : > { %v14769_v49 = vpack.c.bf16 %v5465_v5, %v5465_v5  ;;  %v5463_v14 = vmax.f32 %v5431_v21, 0.0  ;;  %v5434_v40 = vadd.f32 %v18708_v7, %v5395_v61  ;;  %v5393_v46 = vadd.f32 %v5268_v27, %v4923_v8 }
 0x250   : > { %v15457_v62 = vpop.f32.mrf.mxu0 }
 0x251   : > { %v5665_v19 = vshrl.u32 %v14769_v49, 16  ;;  %v14767_v42 = vpack.c.bf16 %v5463_v14, %v5463_v14  ;;  %v5466_v8 = vmax.f32 %v5434_v40, 0.0  ;;  %v5432_v58 = vadd.f32 %v18708_v7, %v5393_v46 }
 0x252   : > { %v5398_v15 = vadd.f32 %v15457_v62, %v4928_v6  ;;  %v5281_v2 = vpop.f32.mrf.mxu0  ;;  %v5668_v34 = vshll.u32 %v14769_v49, 16  ;;  %v5983_v49 = vld [vmem:[#allocation3 + $0x20] sm:$0x1] }
 0x253   : > { %v5667_v32 = vrot.slane %v5665_v19, 7  ;;  %v5648_v43 = vshrl.u32 %v14767_v42, 16  ;;  %v14770_v56 = vpack.c.bf16 %v5466_v8, %v5466_v8  ;;  %v5651_v29 = vshll.u32 %v14767_v42, 16 }
 0x254   : > { %v5464_v44 = vmax.f32 %v5432_v58, 0.0  ;;  %v5437_v47 = vadd.f32 %v18708_v7, %v5398_v15  ;;  %v5396_v33 = vadd.f32 %v5281_v2, %v18687_v0  ;;  %v15458_v9 = vpop.f32.mrf.mxu0 }
 0x255   : > { %v5670_v6 = vor.u32 %v5668_v34, %v5667_v32  ;;  %v5671_v57 = vrot.slane %v5667_v32, 4  ;;  %v5650_v23 = vrot.slane %v5648_v43, 7  ;;  %v5673_v39 = vshrl.u32 %v14770_v56, 16 }
 0x256   : > { %v5676_v18 = vshll.u32 %v14770_v56, 16  ;;  %v14768_v54 = vpack.c.bf16 %v5464_v44, %v5464_v44  ;;  %v5469_v5 = vmax.f32 %v5437_v47, 0.0  ;;  %v5435_v21 = vadd.f32 %v18708_v7, %v5396_v33  ;;  %v5284_v61 = vpop.f32.mrf.mxu0  ;;  %v5976_v47 = vld [vmem:[#allocation3 + $0x14] sm:$0x1] }
 0x257   : > { %v5980_v3 = vsel %vm18794_vm4, %v5670_v6, %v5979_v22  ;;  %v5653_v20 = vor.u32 %v5651_v29, %v5650_v23  ;;  %v5654_v27 = vrot.slane %v5650_v23, 4  ;;  %v5675_v60 = vrot.slane %v5673_v39, 7 }
 0x258   : > { %5981 = vst [vmem:[#allocation3 + $0x18] sm:$0xf] %v5980_v3  ;;  %v5656_v14 = vshrl.u32 %v14768_v54, 16  ;;  %v5659_v40 = vshll.u32 %v14768_v54, 16  ;;  %v14773_v46 = vpack.c.bf16 %v5469_v5, %v5469_v5  ;;  %v5467_v62 = vmax.f32 %v5435_v21, 0.0  ;;  %v15461_v19 = vpop.f32.mrf.mxu0 }
 0x259   : > { %v5971_v42 = vsel %vm18794_vm4, %v5653_v20, %v5970_v37  ;;  %v5678_v8 = vor.u32 %v5676_v18, %v5675_v60  ;;  %v5680_v58 = vrot.slane %v5675_v60, 4  ;;  %v5399_v15 = vadd.f32 %v15458_v9, %v18691_v13  ;;  %v5993_v18 = vld [vmem:[#allocation3 + $0x30] sm:$0xf] }
 0x25a   : > { %5972 = vst [vmem:[#allocation3 + $0xc] sm:$0xf] %v5971_v42  ;;  %v5658_v2 = vrot.slane %v5656_v14, 7  ;;  %v5699_v32 = vshrl.u32 %v14773_v46, 16  ;;  %v5702_v34 = vshll.u32 %v14773_v46, 16  ;;  %v14771_v43 = vpack.c.bf16 %v5467_v62, %v5467_v62  ;;  %v5297_v56 = vpop.f32.mrf.mxu0 }
 0x25b   : > { %v5679_v29 = vsel %vm16523_vm12, %v5671_v57, %v5678_v8  ;;  %v5984_v44 = vsel %vm18805_vm5, %v5680_v58, %v5983_v49  ;;  %v5438_v33 = vadd.f32 %v18708_v7, %v5399_v15  ;;  %v5397_v6 = vadd.f32 %v5284_v61, %v18694_v59  ;;  %v5986_v62 = vld [vmem:[#allocation3 + $0x24] sm:$0xf] }
 0x25c   : > { %5982 = vst.msk [vmem:[#allocation3 + $0x1c] sm:$0xf] %vm5495_vm1, %v5679_v29  ;;  %5985 = vst [vmem:[#allocation3 + $0x20] sm:$0x1] %v5984_v44  ;;  %v5661_v13 = vor.u32 %v5659_v40, %v5658_v2  ;;  %v5663_v9 = vrot.slane %v5658_v2, 4  ;;  %v5701_v23 = vrot.slane %v5699_v32, 7  ;;  %v15462_v37 = vpop.f32.mrf.mxu0  ;;  %v5402_v21 = vadd.f32 %v15461_v19, %v18698_v53 }
 0x25d   : > { %v5682_v39 = vshrl.u32 %v14771_v43, 16  ;;  %v5685_v54 = vshll.u32 %v14771_v43, 16  ;;  %v5470_v5 = vmax.f32 %v5438_v33, 0.0  ;;  %v5436_v57 = vadd.f32 %v18708_v7, %v5397_v6 }
 0x25e   : > { %v5662_v3 = vsel %vm16523_vm12, %v5654_v27, %v5661_v13  ;;  %v5977_v59 = vsel %vm18805_vm5, %v5663_v9, %v5976_v47  ;;  %v5704_v61 = vor.u32 %v5702_v34, %v5701_v23  ;;  %v5705_v20 = vrot.slane %v5701_v23, 4  ;;  %v5300_v60 = vpop.f32.mrf.mxu0 }
 0x25f   : > { %5973 = vst.msk [vmem:[#allocation3 + $0x10] sm:$0xf] %vm5495_vm1, %v5662_v3  ;;  %5978 = vst [vmem:[#allocation3 + $0x14] sm:$0x1] %v5977_v59  ;;  %v5684_v49 = vrot.slane %v5682_v39, 7  ;;  %v14774_v14 = vpack.c.bf16 %v5470_v5, %v5470_v5  ;;  %v5468_v40 = vmax.f32 %v5436_v57, 0.0  ;;  %v5441_v46 = vadd.f32 %v18708_v7, %v5402_v21 }
 0x260   : > { %v5994_v53 = vsel %vm18794_vm4, %v5704_v61, %v5993_v18  ;;  %v5400_v27 = vadd.f32 %v5297_v56, %v18702_v1  ;;  %v5403_v19 = vadd.f32 %v15462_v37, %v18712_v36  ;;  %v5401_v42 = vadd.f32 %v5300_v60, %v18715_v10  ;;  %v15465_v8 = vpop.f32.mrf.mxu0  ;;  %v5997_v36 = vld [vmem:[#allocation3 + $0x38] sm:$0x1]  ;;  %v5990_v60 = vld [vmem:[#allocation3 + $0x2c] sm:$0x1] }
 0x261   : > { %5995 = vst [vmem:[#allocation3 + $0x30] sm:$0xf] %v5994_v53  ;;  %v5687_v58 = vor.u32 %v5685_v54, %v5684_v49  ;;  %v5688_v15 = vrot.slane %v5684_v49, 4  ;;  %v5707_v2 = vshrl.u32 %v14774_v14, 16  ;;  %v5710_v32 = vshll.u32 %v14774_v14, 16 }
 0x262   : > { %v14772_v34 = vpack.c.bf16 %v5468_v40, %v5468_v40  ;;  %v5473_v43 = vmax.f32 %v5441_v46, 0.0  ;;  %v5439_v29 = vadd.f32 %v18708_v7, %v5400_v27  ;;  %v5442_v44 = vadd.f32 %v18708_v7, %v5403_v19  ;;  %v5313_v47 = vpop.f32.mrf.mxu0 }
 0x263   : > { %v5987_v1 = vsel %vm18794_vm4, %v5687_v58, %v5986_v62  ;;  %v5709_v56 = vrot.slane %v5707_v2, 7  ;;  %v5440_v10 = vadd.f32 %v18708_v7, %v5401_v42  ;;  %v5406_v33 = vadd.f32 %v15465_v8, %v18719_v50  ;;  %v6007_v62 = vld [vmem:[#allocation3 + $0x48] sm:$0xf] }
 0x264   : > { %5988 = vst [vmem:[#allocation3 + $0x24] sm:$0xf] %v5987_v1  ;;  %v5690_v6 = vshrl.u32 %v14772_v34, 16  ;;  %v5693_v13 = vshll.u32 %v14772_v34, 16  ;;  %v14777_v9 = vpack.c.bf16 %v5473_v43, %v5473_v43  ;;  %v5471_v23 = vmax.f32 %v5439_v29, 0.0  ;;  %v15466_v39 = vpop.f32.mrf.mxu0  ;;  %v18850_v29 = vld [vmem:[%s21932_s3 + $0x18] sm:$0xff]  }
 0x265   : > { %v5712_v37 = vor.u32 %v5710_v32, %v5709_v56  ;;  %v5714_v18 = vrot.slane %v5709_v56, 4  ;;  %v5474_v54 = vmax.f32 %v5442_v44, 0.0  ;;  %v5472_v5 = vmax.f32 %v5440_v10, 0.0  ;;  %v6000_v10 = vld [vmem:[#allocation3 + $0x3c] sm:$0xf]  ;;  %15585 = vmatprep.subr.bf16.mxu0 %v18850_v29 }
 0x266   : > { %v5692_v57 = vrot.slane %v5690_v6, 7  ;;  %v5733_v21 = vshrl.u32 %v14777_v9, 16  ;;  %v5736_v3 = vshll.u32 %v14777_v9, 16  ;;  %v14775_v59 = vpack.c.bf16 %v5471_v23, %v5471_v23  ;;  %v5316_v19 = vpop.f32.mrf.mxu0  ;;  %v6011_v6 = vld [vmem:[#allocation3 + $0x50] sm:$0x1] }
 0x267   : > { %v5713_v61 = vsel %vm16523_vm12, %v5705_v20, %v5712_v37  ;;  %v5998_v50 = vsel %vm18805_vm5, %v5714_v18, %v5997_v36  ;;  %v14778_v49 = vpack.c.bf16 %v5474_v54, %v5474_v54  ;;  %v14776_v14 = vpack.c.bf16 %v5472_v5, %v5472_v5 }
 0x268   : > { %5996 = vst.msk [vmem:[#allocation3 + $0x34] sm:$0xf] %vm5495_vm1, %v5713_v61  ;;  %5999 = vst [vmem:[#allocation3 + $0x38] sm:$0x1] %v5998_v50  ;;  %v5695_v40 = vor.u32 %v5693_v13, %v5692_v57  ;;  %v5697_v46 = vrot.slane %v5692_v57, 4  ;;  %v5735_v53 = vrot.slane %v5733_v21, 7  ;;  %v5445_v13 = vadd.f32 %v18708_v7, %v5406_v33  ;;  %v15469_v37 = vpop.f32.mrf.mxu0 }
 0x269   : > { %v5716_v27 = vshrl.u32 %v14775_v59, 16  ;;  %v5719_v42 = vshll.u32 %v14775_v59, 16  ;;  %v5741_v8 = vshrl.u32 %v14778_v49, 16  ;;  %v5744_v58 = vshll.u32 %v14778_v49, 16  ;;  %v6004_v21 = vld [vmem:[#allocation3 + $0x44] sm:$0x1] }
 0x26a   : > { %v5724_v2 = vshrl.u32 %v14776_v14, 16  ;;  %v5696_v20 = vsel %vm16523_vm12, %v5688_v15, %v5695_v40  ;;  %v5991_v32 = vsel %vm18805_vm5, %v5697_v46, %v5990_v60  ;;  %v5738_v34 = vor.u32 %v5736_v3, %v5735_v53  ;;  %v6086_v60 = vld [vmem:[#allocation3 + $0xc] sm:$0xf]  ;;  %v18872_v46 = vpop.f32.mrf.mxu0 }
 0x26b   : > { %v5739_v43 = vrot.slane %v5735_v53, 4  ;;  %5989 = vst.msk [vmem:[#allocation3 + $0x28] sm:$0xf] %vm5495_vm1, %v5696_v20  ;;  %5992 = vst [vmem:[#allocation3 + $0x2c] sm:$0x1] %v5991_v32  ;;  %v5718_v44 = vrot.slane %v5716_v27, 7  ;;  %v5404_v9 = vadd.f32 %v5313_v47, %v18723_v24  ;;  %v5407_v23 = vadd.f32 %v15466_v39, %v18727_v38 }
 0x26c   : > { %v5743_v1 = vrot.slane %v5741_v8, 7  ;;  %v5726_v56 = vrot.slane %v5724_v2, 7  ;;  %v5727_v36 = vshll.u32 %v14776_v14, 16  ;;  %v6008_v15 = vsel %vm18794_vm4, %v5738_v34, %v6007_v62  ;;  %v6021_v32 = vld [vmem:[#allocation3 + $0x60] sm:$0xf] }
 0x26d   : > { %6009 = vst [vmem:[#allocation3 + $0x48] sm:$0xf] %v6008_v15  ;;  %v5721_v18 = vor.u32 %v5719_v42, %v5718_v44  ;;  %v5722_v54 = vrot.slane %v5718_v44, 4  ;;  %v5477_v61 = vmax.f32 %v5445_v13, 0.0  ;;  %v5443_v50 = vadd.f32 %v18708_v7, %v5404_v9 }
 0x26e   : > { %v5746_v5 = vor.u32 %v5744_v58, %v5743_v1  ;;  %v5748_v57 = vrot.slane %v5743_v1, 4  ;;  %v5729_v3 = vor.u32 %v5727_v36, %v5726_v56  ;;  %v5731_v59 = vrot.slane %v5726_v56, 4  ;;  %v18879_v1 = vld [vmem:[#allocation3 + $0x10] sm:$0xf] }
 0x26f   : > { %v6001_v24 = vsel %vm18794_vm4, %v5721_v18, %v6000_v10  ;;  %v5446_v33 = vadd.f32 %v18708_v7, %v5407_v23  ;;  %v14781_v14 = vpack.c.bf16 %v5477_v61, %v5477_v61  ;;  %v5475_v40 = vmax.f32 %v5443_v50, 0.0  ;;  %v15470_v10 = vpop.f32.mrf.mxu0 }
 0x270   : > { %v5747_v38 = vsel %vm16523_vm12, %v5739_v43, %v5746_v5  ;;  %v6012_v47 = vsel %vm18805_vm5, %v5748_v57, %v6011_v6  ;;  %6002 = vst [vmem:[#allocation3 + $0x3c] sm:$0xf] %v6001_v24  ;;  %v5730_v39 = vsel %vm16523_vm12, %v5722_v54, %v5729_v3  ;;  %v6005_v49 = vsel %vm18805_vm5, %v5731_v59, %v6004_v21  ;;  %v6014_v57 = vld [vmem:[#allocation3 + $0x54] sm:$0xf] }
 0x271   : > { %6010 = vst.msk [vmem:[#allocation3 + $0x4c] sm:$0xf] %vm5495_vm1, %v5747_v38  ;;  %6013 = vst [vmem:[#allocation3 + $0x50] sm:$0x1] %v6012_v47  ;;  %v5478_v53 = vmax.f32 %v5446_v33, 0.0  ;;  %v5405_v62 = vadd.f32 %v5316_v19, %v18730_v16  ;;  %v5410_v27 = vadd.f32 %v15469_v37, %v18735_v11  ;;  %v6159_v42 = vshrl.u32 %v6086_v60, 16 }
 0x272   : > { %6003 = vst.msk [vmem:[#allocation3 + $0x40] sm:$0xf] %vm5495_vm1, %v5730_v39  ;;  %6006 = vst [vmem:[#allocation3 + $0x44] sm:$0x1] %v6005_v49  ;;  %v5767_v8 = vshrl.u32 %v14781_v14, 16  ;;  %v5770_v58 = vshll.u32 %v14781_v14, 16  ;;  %v14779_v2 = vpack.c.bf16 %v5475_v40, %v5475_v40  ;;  %v14251_v61 = vcombine.low %v6086_v60, %v18879_v1  ;;  %v5332_v39 = vpop.f32.mrf.mxu0 }
 0x273   : > { %v6162_v20 = vshll.u32 %v6086_v60, 16  ;;  %v14782_v34 = vpack.c.bf16 %v5478_v53, %v5478_v53  ;;  %v5444_v43 = vadd.f32 %v18708_v7, %v5405_v62  ;;  %v5449_v44 = vadd.f32 %v18708_v7, %v5410_v27  ;;  %v6088_v11 = vld [vmem:[#allocation3 + $0x18] sm:$0xf]  ;;  %v6025_v47 = vld [vmem:[#allocation3 + $0x68] sm:$0x1] }
 0x274   : > { %v18881_v56 = vrot.slane %v6159_v42, 4  ;;  %v5769_v36 = vrot.slane %v5767_v8, 7  ;;  %v5750_v15 = vshrl.u32 %v14779_v2, 16  ;;  %v5753_v16 = vshll.u32 %v14779_v2, 16  ;;  %15520 = vmatmul.mubr.msk.bf16.vlgmr.msra.gmra.mxu0 %vm6575_vm3, %v14251_v61  ;;  %v18890_v62 = vld [vmem:[#allocation3 + $0x1c] sm:$0xf] }
 0x275   : > { %v18883_v19 = vrot.slane %v6162_v20, 5  ;;  %v5775_v6 = vshrl.u32 %v14782_v34, 16  ;;  %v5778_v13 = vshll.u32 %v14782_v34, 16  ;;  %v5476_v9 = vmax.f32 %v5444_v43, 0.0  ;;  %v6018_v27 = vld [vmem:[#allocation3 + $0x5c] sm:$0x1]  ;;  %15586 = vmatpush3.bf16.msra.mxu0 %v18850_v29 }
 0x276   : > { %v5481_v23 = vmax.f32 %v5449_v44, 0.0  ;;  %v5772_v37 = vor.u32 %v5770_v58, %v5769_v36  ;;  %v5773_v18 = vrot.slane %v5769_v36, 4  ;;  %v5752_v54 = vrot.slane %v5750_v15, 7  ;;  %v6035_v44 = vld [vmem:[#allocation3 + $0x78] sm:$0xf] }
 0x277   : > { %v6172_v5 = vshrl.u32 %v18879_v1, 16  ;;  %v5777_v21 = vrot.slane %v5775_v6, 7  ;;  %v14780_v3 = vpack.c.bf16 %v5476_v9, %v5476_v9  ;;  %v6183_v33 = vshrl.u32 %v6088_v11, 16  ;;  %v6090_v6 = vld [vmem:[#allocation3 + $0x24] sm:$0xf] }
 0x278   : > { %v14785_v59 = vpack.c.bf16 %v5481_v23, %v5481_v23  ;;  %v6022_v50 = vsel %vm18794_vm4, %v5772_v37, %v6021_v32  ;;  %v5755_v24 = vor.u32 %v5753_v16, %v5752_v54  ;;  %v5756_v38 = vrot.slane %v5752_v54, 4  ;;  %v15473_v16 = vpop.f32.mrf.mxu0 }
 0x279   : > { %6023 = vst [vmem:[#allocation3 + $0x60] sm:$0xf] %v6022_v50  ;;  %v5780_v49 = vor.u32 %v5778_v13, %v5777_v21  ;;  %v5782_v14 = vrot.slane %v5777_v21, 4  ;;  %v5758_v40 = vshrl.u32 %v14780_v3, 16  ;;  %v5761_v53 = vshll.u32 %v14780_v3, 16 }
 0x27a   : > { %v6015_v60 = vsel %vm18794_vm4, %v5755_v24, %v6014_v57  ;;  %v5801_v42 = vshrl.u32 %v14785_v59, 16  ;;  %v5804_v8 = vshll.u32 %v14785_v59, 16  ;;  %v18894_v58 = vrot.slane %v6183_v33, 4  ;;  %v18916_v21 = vld [vmem:[#allocation3 + $0x28] sm:$0xf] }
 0x27b   : > { %6016 = vst [vmem:[#allocation3 + $0x54] sm:$0xf] %v6015_v60  ;;  %v5781_v2 = vsel %vm16523_vm12, %v5773_v18, %v5780_v49  ;;  %v6026_v20 = vsel %vm18805_vm5, %v5782_v14, %v6025_v47  ;;  %v5760_v32 = vrot.slane %v5758_v40, 7  ;;  %v6186_v34 = vshll.u32 %v6088_v11, 16  ;;  %v18933_v14 = vpop.f32.mrf.mxu0 }
 0x27c   : > { %6024 = vst.msk [vmem:[#allocation3 + $0x64] sm:$0xf] %vm5495_vm1, %v5781_v2  ;;  %6027 = vst [vmem:[#allocation3 + $0x68] sm:$0x1] %v6026_v20  ;;  %v18902_v43 = vrot.slane %v5801_v42, 7  ;;  %v6196_v36 = vshrl.u32 %v18890_v62, 16  ;;  %v14252_v15 = vcombine.low %v6088_v11, %v18890_v62  ;;  %v5408_v29 = vadd.f32 %v18872_v46, %v18739_v26 }
 0x27d   : > { %v5763_v13 = vor.u32 %v5761_v53, %v5760_v32  ;;  %v5765_v9 = vrot.slane %v5760_v32, 4  ;;  %v18908_v23 = vrot.slane %v6186_v34, 5  ;;  %v5411_v37 = vadd.f32 %v15470_v10, %v18744_v51  ;;  %v6028_v32 = vld [vmem:[#allocation3 + $0x6c] sm:$0xf] }
 0x27e   : > { %v5806_v18 = vor.u32 %v5804_v8, %v18902_v43  ;;  %v5807_v54 = vrot.slane %v18902_v43, 4  ;;  %15523 = vmatprep.mubr.msk.bf16.mxu0 %vm6575_vm3, %v14252_v15  ;;  %v5447_v57 = vadd.f32 %v18708_v7, %v5408_v29  ;;  %v5409_v11 = vadd.f32 %v5332_v39, %v18747_v4 }
 0x27f   : > { %v5764_v26 = vsel %vm16523_vm12, %v5756_v38, %v5763_v13  ;;  %v6019_v46 = vsel %vm18805_vm5, %v5765_v9, %v6018_v27  ;;  %v5450_v51 = vadd.f32 %v18708_v7, %v5411_v37  ;;  %v5414_v10 = vadd.f32 %v15473_v16, %v18751_v41 }
 0x280   : > { %6017 = vst.msk [vmem:[#allocation3 + $0x58] sm:$0xf] %vm5495_vm1, %v5764_v26  ;;  %6020 = vst [vmem:[#allocation3 + $0x5c] sm:$0x1] %v6019_v46  ;;  %v6036_v3 = vsel %vm18794_vm4, %v5806_v18, %v6035_v44  ;;  %v5479_v59 = vmax.f32 %v5447_v57, 0.0  ;;  %v5448_v4 = vadd.f32 %v18708_v7, %v5409_v11  ;;  %v6207_v61 = vshrl.u32 %v6090_v6, 16  ;;  %v15474_v18 = vpop.f32.mrf.mxu0 }
 0x281   : > { %6037 = vst [vmem:[#allocation3 + $0x78] sm:$0xf] %v6036_v3  ;;  %v5482_v50 = vmax.f32 %v5450_v51, 0.0  ;;  %v5453_v24 = vadd.f32 %v18708_v7, %v5414_v10  ;;  %v6210_v38 = vshll.u32 %v6090_v6, 16  ;;  %v6220_v47 = vshrl.u32 %v18916_v21, 16 }
 0x282   : > { %v14783_v33 = vpack.c.bf16 %v5479_v59, %v5479_v59  ;;  %v5480_v39 = vmax.f32 %v5448_v4, 0.0  ;;  %v18930_v41 = vrot.slane %v6207_v61, 4  ;;  %v14253_v49 = vcombine.low %v6090_v6, %v18916_v21  ;;  %v6039_v6 = vld [vmem:[#allocation3 + $0x80] sm:$0x1]  ;;  %v6119_v11 = vld [vmem:[#allocation3 + $0x14] sm:$0x1] }
 0x283   : > { %v14786_v40 = vpack.c.bf16 %v5482_v50, %v5482_v50  ;;  %v5485_v53 = vmax.f32 %v5453_v24, 0.0  ;;  %v18935_v60 = vrot.slane %v6210_v38, 5  ;;  %v6165_v27 = vor.u32 %v18883_v19, %v18881_v56  ;;  %v6032_v3 = vld [vmem:[#allocation3 + $0x74] sm:$0x1]  ;;  %v6049_v59 = vld [vmem:[#allocation3 + $0x90] sm:$0xf] }
 0x284   : > { %v5784_v42 = vshrl.u32 %v14783_v33, 16  ;;  %v5787_v8 = vshll.u32 %v14783_v33, 16  ;;  %v14784_v2 = vpack.c.bf16 %v5480_v39, %v5480_v39  ;;  %15524 = vmatmul.mubr.msk.bf16.gmra.mxu0 %vm6575_vm3, %v14253_v49  ;;  %v6168_v20 = vshll.u32 %v18879_v1, 16  ;;  %v6092_v39 = vld [vmem:[#allocation3 + $0x30] sm:$0xf] }
 0x285   : > { %v5809_v34 = vshrl.u32 %v14786_v40, 16  ;;  %v5812_v44 = vshll.u32 %v14786_v40, 16  ;;  %v14789_v15 = vpack.c.bf16 %v5485_v53, %v5485_v53  ;;  %v6166_v29 = vrot.slane %v6165_v27, 4  ;;  %v18949_v53 = vld [vmem:[#allocation3 + $0x34] sm:$0xf]  ;;  %v5348_v27 = vpop.f32.mrf.mxu0 }
 0x286   : > { %v5786_v16 = vrot.slane %v5784_v42, 7  ;;  %v5792_v13 = vshrl.u32 %v14784_v2, 16  ;;  %v5795_v9 = vshll.u32 %v14784_v2, 16  ;;  %v6170_v37 = vrot.slane %v6168_v20, 5 }
 0x287   : > { %v5811_v57 = vrot.slane %v5809_v34, 7  ;;  %v5835_v56 = vshrl.u32 %v14789_v15, 16  ;;  %v5838_v19 = vshll.u32 %v14789_v15, 16  ;;  %v6174_v26 = vrot.slane %v6172_v5, 4  ;;  %v6120_v15 = vld [vmem:[#allocation3 + $0x20] sm:$0x1] }
 0x288   : > { %v5789_v46 = vor.u32 %v5787_v8, %v5786_v16  ;;  %v5790_v51 = vrot.slane %v5786_v16, 4  ;;  %v5794_v10 = vrot.slane %v5792_v13, 7  ;;  %v6171_v61 = vsel %vm16509_vm10, %v6166_v29, %v6170_v37 }
 0x289   : > { %v5814_v50 = vor.u32 %v5812_v44, %v5811_v57  ;;  %v5816_v24 = vrot.slane %v5811_v57, 4  ;;  %v18945_v38 = vrot.slane %v5835_v56, 7  ;;  %v6175_v33 = vor.u32 %v6174_v26, %v6170_v37  ;;  %v15477_v56 = vpop.f32.mrf.mxu0 }
 0x28a   : > { %v6029_v49 = vsel %vm18794_vm4, %v5789_v46, %v6028_v32  ;;  %v5797_v40 = vor.u32 %v5795_v9, %v5794_v10  ;;  %v5799_v1 = vrot.slane %v5794_v10, 4  ;;  %v6178_v5 = vshll.u32 %v6119_v11, 16  ;;  %v16066_v10 = vld [vmem:[%s21932_s3 + $0x20] sm:$0xff]  }
 0x28b   : > { %6030 = vst [vmem:[#allocation3 + $0x6c] sm:$0xf] %v6029_v49  ;;  %v5815_v42 = vsel %vm16523_vm12, %v5807_v54, %v5814_v50  ;;  %v6040_v8 = vsel %vm18805_vm5, %v5816_v24, %v6039_v6  ;;  %v5840_v2 = vor.u32 %v5838_v19, %v18945_v38  ;;  %v5841_v20 = vrot.slane %v18945_v38, 4  ;;  %v6094_v19 = vld [vmem:[#allocation3 + $0x3c] sm:$0xf] }
 0x28c   : > { %6038 = vst.msk [vmem:[#allocation3 + $0x7c] sm:$0xf] %vm5495_vm1, %v5815_v42  ;;  %6041 = vst [vmem:[#allocation3 + $0x80] sm:$0x1] %v6040_v8  ;;  %v5798_v32 = vsel %vm16523_vm12, %v5790_v51, %v5797_v40  ;;  %v6033_v34 = vsel %vm18805_vm5, %v5799_v1, %v6032_v3  ;;  %v6176_v43 = vrot.slane %v6175_v33, 4  ;;  %v6180_v44 = vrot.slane %v6178_v5, 5 }
 0x28d   : > { %6031 = vst.msk [vmem:[#allocation3 + $0x70] sm:$0xf] %vm5495_vm1, %v5798_v32  ;;  %6034 = vst [vmem:[#allocation3 + $0x74] sm:$0x1] %v6033_v34  ;;  %v6050_v54 = vsel %vm18794_vm4, %v5840_v2, %v6049_v59  ;;  %v6231_v29 = vshrl.u32 %v6092_v39, 16  ;;  %v6234_v16 = vshll.u32 %v6092_v39, 16  ;;  %v14254_v9 = vcombine.low %v6092_v39, %v18949_v53 }
 0x28e   : > { %v6244_v6 = vshrl.u32 %v18949_v53, 16  ;;  %6051 = vst [vmem:[#allocation3 + $0x90] sm:$0xf] %v6050_v54  ;;  %v6181_v13 = vsel %vm16509_vm10, %v6176_v43, %v6180_v44  ;;  %v5412_v37 = vadd.f32 %v18933_v14, %v18756_v17  ;;  %v6189_v57 = vor.u32 %v18908_v23, %v18894_v58  ;;  %v16174_v24 = vld [vmem:[%s21932_s3 + $0x10] sm:$0xff]   ;;  %v18994_v49 = vld [vmem:[#allocation3 + $0x40] sm:$0xf]  ;;  %v5361_v54 = vpop.f32.mrf.mxu0 }
 0x28f   : > { %v14218_v11 = vcombine.low %v6171_v61, %v6181_v13  ;;  %v18975_v26 = vrot.slane %v6231_v29, 4  ;;  %v18977_v46 = vrot.slane %v6234_v16, 5  ;;  %v6192_v51 = vshll.u32 %v18890_v62, 16  ;;  %15527 = vmatprep.mubr.msk.bf16.mxu0 %vm6575_vm3, %v14254_v9 }
 0x290   : > { %v5451_v17 = vadd.f32 %v18708_v7, %v5412_v37  ;;  %v6190_v14 = vrot.slane %v6189_v57, 4  ;;  %v6198_v58 = vrot.slane %v6196_v36, 4  ;;  %v6202_v23 = vshll.u32 %v6120_v15, 16  ;;  %v6042_v37 = vld [vmem:[#allocation3 + $0x84] sm:$0xf] }
 0x291   : > { %15486 = vmatmul.mubr.msk.bf16.vlgmr.msra.gmra.mxu1 %vm6575_vm3, %v14218_v11  ;;  %v6194_v3 = vrot.slane %v6192_v51, 5  ;;  %v5415_v59 = vadd.f32 %v15474_v18, %v18761_v31  ;;  %v5413_v61 = vadd.f32 %v5348_v27, %v18764_v35  ;;  %v5418_v50 = vadd.f32 %v15477_v56, %v18768_v45 }
 0x292   : > { %15552 = vmatpush3.bf16.msra.mxu1 %v16174_v24  ;;  %v5483_v33 = vmax.f32 %v5451_v17, 0.0  ;;  %v6204_v39 = vrot.slane %v6202_v23, 5  ;;  %v6255_v62 = vshrl.u32 %v6094_v19, 16  ;;  %v6258_v36 = vshll.u32 %v6094_v19, 16 }
 0x293   : > { %v6195_v40 = vsel %vm16509_vm10, %v6190_v14, %v6194_v3  ;;  %v6199_v1 = vor.u32 %v6198_v58, %v6194_v3  ;;  %v5454_v31 = vadd.f32 %v18708_v7, %v5415_v59  ;;  %v5452_v35 = vadd.f32 %v18708_v7, %v5413_v61  ;;  %15619 = vmatprep.subr.bf16.mxu1 %v16066_v10  ;;  %v19013_v14 = vld [vmem:[#allocation3 + $0x2c] sm:$0x1]  ;;  %v6053_v3 = vld [vmem:[#allocation3 + $0x98] sm:$0x1]  ;;  %v15478_v61 = vpop.f32.mrf.mxu0 }
 0x294   : > { %v14787_v45 = vpack.c.bf16 %v5483_v33, %v5483_v33  ;;  %v5457_v18 = vadd.f32 %v18708_v7, %v5418_v50  ;;  %v19001_v5 = vrot.slane %v6255_v62, 4  ;;  %v19003_v27 = vrot.slane %v6258_v36, 5  ;;  %v6063_v33 = vld [vmem:[#allocation3 + $0xa8] sm:$0xf] }
 0x295   : > { %v6200_v42 = vrot.slane %v6199_v1, 4  ;;  %v5486_v8 = vmax.f32 %v5454_v31, 0.0  ;;  %v5484_v2 = vmax.f32 %v5452_v35, 0.0  ;;  %v6268_v32 = vshrl.u32 %v18994_v49, 16  ;;  %v6096_v35 = vld [vmem:[#allocation3 + $0x48] sm:$0xf] }
 0x296   : > { %v5818_v34 = vshrl.u32 %v14787_v45, 16  ;;  %v5821_v43 = vshll.u32 %v14787_v45, 16  ;;  %v5489_v44 = vmax.f32 %v5457_v18, 0.0  ;;  %v14255_v15 = vcombine.low %v6094_v19, %v18994_v49 }
 0x297   : > { %v6205_v29 = vsel %vm16509_vm10, %v6200_v42, %v6204_v39  ;;  %v14790_v16 = vpack.c.bf16 %v5486_v8, %v5486_v8  ;;  %v14788_v7 = vpack.c.bf16 %v5484_v2, %v5484_v2  ;;  %v6213_v13 = vor.u32 %v18935_v60, %v18930_v41  ;;  %v6046_v41 = vld [vmem:[#allocation3 + $0x8c] sm:$0x1] }
 0x298   : > { %v5820_v9 = vrot.slane %v5818_v34, 7  ;;  %v14219_v57 = vcombine.low %v6195_v40, %v6205_v29  ;;  %v14793_v56 = vpack.c.bf16 %v5489_v44, %v5489_v44  ;;  %15528 = vmatmul.mubr.msk.bf16.gmra.mxu0 %vm6575_vm3, %v14255_v15  ;;  %v6216_v11 = vshll.u32 %v18916_v21, 16  ;;  %v19027_v15 = vld [vmem:[#allocation3 + $0x4c] sm:$0xf]  ;;  %v5364_v21 = vpop.f32.mrf.mxu0 }
 0x299   : > { %v5843_v51 = vshrl.u32 %v14790_v16, 16  ;;  %v5846_v10 = vshll.u32 %v14790_v16, 16  ;;  %v5826_v19 = vshrl.u32 %v14788_v7, 16  ;;  %v5829_v17 = vshll.u32 %v14788_v7, 16 }
 0x29a   : > { %v5823_v58 = vor.u32 %v5821_v43, %v5820_v9  ;;  %v5824_v23 = vrot.slane %v5820_v9, 4  ;;  %15489 = vmatprep.mubr.msk.bf16.mxu1 %vm6575_vm3, %v14219_v57  ;;  %v5869_v60 = vshrl.u32 %v14793_v56, 16  ;;  %v5872_v59 = vshll.u32 %v14793_v56, 16 }
 0x29b   : > { %v5845_v50 = vrot.slane %v5843_v51, 7  ;;  %v5828_v24 = vrot.slane %v5826_v19, 7  ;;  %v6214_v39 = vrot.slane %v6213_v13, 4  ;;  %v6218_v62 = vrot.slane %v6216_v11, 5  ;;  %v19046_v51 = vld [vmem:[#allocation3 + $0x38] sm:$0x1] }
 0x29c   : > { %v6043_v36 = vsel %vm18794_vm4, %v5823_v58, %v6042_v37  ;;  %v19018_v40 = vrot.slane %v5869_v60, 7  ;;  %v6222_v1 = vrot.slane %v6220_v47, 4  ;;  %v6226_v31 = vshll.u32 %v19013_v14, 16 }
 0x29d   : > { %6044 = vst [vmem:[#allocation3 + $0x84] sm:$0xf] %v6043_v36  ;;  %v5848_v45 = vor.u32 %v5846_v10, %v5845_v50  ;;  %v5850_v18 = vrot.slane %v5845_v50, 4  ;;  %v5831_v42 = vor.u32 %v5829_v17, %v5828_v24  ;;  %v5833_v8 = vrot.slane %v5828_v24, 4  ;;  %v19071_v36 = vld [vmem:[#allocation3 + $0x58] sm:$0xf] }
 0x29e   : > { %v5874_v2 = vor.u32 %v5872_v59, %v19018_v40  ;;  %v5875_v34 = vrot.slane %v19018_v40, 4  ;;  %v6219_v43 = vsel %vm16509_vm10, %v6214_v39, %v6218_v62  ;;  %v6223_v44 = vor.u32 %v6222_v1, %v6218_v62 }
 0x29f   : > { %v5849_v47 = vsel %vm16523_vm12, %v5841_v20, %v5848_v45  ;;  %v6054_v29 = vsel %vm18805_vm5, %v5850_v18, %v6053_v3  ;;  %v5832_v16 = vsel %vm16523_vm12, %v5824_v23, %v5831_v42  ;;  %v6047_v7 = vsel %vm18805_vm5, %v5833_v8, %v6046_v41  ;;  %v15481_v23 = vpop.f32.mrf.mxu0  ;;  %v6098_v3 = vld [vmem:[#allocation3 + $0x54] sm:$0xf] }
 0x2a0   : > { %6052 = vst.msk [vmem:[#allocation3 + $0x94] sm:$0xf] %vm5495_vm1, %v5849_v47  ;;  %6055 = vst [vmem:[#allocation3 + $0x98] sm:$0x1] %v6054_v29  ;;  %v6064_v38 = vsel %vm18794_vm4, %v5874_v2, %v6063_v33  ;;  %v6224_v13 = vrot.slane %v6223_v44, 4  ;;  %v6228_v20 = vrot.slane %v6226_v31, 5  ;;  %v14256_v56 = vcombine.low %v6096_v35, %v19027_v15 }
 0x2a1   : > { %6045 = vst.msk [vmem:[#allocation3 + $0x88] sm:$0xf] %vm5495_vm1, %v5832_v16  ;;  %6048 = vst [vmem:[#allocation3 + $0x8c] sm:$0x1] %v6047_v7  ;;  %v6279_v9 = vshrl.u32 %v6096_v35, 16  ;;  %v6282_v37 = vshll.u32 %v6096_v35, 16  ;;  %v5416_v11 = vadd.f32 %v5361_v54, %v18773_v12  ;;  %v6237_v17 = vor.u32 %v18977_v46, %v18975_v26 }
 0x2a2   : > { %6065 = vst [vmem:[#allocation3 + $0xa8] sm:$0xf] %v6064_v38  ;;  %v6292_v57 = vshrl.u32 %v19027_v15, 16  ;;  %v6229_v10 = vsel %vm16509_vm10, %v6224_v13, %v6228_v20  ;;  %v6240_v58 = vshll.u32 %v18949_v53, 16  ;;  %15531 = vmatprep.mubr.msk.bf16.mxu0 %vm6575_vm3, %v14256_v56  ;;  %v19061_v12 = vld [vmem:[%s21931_s2] ss:$0 sm:$0xff]  ;;  %v5419_v24 = vadd.f32 %v15478_v61, %v18777_v25 }
 0x2a3   : > { %v19050_v19 = vrot.slane %v6279_v9, 4  ;;  %v14220_v41 = vcombine.low %v6219_v43, %v6229_v10  ;;  %v19055_v60 = vrot.slane %v6282_v37, 5  ;;  %v5455_v54 = vadd.f32 %v19061_v12, %v5416_v11  ;;  %v19089_v37 = vld [vmem:[%s21932_s3 + $0x28] sm:$0xff]   ;;  %v6056_v56 = vld [vmem:[#allocation3 + $0x9c] sm:$0xf] }
 0x2a4   : > { %v6246_v59 = vrot.slane %v6244_v6, 4  ;;  %v6238_v26 = vrot.slane %v6237_v17, 4  ;;  %v6242_v46 = vrot.slane %v6240_v58, 5  ;;  %v6250_v50 = vshll.u32 %v19046_v51, 16  ;;  %15653 = vmatprep.subr.bf16.mxu0 %v19089_v37 }
 0x2a5   : > { %15490 = vmatmul.mubr.msk.bf16.gmra.mxu1 %vm6575_vm3, %v14220_v41  ;;  %v5487_v33 = vmax.f32 %v5455_v54, 0.0  ;;  %v5417_v39 = vadd.f32 %v5364_v21, %v18779_v52  ;;  %v5422_v62 = vadd.f32 %v15481_v23, %v18782_v48  ;;  %v6303_v1 = vshrl.u32 %v6098_v3, 16 }
 0x2a6   : > { %v6243_v53 = vsel %vm16509_vm10, %v6238_v26, %v6242_v46  ;;  %v6247_v6 = vor.u32 %v6246_v59, %v6242_v46  ;;  %v6252_v31 = vrot.slane %v6250_v50, 5  ;;  %v5458_v35 = vadd.f32 %v19061_v12, %v5419_v24  ;;  %v19096_v59 = vld [vmem:[#allocation3 + $0x44] sm:$0x1]  ;;  %v5377_v26 = vpop.f32.mrf.mxu0  ;;  %v6067_v50 = vld [vmem:[#allocation3 + $0xb0] sm:$0x1] }
 0x2a7   : > { %v14791_v45 = vpack.c.bf16 %v5487_v33, %v5487_v33  ;;  %v5456_v25 = vadd.f32 %v19061_v12, %v5417_v39  ;;  %v5461_v61 = vadd.f32 %v19061_v12, %v5422_v62  ;;  %v19078_v18 = vrot.slane %v6303_v1, 4  ;;  %v6060_v62 = vld [vmem:[#allocation3 + $0xa4] sm:$0x1] }
 0x2a8   : > { %v6248_v52 = vrot.slane %v6247_v6, 4  ;;  %v5490_v42 = vmax.f32 %v5458_v35, 0.0  ;;  %v6306_v48 = vshll.u32 %v6098_v3, 16  ;;  %v6316_v8 = vshrl.u32 %v19071_v36, 16 }
 0x2a9   : > { %v5852_v2 = vshrl.u32 %v14791_v45, 16  ;;  %v5855_v43 = vshll.u32 %v14791_v45, 16  ;;  %v5488_v44 = vmax.f32 %v5456_v25, 0.0  ;;  %v5493_v21 = vmax.f32 %v5461_v61, 0.0  ;;  %v6077_v45 = vld [vmem:[#allocation3 + $0xc0] sm:$0xf] }
 0x2aa   : > { %v6253_v47 = vsel %vm16509_vm10, %v6248_v52, %v6252_v31  ;;  %v14794_v29 = vpack.c.bf16 %v5490_v42, %v5490_v42  ;;  %v19083_v16 = vrot.slane %v6306_v48, 5  ;;  %v14257_v7 = vcombine.low %v6098_v3, %v19071_v36 }
 0x2ab   : > { %v5854_v38 = vrot.slane %v5852_v2, 7  ;;  %v14221_v13 = vcombine.low %v6243_v53, %v6253_v47  ;;  %v14792_v20 = vpack.c.bf16 %v5488_v44, %v5488_v44  ;;  %v14797_v9 = vpack.c.bf16 %v5493_v21, %v5493_v21  ;;  %v6100_v2 = vld [vmem:[#allocation3 + $0x60] sm:$0xf]  ;;  %v15482_v44 = vpop.f32.mrf.mxu0 }
 0x2ac   : > { %v5877_v11 = vshrl.u32 %v14794_v29, 16  ;;  %v5880_v10 = vshll.u32 %v14794_v29, 16  ;;  %15532 = vmatmul.mubr.msk.bf16.gmra.mxu0 %vm6575_vm3, %v14257_v7  ;;  %v6261_v17 = vor.u32 %v19003_v27, %v19001_v5  ;;  %v6264_v58 = vshll.u32 %v18994_v49, 16 }
 0x2ad   : > { %v5857_v23 = vor.u32 %v5855_v43, %v5854_v38  ;;  %v5858_v3 = vrot.slane %v5854_v38, 4  ;;  %15493 = vmatprep.mubr.msk.bf16.mxu1 %vm6575_vm3, %v14221_v13  ;;  %v5860_v41 = vshrl.u32 %v14792_v20, 16  ;;  %v5863_v54 = vshll.u32 %v14792_v20, 16  ;;  %v19108_v43 = vld [vmem:[#allocation3 + $0x64] sm:$0xf] }
 0x2ae   : > { %v5879_v46 = vrot.slane %v5877_v11, 7  ;;  %v5903_v24 = vshrl.u32 %v14797_v9, 16  ;;  %v5906_v33 = vshll.u32 %v14797_v9, 16  ;;  %v6262_v39 = vrot.slane %v6261_v17, 4  ;;  %v19123_v13 = vld [vmem:[#allocation3 + $0x50] sm:$0x1] }
 0x2af   : > { %v6057_v5 = vsel %vm18794_vm4, %v5857_v23, %v6056_v56  ;;  %v5862_v27 = vrot.slane %v5860_v41, 7  ;;  %v6266_v1 = vrot.slane %v6264_v58, 5  ;;  %v6270_v53 = vrot.slane %v6268_v32, 4  ;;  %v6102_v11 = vld [vmem:[#allocation3 + $0x6c] sm:$0xf] }
 0x2b0   : > { %6058 = vst [vmem:[#allocation3 + $0x9c] sm:$0xf] %v6057_v5  ;;  %v5882_v6 = vor.u32 %v5880_v10, %v5879_v46  ;;  %v5884_v31 = vrot.slane %v5879_v46, 4  ;;  %v19103_v35 = vrot.slane %v5903_v24, 7  ;;  %v6274_v25 = vshll.u32 %v19096_v59, 16 }
 0x2b1   : > { %v5865_v61 = vor.u32 %v5863_v54, %v5862_v27  ;;  %v5867_v52 = vrot.slane %v5862_v27, 4  ;;  %v6267_v42 = vsel %vm16509_vm10, %v6262_v39, %v6266_v1  ;;  %v6271_v48 = vor.u32 %v6270_v53, %v6266_v1  ;;  %v19135_v41 = vld [vmem:[#allocation3 + $0x70] sm:$0xf] }
 0x2b2   : > { %v5883_v49 = vsel %vm16523_vm12, %v5875_v34, %v5882_v6  ;;  %v6068_v32 = vsel %vm18805_vm5, %v5884_v31, %v6067_v50  ;;  %v5908_v21 = vor.u32 %v5906_v33, %v19103_v35  ;;  %v5909_v47 = vrot.slane %v19103_v35, 4 }
 0x2b3   : > { %6066 = vst.msk [vmem:[#allocation3 + $0xac] sm:$0xf] %vm5495_vm1, %v5883_v49  ;;  %6069 = vst [vmem:[#allocation3 + $0xb0] sm:$0x1] %v6068_v32  ;;  %v5866_v29 = vsel %vm16523_vm12, %v5858_v3, %v5865_v61  ;;  %v6061_v7 = vsel %vm18805_vm5, %v5867_v52, %v6060_v62  ;;  %v6272_v40 = vrot.slane %v6271_v48, 4  ;;  %v6276_v38 = vrot.slane %v6274_v25, 5  ;;  %v5380_v3 = vpop.f32.mrf.mxu0 }
 0x2b4   : > { %6059 = vst.msk [vmem:[#allocation3 + $0xa0] sm:$0xf] %vm5495_vm1, %v5866_v29  ;;  %6062 = vst [vmem:[#allocation3 + $0xa4] sm:$0x1] %v6061_v7  ;;  %v6078_v34 = vsel %vm18794_vm4, %v5908_v21, %v6077_v45  ;;  %v6327_v20 = vshrl.u32 %v6100_v2, 16  ;;  %v6330_v9 = vshll.u32 %v6100_v2, 16  ;;  %v14258_v17 = vcombine.low %v6100_v2, %v19108_v43 }
 0x2b5   : > { %v6340_v56 = vshrl.u32 %v19108_v43, 16  ;;  %6079 = vst [vmem:[#allocation3 + $0xc0] sm:$0xf] %v6078_v34  ;;  %v6277_v10 = vsel %vm16509_vm10, %v6272_v40, %v6276_v38  ;;  %v5420_v58 = vadd.f32 %v5377_v26, %v18785_v30  ;;  %v6285_v23 = vor.u32 %v19055_v60, %v19050_v19  ;;  %v6070_v7 = vld [vmem:[#allocation3 + $0xb4] sm:$0xf] }
 0x2b6   : > { %v14222_v54 = vcombine.low %v6267_v42, %v6277_v10  ;;  %v19137_v46 = vrot.slane %v6327_v20, 4  ;;  %v19139_v50 = vrot.slane %v6330_v9, 5  ;;  %v6288_v24 = vshll.u32 %v19027_v15, 16  ;;  %15535 = vmatprep.mubr.msk.bf16.mxu0 %vm6575_vm3, %v14258_v17  ;;  %v19160_v42 = vld [vmem:[#allocation3 + $0x5c] sm:$0x1] }
 0x2b7   : > { %v5459_v33 = vadd.f32 %v19061_v12, %v5420_v58  ;;  %v6286_v39 = vrot.slane %v6285_v23, 4  ;;  %v6294_v30 = vrot.slane %v6292_v57, 4  ;;  %v6298_v19 = vshll.u32 %v19123_v13, 16 }
 0x2b8   : > { %15494 = vmatmul.mubr.msk.bf16.gmra.mxu1 %vm6575_vm3, %v14222_v54  ;;  %v6290_v60 = vrot.slane %v6288_v24, 5  ;;  %v5423_v26 = vadd.f32 %v15482_v44, %v18787_v28  ;;  %v5421_v5 = vadd.f32 %v5380_v3, %v18789_v63  ;;  %v6351_v27 = vshrl.u32 %v6102_v11, 16  ;;  %v19171_v54 = vld [vmem:[#allocation3 + $0x7c] sm:$0xf] }
 0x2b9   : > { %v5491_v62 = vmax.f32 %v5459_v33, 0.0  ;;  %v6300_v1 = vrot.slane %v6298_v19, 5  ;;  %v6354_v53 = vshll.u32 %v6102_v11, 16  ;;  %v6364_v6 = vshrl.u32 %v19135_v41, 16  ;;  %v6081_v19 = vld [vmem:[#allocation3 + $0xc8] sm:$0x1] }
 0x2ba   : > { %v6291_v31 = vsel %vm16509_vm10, %v6286_v39, %v6290_v60  ;;  %v6295_v45 = vor.u32 %v6294_v30, %v6290_v60  ;;  %v5462_v57 = vadd.f32 %v19061_v12, %v5423_v26  ;;  %v5460_v25 = vadd.f32 %v19061_v12, %v5421_v5 }
 0x2bb   : > { %v14795_v61 = vpack.c.bf16 %v5491_v62, %v5491_v62  ;;  %v19155_v52 = vrot.slane %v6351_v27, 4  ;;  %v19157_v28 = vrot.slane %v6354_v53, 5  ;;  %v14259_v63 = vcombine.low %v6102_v11, %v19135_v41  ;;  %v6074_v62 = vld [vmem:[#allocation3 + $0xbc] sm:$0x1] }
 0x2bc   : > { %v6296_v48 = vrot.slane %v6295_v45, 4  ;;  %v5494_v2 = vmax.f32 %v5462_v57, 0.0  ;;  %v5492_v44 = vmax.f32 %v5460_v25, 0.0  ;;  %v6309_v49 = vor.u32 %v19083_v16, %v19078_v18  ;;  %v6104_v16 = vld [vmem:[#allocation3 + $0x78] sm:$0xf] }
 0x2bd   : > { %v5886_v32 = vshrl.u32 %v14795_v61, 16  ;;  %v5889_v21 = vshll.u32 %v14795_v61, 16  ;;  %15536 = vmatmul.mubr.msk.bf16.gmra.mxu0 %vm6575_vm3, %v14259_v63  ;;  %v6312_v12 = vshll.u32 %v19071_v36, 16  ;;  %v6318_v29 = vrot.slane %v6316_v8, 4  ;;  %v19179_v63 = vld [vmem:[#allocation3 + $0x68] sm:$0x1] }
 0x2be   : > { %v6301_v40 = vsel %vm16509_vm10, %v6296_v48, %v6300_v1  ;;  %v14798_v38 = vpack.c.bf16 %v5494_v2, %v5494_v2  ;;  %v14796_v34 = vpack.c.bf16 %v5492_v44, %v5492_v44  ;;  %v6310_v20 = vrot.slane %v6309_v49, 4  ;;  %v6106_v49 = vld [vmem:[#allocation3 + $0x84] sm:$0xf] }
 0x2bf   : > { %v5888_v9 = vrot.slane %v5886_v32, 7  ;;  %v14223_v11 = vcombine.low %v6291_v31, %v6301_v40  ;;  %v6314_v10 = vrot.slane %v6312_v12, 5  ;;  %v6322_v18 = vshll.u32 %v19160_v42, 16  ;;  %v19184_v32 = vld [vmem:[#allocation3 + $0x88] sm:$0xf] }
 0x2c0   : > { %v5911_v17 = vshrl.u32 %v14798_v38, 16  ;;  %v5914_v58 = vshll.u32 %v14798_v38, 16  ;;  %v5894_v23 = vshrl.u32 %v14796_v34, 16  ;;  %v5897_v3 = vshll.u32 %v14796_v34, 16 }
 0x2c1   : > { %v5891_v8 = vor.u32 %v5889_v21, %v5888_v9  ;;  %v5892_v24 = vrot.slane %v5888_v9, 4  ;;  %15497 = vmatprep.mubr.msk.bf16.mxu1 %vm6575_vm3, %v14223_v11  ;;  %v6315_v33 = vsel %vm16509_vm10, %v6310_v20, %v6314_v10  ;;  %v6319_v39 = vor.u32 %v6318_v29, %v6314_v10 }
 0x2c2   : > { %v5913_v30 = vrot.slane %v5911_v17, 7  ;;  %v5896_v60 = vrot.slane %v5894_v23, 7  ;;  %v6324_v26 = vrot.slane %v6322_v18, 5  ;;  %v6375_v5 = vshrl.u32 %v6104_v16, 16  ;;  %v19208_v18 = vld [vmem:[#allocation3 + $0x74] sm:$0x1] }
 0x2c3   : > { %v6071_v27 = vsel %vm18794_vm4, %v5891_v8, %v6070_v7  ;;  %v6320_v1 = vrot.slane %v6319_v39, 4  ;;  %v6378_v53 = vshll.u32 %v6104_v16, 16  ;;  %v6388_v31 = vshrl.u32 %v19171_v54, 16  ;;  %v19213_v23 = vld [vmem:[#allocation3 + $0x94] sm:$0xf] }
 0x2c4   : > { %6072 = vst [vmem:[#allocation3 + $0xb4] sm:$0xf] %v6071_v27  ;;  %v5916_v45 = vor.u32 %v5914_v58, %v5913_v30  ;;  %v5918_v57 = vrot.slane %v5913_v30, 4  ;;  %v5899_v25 = vor.u32 %v5897_v3, %v5896_v60  ;;  %v5901_v61 = vrot.slane %v5896_v60, 4 }
 0x2c5   : > { %v6325_v48 = vsel %vm16509_vm10, %v6320_v1, %v6324_v26  ;;  %v6377_v2 = vrot.slane %v6375_v5, 4  ;;  %v6380_v44 = vrot.slane %v6378_v53, 5  ;;  %v14260_v55 = vcombine.low %v6104_v16, %v19171_v54  ;;  %v19223_v5 = vld [vmem:[#allocation3 + $0x80] sm:$0x1] }
 0x2c6   : > { %v5917_v21 = vsel %vm16523_vm12, %v5909_v47, %v5916_v45  ;;  %v6082_v12 = vsel %vm18805_vm5, %v5918_v57, %v6081_v19  ;;  %v5900_v29 = vsel %vm16523_vm12, %v5892_v24, %v5899_v25  ;;  %v6075_v7 = vsel %vm18805_vm5, %v5901_v61, %v6074_v62  ;;  %v19227_v57 = vld [vmem:[#allocation3 + $0xa0] sm:$0xf] }
 0x2c7   : > { %6080 = vst.msk [vmem:[#allocation3 + $0xc4] sm:$0xf] %vm5495_vm1, %v5917_v21  ;;  %6083 = vst [vmem:[#allocation3 + $0xc8] sm:$0x1] %v6082_v12  ;;  %v14224_v40 = vcombine.low %v6315_v33, %v6325_v48  ;;  %15539 = vmatprep.mubr.msk.bf16.mxu0 %vm6575_vm3, %v14260_v55  ;;  %v6333_v35 = vor.u32 %v19139_v50, %v19137_v46  ;;  %v6336_v47 = vshll.u32 %v19108_v43, 16  ;;  %v6342_v22 = vrot.slane %v6340_v56, 4 }
 0x2c8   : > { %6073 = vst.msk [vmem:[#allocation3 + $0xb8] sm:$0xf] %vm5495_vm1, %v5900_v29  ;;  %6076 = vst [vmem:[#allocation3 + $0xbc] sm:$0x1] %v6075_v7  ;;  %v6346_v0 = vshll.u32 %v19179_v63, 16  ;;  %v6399_v38 = vshrl.u32 %v6106_v49, 16  ;;  %v14261_v10 = vcombine.low %v6106_v49, %v19184_v32  ;;  %v6357_v46 = vor.u32 %v19157_v28, %v19155_v52 }
 0x2c9   : > { %v6402_v34 = vshll.u32 %v6106_v49, 16  ;;  %v6412_v20 = vshrl.u32 %v19184_v32, 16  ;;  %15498 = vmatmul.mubr.msk.bf16.gmra.mxu1 %vm6575_vm3, %v14224_v40  ;;  %v6334_v9 = vrot.slane %v6333_v35, 4  ;;  %v6338_v11 = vrot.slane %v6336_v47, 5  ;;  %v6108_v50 = vld [vmem:[#allocation3 + $0x90] sm:$0xf] }
 0x2ca   : > { %v6348_v16 = vrot.slane %v6346_v0, 5  ;;  %v6401_v56 = vrot.slane %v6399_v38, 4  ;;  %v6360_v58 = vshll.u32 %v19135_v41, 16  ;;  %15540 = vmatmul.mubr.msk.bf16.gmra.mxu0 %vm6575_vm3, %v14261_v10  ;;  %v6358_v24 = vrot.slane %v6357_v46, 4  ;;  %v19241_v0 = vld [vmem:[#allocation3 + $0x8c] sm:$0x1] }
 0x2cb   : > { %v6404_v17 = vrot.slane %v6402_v34, 5  ;;  %v6339_v3 = vsel %vm16509_vm10, %v6334_v9, %v6338_v11  ;;  %v6343_v8 = vor.u32 %v6342_v22, %v6338_v11  ;;  %v6366_v33 = vrot.slane %v6364_v6, 4  ;;  %v6110_v6 = vld [vmem:[#allocation3 + $0x9c] sm:$0xf]  ;;  %v6112_v34 = vld [vmem:[#allocation3 + $0xa8] sm:$0xf] }
 0x2cc   : > { %v6362_v39 = vrot.slane %v6360_v58, 5  ;;  %v6370_v52 = vshll.u32 %v19208_v18, 16  ;;  %v6423_v28 = vshrl.u32 %v6108_v50, 16  ;;  %v6426_v30 = vshll.u32 %v6108_v50, 16  ;;  %v19245_v46 = vld [vmem:[#allocation3 + $0xac] sm:$0xf] }
 0x2cd   : > { %v6344_v19 = vrot.slane %v6343_v8, 4  ;;  %v6436_v60 = vshrl.u32 %v19213_v23, 16  ;;  %v14262_v26 = vcombine.low %v6108_v50, %v19213_v23  ;;  %v6381_v27 = vor.u32 %v6380_v44, %v6377_v2  ;;  %v19249_v8 = vld [vmem:[#allocation3 + $0x98] sm:$0x1] }
 0x2ce   : > { %v6363_v62 = vsel %vm16509_vm10, %v6358_v24, %v6362_v39  ;;  %v6367_v1 = vor.u32 %v6366_v33, %v6362_v39  ;;  %v6372_v53 = vrot.slane %v6370_v52, 5  ;;  %v6425_v45 = vrot.slane %v6423_v28, 4  ;;  %v6114_v24 = vld [vmem:[#allocation3 + $0xb4] sm:$0xf] }
 0x2cf   : > { %v6349_v25 = vsel %vm16509_vm10, %v6344_v19, %v6348_v16  ;;  %v6428_v61 = vrot.slane %v6426_v30, 5  ;;  %15543 = vmatprep.mubr.msk.bf16.mxu0 %vm6575_vm3, %v14262_v26  ;;  %v6382_v48 = vrot.slane %v6381_v27, 4  ;;  %v6384_v55 = vshll.u32 %v19171_v54, 16 }
 0x2d0   : > { %v14225_v49 = vcombine.low %v6339_v3, %v6349_v25  ;;  %v6368_v2 = vrot.slane %v6367_v1, 4  ;;  %v6390_v44 = vrot.slane %v6388_v31, 4  ;;  %v6394_v21 = vshll.u32 %v19223_v5, 16  ;;  %v19257_v1 = vld [vmem:[#allocation3 + $0xb8] sm:$0xf] }
 0x2d1   : > { %v6386_v12 = vrot.slane %v6384_v55, 5  ;;  %v6447_v29 = vshrl.u32 %v6110_v6, 16  ;;  %v6450_v7 = vshll.u32 %v6110_v6, 16  ;;  %v6460_v40 = vshrl.u32 %v19227_v57, 16 }
 0x2d2   : > { %15501 = vmatprep.mubr.msk.bf16.mxu1 %vm6575_vm3, %v14225_v49  ;;  %v6373_v35 = vsel %vm16509_vm10, %v6368_v2, %v6372_v53  ;;  %v6396_v47 = vrot.slane %v6394_v21, 5  ;;  %v14263_v22 = vcombine.low %v6110_v6, %v19227_v57  ;;  %v6405_v38 = vor.u32 %v6404_v17, %v6401_v56 }
 0x2d3   : > { %v14226_v31 = vcombine.low %v6363_v62, %v6373_v35  ;;  %v6387_v9 = vsel %vm16509_vm10, %v6382_v48, %v6386_v12  ;;  %v6391_v11 = vor.u32 %v6390_v44, %v6386_v12  ;;  %v6449_v10 = vrot.slane %v6447_v29, 4 }
 0x2d4   : > { %v6452_v50 = vrot.slane %v6450_v7, 5  ;;  %15544 = vmatmul.mubr.msk.bf16.gmra.mxu0 %vm6575_vm3, %v14263_v22  ;;  %v6406_v16 = vrot.slane %v6405_v38, 4  ;;  %v6408_v58 = vshll.u32 %v19184_v32, 16  ;;  %v6414_v3 = vrot.slane %v6412_v20, 4  ;;  %v16061_v38 = vld [vmem:[#allocation3 + $0xc] sm:$0xff]  }
 0x2d5   : > { %15502 = vmatmul.mubr.msk.bf16.gmra.mxu1 %vm6575_vm3, %v14226_v31  ;;  %v6392_v56 = vrot.slane %v6391_v11, 4  ;;  %v6418_v17 = vshll.u32 %v19241_v0, 16  ;;  %v6471_v33 = vshrl.u32 %v6112_v34, 16  ;;  %v6474_v39 = vshll.u32 %v6112_v34, 16  ;;  %v19273_v11 = vld [vmem:[#allocation3 + $0xb0] sm:$0x1] }
 0x2d6   : > { %v6410_v52 = vrot.slane %v6408_v58, 5  ;;  %v6484_v28 = vshrl.u32 %v19245_v46, 16  ;;  %v14264_v30 = vcombine.low %v6112_v34, %v19245_v46  ;;  %v6429_v19 = vor.u32 %v6428_v61, %v6425_v45 }
 0x2d7   : > { %v6397_v26 = vsel %vm16509_vm10, %v6392_v56, %v6396_v47  ;;  %v6420_v20 = vrot.slane %v6418_v17, 5  ;;  %v6473_v27 = vrot.slane %v6471_v33, 4  ;;  %v6476_v62 = vrot.slane %v6474_v39, 5  ;;  %v19267_v47 = vld [vmem:[#allocation3 + $0xa4] sm:$0x1] }
 0x2d8   : > { %v14227_v53 = vcombine.low %v6387_v9, %v6397_v26  ;;  %v6411_v6 = vsel %vm16509_vm10, %v6406_v16, %v6410_v52  ;;  %v6415_v25 = vor.u32 %v6414_v3, %v6410_v52  ;;  %15547 = vmatprep.mubr.msk.bf16.mxu0 %vm6575_vm3, %v14264_v30  ;;  %v6430_v48 = vrot.slane %v6429_v19, 4 }
 0x2d9   : > { %v6432_v55 = vshll.u32 %v19213_v23, 16  ;;  %v6438_v49 = vrot.slane %v6436_v60, 4  ;;  %v6442_v45 = vshll.u32 %v19249_v8, 16  ;;  %v6495_v61 = vshrl.u32 %v6114_v24, 16 }
 0x2da   : > { %15505 = vmatprep.mubr.msk.bf16.mxu1 %vm6575_vm3, %v14227_v53  ;;  %v6416_v2 = vrot.slane %v6415_v25, 4  ;;  %v6498_v44 = vshll.u32 %v6114_v24, 16  ;;  %v6508_v21 = vshrl.u32 %v19257_v1, 16  ;;  %v14265_v12 = vcombine.low %v6114_v24, %v19257_v1  ;;  %v19284_v53 = vld [vmem:[#allocation3 + $0xbc] sm:$0x1] }
 0x2db   : > { %v6434_v29 = vrot.slane %v6432_v55, 5  ;;  %v6444_v7 = vrot.slane %v6442_v45, 5  ;;  %v6497_v35 = vrot.slane %v6495_v61, 4  ;;  %v6453_v22 = vor.u32 %v6452_v50, %v6449_v10 }
 0x2dc   : > { %v6421_v60 = vsel %vm16509_vm10, %v6416_v2, %v6420_v20  ;;  %v6500_v34 = vrot.slane %v6498_v44, 5  ;;  %15548 = vmatmul.mubr.msk.bf16.gmra.mxu0 %vm6575_vm3, %v14265_v12  ;;  %v6456_v31 = vshll.u32 %v19227_v57, 16  ;;  %v6462_v9 = vrot.slane %v6460_v40, 4  ;;  %v7081_v2 = vld [vmem:[#allocation3 + $0xc] sm:$0xe] }
 0x2dd   : > { %v14228_v16 = vcombine.low %v6411_v6, %v6421_v60  ;;  %v6435_v58 = vsel %vm16509_vm10, %v6430_v48, %v6434_v29  ;;  %v6439_v3 = vor.u32 %v6438_v49, %v6434_v29  ;;  %v6454_v24 = vrot.slane %v6453_v22, 4  ;;  %15587 = vmatprep.mubr.msk.bf16.mxu0 %vm6575_vm3, %v16061_v38  ;;  %v7080_v6 = vld [vmem:[#allocation3] sm:$0xe]  ;;  %v16063_v49 = vld [vmem:[#allocation3 + $0x18] sm:$0xff]   ;;  %v16176_v60 = vld [vmem:[#allocation3 + $0x4] sm:$0xf] }
 0x2de   : > { %v6458_v10 = vrot.slane %v6456_v31, 5  ;;  %v6466_v50 = vshll.u32 %v19267_v47, 16  ;;  %v6477_v56 = vor.u32 %v6476_v62, %v6473_v27  ;;  %v6480_v17 = vshll.u32 %v19245_v46, 16 }
 0x2df   : > { %15506 = vmatmul.mubr.msk.bf16.gmra.mxu1 %vm6575_vm3, %v14228_v16  ;;  %v6440_v33 = vrot.slane %v6439_v3, 4  ;;  %v6486_v40 = vrot.slane %v6484_v28, 4  ;;  %v6490_v39 = vshll.u32 %v19273_v11, 16  ;;  %v6501_v52 = vor.u32 %v6500_v34, %v6497_v35  ;;  %v16064_v35 = vld [vmem:[#allocation3 + $0x24] sm:$0xff]  }
 0x2e0   : > { %v6459_v30 = vsel %vm16509_vm10, %v6454_v24, %v6458_v10  ;;  %v6463_v19 = vor.u32 %v6462_v9, %v6458_v10  ;;  %v6468_v26 = vrot.slane %v6466_v50, 5  ;;  %v6478_v20 = vrot.slane %v6477_v56, 4  ;;  %v7082_v9 = vld [vmem:[#allocation3 + $0x18] sm:$0xe] }
 0x2e1   : > { %v6445_v27 = vsel %vm16509_vm10, %v6440_v33, %v6444_v7  ;;  %v6482_v62 = vrot.slane %v6480_v17, 5  ;;  %v6492_v25 = vrot.slane %v6490_v39, 5  ;;  %v6502_v48 = vrot.slane %v6501_v52, 4  ;;  %v16178_v39 = vld [vmem:[#allocation3 + $0x10] sm:$0xf] }
 0x2e2   : > { %v14229_v55 = vcombine.low %v6435_v58, %v6445_v27  ;;  %v6464_v28 = vrot.slane %v6463_v19, 4  ;;  %v6504_v45 = vshll.u32 %v19257_v1, 16  ;;  %v6510_v61 = vrot.slane %v6508_v21, 4  ;;  %v16177_v21 = vld [vmem:[#allocation3 + $0x8] sm:$0x1] }
 0x2e3   : > { %v6483_v44 = vsel %vm16509_vm10, %v6478_v20, %v6482_v62  ;;  %v6487_v12 = vor.u32 %v6486_v40, %v6482_v62  ;;  %v6514_v29 = vshll.u32 %v19284_v53, 16  ;;  %v14283_v22 = vrot.slane %v7080_v6, 9  ;;  %v7083_v20 = vld [vmem:[#allocation3 + $0x24] sm:$0xe]  ;;  %v16180_v62 = vld [vmem:[#allocation3 + $0x1c] sm:$0xf] }
 0x2e4   : > { %15509 = vmatprep.mubr.msk.bf16.mxu1 %vm6575_vm3, %v14229_v55  ;;  %v6469_v7 = vsel %vm16509_vm10, %v6464_v28, %v6468_v26  ;;  %15588 = vmatmul.mubr.msk.bf16.vlgmr.msra.gmra.mxu0 %vm6575_vm3, %v16063_v49  ;;  %v6506_v38 = vrot.slane %v6504_v45, 5  ;;  %v7130_v34 = vrot.slane %v16176_v60, 5  ;;  %v7133_v31 = vrot.slane %v16177_v21, 5  ;;  %v16067_v60 = vld [vmem:[#allocation3 + $0x3c] sm:$0xff]  }
 0x2e5   : > { %v14230_v16 = vcombine.low %v6459_v30, %v6469_v7  ;;  %v6488_v58 = vrot.slane %v6487_v12, 4  ;;  %v6516_v3 = vrot.slane %v6514_v29, 5  ;;  %15591 = vmatprep.mubr.msk.bf16.mxu0 %vm6575_vm3, %v16064_v35  ;;  %v14284_v24 = vrot.slane %v7081_v2, 9  ;;  %15654 = vmatpush3.bf16.msra.mxu0 %v19089_v37  ;;  %v16179_v30 = vld [vmem:[#allocation3 + $0x14] sm:$0x1]  ;;  %v19314_v2 = vld [vmem:[%s21932_s3 + $0x38] sm:$0xff]  }
 0x2e6   : > { %v6507_v10 = vsel %vm16509_vm10, %v6502_v48, %v6506_v38  ;;  %v6511_v50 = vor.u32 %v6510_v61, %v6506_v38  ;;  %v7131_v17 = vsel %vm16848_vm0, %v14283_v22, %v7130_v34  ;;  %v7132_v33 = vrot.slane %v7130_v34, 4  ;;  %v7084_v61 = vld [vmem:[#allocation3 + $0x30] sm:$0xe]  ;;  %v16182_v34 = vld [vmem:[#allocation3 + $0x28] sm:$0xf]  ;;  %15721 = vmatprep.subr.bf16.mxu0 %v19314_v2 }
 0x2e7   : > { %15510 = vmatmul.mubr.msk.bf16.gmra.mxu1 %vm6575_vm3, %v14230_v16  ;;  %v6493_v40 = vsel %vm16509_vm10, %v6488_v58, %v6492_v25  ;;  %v7137_v52 = vrot.slane %v16178_v39, 5  ;;  %v7140_v19 = vrot.slane %v16179_v30, 5  ;;  %v14285_v26 = vrot.slane %v7082_v9, 9  ;;  %v16181_v25 = vld [vmem:[#allocation3 + $0x20] sm:$0x1]  ;;  %v16065_v12 = vld [vmem:[#allocation3 + $0x30] sm:$0xff]  }
 0x2e8   : > { %v14231_v37 = vcombine.low %v6483_v44, %v6493_v40  ;;  %v6512_v6 = vrot.slane %v6511_v50, 4  ;;  %v7134_v27 = vsel %vm16848_vm0, %v7132_v33, %v7133_v31  ;;  %v7144_v48 = vrot.slane %v16180_v62, 5  ;;  %v7085_v9 = vld [vmem:[#allocation3 + $0x3c] sm:$0xe]  ;;  %v7086_v50 = vld [vmem:[#allocation3 + $0x48] sm:$0xe] }
 0x2e9   : > { %v14301_v55 = vcombine.low %v7131_v17, %v7134_v27  ;;  %v19309_v28 = vsel %vm16848_vm0, %v14284_v24, %v7137_v52  ;;  %v7139_v49 = vrot.slane %v7137_v52, 4  ;;  %v7147_v45 = vrot.slane %v16181_v25, 5  ;;  %v16183_v24 = vld [vmem:[#allocation3 + $0x34] sm:$0xf]  ;;  %v7088_v25 = vld [vmem:[#allocation3 + $0x60] sm:$0xe] }
 0x2ea   : > { %15513 = vmatprep.mubr.msk.bf16.mxu1 %vm6575_vm3, %v14231_v37  ;;  %v6517_v44 = vsel %vm16509_vm10, %v6512_v6, %v6516_v3  ;;  %v19321_v29 = vsel %vm16848_vm0, %v14285_v26, %v7144_v48  ;;  %v7146_v35 = vrot.slane %v7144_v48, 4  ;;  %v14286_v22 = vrot.slane %v7083_v20, 9 }
 0x2eb   : > { %v14232_v7 = vcombine.low %v6507_v10, %v6517_v44  ;;  %v19325_v38 = vsel %vm16848_vm0, %v7139_v49, %v7140_v19  ;;  %v7151_v21 = vrot.slane %v16182_v34, 5  ;;  %v7154_v31 = vrot.slane %v19013_v14, 5  ;;  %v16184_v19 = vld [vmem:[#allocation3 + $0x40] sm:$0xf] }
 0x2ec   : > { %15592 = vmatmul.mubr.msk.bf16.gmra.mxu0 %vm6575_vm3, %v16065_v12  ;;  %v14302_v16 = vcombine.low %v19309_v28, %v19325_v38  ;;  %v19334_v58 = vsel %vm16848_vm0, %v7146_v35, %v7147_v45  ;;  %v14287_v3 = vrot.slane %v7084_v61, 9  ;;  %v7158_v10 = vrot.slane %v16183_v24, 5  ;;  %v16068_v61 = vld [vmem:[#allocation3 + $0x48] sm:$0xff]  }
 0x2ed   : > { %15595 = vmatprep.mubr.msk.bf16.mxu0 %vm6575_vm3, %v16067_v60  ;;  %v14303_v14 = vcombine.low %v19321_v29, %v19334_v58  ;;  %v19341_v17 = vsel %vm16848_vm0, %v14286_v22, %v7151_v21  ;;  %v7153_v33 = vrot.slane %v7151_v21, 4  ;;  %v7161_v40 = vrot.slane %v19046_v51, 5  ;;  %v7087_v51 = vld [vmem:[#allocation3 + $0x54] sm:$0xe]  ;;  %v7089_v22 = vld [vmem:[#allocation3 + $0x6c] sm:$0xe] }
 0x2ee   : > { %v19346_v39 = vsel %vm16848_vm0, %v14287_v3, %v7158_v10  ;;  %v7160_v52 = vrot.slane %v7158_v10, 4  ;;  %v14288_v30 = vrot.slane %v7085_v9, 9  ;;  %v7165_v26 = vrot.slane %v16184_v19, 5  ;;  %v7090_v21 = vld [vmem:[#allocation3 + $0x78] sm:$0xe] }
 0x2ef   : > { %15514 = vmatmul.mubr.msk.bf16.gmra.mxu1 %vm6575_vm3, %v14232_v7  ;;  %v19351_v20 = vsel %vm16848_vm0, %v7153_v33, %v7154_v31  ;;  %v7168_v37 = vrot.slane %v19096_v59, 5  ;;  %v14289_v6 = vrot.slane %v7086_v50, 9  ;;  %v7172_v27 = vrot.slane %v19027_v15, 5  ;;  %v16069_v7 = vld [vmem:[#allocation3 + $0x54] sm:$0xff]  }
 0x2f0   : > { %15553 = vmatprep.mubr.msk.bf16.mxu1 %vm6575_vm3, %v14301_v55  ;;  %v14304_v62 = vcombine.low %v19341_v17, %v19351_v20  ;;  %v19360_v48 = vsel %vm16848_vm0, %v7160_v52, %v7161_v40  ;;  %v19364_v28 = vsel %vm16848_vm0, %v14288_v30, %v7165_v26  ;;  %v7167_v49 = vrot.slane %v7165_v26, 4  ;;  %v19403_v10 = vld [vmem:[%s21932_s3 + $0x30] sm:$0xff]   ;;  %v7091_v52 = vld [vmem:[#allocation3 + $0x84] sm:$0xe] }
 0x2f1   : > { %v14305_v59 = vcombine.low %v19346_v39, %v19360_v48  ;;  %v19370_v15 = vsel %vm16848_vm0, %v14289_v6, %v7172_v27  ;;  %v7174_v55 = vrot.slane %v7172_v27, 4  ;;  %v7175_v45 = vrot.slane %v19123_v13, 5 }
 0x2f2   : > { %v19375_v44 = vsel %vm16848_vm0, %v7167_v49, %v7168_v37  ;;  %v14290_v12 = vrot.slane %v7087_v51, 9  ;;  %v7179_v29 = vrot.slane %v19071_v36, 5  ;;  %v7182_v35 = vrot.slane %v19160_v42, 5  ;;  %v7092_v37 = vld [vmem:[#allocation3 + $0x90] sm:$0xe] }
 0x2f3   : > { %v14306_v38 = vcombine.low %v19364_v28, %v19375_v44  ;;  %v19383_v60 = vsel %vm16848_vm0, %v7174_v55, %v7175_v45  ;;  %v14291_v13 = vrot.slane %v7088_v25, 9  ;;  %v7186_v34 = vrot.slane %v19108_v43, 5  ;;  %v8630_v51 = vld [vmem:[#allocation3 + $0xc] sm:$0xe]  ;;  %v7093_v45 = vld [vmem:[#allocation3 + $0x9c] sm:$0xe] }
 0x2f4   : > { %15596 = vmatmul.mubr.msk.bf16.gmra.mxu0 %vm6575_vm3, %v16068_v61  ;;  %v14307_v36 = vcombine.low %v19370_v15, %v19383_v60  ;;  %v19391_v42 = vsel %vm16848_vm0, %v14290_v12, %v7179_v29  ;;  %v7181_v31 = vrot.slane %v7179_v29, 4  ;;  %v7189_v9 = vrot.slane %v19179_v63, 5  ;;  %v16070_v61 = vld [vmem:[#allocation3 + $0x60] sm:$0xff]  }
 0x2f5   : > { %15599 = vmatprep.mubr.msk.bf16.mxu0 %vm6575_vm3, %v16069_v7  ;;  %v19397_v58 = vsel %vm16848_vm0, %v14291_v13, %v7186_v34  ;;  %v7188_v43 = vrot.slane %v7186_v34, 4  ;;  %v14292_v3 = vrot.slane %v7089_v22, 9  ;;  %v7193_v24 = vrot.slane %v19135_v41, 5  ;;  %v19447_v22 = vld [vmem:[#allocation3 + $0x10] sm:$0xf] }
 0x2f6   : > { %v19407_v50 = vsel %vm16848_vm0, %v7181_v31, %v7182_v35  ;;  %v7196_v63 = vrot.slane %v19208_v18, 5  ;;  %v14293_v33 = vrot.slane %v7090_v21, 9  ;;  %v7200_v40 = vrot.slane %v19171_v54, 5  ;;  %v16185_v54 = vld [vmem:[%s21932_s3 + $0x20] sm:$0xff]  }
 0x2f7   : > { %15554 = vmatmul.mubr.msk.bf16.vlgmr.msra.gmra.mxu1 %vm6575_vm3, %v14302_v16  ;;  %v14308_v41 = vcombine.low %v19391_v42, %v19407_v50  ;;  %v19416_v30 = vsel %vm16848_vm0, %v7188_v43, %v7189_v9  ;;  %v19420_v19 = vsel %vm16848_vm0, %v14292_v3, %v7193_v24  ;;  %v7195_v26 = vrot.slane %v7193_v24, 4  ;;  %v16071_v7 = vld [vmem:[#allocation3 + $0x6c] sm:$0xff]   ;;  %v19462_v43 = vld [vmem:[#allocation3 + $0x14] sm:$0x1] }
 0x2f8   : > { %15620 = vmatpush3.bf16.msra.mxu1 %v16185_v54  ;;  %15557 = vmatprep.mubr.msk.bf16.mxu1 %vm6575_vm3, %v14303_v14  ;;  %v14309_v18 = vcombine.low %v19397_v58, %v19416_v30  ;;  %v19430_v16 = vsel %vm16848_vm0, %v14293_v33, %v7200_v40  ;;  %v7202_v6 = vrot.slane %v7200_v40, 4  ;;  %v7203_v27 = vrot.slane %v19223_v5, 5  ;;  %v7094_v33 = vld [vmem:[#allocation3 + $0xa8] sm:$0xe]  ;;  %v8631_v54 = vld [vmem:[#allocation3 + $0x18] sm:$0xe] }
 0x2f9   : > { %v19435_v49 = vsel %vm16848_vm0, %v7195_v26, %v7196_v63  ;;  %v14294_v25 = vrot.slane %v7091_v52, 9  ;;  %v7207_v55 = vrot.slane %v19184_v32, 5  ;;  %v7210_v14 = vrot.slane %v19241_v0, 5  ;;  %15687 = vmatprep.subr.bf16.mxu1 %v19403_v10 }
 0x2fa   : > { %v14310_v12 = vcombine.low %v19420_v19, %v19435_v49  ;;  %v19444_v5 = vsel %vm16848_vm0, %v7202_v6, %v7203_v27  ;;  %v14295_v29 = vrot.slane %v7092_v37, 9  ;;  %v7214_v35 = vrot.slane %v19213_v23, 5  ;;  %v19481_v37 = vld [vmem:[#allocation3 + $0x1c] sm:$0xf]  ;;  %v8636_v19 = vld [vmem:[#allocation3 + $0x54] sm:$0xe] }
 0x2fb   : > { %v14311_v32 = vcombine.low %v19430_v16, %v19444_v5  ;;  %v19453_v0 = vsel %vm16848_vm0, %v14294_v25, %v7207_v55  ;;  %v7209_v13 = vrot.slane %v7207_v55, 4  ;;  %v7217_v34 = vrot.slane %v19249_v8, 5  ;;  %v19494_v25 = vld [vmem:[#allocation3 + $0x20] sm:$0x1]  ;;  %v7912_v49 = vld [vmem:[#allocation3 + $0x3c] sm:$0xf] }
 0x2fc   : > { %15600 = vmatmul.mubr.msk.bf16.gmra.mxu0 %vm6575_vm3, %v16070_v61  ;;  %v19459_v21 = vsel %vm16848_vm0, %v14295_v29, %v7214_v35  ;;  %v7216_v23 = vrot.slane %v7214_v35, 4  ;;  %v14296_v31 = vrot.slane %v7093_v45, 9  ;;  %v7221_v9 = vrot.slane %v19227_v57, 5  ;;  %v8632_v29 = vld [vmem:[#allocation3 + $0x24] sm:$0xe]  ;;  %v16072_v35 = vld [vmem:[#allocation3 + $0x78] sm:$0xff]  }
 0x2fd   : > { %15603 = vmatprep.mubr.msk.bf16.mxu0 %vm6575_vm3, %v16071_v7  ;;  %v19467_v3 = vsel %vm16848_vm0, %v7209_v13, %v7210_v14  ;;  %v7224_v8 = vrot.slane %v19267_v47, 5  ;;  %v14404_v24 = vrot.slane %v8630_v51, 9  ;;  %v8696_v63 = vrot.slane %v19447_v22, 5  ;;  %v7095_v14 = vld [vmem:[#allocation3 + $0xb4] sm:$0xe]  ;;  %v16078_v16 = vld [vmem:[#allocation3 + $0xc0] sm:$0xff]  }
 0x2fe   : > { %v14312_v40 = vcombine.low %v19453_v0, %v19467_v3  ;;  %v19475_v57 = vsel %vm16848_vm0, %v7216_v23, %v7217_v34  ;;  %v19479_v52 = vsel %vm16848_vm0, %v14296_v31, %v7221_v9  ;;  %v7223_v26 = vrot.slane %v7221_v9, 4  ;;  %v16073_v34 = vld [vmem:[#allocation3 + $0x84] sm:$0xff]  }
 0x2ff   : > { %15558 = vmatmul.mubr.msk.bf16.gmra.mxu1 %vm6575_vm3, %v14304_v62  ;;  %v14313_v47 = vcombine.low %v19459_v21, %v19475_v57  ;;  %v19491_v6 = vsel %vm16848_vm0, %v14404_v24, %v8696_v63  ;;  %v8698_v27 = vrot.slane %v8696_v63, 4  ;;  %v8699_v51 = vrot.slane %v19462_v43, 5  ;;  %v19527_v24 = vld [vmem:[#allocation3 + $0x2c] sm:$0x1] }
 0x300   : > { %15561 = vmatprep.mubr.msk.bf16.mxu1 %vm6575_vm3, %v14305_v59  ;;  %v19502_v17 = vsel %vm16848_vm0, %v7223_v26, %v7224_v8  ;;  %v14297_v20 = vrot.slane %v7094_v33, 9  ;;  %v7228_v62 = vrot.slane %v19245_v46, 5  ;;  %v7231_v55 = vrot.slane %v19273_v11, 5  ;;  %v19513_v59 = vld [vmem:[#allocation3 + $0x28] sm:$0xf] }
 0x301   : > { %v19510_v61 = vsel %vm16848_vm0, %v8698_v27, %v8699_v51  ;;  %v14405_v39 = vrot.slane %v8631_v54, 9  ;;  %v8703_v48 = vrot.slane %v19481_v37, 5  ;;  %v8706_v13 = vrot.slane %v19494_v25, 5  ;;  %v7900_v27 = vld [vmem:[#allocation3 + $0xc] sm:$0xf] }
 0x302   : > { %v14422_v46 = vcombine.low %v19491_v6, %v19510_v61  ;;  %v19519_v11 = vsel %vm16848_vm0, %v14297_v20, %v7228_v62  ;;  %v7230_v7 = vrot.slane %v7228_v62, 4  ;;  %v14298_v9 = vrot.slane %v7095_v14, 9 }
 0x303   : > { %v19524_v23 = vsel %vm16848_vm0, %v14405_v39, %v8703_v48  ;;  %v8705_v31 = vrot.slane %v8703_v48, 4  ;;  %v7235_v8 = vrot.slane %v19257_v1, 5  ;;  %v7238_v33 = vrot.slane %v19284_v53, 5  ;;  %v8633_v48 = vld [vmem:[#allocation3 + $0x30] sm:$0xe] }
 0x304   : > { %15604 = vmatmul.mubr.msk.bf16.gmra.mxu0 %vm6575_vm3, %v16072_v35  ;;  %v19532_v63 = vsel %vm16848_vm0, %v7230_v7, %v7231_v55  ;;  %v14406_v26 = vrot.slane %v8632_v29, 9  ;;  %v8710_v54 = vrot.slane %v19513_v59, 5  ;;  %v8713_v39 = vrot.slane %v19527_v24, 5 }
 0x305   : > { %15607 = vmatprep.mubr.msk.bf16.mxu0 %vm6575_vm3, %v16073_v34  ;;  %v19541_v1 = vsel %vm16848_vm0, %v8705_v31, %v8706_v13  ;;  %v19545_v20 = vsel %vm16848_vm0, %v14298_v9, %v7235_v8  ;;  %v7237_v62 = vrot.slane %v7235_v8, 4  ;;  %v7949_v35 = vshrl.u32 %v7900_v27, 16  ;;  %v19563_v34 = vld [vmem:[#allocation3 + $0x34] sm:$0xf]  ;;  %v19577_v9 = vld [vmem:[#allocation3 + $0x38] sm:$0x1] }
 0x306   : > { %v14423_v53 = vcombine.low %v19524_v23, %v19541_v1  ;;  %v19551_v55 = vsel %vm16848_vm0, %v14406_v26, %v8710_v54  ;;  %v8712_v14 = vrot.slane %v8710_v54, 4  ;;  %v7952_v7 = vshll.u32 %v7900_v27, 16  ;;  %v7903_v8 = vld [vmem:[#allocation3 + $0x18] sm:$0xf]  ;;  %v16074_v26 = vld [vmem:[#allocation3 + $0x90] sm:$0xff]  }
 0x307   : > { %15562 = vmatmul.mubr.msk.bf16.gmra.mxu1 %vm6575_vm3, %v14306_v38  ;;  %v19560_v29 = vsel %vm16848_vm0, %v7237_v62, %v7238_v33  ;;  %v7958_v13 = vshll.u32 %v19447_v22, 16  ;;  %v7962_v38 = vshrl.u32 %v19447_v22, 16  ;;  %v7968_v31 = vshll.u32 %v19462_v43, 16  ;;  %v19591_v33 = vld [vmem:[#allocation3 + $0x40] sm:$0xf] }
 0x308   : > { %15565 = vmatprep.mubr.msk.bf16.mxu1 %vm6575_vm3, %v14307_v36  ;;  %v19573_v44 = vsel %vm16848_vm0, %v8712_v14, %v8713_v39  ;;  %v7951_v15 = vrot.slane %v7949_v35, 4  ;;  %v7954_v60 = vrot.slane %v7952_v7, 5  ;;  %v14407_v62 = vrot.slane %v8633_v48, 9  ;;  %v16075_v39 = vld [vmem:[#allocation3 + $0x9c] sm:$0xff]   ;;  %v8638_v1 = vld [vmem:[#allocation3 + $0x6c] sm:$0xe] }
 0x309   : > { %v7960_v36 = vrot.slane %v7958_v13, 5  ;;  %v7964_v54 = vrot.slane %v7962_v38, 4  ;;  %v7970_v27 = vrot.slane %v7968_v31, 5  ;;  %v8717_v14 = vrot.slane %v19563_v34, 5  ;;  %v8634_v38 = vld [vmem:[#allocation3 + $0x3c] sm:$0xe] }
 0x30a   : > { %v7955_v28 = vor.u32 %v7954_v60, %v7951_v15  ;;  %v8720_v22 = vrot.slane %v19577_v9, 5  ;;  %v7973_v43 = vshrl.u32 %v7903_v8, 16  ;;  %v7976_v51 = vshll.u32 %v7903_v8, 16 }
 0x30b   : > { %v7965_v45 = vor.u32 %v7964_v54, %v7960_v36  ;;  %v19586_v35 = vsel %vm16848_vm0, %v14407_v62, %v8717_v14  ;;  %v8719_v7 = vrot.slane %v8717_v14, 4  ;;  %v7982_v13 = vshll.u32 %v19481_v37, 16  ;;  %v19598_v14 = vld [vmem:[#allocation3 + $0x44] sm:$0x1] }
 0x30c   : > { %15608 = vmatmul.mubr.msk.bf16.gmra.mxu0 %vm6575_vm3, %v16074_v26  ;;  %v7956_v48 = vrot.slane %v7955_v28, 4  ;;  %v7975_v31 = vrot.slane %v7973_v43, 4  ;;  %v7978_v15 = vrot.slane %v7976_v51, 5  ;;  %v7986_v60 = vshrl.u32 %v19481_v37, 16 }
 0x30d   : > { %15611 = vmatprep.mubr.msk.bf16.mxu0 %vm6575_vm3, %v16075_v39  ;;  %v7966_v8 = vrot.slane %v7965_v45, 4  ;;  %v19595_v26 = vsel %vm16848_vm0, %v8719_v7, %v8720_v22  ;;  %v7984_v54 = vrot.slane %v7982_v13, 5  ;;  %v7992_v62 = vshll.u32 %v19494_v25, 16  ;;  %v7906_v39 = vld [vmem:[#allocation3 + $0x24] sm:$0xf] }
 0x30e   : > { %v7961_v37 = vsel %vm16509_vm10, %v7956_v48, %v7960_v36  ;;  %v14425_v45 = vcombine.low %v19586_v35, %v19595_v26  ;;  %v7979_v51 = vor.u32 %v7978_v15, %v7975_v31  ;;  %v7988_v28 = vrot.slane %v7986_v60, 4  ;;  %v8635_v13 = vld [vmem:[#allocation3 + $0x48] sm:$0xe]  ;;  %v16077_v15 = vld [vmem:[#allocation3 + $0xb4] sm:$0xff]  }
 0x30f   : > { %15566 = vmatmul.mubr.msk.bf16.gmra.mxu1 %vm6575_vm3, %v14308_v41  ;;  %v7971_v25 = vsel %vm16509_vm10, %v7966_v8, %v7970_v27  ;;  %v7994_v42 = vrot.slane %v7992_v62, 5  ;;  %v14408_v50 = vrot.slane %v8634_v38, 9  ;;  %v8724_v41 = vrot.slane %v19591_v33, 5  ;;  %v16076_v48 = vld [vmem:[#allocation3 + $0xa8] sm:$0xff]   ;;  %v7909_v27 = vld [vmem:[#allocation3 + $0x30] sm:$0xf] }
 0x310   : > { %15569 = vmatprep.mubr.msk.bf16.mxu1 %vm6575_vm3, %v14309_v18  ;;  %v19615_v22 = vcombine.low %v7961_v37, %v7971_v25  ;;  %v7980_v36 = vrot.slane %v7979_v51, 4  ;;  %v7989_v43 = vor.u32 %v7988_v28, %v7984_v54  ;;  %v8727_v7 = vrot.slane %v19598_v14, 5  ;;  %v19626_v37 = vld [vmem:[#allocation3 + $0x4c] sm:$0xf] }
 0x311   : > { %v19620_v58 = vsel %vm16848_vm0, %v14408_v50, %v8724_v41  ;;  %v8726_v30 = vrot.slane %v8724_v41, 4  ;;  %v7997_v18 = vshrl.u32 %v7906_v39, 16  ;;  %v8000_v31 = vshll.u32 %v7906_v39, 16  ;;  %v19634_v50 = vld [vmem:[#allocation3 + $0x50] sm:$0x1] }
 0x312   : > { %v7985_v38 = vsel %vm16509_vm10, %v7980_v36, %v7984_v54  ;;  %v7990_v60 = vrot.slane %v7989_v43, 4  ;;  %v8006_v8 = vshll.u32 %v19513_v59, 16  ;;  %v8010_v62 = vshrl.u32 %v19513_v59, 16 }
 0x313   : > { %v19631_v51 = vsel %vm16848_vm0, %v8726_v30, %v8727_v7  ;;  %v7999_v28 = vrot.slane %v7997_v18, 4  ;;  %v8002_v39 = vrot.slane %v8000_v31, 5  ;;  %v8016_v25 = vshll.u32 %v19527_v24, 16 }
 0x314   : > { %15612 = vmatmul.mubr.msk.bf16.gmra.mxu0 %vm6575_vm3, %v16076_v48  ;;  %v7995_v54 = vsel %vm16509_vm10, %v7990_v60, %v7994_v42  ;;  %v14426_v59 = vcombine.low %v19620_v58, %v19631_v51  ;;  %v8008_v41 = vrot.slane %v8006_v8, 5  ;;  %v8012_v36 = vrot.slane %v8010_v62, 4 }
 0x315   : > { %15615 = vmatprep.mubr.msk.bf16.mxu0 %vm6575_vm3, %v16077_v15  ;;  %v19641_v43 = vcombine.low %v7985_v38, %v7995_v54  ;;  %v8003_v7 = vor.u32 %v8002_v39, %v7999_v28  ;;  %v8018_v48 = vrot.slane %v8016_v25, 5  ;;  %v14409_v30 = vrot.slane %v8635_v13, 9  ;;  %v19659_v39 = vld [vmem:[#allocation3 + $0x58] sm:$0xf]  ;;  %v19663_v54 = vld [vmem:[#allocation3 + $0x5c] sm:$0x1] }
 0x316   : > { %v8013_v24 = vor.u32 %v8012_v36, %v8008_v41  ;;  %v8731_v18 = vrot.slane %v19626_v37, 5  ;;  %v8734_v42 = vrot.slane %v19634_v50, 5  ;;  %v8021_v31 = vshrl.u32 %v7909_v27, 16 }
 0x317   : > { %15570 = vmatmul.mubr.msk.bf16.gmra.mxu1 %vm6575_vm3, %v14310_v12  ;;  %v8004_v15 = vrot.slane %v8003_v7, 4  ;;  %v8024_v38 = vshll.u32 %v7909_v27, 16  ;;  %v8030_v13 = vshll.u32 %v19563_v34, 16  ;;  %v8034_v60 = vshrl.u32 %v19563_v34, 16 }
 0x318   : > { %15573 = vmatprep.mubr.msk.bf16.mxu1 %vm6575_vm3, %v14311_v32  ;;  %v8014_v12 = vrot.slane %v8013_v24, 4  ;;  %v19657_v8 = vsel %vm16848_vm0, %v14409_v30, %v8731_v18  ;;  %v8733_v62 = vrot.slane %v8731_v18, 4  ;;  %v8023_v28 = vrot.slane %v8021_v31, 4 }
 0x319   : > { %v8009_v5 = vsel %vm16509_vm10, %v8004_v15, %v8008_v41  ;;  %v8026_v32 = vrot.slane %v8024_v38, 5  ;;  %v8032_v27 = vrot.slane %v8030_v13, 5  ;;  %v8036_v25 = vrot.slane %v8034_v60, 4 }
 0x31a   : > { %v8019_v34 = vsel %vm16509_vm10, %v8014_v12, %v8018_v48  ;;  %v19669_v36 = vsel %vm16848_vm0, %v8733_v62, %v8734_v42  ;;  %v8040_v7 = vshll.u32 %v19577_v9, 16  ;;  %v14410_v30 = vrot.slane %v8636_v19, 9  ;;  %v19684_v12 = vld [vmem:[#allocation3 + $0x64] sm:$0xf] }
 0x31b   : > { %v19673_v24 = vcombine.low %v8009_v5, %v8019_v34  ;;  %v14427_v41 = vcombine.low %v19657_v8, %v19669_v36  ;;  %v8027_v18 = vor.u32 %v8026_v32, %v8023_v28  ;;  %v8037_v31 = vor.u32 %v8036_v25, %v8032_v27  ;;  %v8637_v28 = vld [vmem:[#allocation3 + $0x60] sm:$0xe]  ;;  %v7915_v5 = vld [vmem:[#allocation3 + $0x48] sm:$0xf] }
 0x31c   : > { %15616 = vmatmul.mubr.msk.bf16.gmra.mxu0 %vm6575_vm3, %v16078_v16  ;;  %v8042_v48 = vrot.slane %v8040_v7, 5  ;;  %v8738_v42 = vrot.slane %v19659_v39, 5  ;;  %v8741_v9 = vrot.slane %v19663_v54, 5  ;;  %v8045_v15 = vshrl.u32 %v7912_v49, 16  ;;  %v19703_v16 = vld [vmem:[#allocation3 + $0x68] sm:$0x1] }
 0x31d   : > { %15655 = vmatprep.mubr.msk.bf16.mxu0 %vm6575_vm3, %v14422_v46  ;;  %v8028_v38 = vrot.slane %v8027_v18, 4  ;;  %v8038_v13 = vrot.slane %v8037_v31, 4  ;;  %v8048_v60 = vshll.u32 %v7912_v49, 16  ;;  %v8054_v19 = vshll.u32 %v19591_v33, 16  ;;  %v19833_v8 = vld [vmem:[%s21932_s3 + $0x40] sm:$0xff]  }
 0x31e   : > { %v19692_v6 = vsel %vm16848_vm0, %v14410_v30, %v8738_v42  ;;  %v8740_v61 = vrot.slane %v8738_v42, 4  ;;  %v8047_v46 = vrot.slane %v8045_v15, 4  ;;  %v8058_v62 = vshrl.u32 %v19591_v33, 16  ;;  %v7918_v15 = vld [vmem:[#allocation3 + $0x54] sm:$0xf] }
 0x31f   : > { %15574 = vmatmul.mubr.msk.bf16.gmra.mxu1 %vm6575_vm3, %v14312_v40  ;;  %v8033_v49 = vsel %vm16509_vm10, %v8028_v38, %v8032_v27  ;;  %v8043_v0 = vsel %vm16509_vm10, %v8038_v13, %v8042_v48  ;;  %v8050_v3 = vrot.slane %v8048_v60, 5  ;;  %v8056_v40 = vrot.slane %v8054_v19, 5 }
 0x320   : > { %15577 = vmatprep.mubr.msk.bf16.mxu1 %vm6575_vm3, %v14313_v47  ;;  %v19705_v32 = vcombine.low %v8033_v49, %v8043_v0  ;;  %v19709_v33 = vsel %vm16848_vm0, %v8740_v61, %v8741_v9  ;;  %v8060_v21 = vrot.slane %v8058_v62, 4  ;;  %v8064_v57 = vshll.u32 %v19598_v14, 16  ;;  %v19740_v62 = vld [vmem:[#allocation3 + $0x74] sm:$0x1] }
 0x321   : > { %v14428_v47 = vcombine.low %v19692_v6, %v19709_v33  ;;  %v8051_v27 = vor.u32 %v8050_v3, %v8047_v46  ;;  %v14411_v25 = vrot.slane %v8637_v28, 9  ;;  %v8745_v34 = vrot.slane %v19684_v12, 5  ;;  %v8641_v6 = vld [vmem:[#allocation3 + $0x90] sm:$0xe] }
 0x322   : > { %v8061_v7 = vor.u32 %v8060_v21, %v8056_v40  ;;  %v8066_v30 = vrot.slane %v8064_v57, 5  ;;  %v8748_v18 = vrot.slane %v19703_v16, 5  ;;  %v8069_v31 = vshrl.u32 %v7915_v5, 16 }
 0x323   : > { %v8052_v48 = vrot.slane %v8051_v27, 4  ;;  %v19722_v14 = vsel %vm16848_vm0, %v14411_v25, %v8745_v34  ;;  %v8747_v42 = vrot.slane %v8745_v34, 4  ;;  %v8072_v9 = vshll.u32 %v7915_v5, 16 }
 0x324   : > { %15656 = vmatmul.mubr.msk.bf16.vlgmr.msra.gmra.mxu0 %vm6575_vm3, %v14423_v53  ;;  %v22158_v38 = vcombine.low %v19551_v55, %v19573_v44  ;;  %v8062_v13 = vrot.slane %v8061_v7, 4  ;;  %v8071_v60 = vrot.slane %v8069_v31, 4  ;;  %v8078_v19 = vshll.u32 %v19626_v37, 16  ;;  %v19738_v44 = vld [vmem:[#allocation3 + $0x70] sm:$0xf] }
 0x325   : > { %v8082_v23 = vshrl.u32 %v19626_v37, 16  ;;  %15722 = vmatpush3.bf16.msra.mxu0 %v19314_v2  ;;  %v8057_v53 = vsel %vm16509_vm10, %v8052_v48, %v8056_v40  ;;  %v19735_v61 = vsel %vm16848_vm0, %v8747_v42, %v8748_v18  ;;  %v8074_v46 = vrot.slane %v8072_v9, 5  ;;  %v19764_v9 = vld [vmem:[#allocation3 + $0x7c] sm:$0xf] }
 0x326   : > { %15659 = vmatprep.mubr.msk.bf16.mxu0 %vm6575_vm3, %v22158_v38  ;;  %v8088_v55 = vshll.u32 %v19634_v50, 16  ;;  %v22159_v37 = vcombine.low %v19479_v52, %v19502_v17  ;;  %v8067_v2 = vsel %vm16509_vm10, %v8062_v13, %v8066_v30  ;;  %v14429_v28 = vcombine.low %v19722_v14, %v19735_v61 }
 0x327   : > { %v8080_v49 = vrot.slane %v8078_v19, 5  ;;  %v8084_v0 = vrot.slane %v8082_v23, 4  ;;  %v22160_v50 = vcombine.low %v19519_v11, %v19532_v63  ;;  %v19754_v3 = vcombine.low %v8057_v53, %v8067_v2  ;;  %v8639_v11 = vld [vmem:[#allocation3 + $0x78] sm:$0xe]  ;;  %v7921_v63 = vld [vmem:[#allocation3 + $0x60] sm:$0xf] }
 0x328   : > { %15578 = vmatmul.mubr.msk.bf16.gmra.mxu1 %vm6575_vm3, %v22159_v37  ;;  %v8075_v40 = vor.u32 %v8074_v46, %v8071_v60  ;;  %v8090_v5 = vrot.slane %v8088_v55, 5  ;;  %v14412_v52 = vrot.slane %v8638_v1, 9  ;;  %v8752_v21 = vrot.slane %v19738_v44, 5  ;;  %v19772_v60 = vld [vmem:[#allocation3 + $0x80] sm:$0x1] }
 0x329   : > { %15581 = vmatprep.mubr.msk.bf16.mxu1 %vm6575_vm3, %v22160_v50  ;;  %v8085_v17 = vor.u32 %v8084_v0, %v8080_v49  ;;  %v8755_v57 = vrot.slane %v19740_v62, 5  ;;  %v8093_v27 = vshrl.u32 %v7918_v15, 16  ;;  %v8096_v34 = vshll.u32 %v7918_v15, 16  ;;  %v8640_v50 = vld [vmem:[#allocation3 + $0x84] sm:$0xe] }
 0x32a   : > { %v8076_v25 = vrot.slane %v8075_v40, 4  ;;  %v8102_v7 = vshll.u32 %v19659_v39, 16  ;;  %v8106_v30 = vshrl.u32 %v19659_v39, 16  ;;  %v19762_v31 = vsel %vm16848_vm0, %v14412_v52, %v8752_v21  ;;  %v19803_v52 = vld [vmem:[#allocation3 + $0x88] sm:$0xf] }
 0x32b   : > { %v8086_v18 = vrot.slane %v8085_v17, 4  ;;  %v8754_v48 = vrot.slane %v8752_v21, 4  ;;  %v8095_v42 = vrot.slane %v8093_v27, 4  ;;  %v8098_v39 = vrot.slane %v8096_v34, 5  ;;  %v19809_v27 = vld [vmem:[#allocation3 + $0x8c] sm:$0x1] }
 0x32c   : > { %15660 = vmatmul.mubr.msk.bf16.gmra.mxu0 %vm6575_vm3, %v14425_v45  ;;  %v8081_v15 = vsel %vm16509_vm10, %v8076_v25, %v8080_v49  ;;  %v8104_v38 = vrot.slane %v8102_v7, 5  ;;  %v8108_v13 = vrot.slane %v8106_v30, 4  ;;  %v8112_v26 = vshll.u32 %v19663_v54, 16  ;;  %v7924_v25 = vld [vmem:[#allocation3 + $0x6c] sm:$0xf] }
 0x32d   : > { %15663 = vmatprep.mubr.msk.bf16.mxu0 %vm6575_vm3, %v14426_v59  ;;  %v8091_v19 = vsel %vm16509_vm10, %v8086_v18, %v8090_v5  ;;  %v19782_v35 = vsel %vm16848_vm0, %v8754_v48, %v8755_v57  ;;  %v14413_v45 = vrot.slane %v8639_v11, 9  ;;  %v8099_v53 = vor.u32 %v8098_v39, %v8095_v42 }
 0x32e   : > { %v19785_v23 = vcombine.low %v8081_v15, %v8091_v19  ;;  %v14430_v1 = vcombine.low %v19762_v31, %v19782_v35  ;;  %v8109_v46 = vor.u32 %v8108_v13, %v8104_v38  ;;  %v22161_v58 = vcombine.low %v19545_v20, %v19560_v29  ;;  %v19886_v31 = vld [vmem:[#allocation3 + $0xa4] sm:$0x1] }
 0x32f   : > { %v8114_v51 = vrot.slane %v8112_v26, 5  ;;  %v8759_v59 = vrot.slane %v19764_v9, 5  ;;  %v8762_v55 = vrot.slane %v19772_v60, 5  ;;  %v8117_v37 = vshrl.u32 %v7921_v63, 16 }
 0x330   : > { %15582 = vmatmul.mubr.msk.bf16.gmra.mxu1 %vm6575_vm3, %v22161_v58  ;;  %v8100_v54 = vrot.slane %v8099_v53, 4  ;;  %v8110_v2 = vrot.slane %v8109_v46, 4  ;;  %v8120_v49 = vshll.u32 %v7921_v63, 16  ;;  %v8126_v0 = vshll.u32 %v19684_v12, 16 }
 0x331   : > { %15621 = vmatprep.mubr.msk.bf16.mxu1 %vm6575_vm3, %v19615_v22  ;;  %v19800_v20 = vsel %vm16848_vm0, %v14413_v45, %v8759_v59  ;;  %v8761_v29 = vrot.slane %v8759_v59, 4  ;;  %v8119_v40 = vrot.slane %v8117_v37, 4  ;;  %v8130_v5 = vshrl.u32 %v19684_v12, 16  ;;  %v19843_v45 = vld [vmem:[#allocation3 + $0x94] sm:$0xf] }
 0x332   : > { %v8105_v17 = vsel %vm16509_vm10, %v8100_v54, %v8104_v38  ;;  %v8115_v22 = vsel %vm16509_vm10, %v8110_v2, %v8114_v51  ;;  %v8122_v21 = vrot.slane %v8120_v49, 5  ;;  %v8128_v57 = vrot.slane %v8126_v0, 5  ;;  %v19855_v51 = vld [vmem:[#allocation3 + $0x98] sm:$0x1] }
 0x333   : > { %v19811_v34 = vcombine.low %v8105_v17, %v8115_v22  ;;  %v19815_v7 = vsel %vm16848_vm0, %v8761_v29, %v8762_v55  ;;  %v8132_v12 = vrot.slane %v8130_v5, 4  ;;  %v8136_v30 = vshll.u32 %v19703_v16, 16 }
 0x334   : > { %15664 = vmatmul.mubr.msk.bf16.gmra.mxu0 %vm6575_vm3, %v14427_v41  ;;  %v14431_v11 = vcombine.low %v19800_v20, %v19815_v7  ;;  %v8123_v63 = vor.u32 %v8122_v21, %v8119_v40  ;;  %v14414_v18 = vrot.slane %v8640_v50, 9  ;;  %v8766_v48 = vrot.slane %v19803_v52, 5  ;;  %v8642_v21 = vld [vmem:[#allocation3 + $0x9c] sm:$0xe] }
 0x335   : > { %15667 = vmatprep.mubr.msk.bf16.mxu0 %vm6575_vm3, %v14428_v47  ;;  %v8133_v42 = vor.u32 %v8132_v12, %v8128_v57  ;;  %v8138_v15 = vrot.slane %v8136_v30, 5  ;;  %v8769_v16 = vrot.slane %v19809_v27, 5  ;;  %v8141_v39 = vshrl.u32 %v7924_v25, 16  ;;  %v19882_v30 = vpop.f32.mrf.mxu0 }
 0x336   : > { %v8124_v36 = vrot.slane %v8123_v63, 4  ;;  %v19837_v41 = vsel %vm16848_vm0, %v14414_v18, %v8766_v48  ;;  %v8768_v38 = vrot.slane %v8766_v48, 4  ;;  %v8144_v13 = vshll.u32 %v7924_v25, 16 }
 0x337   : > { %v8134_v33 = vrot.slane %v8133_v42, 4  ;;  %v8143_v47 = vrot.slane %v8141_v39, 4  ;;  %v8150_v19 = vshll.u32 %v19738_v44, 16  ;;  %v8154_v26 = vshrl.u32 %v19738_v44, 16  ;;  %v7927_v44 = vld [vmem:[#allocation3 + $0x78] sm:$0xf] }
 0x338   : > { %15622 = vmatmul.mubr.msk.bf16.vlgmr.msra.gmra.mxu1 %vm6575_vm3, %v19641_v43  ;;  %v8129_v53 = vsel %vm16509_vm10, %v8124_v36, %v8128_v57  ;;  %v19852_v46 = vsel %vm16848_vm0, %v8768_v38, %v8769_v16  ;;  %v8146_v43 = vrot.slane %v8144_v13, 5  ;;  %v8160_v58 = vshll.u32 %v19740_v62, 16  ;;  %v7930_v57 = vld [vmem:[#allocation3 + $0x84] sm:$0xf] }
 0x339   : > { %15688 = vmatpush3.bf16.msra.mxu1 %v19403_v10  ;;  %15625 = vmatprep.mubr.msk.bf16.mxu1 %vm6575_vm3, %v19673_v24  ;;  %v8139_v59 = vsel %vm16509_vm10, %v8134_v33, %v8138_v15  ;;  %v14432_v10 = vcombine.low %v19837_v41, %v19852_v46  ;;  %v8152_v24 = vrot.slane %v8150_v19, 5  ;;  %v8156_v55 = vrot.slane %v8154_v26, 4 }
 0x33a   : > { %15755 = vmatprep.subr.bf16.mxu1 %v19833_v8  ;;  %v19862_v37 = vcombine.low %v8129_v53, %v8139_v59  ;;  %v8147_v54 = vor.u32 %v8146_v43, %v8143_v47  ;;  %v8162_v2 = vrot.slane %v8160_v58, 5  ;;  %v14415_v49 = vrot.slane %v8641_v6, 9  ;;  %v19905_v47 = vpop.f32.mrf.mxu0  ;;  %v8643_v53 = vld [vmem:[#allocation3 + $0xa8] sm:$0xe] }
 0x33b   : > { %v8157_v0 = vor.u32 %v8156_v55, %v8152_v24  ;;  %v8773_v62 = vrot.slane %v19843_v45, 5  ;;  %v8776_v50 = vrot.slane %v19855_v51, 5  ;;  %v8165_v29 = vshrl.u32 %v7927_v44, 16 }
 0x33c   : > { %15668 = vmatmul.mubr.msk.bf16.gmra.mxu0 %vm6575_vm3, %v14429_v28  ;;  %v8148_v40 = vrot.slane %v8147_v54, 4  ;;  %v8168_v5 = vshll.u32 %v7927_v44, 16  ;;  %v8174_v17 = vshll.u32 %v19764_v9, 16  ;;  %v8178_v22 = vshrl.u32 %v19764_v9, 16  ;;  %v19880_v28 = vld [vmem:[#allocation3 + $0xa0] sm:$0xf] }
 0x33d   : > { %15671 = vmatprep.mubr.msk.bf16.mxu0 %vm6575_vm3, %v14430_v1  ;;  %v8158_v25 = vrot.slane %v8157_v0, 4  ;;  %v19878_v12 = vsel %vm16848_vm0, %v14415_v49, %v8773_v62  ;;  %v8775_v14 = vrot.slane %v8773_v62, 4  ;;  %v8167_v61 = vrot.slane %v8165_v29, 4  ;;  %v19921_v0 = vld [vmem:[#allocation3 + $0xb0] sm:$0x1] }
 0x33e   : > { %v8153_v9 = vsel %vm16509_vm10, %v8148_v40, %v8152_v24  ;;  %v8170_v63 = vrot.slane %v8168_v5, 5  ;;  %v8176_v18 = vrot.slane %v8174_v17, 5  ;;  %v8180_v48 = vrot.slane %v8178_v22, 4  ;;  %v19911_v24 = vld [vmem:[#allocation3 + $0xac] sm:$0xf] }
 0x33f   : > { %v8163_v35 = vsel %vm16509_vm10, %v8158_v25, %v8162_v2  ;;  %v19894_v1 = vsel %vm16848_vm0, %v8775_v14, %v8776_v50  ;;  %v8184_v42 = vshll.u32 %v19772_v60, 16  ;;  %v14416_v15 = vrot.slane %v8642_v21, 9  ;;  %v7933_v62 = vld [vmem:[#allocation3 + $0x90] sm:$0xf]  ;;  %v19932_v50 = vpop.f32.mrf.mxu0 }
 0x340   : > { %15626 = vmatmul.mubr.msk.bf16.gmra.mxu1 %vm6575_vm3, %v19705_v32  ;;  %v19899_v16 = vcombine.low %v8153_v9, %v8163_v35  ;;  %v14433_v39 = vcombine.low %v19878_v12, %v19894_v1  ;;  %v8171_v36 = vor.u32 %v8170_v63, %v8167_v61  ;;  %v8181_v32 = vor.u32 %v8180_v48, %v8176_v18  ;;  %v7936_v12 = vld [vmem:[#allocation3 + $0x9c] sm:$0xf]  ;;  %v8644_v63 = vld [vmem:[#allocation3 + $0xb4] sm:$0xe] }
 0x341   : > { %15629 = vmatprep.mubr.msk.bf16.mxu1 %vm6575_vm3, %v19754_v3  ;;  %v8186_v38 = vrot.slane %v8184_v42, 5  ;;  %v8780_v13 = vrot.slane %v19880_v28, 5  ;;  %v8783_v6 = vrot.slane %v19886_v31, 5  ;;  %v8189_v33 = vshrl.u32 %v7930_v57, 16  ;;  %v19953_v42 = vld [vmem:[#allocation3 + $0xb8] sm:$0xf] }
 0x342   : > { %v8172_v60 = vrot.slane %v8171_v36, 4  ;;  %v8182_v19 = vrot.slane %v8181_v32, 4  ;;  %v8192_v26 = vshll.u32 %v7930_v57, 16  ;;  %v8198_v3 = vshll.u32 %v19803_v52, 16 }
 0x343   : > { %v8781_v43 = vsel %vm16848_vm0, %v14416_v15, %v8780_v13  ;;  %v8782_v58 = vrot.slane %v8780_v13, 4  ;;  %v8191_v44 = vrot.slane %v8189_v33, 4  ;;  %v8202_v59 = vshrl.u32 %v19803_v52, 16  ;;  %v19955_v15 = vld [vmem:[#allocation3 + $0xbc] sm:$0x1] }
 0x344   : > { %15672 = vmatmul.mubr.msk.bf16.gmra.mxu0 %vm6575_vm3, %v14431_v11  ;;  %v8177_v55 = vsel %vm16509_vm10, %v8172_v60, %v8176_v18  ;;  %v8187_v54 = vsel %vm16509_vm10, %v8182_v19, %v8186_v38  ;;  %v8194_v2 = vrot.slane %v8192_v26, 5  ;;  %v8200_v49 = vrot.slane %v8198_v3, 5  ;;  %v19946_v18 = vpop.f32.mrf.mxu0 }
 0x345   : > { %15675 = vmatprep.mubr.msk.bf16.mxu0 %vm6575_vm3, %v14432_v10  ;;  %v19927_v52 = vcombine.low %v8177_v55, %v8187_v54  ;;  %v8784_v20 = vsel %vm16848_vm0, %v8782_v58, %v8783_v6  ;;  %v8204_v7 = vrot.slane %v8202_v59, 4  ;;  %v8208_v11 = vshll.u32 %v19809_v27, 16  ;;  %v8645_v59 = vld [vmem:[#allocation3 + $0xc0] sm:$0xe]  ;;  %v7939_v55 = vld [vmem:[#allocation3 + $0xa8] sm:$0xf] }
 0x346   : > { %v14434_v29 = vcombine.low %v8781_v43, %v8784_v20  ;;  %v8195_v40 = vor.u32 %v8194_v2, %v8191_v44  ;;  %v14417_v5 = vrot.slane %v8643_v53, 9  ;;  %v8787_v17 = vrot.slane %v19911_v24, 5  ;;  %v19966_v53 = vpop.f32.mrf.mxu0  ;;  %v19974_v20 = vld [vmem:[#allocation3 + $0xc4] sm:$0xf] }
 0x347   : > { %v8205_v41 = vor.u32 %v8204_v7, %v8200_v49  ;;  %v8210_v46 = vrot.slane %v8208_v11, 5  ;;  %v8790_v10 = vrot.slane %v19921_v0, 5  ;;  %v8213_v22 = vshrl.u32 %v7933_v62, 16 }
 0x348   : > { %15630 = vmatmul.mubr.msk.bf16.gmra.mxu1 %vm6575_vm3, %v19785_v23  ;;  %v8196_v21 = vrot.slane %v8195_v40, 4  ;;  %v19942_v27 = vsel %vm16848_vm0, %v14417_v5, %v8787_v17  ;;  %v8789_v57 = vrot.slane %v8787_v17, 4  ;;  %v8216_v25 = vshll.u32 %v7933_v62, 16  ;;  %v19980_v40 = vld [vmem:[#allocation3 + $0xc8] sm:$0x1] }
 0x349   : > { %15633 = vmatprep.mubr.msk.bf16.mxu1 %vm6575_vm3, %v19811_v34  ;;  %v8206_v14 = vrot.slane %v8205_v41, 4  ;;  %v8215_v61 = vrot.slane %v8213_v22, 4  ;;  %v8222_v23 = vshll.u32 %v19843_v45, 16  ;;  %v8226_v9 = vshrl.u32 %v19843_v45, 16 }
 0x34a   : > { %v8201_v34 = vsel %vm16509_vm10, %v8196_v21, %v8200_v49  ;;  %v8791_v48 = vsel %vm16848_vm0, %v8789_v57, %v8790_v10  ;;  %v8218_v35 = vrot.slane %v8216_v25, 5  ;;  %v8232_v1 = vshll.u32 %v19855_v51, 16 }
 0x34b   : > { %v8211_v36 = vsel %vm16509_vm10, %v8206_v14, %v8210_v46  ;;  %v14435_v45 = vcombine.low %v19942_v27, %v8791_v48  ;;  %v8224_v32 = vrot.slane %v8222_v23, 5  ;;  %v8228_v38 = vrot.slane %v8226_v9, 4  ;;  %v19987_v46 = vpop.f32.mrf.mxu0 }
 0x34c   : > { %15676 = vmatmul.mubr.msk.bf16.gmra.mxu0 %vm6575_vm3, %v14433_v39  ;;  %v19961_v13 = vcombine.low %v8201_v34, %v8211_v36  ;;  %v8219_v6 = vor.u32 %v8218_v35, %v8215_v61  ;;  %v8234_v33 = vrot.slane %v8232_v1, 5  ;;  %v14418_v60 = vrot.slane %v8644_v63, 9  ;;  %v9467_v35 = vld [vmem:[#allocation3 + $0x18] sm:$0xf] }
 0x34d   : > { %15679 = vmatprep.mubr.msk.bf16.mxu0 %vm6575_vm3, %v14434_v29  ;;  %v8229_v51 = vor.u32 %v8228_v38, %v8224_v32  ;;  %v8794_v19 = vrot.slane %v19953_v42, 5  ;;  %v8797_v26 = vrot.slane %v19955_v15, 5  ;;  %v8237_v3 = vshrl.u32 %v7936_v12, 16  ;;  %v19999_v1 = vpop.f32.mrf.mxu0 }
 0x34e   : > { %v8220_v43 = vrot.slane %v8219_v6, 4  ;;  %v8240_v58 = vshll.u32 %v7936_v12, 16  ;;  %v8246_v44 = vshll.u32 %v19880_v28, 16  ;;  %v8250_v39 = vshrl.u32 %v19880_v28, 16  ;;  %v20005_v6 = vld [vmem:[#allocation3 + $0x1c] sm:$0xf] }
 0x34f   : > { %v8230_v54 = vrot.slane %v8229_v51, 4  ;;  %v8795_v2 = vsel %vm16848_vm0, %v14418_v60, %v8794_v19  ;;  %v8796_v49 = vrot.slane %v8794_v19, 4  ;;  %v8239_v62 = vrot.slane %v8237_v3, 4  ;;  %v20012_v19 = vld [vmem:[#allocation3 + $0x20] sm:$0x1] }
 0x350   : > { %15634 = vmatmul.mubr.msk.bf16.gmra.mxu1 %vm6575_vm3, %v19862_v37  ;;  %v8225_v7 = vsel %vm16509_vm10, %v8220_v43, %v8224_v32  ;;  %v8242_v28 = vrot.slane %v8240_v58, 5  ;;  %v8248_v11 = vrot.slane %v8246_v44, 5  ;;  %v8252_v29 = vrot.slane %v8250_v39, 4  ;;  %v7942_v44 = vld [vmem:[#allocation3 + $0xb4] sm:$0xf] }
 0x351   : > { %15637 = vmatprep.mubr.msk.bf16.mxu1 %vm6575_vm3, %v19899_v16  ;;  %v8235_v37 = vsel %vm16509_vm10, %v8230_v54, %v8234_v33  ;;  %v8798_v5 = vsel %vm16848_vm0, %v8796_v49, %v8797_v26  ;;  %v8256_v17 = vshll.u32 %v19886_v31, 16  ;;  %v14419_v41 = vrot.slane %v8645_v59, 9  ;;  %v20018_v54 = vpop.f32.mrf.mxu1 }
 0x352   : > { %v19989_v16 = vcombine.low %v8225_v7, %v8235_v37  ;;  %v14436_v10 = vcombine.low %v8795_v2, %v8798_v5  ;;  %v8243_v22 = vor.u32 %v8242_v28, %v8239_v62  ;;  %v8253_v21 = vor.u32 %v8252_v29, %v8248_v11  ;;  %v20020_v2 = vpop.f32.mrf.mxu0 }
 0x353   : > { %v8258_v27 = vrot.slane %v8256_v17, 5  ;;  %v8801_v57 = vrot.slane %v19974_v20, 5  ;;  %v8804_v25 = vrot.slane %v19980_v40, 5  ;;  %v8261_v12 = vshrl.u32 %v7939_v55, 16  ;;  %22162 = vst [vmem:[#allocation30_spill] sm:$0xff] %v20020_v2 }
 0x354   : > { %15680 = vmatmul.mubr.msk.bf16.gmra.mxu0 %vm6575_vm3, %v14435_v45  ;;  %v8244_v14 = vrot.slane %v8243_v22, 4  ;;  %v8254_v61 = vrot.slane %v8253_v21, 4  ;;  %v8264_v23 = vshll.u32 %v7939_v55, 16  ;;  %v8270_v31 = vshll.u32 %v19911_v24, 16 }
 0x355   : > { %15683 = vmatprep.mubr.msk.bf16.mxu0 %vm6575_vm3, %v14436_v10  ;;  %v8802_v9 = vsel %vm16848_vm0, %v14419_v41, %v8801_v57  ;;  %v8803_v63 = vrot.slane %v8801_v57, 4  ;;  %v8263_v34 = vrot.slane %v8261_v12, 4  ;;  %v8274_v48 = vshrl.u32 %v19911_v24, 16  ;;  %v9470_v10 = vld [vmem:[#allocation3 + $0x24] sm:$0xf] }
 0x356   : > { %v8249_v36 = vsel %vm16509_vm10, %v8244_v14, %v8248_v11  ;;  %v8259_v45 = vsel %vm16509_vm10, %v8254_v61, %v8258_v27  ;;  %v8266_v32 = vrot.slane %v8264_v23, 5  ;;  %v8272_v38 = vrot.slane %v8270_v31, 5 }
 0x357   : > { %v14383_v33 = vcombine.low %v8249_v36, %v8259_v45  ;;  %v8805_v24 = vsel %vm16848_vm0, %v8803_v63, %v8804_v25  ;;  %v8276_v60 = vrot.slane %v8274_v48, 4  ;;  %v8280_v51 = vshll.u32 %v19921_v0, 16  ;;  %v20029_v25 = vpop.f32.mrf.mxu1 }
 0x358   : > { %15638 = vmatmul.mubr.msk.bf16.gmra.mxu1 %vm6575_vm3, %v19927_v52  ;;  %v14437_v26 = vcombine.low %v8802_v9, %v8805_v24  ;;  %v8267_v3 = vor.u32 %v8266_v32, %v8263_v34  ;;  %v9516_v43 = vshrl.u32 %v9467_v35, 16  ;;  %v9519_v58 = vshll.u32 %v9467_v35, 16  ;;  %v20031_v12 = vpop.f32.mrf.mxu0  ;;  %v20034_v9 = vld [vmem:[#allocation3 + $0x28] sm:$0xf]  ;;  %v7945_v24 = vld [vmem:[#allocation3 + $0xc0] sm:$0xf] }
 0x359   : > { %15641 = vmatprep.mubr.msk.bf16.mxu1 %vm6575_vm3, %v19961_v13  ;;  %v8277_v39 = vor.u32 %v8276_v60, %v8272_v38  ;;  %v8282_v59 = vrot.slane %v8280_v51, 5  ;;  %v9525_v52 = vshll.u32 %v20005_v6, 16  ;;  %v9529_v55 = vshrl.u32 %v20005_v6, 16 }
 0x35a   : > { %v8268_v0 = vrot.slane %v8267_v3, 4  ;;  %v9518_v49 = vrot.slane %v9516_v43, 4  ;;  %v9521_v62 = vrot.slane %v9519_v58, 5  ;;  %v9535_v13 = vshll.u32 %v20012_v19, 16  ;;  %v20049_v3 = vpop.f32.mrf.mxu0 }
 0x35b   : > { %v8278_v7 = vrot.slane %v8277_v39, 4  ;;  %v9527_v28 = vrot.slane %v9525_v52, 5  ;;  %v9531_v11 = vrot.slane %v9529_v55, 4  ;;  %v8285_v29 = vshrl.u32 %v7942_v44, 16 }
 0x35c   : > { %15684 = vmatmul.mubr.msk.bf16.gmra.mxu0 %vm6575_vm3, %v14437_v26  ;;  %v8273_v37 = vsel %vm16509_vm10, %v8268_v0, %v8272_v38  ;;  %v9522_v5 = vor.u32 %v9521_v62, %v9518_v49  ;;  %v9537_v17 = vrot.slane %v9535_v13, 5  ;;  %v8288_v41 = vshll.u32 %v7942_v44, 16  ;;  %v20042_v38 = vld [vmem:[#allocation3 + $0x2c] sm:$0x1] }
 0x35d   : > { %v8283_v22 = vsel %vm16509_vm10, %v8278_v7, %v8282_v59  ;;  %v9532_v21 = vor.u32 %v9531_v11, %v9527_v28  ;;  %v8287_v27 = vrot.slane %v8285_v29, 4  ;;  %v8294_v57 = vshll.u32 %v19953_v42, 16 }
 0x35e   : > { %v14384_v14 = vcombine.low %v8273_v37, %v8283_v22  ;;  %v9523_v61 = vrot.slane %v9522_v5, 4  ;;  %v8290_v23 = vrot.slane %v8288_v41, 5  ;;  %v8298_v31 = vshrl.u32 %v19953_v42, 16  ;;  %v9473_v37 = vld [vmem:[#allocation3 + $0x30] sm:$0xf] }
 0x35f   : > { %v9533_v63 = vrot.slane %v9532_v21, 4  ;;  %v8296_v34 = vrot.slane %v8294_v57, 5  ;;  %v8304_v48 = vshll.u32 %v19955_v15, 16  ;;  %v9540_v35 = vshrl.u32 %v9470_v10, 16  ;;  %v20047_v15 = vpop.f32.mrf.mxu1 }
 0x360   : > { %15642 = vmatmul.mubr.msk.bf16.gmra.mxu1 %vm6575_vm3, %v19989_v16  ;;  %v9528_v36 = vsel %vm16509_vm10, %v9523_v61, %v9527_v28  ;;  %v8291_v45 = vor.u32 %v8290_v23, %v8287_v27  ;;  %v8300_v32 = vrot.slane %v8298_v31, 4  ;;  %v9543_v42 = vshll.u32 %v9470_v10, 16  ;;  %v20064_v27 = vld [vmem:[#allocation3 + $0x34] sm:$0xf] }
 0x361   : > { %15645 = vmatprep.mubr.msk.bf16.mxu1 %vm6575_vm3, %v14383_v33  ;;  %v9538_v60 = vsel %vm16509_vm10, %v9533_v63, %v9537_v17  ;;  %v8306_v16 = vrot.slane %v8304_v48, 5  ;;  %v9542_v51 = vrot.slane %v9540_v35, 4  ;;  %v9549_v26 = vshll.u32 %v20034_v9, 16  ;;  %v20057_v5 = vpop.f32.mrf.mxu1  ;;  %v20059_v17 = vpop.f32.mrf.mxu0  ;;  %v20070_v35 = vld [vmem:[#allocation3 + $0x38] sm:$0x1] }
 0x362   : > { %v14492_v33 = vcombine.low %v9528_v36, %v9538_v60  ;;  %v8292_v43 = vrot.slane %v8291_v45, 4  ;;  %v8301_v58 = vor.u32 %v8300_v32, %v8296_v34  ;;  %v9545_v44 = vrot.slane %v9543_v42, 5 }
 0x363   : > { %v9551_v39 = vrot.slane %v9549_v26, 5  ;;  %v9553_v59 = vshrl.u32 %v20034_v9, 16  ;;  %v9559_v52 = vshll.u32 %v20042_v38, 16  ;;  %v8309_v55 = vshrl.u32 %v7945_v24, 16  ;;  %v9476_v26 = vld [vmem:[#allocation3 + $0x3c] sm:$0xf] }
 0x364   : > { %15723 = vmatprep.mubr.msk.bf16.mxu0 %vm6575_vm3, %v14492_v33  ;;  %v8297_v0 = vsel %vm16509_vm10, %v8292_v43, %v8296_v34  ;;  %v8302_v49 = vrot.slane %v8301_v58, 4  ;;  %v9546_v62 = vor.u32 %v9545_v44, %v9542_v51  ;;  %v8312_v13 = vshll.u32 %v7945_v24, 16  ;;  %v20076_v24 = vpop.f32.mrf.mxu0 }
 0x365   : > { %v9555_v7 = vrot.slane %v9553_v59, 4  ;;  %v9561_v28 = vrot.slane %v9559_v52, 5  ;;  %v8311_v11 = vrot.slane %v8309_v55, 4  ;;  %v8318_v29 = vshll.u32 %v19974_v20, 16  ;;  %v20074_v42 = vpop.f32.mrf.mxu1 }
 0x366   : > { %v8307_v41 = vsel %vm16509_vm10, %v8302_v49, %v8306_v16  ;;  %v9547_v10 = vrot.slane %v9546_v62, 4  ;;  %v8314_v22 = vrot.slane %v8312_v13, 5  ;;  %v8322_v21 = vshrl.u32 %v19974_v20, 16  ;;  %v20086_v13 = vld [vmem:[#allocation3 + $0x44] sm:$0x1] }
 0x367   : > { %v14385_v57 = vcombine.low %v8297_v0, %v8307_v41  ;;  %v9556_v61 = vor.u32 %v9555_v7, %v9551_v39  ;;  %v8320_v23 = vrot.slane %v8318_v29, 5  ;;  %v8328_v31 = vshll.u32 %v19980_v40, 16  ;;  %v20088_v29 = vpop.f32.mrf.mxu1 }
 0x368   : > { %15646 = vmatmul.mubr.msk.bf16.gmra.mxu1 %vm6575_vm3, %v14384_v14  ;;  %v9552_v63 = vsel %vm16509_vm10, %v9547_v10, %v9551_v39  ;;  %v8315_v34 = vor.u32 %v8314_v22, %v8311_v11  ;;  %v8324_v48 = vrot.slane %v8322_v21, 4  ;;  %v9564_v36 = vshrl.u32 %v9473_v37, 16  ;;  %v20082_v39 = vld [vmem:[#allocation3 + $0x40] sm:$0xf]  ;;  %v9479_v21 = vld [vmem:[#allocation3 + $0x48] sm:$0xf] }
 0x369   : > { %15649 = vmatprep.mubr.msk.bf16.mxu1 %vm6575_vm3, %v14385_v57  ;;  %v9557_v20 = vrot.slane %v9556_v61, 4  ;;  %v8330_v45 = vrot.slane %v8328_v31, 5  ;;  %v9567_v32 = vshll.u32 %v9473_v37, 16  ;;  %v9573_v14 = vshll.u32 %v20064_v27, 16 }
 0x36a   : > { %v8316_v40 = vrot.slane %v8315_v34, 4  ;;  %v8325_v60 = vor.u32 %v8324_v48, %v8320_v23  ;;  %v9566_v16 = vrot.slane %v9564_v36, 4  ;;  %v9577_v51 = vshrl.u32 %v20064_v27, 16 }
 0x36b   : > { %v9562_v33 = vsel %vm16509_vm10, %v9557_v20, %v9561_v28  ;;  %v9569_v43 = vrot.slane %v9567_v32, 5  ;;  %v9575_v58 = vrot.slane %v9573_v14, 5  ;;  %v9583_v44 = vshll.u32 %v20070_v35, 16  ;;  %v20098_v32 = vld [vmem:[#allocation3 + $0x4c] sm:$0xf] }
 0x36c   : > { %v14493_v59 = vcombine.low %v9552_v63, %v9562_v33  ;;  %v8321_v52 = vsel %vm16509_vm10, %v8316_v40, %v8320_v23  ;;  %v8326_v55 = vrot.slane %v8325_v60, 4  ;;  %v9579_v0 = vrot.slane %v9577_v51, 4  ;;  %v20090_v28 = vpop.f32.mrf.mxu0  ;;  %v16082_v23 = vld [vmem:[#allocation3 + $0x18] sm:$0xff]   ;;  %v20107_v60 = vld [vmem:[#allocation3 + $0x50] sm:$0x1]  ;;  %v20109_v51 = vpop.f32.mrf.mxu1 }
 0x36d   : > { %v9570_v49 = vor.u32 %v9569_v43, %v9566_v16  ;;  %v9585_v62 = vrot.slane %v9583_v44, 5  ;;  %v9588_v7 = vshrl.u32 %v9476_v26, 16  ;;  %v9591_v11 = vshll.u32 %v9476_v26, 16 }
 0x36e   : > { %15724 = vmatmul.mubr.msk.bf16.vlgmr.msra.gmra.mxu0 %vm6575_vm3, %v14493_v59  ;;  %v8331_v37 = vsel %vm16509_vm10, %v8326_v55, %v8330_v45  ;;  %v9580_v41 = vor.u32 %v9579_v0, %v9575_v58  ;;  %v9597_v10 = vshll.u32 %v20082_v39, 16  ;;  %v9601_v22 = vshrl.u32 %v20082_v39, 16  ;;  %v20111_v26 = vpop.f32.mrf.mxu0 }
 0x36f   : > { %v14386_v57 = vcombine.low %v8321_v52, %v8331_v37  ;;  %v9571_v61 = vrot.slane %v9570_v49, 4  ;;  %v9590_v31 = vrot.slane %v9588_v7, 4  ;;  %v9593_v63 = vrot.slane %v9591_v11, 5  ;;  %v9482_v11 = vld [vmem:[#allocation3 + $0x54] sm:$0xf] }
 0x370   : > { %v9581_v34 = vrot.slane %v9580_v41, 4  ;;  %v9599_v48 = vrot.slane %v9597_v10, 5  ;;  %v9603_v36 = vrot.slane %v9601_v22, 4  ;;  %v9607_v20 = vshll.u32 %v20086_v13, 16  ;;  %v20128_v10 = vld [vmem:[#allocation3 + $0x58] sm:$0xf]  ;;  %v20130_v22 = vpop.f32.mrf.mxu1 }
 0x371   : > { %15650 = vmatmul.mubr.msk.bf16.gmra.mxu1 %vm6575_vm3, %v14386_v57  ;;  %v9576_v45 = vsel %vm16509_vm10, %v9571_v61, %v9575_v58  ;;  %v9594_v14 = vor.u32 %v9593_v63, %v9590_v31  ;;  %v20105_v40 = vadd.f32 %v19882_v30, %v20018_v54  ;;  %v9612_v16 = vshrl.u32 %v9479_v21, 16  ;;  %22163 = vst [vmem:[#allocation28_spill] sm:$0xff] %v20130_v22  ;;  %v16084_v63 = vld [vmem:[#allocation3 + $0x24] sm:$0xff]  }
 0x372   : > { %v9586_v33 = vsel %vm16509_vm10, %v9581_v34, %v9585_v62  ;;  %15689 = vmatprep.mubr.msk.bf16.mxu1 %vm6575_vm3, %v16082_v23  ;;  %v9604_v43 = vor.u32 %v9603_v36, %v9599_v48  ;;  %v9609_v44 = vrot.slane %v9607_v20, 5  ;;  %v9615_v58 = vshll.u32 %v9479_v21, 16  ;;  %v20132_v21 = vpop.f32.mrf.mxu0 }
 0x373   : > { %v14494_v59 = vcombine.low %v9576_v45, %v9586_v33  ;;  %v9595_v52 = vrot.slane %v9594_v14, 4  ;;  %v9614_v55 = vrot.slane %v9612_v16, 4  ;;  %v9621_v30 = vshll.u32 %v20098_v32, 16  ;;  %v16085_v45 = vld [vmem:[#allocation3 + $0x30] sm:$0xff]  }
 0x374   : > { %v9605_v54 = vrot.slane %v9604_v43, 4  ;;  %v9617_v0 = vrot.slane %v9615_v58, 5  ;;  %v9625_v49 = vshrl.u32 %v20098_v32, 16  ;;  %v9631_v7 = vshll.u32 %v20107_v60, 16 }
 0x375   : > { %15727 = vmatprep.mubr.msk.bf16.mxu0 %vm6575_vm3, %v14494_v59  ;;  %v9623_v62 = vrot.slane %v9621_v30, 5  ;;  %v20122_v37 = vadd.f32 %v19905_v47, %v20029_v25  ;;  %v20126_v41 = vadd.f32 %v19932_v50, %v20047_v15  ;;  %v9600_v57 = vsel %vm16509_vm10, %v9595_v52, %v9599_v48  ;;  %v20138_v47 = vld [vmem:[#allocation3 + $0x5c] sm:$0x1]  ;;  %v9485_v48 = vld [vmem:[#allocation3 + $0x60] sm:$0xf] }
 0x376   : > { %v9610_v61 = vsel %vm16509_vm10, %v9605_v54, %v9609_v44  ;;  %v9618_v23 = vor.u32 %v9617_v0, %v9614_v55  ;;  %v9627_v31 = vrot.slane %v9625_v49, 4  ;;  %v9633_v50 = vrot.slane %v9631_v7, 5  ;;  %v20149_v59 = vld [vmem:[#allocation3 + $0x64] sm:$0xf]  ;;  %v20151_v55 = vpop.f32.mrf.mxu0 }
 0x377   : > { %v14495_v25 = vcombine.low %v9600_v57, %v9610_v61  ;;  %v9636_v15 = vshrl.u32 %v9482_v11, 16  ;;  %v9639_v34 = vshll.u32 %v9482_v11, 16  ;;  %v9645_v14 = vshll.u32 %v20128_v10, 16  ;;  %v20157_v57 = vld [vmem:[#allocation3 + $0x68] sm:$0x1] }
 0x378   : > { %v9619_v36 = vrot.slane %v9618_v23, 4  ;;  %v9628_v20 = vor.u32 %v9627_v31, %v9623_v62  ;;  %v9649_v16 = vshrl.u32 %v20128_v10, 16  ;;  %v9655_v44 = vshll.u32 %v20138_v47, 16  ;;  %v15495_v52 = vpop.f32.mrf.mxu1 }
 0x379   : > { %15728 = vmatmul.mubr.msk.bf16.gmra.mxu0 %vm6575_vm3, %v14495_v25  ;;  %15690 = vmatmul.mubr.msk.bf16.vlgmr.msra.gmra.mxu1 %vm6575_vm3, %v16084_v63  ;;  %v9638_v33 = vrot.slane %v9636_v15, 4  ;;  %v9641_v43 = vrot.slane %v9639_v34, 5  ;;  %v20147_v58 = vadd.f32 %v19966_v53, %v20074_v42  ;;  %v9647_v0 = vrot.slane %v9645_v14, 5 }
 0x37a   : > { %v9624_v30 = vsel %vm16509_vm10, %v9619_v36, %v9623_v62  ;;  %v9629_v54 = vrot.slane %v9628_v20, 4  ;;  %15756 = vmatpush3.bf16.msra.mxu1 %v19833_v8  ;;  %15693 = vmatprep.mubr.msk.bf16.mxu1 %vm6575_vm3, %v16085_v45  ;;  %v9651_v49 = vrot.slane %v9649_v16, 4  ;;  %v9657_v11 = vrot.slane %v9655_v44, 5  ;;  %v6690_v34 = vpop.f32.mrf.mxu1 }
 0x37b   : > { %v9642_v7 = vor.u32 %v9641_v43, %v9638_v33  ;;  %v9660_v53 = vshrl.u32 %v9485_v48, 16  ;;  %v9663_v42 = vshll.u32 %v9485_v48, 16  ;;  %v9669_v31 = vshll.u32 %v20149_v59, 16  ;;  %v9488_v48 = vld [vmem:[#allocation3 + $0x6c] sm:$0xf] }
 0x37c   : > { %v9634_v61 = vsel %vm16509_vm10, %v9629_v54, %v9633_v50  ;;  %v9652_v23 = vor.u32 %v9651_v49, %v9647_v0  ;;  %v9673_v62 = vshrl.u32 %v20149_v59, 16  ;;  %v9679_v16 = vshll.u32 %v20157_v57, 16  ;;  %v16086_v50 = vld [vmem:[#allocation3 + $0x3c] sm:$0xff]   ;;  %v20177_v54 = vld [vmem:[#allocation3 + $0x74] sm:$0x1] }
 0x37d   : > { %v14496_v25 = vcombine.low %v9624_v30, %v9634_v61  ;;  %v9643_v8 = vrot.slane %v9642_v7, 4  ;;  %v9662_v63 = vrot.slane %v9660_v53, 4  ;;  %v9665_v15 = vrot.slane %v9663_v42, 5  ;;  %v20163_v36 = vpop.f32.mrf.mxu0  ;;  %v20175_v30 = vld [vmem:[#allocation3 + $0x70] sm:$0xf] }
 0x37e   : > { %v9653_v20 = vrot.slane %v9652_v23, 4  ;;  %v9671_v45 = vrot.slane %v9669_v31, 5  ;;  %v9675_v14 = vrot.slane %v9673_v62, 4  ;;  %v20169_v43 = vadd.f32 %v19987_v46, %v20088_v29  ;;  %v16087_v46 = vld [vmem:[#allocation3 + $0x48] sm:$0xff]   ;;  %v15496_v31 = vpop.f32.mrf.mxu1 }
 0x37f   : > { %15731 = vmatprep.mubr.msk.bf16.mxu0 %vm6575_vm3, %v14496_v25  ;;  %v9666_v33 = vor.u32 %v9665_v15, %v9662_v63  ;;  %v20173_v44 = vadd.f32 %v19999_v1, %v20109_v51  ;;  %v20179_v49 = vpop.f32.mrf.mxu0  ;;  %v9648_v7 = vsel %vm16509_vm10, %v9643_v8, %v9647_v0  ;;  %v9681_v61 = vrot.slane %v9679_v16, 5  ;;  %v20196_v16 = vld [vmem:[#allocation3 + $0x7c] sm:$0xf] }
 0x380   : > { %22164 = vst [vmem:[#allocation44_spill] sm:$0xff] %v20169_v43  ;;  %v9658_v53 = vsel %vm16509_vm10, %v9653_v20, %v9657_v11  ;;  %v9676_v42 = vor.u32 %v9675_v14, %v9671_v45  ;;  %v9684_v51 = vshrl.u32 %v9488_v48, 16  ;;  %v9687_v23 = vshll.u32 %v9488_v48, 16  ;;  %v9491_v11 = vld [vmem:[#allocation3 + $0x78] sm:$0xf] }
 0x381   : > { %22165 = vst [vmem:[#allocation39_spill] sm:$0xff] %v20173_v44  ;;  %v14497_v29 = vcombine.low %v9648_v7, %v9658_v53  ;;  %15694 = vmatmul.mubr.msk.bf16.gmra.mxu1 %vm6575_vm3, %v16086_v50  ;;  %v9667_v1 = vrot.slane %v9666_v33, 4  ;;  %v9693_v25 = vshll.u32 %v20175_v30, 16  ;;  %v9697_v0 = vshrl.u32 %v20175_v30, 16  ;;  %v20198_v48 = vld [vmem:[#allocation3 + $0x80] sm:$0x1]  ;;  %v20200_v50 = vpop.f32.mrf.mxu0 }
 0x382   : > { %v9677_v62 = vrot.slane %v9676_v42, 4  ;;  %15697 = vmatprep.mubr.msk.bf16.mxu1 %vm6575_vm3, %v16087_v46  ;;  %v9703_v8 = vshll.u32 %v20177_v54, 16  ;;  %v9686_v15 = vrot.slane %v9684_v51, 4  ;;  %v9689_v20 = vrot.slane %v9687_v23, 5  ;;  %v6693_v51 = vpop.f32.mrf.mxu1 }
 0x383   : > { %15732 = vmatmul.mubr.msk.bf16.gmra.mxu0 %vm6575_vm3, %v14497_v29  ;;  %v9672_v63 = vsel %vm16509_vm10, %v9667_v1, %v9671_v45  ;;  %v20194_v14 = vadd.f32 %v20031_v12, %v15495_v52  ;;  %v9695_v7 = vrot.slane %v9693_v25, 5  ;;  %v9699_v53 = vrot.slane %v9697_v0, 4  ;;  %v16088_v12 = vld [vmem:[#allocation3 + $0x54] sm:$0xff]   ;;  %v16089_v25 = vld [vmem:[#allocation3 + $0x60] sm:$0xff]  }
 0x384   : > { %v9682_v33 = vsel %vm16509_vm10, %v9677_v62, %v9681_v61  ;;  %v9705_v42 = vrot.slane %v9703_v8, 5  ;;  %v9690_v29 = vor.u32 %v9689_v20, %v9686_v15  ;;  %v9708_v45 = vshrl.u32 %v9491_v11, 16  ;;  %v9494_v8 = vld [vmem:[#allocation3 + $0x84] sm:$0xf] }
 0x385   : > { %22166 = vst [vmem:[#allocation49_spill] sm:$0xff] %v20194_v14  ;;  %v14498_v46 = vcombine.low %v9672_v63, %v9682_v33  ;;  %v9711_v1 = vshll.u32 %v9491_v11, 16  ;;  %v9700_v23 = vor.u32 %v9699_v53, %v9695_v7  ;;  %v9717_v52 = vshll.u32 %v20196_v16, 16  ;;  %v20211_v11 = vpop.f32.mrf.mxu0  ;;  %v20213_v53 = vld [vmem:[#allocation3 + $0x88] sm:$0xf] }
 0x386   : > { %v9721_v14 = vshrl.u32 %v20196_v16, 16  ;;  %v9727_v44 = vshll.u32 %v20198_v48, 16  ;;  %v9691_v2 = vrot.slane %v9690_v29, 4  ;;  %v9710_v61 = vrot.slane %v9708_v45, 4  ;;  %22168 = vst [vmem:[#allocation50_spill] sm:$0xff] %v20211_v11 }
 0x387   : > { %15735 = vmatprep.mubr.msk.bf16.mxu0 %vm6575_vm3, %v14498_v46  ;;  %v9713_v62 = vrot.slane %v9711_v1, 5  ;;  %v20209_v0 = vadd.f32 %v20049_v3, %v6690_v34  ;;  %v9701_v63 = vrot.slane %v9700_v23, 4  ;;  %v9719_v15 = vrot.slane %v9717_v52, 5  ;;  %v20224_v34 = vld [vmem:[#allocation3 + $0x8c] sm:$0x1] }
 0x388   : > { %v9723_v20 = vrot.slane %v9721_v14, 4  ;;  %v9729_v33 = vrot.slane %v9727_v44, 5  ;;  %v9696_v22 = vsel %vm16509_vm10, %v9691_v2, %v9695_v7  ;;  %v20219_v29 = vadd.f32 %v20059_v17, %v15496_v31  ;;  %22171 = vst [vmem:[#allocation23_spill] sm:$0xff] %v20224_v34  ;;  %v9497_v31 = vld [vmem:[#allocation3 + $0x90] sm:$0xf] }
 0x389   : > { %22167 = vst [vmem:[#allocation45_spill] sm:$0xff] %v20209_v0  ;;  %15698 = vmatmul.mubr.msk.bf16.gmra.mxu1 %vm6575_vm3, %v16088_v12  ;;  %v9714_v46 = vor.u32 %v9713_v62, %v9710_v61  ;;  %v20222_v3 = vadd.f32 %v20076_v24, %v6693_v51  ;;  %v15499_v45 = vpop.f32.mrf.mxu1  ;;  %v9706_v44 = vsel %vm16509_vm10, %v9701_v63, %v9705_v42  ;;  %v9732_v1 = vshrl.u32 %v9494_v8, 16  ;;  %v20234_v63 = vld [vmem:[#allocation3 + $0x94] sm:$0xf]  ;;  %v16090_v0 = vld [vmem:[#allocation3 + $0x6c] sm:$0xff]  }
 0x38a   : > { %22169 = vst [vmem:[#allocation21_spill] sm:$0xff] %v20219_v29  ;;  %v9724_v14 = vor.u32 %v9723_v20, %v9719_v15  ;;  %15701 = vmatprep.mubr.msk.bf16.mxu1 %vm6575_vm3, %v16089_v25  ;;  %v9735_v2 = vshll.u32 %v9494_v8, 16  ;;  %v14499_v7 = vcombine.low %v9696_v22, %v9706_v44  ;;  %v9741_v12 = vshll.u32 %v20213_v53, 16  ;;  %v20231_v51 = vpop.f32.mrf.mxu0 }
 0x38b   : > { %22170 = vst [vmem:[#allocation27_spill] sm:$0xff] %v20222_v3  ;;  %v9715_v23 = vrot.slane %v9714_v46, 4  ;;  %v9745_v17 = vshrl.u32 %v20213_v53, 16  ;;  %v6706_v24 = vpop.f32.mrf.mxu1  ;;  %v9734_v61 = vrot.slane %v9732_v1, 4  ;;  %v9751_v42 = vshll.u32 %v20224_v34, 16 }
 0x38c   : > { %v9725_v52 = vrot.slane %v9724_v14, 4  ;;  %v9737_v62 = vrot.slane %v9735_v2, 5  ;;  %15736 = vmatmul.mubr.msk.bf16.gmra.mxu0 %vm6575_vm3, %v14499_v7  ;;  %v9743_v25 = vrot.slane %v9741_v12, 5  ;;  %v20240_v20 = vadd.f32 %v20090_v28, %v15499_v45  ;;  %v20242_v46 = vld [vmem:[#allocation3 + $0x98] sm:$0x1]  ;;  %v20244_v14 = vpop.f32.mrf.mxu0 }
 0x38d   : > { %v9720_v22 = vsel %vm16509_vm10, %v9715_v23, %v9719_v15  ;;  %v9747_v8 = vrot.slane %v9745_v17, 4  ;;  %22173 = vst [vmem:[#allocation24_spill] sm:$0xff] %v20242_v46  ;;  %v15500_v44 = vpop.f32.mrf.mxu1  ;;  %v9753_v11 = vrot.slane %v9751_v42, 5  ;;  %v9756_v3 = vshrl.u32 %v9497_v31, 16  ;;  %v16091_v12 = vld [vmem:[#allocation3 + $0x78] sm:$0xff]  }
 0x38e   : > { %22172 = vst [vmem:[#allocation31_spill] sm:$0xff] %v20240_v20  ;;  %v9730_v1 = vsel %vm16509_vm10, %v9725_v52, %v9729_v33  ;;  %v9738_v2 = vor.u32 %v9737_v62, %v9734_v61  ;;  %v9759_v15 = vshll.u32 %v9497_v31, 16  ;;  %v9765_v23 = vshll.u32 %v20234_v63, 16  ;;  %v20249_v28 = vpop.f32.mrf.mxu0  ;;  %v9500_v33 = vld [vmem:[#allocation3 + $0x9c] sm:$0xf] }
 0x38f   : > { %v14500_v7 = vcombine.low %v9720_v22, %v9730_v1  ;;  %v9748_v29 = vor.u32 %v9747_v8, %v9743_v25  ;;  %v9758_v17 = vrot.slane %v9756_v3, 4  ;;  %v9769_v20 = vshrl.u32 %v20234_v63, 16  ;;  %v6709_v34 = vpop.f32.mrf.mxu1  ;;  %v20258_v42 = vld [vmem:[#allocation3 + $0xa0] sm:$0xf] }
 0x390   : > { %v9739_v45 = vrot.slane %v9738_v2, 4  ;;  %v9775_v43 = vshll.u32 %v20242_v46, 16  ;;  %v9761_v61 = vrot.slane %v9759_v15, 5  ;;  %v9767_v31 = vrot.slane %v9765_v23, 5  ;;  %v20260_v22 = vpop.f32.mrf.mxu0 }
 0x391   : > { %15739 = vmatprep.mubr.msk.bf16.mxu0 %vm6575_vm3, %v14500_v7  ;;  %v9749_v52 = vrot.slane %v9748_v29, 4  ;;  %15702 = vmatmul.mubr.msk.bf16.gmra.mxu1 %vm6575_vm3, %v16090_v0  ;;  %v20256_v62 = vadd.f32 %v20111_v26, %v6706_v24  ;;  %22175 = vst [vmem:[#allocation33_spill] sm:$0xff] %v20260_v22  ;;  %v9771_v8 = vrot.slane %v9769_v20, 4  ;;  %v20266_v29 = vadd.f32 %v20132_v21, %v15500_v44  ;;  %v20268_v0 = vld [vmem:[#allocation3 + $0xa4] sm:$0x1] }
 0x392   : > { %v9744_v3 = vsel %vm16509_vm10, %v9739_v45, %v9743_v25  ;;  %v9777_v1 = vrot.slane %v9775_v43, 5  ;;  %15705 = vmatprep.mubr.msk.bf16.mxu1 %vm6575_vm3, %v16091_v12  ;;  %22177 = vst [vmem:[#allocation35_spill] sm:$0xff] %v20268_v0  ;;  %v9762_v24 = vor.u32 %v9761_v61, %v9758_v17  ;;  %v20273_v2 = vadd.f32 %v20151_v55, %v6709_v34  ;;  %v9503_v20 = vld [vmem:[#allocation3 + $0xa8] sm:$0xf]  ;;  %v20280_v17 = vld [vmem:[#allocation3 + $0xac] sm:$0xf] }
 0x393   : > { %22174 = vst [vmem:[#allocation22_spill] sm:$0xff] %v20256_v62  ;;  %22176 = vst [vmem:[#allocation37_spill] sm:$0xff] %v20266_v29  ;;  %v9754_v26 = vsel %vm16509_vm10, %v9749_v52, %v9753_v11  ;;  %v9780_v7 = vshrl.u32 %v9500_v33, 16  ;;  %v9772_v23 = vor.u32 %v9771_v8, %v9767_v31  ;;  %v9783_v25 = vshll.u32 %v9500_v33, 16 }
 0x394   : > { %22178 = vst [vmem:[#allocation41_spill] sm:$0xff] %v20273_v2  ;;  %v14501_v15 = vcombine.low %v9744_v3, %v9754_v26  ;;  %v9789_v43 = vshll.u32 %v20258_v42, 16  ;;  %v20276_v12 = vpop.f32.mrf.mxu0  ;;  %v9763_v21 = vrot.slane %v9762_v24, 4  ;;  %v9793_v45 = vshrl.u32 %v20258_v42, 16  ;;  %v16092_v24 = vld [vmem:[#allocation3 + $0x84] sm:$0xff]  }
 0x395   : > { %v9782_v44 = vrot.slane %v9780_v7, 4  ;;  %v9799_v22 = vshll.u32 %v20268_v0, 16  ;;  %v15503_v11 = vpop.f32.mrf.mxu1  ;;  %v9773_v55 = vrot.slane %v9772_v23, 4  ;;  %v9785_v34 = vrot.slane %v9783_v25, 5  ;;  %v20290_v7 = vld [vmem:[#allocation3 + $0xb0] sm:$0x1] }
 0x396   : > { %15740 = vmatmul.mubr.msk.bf16.gmra.mxu0 %vm6575_vm3, %v14501_v15  ;;  %v9791_v52 = vrot.slane %v9789_v43, 5  ;;  %v20284_v33 = vadd.f32 %v20163_v36, %v15503_v11  ;;  %v20286_v61 = vpop.f32.mrf.mxu0  ;;  %v9768_v3 = vsel %vm16509_vm10, %v9763_v21, %v9767_v31  ;;  %v9795_v8 = vrot.slane %v9793_v45, 4  ;;  %22180 = vst [vmem:[#allocation29_spill] sm:$0xff] %v20290_v7  ;;  %v16093_v43 = vld [vmem:[#allocation3 + $0x90] sm:$0xff]  }
 0x397   : > { %v9801_v26 = vrot.slane %v9799_v22, 5  ;;  %v9804_v2 = vshrl.u32 %v9503_v20, 16  ;;  %v6722_v29 = vpop.f32.mrf.mxu1  ;;  %v9778_v15 = vsel %vm16509_vm10, %v9773_v55, %v9777_v1  ;;  %v9786_v23 = vor.u32 %v9785_v34, %v9782_v44 }
 0x398   : > { %22179 = vst [vmem:[#allocation40_spill] sm:$0xff] %v20284_v33  ;;  %v9807_v25 = vshll.u32 %v9503_v20, 16  ;;  %v9813_v36 = vshll.u32 %v20280_v17, 16  ;;  %v20295_v11 = vpop.f32.mrf.mxu0  ;;  %v14502_v33 = vcombine.low %v9768_v3, %v9778_v15  ;;  %v9796_v62 = vor.u32 %v9795_v8, %v9791_v52  ;;  %v9506_v20 = vld [vmem:[#allocation3 + $0xb4] sm:$0xf] }
 0x399   : > { %15706 = vmatmul.mubr.msk.bf16.gmra.mxu1 %vm6575_vm3, %v16092_v24  ;;  %v9806_v31 = vrot.slane %v9804_v2, 4  ;;  %v9817_v22 = vshrl.u32 %v20280_v17, 16  ;;  %v15504_v21 = vpop.f32.mrf.mxu1  ;;  %v9787_v45 = vrot.slane %v9786_v23, 4  ;;  %v9823_v1 = vshll.u32 %v20290_v7, 16  ;;  %v20312_v24 = vld [vmem:[#allocation3 + $0xb8] sm:$0xf] }
 0x39a   : > { %v9809_v0 = vrot.slane %v9807_v25, 5  ;;  %v9815_v46 = vrot.slane %v9813_v36, 5  ;;  %15709 = vmatprep.mubr.msk.bf16.mxu1 %vm6575_vm3, %v16093_v43  ;;  %v20301_v44 = vpop.f32.mrf.mxu0  ;;  %15743 = vmatprep.mubr.msk.bf16.mxu0 %vm6575_vm3, %v14502_v33  ;;  %v9797_v55 = vrot.slane %v9796_v62, 4  ;;  %v20305_v3 = vadd.f32 %v20179_v49, %v6722_v29  ;;  %22185 = vst [vmem:[#allocation26_spill] sm:$0xff] %v20312_v24  ;;  %v20316_v36 = vld [vmem:[#allocation3 + $0xbc] sm:$0x1] }
 0x39b   : > { %22181 = vst [vmem:[#allocation32_spill] sm:$0xff] %v20301_v44  ;;  %v9819_v34 = vrot.slane %v9817_v22, 4  ;;  %v20308_v2 = vadd.f32 %v20200_v50, %v15504_v21  ;;  %v20310_v8 = vpop.f32.mrf.mxu1  ;;  %v9792_v15 = vsel %vm16509_vm10, %v9787_v45, %v9791_v52  ;;  %v9825_v25 = vrot.slane %v9823_v1, 5  ;;  %22186 = vst [vmem:[#allocation42_spill] sm:$0xff] %v20316_v36  ;;  %v9509_v52 = vld [vmem:[#allocation3 + $0xc0] sm:$0xf] }
 0x39c   : > { %22182 = vst [vmem:[#allocation34_spill] sm:$0xff] %v20305_v3  ;;  %22184 = vst [vmem:[#allocation38_spill] sm:$0xff] %v20310_v8  ;;  %v9810_v23 = vor.u32 %v9809_v0, %v9806_v31  ;;  %v20318_v33 = vpop.f32.mrf.mxu0  ;;  %v9802_v49 = vsel %vm16509_vm10, %v9797_v55, %v9801_v26  ;;  %v9828_v29 = vshrl.u32 %v9506_v20, 16  ;;  %v9831_v50 = vshll.u32 %v9506_v20, 16  ;;  %v16094_v8 = vld [vmem:[#allocation3 + $0x9c] sm:$0xff]  }
 0x39d   : > { %22183 = vst [vmem:[#allocation25_spill] sm:$0xff] %v20308_v2  ;;  %v9820_v62 = vor.u32 %v9819_v34, %v9815_v46  ;;  %v14503_v43 = vcombine.low %v9792_v15, %v9802_v49  ;;  %v9837_v21 = vshll.u32 %v20312_v24, 16  ;;  %v9841_v44 = vshrl.u32 %v20312_v24, 16  ;;  %v20327_v26 = vld [vmem:[#allocation3 + $0xc4] sm:$0xf]  ;;  %v16095_v49 = vld [vmem:[#allocation3 + $0xa8] sm:$0xff]  }
 0x39e   : > { %v9811_v22 = vrot.slane %v9810_v23, 4  ;;  %v20324_v0 = vpop.f32.mrf.mxu0  ;;  %v9830_v45 = vrot.slane %v9828_v29, 4  ;;  %v9833_v1 = vrot.slane %v9831_v50, 5  ;;  %v9847_v2 = vshll.u32 %v20316_v36, 16  ;;  %v20335_v23 = vld [vmem:[#allocation3 + $0xc8] sm:$0x1] }
 0x39f   : > { %v9821_v31 = vrot.slane %v9820_v62, 4  ;;  %v15507_v3 = vpop.f32.mrf.mxu1  ;;  %15744 = vmatmul.mubr.msk.bf16.gmra.mxu0 %vm6575_vm3, %v14503_v43  ;;  %v9839_v55 = vrot.slane %v9837_v21, 5  ;;  %v9843_v34 = vrot.slane %v9841_v44, 4  ;;  %22188 = vst [vmem:[#allocation46_spill] sm:$0xff] %v20335_v23  ;;  %v9852_v43 = vshrl.u32 %v9509_v52, 16 }
 0x3a0   : > { %v9816_v20 = vsel %vm16509_vm10, %v9811_v22, %v9815_v46  ;;  %v20333_v15 = vadd.f32 %v20231_v51, %v15507_v3  ;;  %v20337_v62 = vpop.f32.mrf.mxu0  ;;  %v9834_v50 = vor.u32 %v9833_v1, %v9830_v45  ;;  %v9849_v36 = vrot.slane %v9847_v2, 5 }
 0x3a1   : > { %v9826_v29 = vsel %vm16509_vm10, %v9821_v31, %v9825_v25  ;;  %15710 = vmatmul.mubr.msk.bf16.gmra.mxu1 %vm6575_vm3, %v16094_v8  ;;  %v6738_v7 = vpop.f32.mrf.mxu1  ;;  %v9844_v22 = vor.u32 %v9843_v34, %v9839_v55  ;;  %v9855_v44 = vshll.u32 %v9509_v52, 16  ;;  %v9861_v51 = vshll.u32 %v20327_v26, 16 }
 0x3a2   : > { %22187 = vst [vmem:[#allocation43_spill] sm:$0xff] %v20333_v15  ;;  %v14504_v46 = vcombine.low %v9816_v20, %v9826_v29  ;;  %15713 = vmatprep.mubr.msk.bf16.mxu1 %vm6575_vm3, %v16095_v49  ;;  %v20344_v3 = vpop.f32.mrf.mxu0  ;;  %v9835_v21 = vrot.slane %v9834_v50, 4  ;;  %v9854_v15 = vrot.slane %v9852_v43, 4  ;;  %v9865_v24 = vshrl.u32 %v20327_v26, 16  ;;  %v10197_v20 = vld [vmem:[#allocation3 + $0x18] sm:$0xe] }
 0x3a3   : > { %22189 = vst [vmem:[#allocation36_spill] sm:$0xff] %v20344_v3  ;;  %v9871_v25 = vshll.u32 %v20335_v23, 16  ;;  %v15508_v2 = vpop.f32.mrf.mxu1  ;;  %v9845_v8 = vrot.slane %v9844_v22, 4  ;;  %v9857_v31 = vrot.slane %v9855_v44, 5  ;;  %v9863_v45 = vrot.slane %v9861_v51, 5 }
 0x3a4   : > { %15747 = vmatprep.mubr.msk.bf16.mxu0 %vm6575_vm3, %v14504_v46  ;;  %v20350_v52 = vadd.f32 %v20244_v14, %v6738_v7  ;;  %v20352_v1 = vpop.f32.mrf.mxu0  ;;  %v9867_v34 = vrot.slane %v9865_v24, 4  ;;  %v20355_v49 = vadd.f32 %v20249_v28, %v15508_v2  ;;  %v9512_v50 = vld [vmem:[#allocation3 + $0xcc] sm:$0xf]  ;;  %v9840_v43 = vsel %vm16509_vm10, %v9835_v21, %v9839_v55  ;;  %v20365_v7 = vld [vmem:[#allocation3 + $0xd0] sm:$0xf]  ;;  %v16096_v28 = vld [vmem:[#allocation3 + $0xb4] sm:$0xff]  }
 0x3a5   : > { %v20357_v29 = vpop.f32.mrf.mxu1  ;;  %v9850_v46 = vsel %vm16509_vm10, %v9845_v8, %v9849_v36  ;;  %v9858_v22 = vor.u32 %v9857_v31, %v9854_v15  ;;  %v9873_v44 = vrot.slane %v9871_v25, 5  ;;  %v14525_v2 = vrot.slane %v10197_v20, 9  ;;  %v16097_v55 = vld [vmem:[#allocation3 + $0xc0] sm:$0xff]  }
 0x3a6   : > { %22190 = vst [vmem:[#allocation47_spill] sm:$0xff] %v20355_v49  ;;  %22191 = vst [vmem:[#allocation48_spill] sm:$0xff] %v20357_v29  ;;  %v20363_v14 = vpop.f32.mrf.mxu0  ;;  %v14505_v51 = vcombine.low %v9840_v43, %v9850_v46  ;;  %v9868_v24 = vor.u32 %v9867_v34, %v9863_v45  ;;  %v10263_v29 = vrot.slane %v20005_v6, 5  ;;  %v9876_v21 = vshrl.u32 %v9512_v50, 16  ;;  %v20383_v34 = vld [vmem:[#allocation3 + $0xd4] sm:$0x1] }
 0x3a7   : > { %v15511_v3 = vpop.f32.mrf.mxu1  ;;  %v9859_v49 = vrot.slane %v9858_v22, 4  ;;  %v9879_v36 = vshll.u32 %v9512_v50, 16  ;;  %v10266_v20 = vrot.slane %v20012_v19, 5  ;;  %v9885_v6 = vshll.u32 %v20365_v7, 16 }
 0x3a8   : > { %v20369_v23 = vadd.f32 %v20276_v12, %v15511_v3  ;;  %v20371_v15 = vpop.f32.mrf.mxu0  ;;  %15748 = vmatmul.mubr.msk.bf16.gmra.mxu0 %vm6575_vm3, %v14505_v51  ;;  %v9869_v25 = vrot.slane %v9868_v24, 4  ;;  %v10265_v31 = vrot.slane %v10263_v29, 4  ;;  %v9878_v50 = vrot.slane %v9876_v21, 4  ;;  %v10199_v21 = vld [vmem:[#allocation3 + $0x30] sm:$0xe] }
 0x3a9   : > { %15714 = vmatmul.mubr.msk.bf16.gmra.mxu1 %vm6575_vm3, %v16096_v28  ;;  %v6754_v8 = vpop.f32.mrf.mxu1  ;;  %v9864_v12 = vsel %vm16509_vm10, %v9859_v49, %v9863_v45  ;;  %v9881_v43 = vrot.slane %v9879_v36, 5  ;;  %v9887_v24 = vrot.slane %v9885_v6, 5  ;;  %v9889_v45 = vshrl.u32 %v20365_v7, 16 }
 0x3aa   : > { %15717 = vmatprep.mubr.msk.bf16.mxu1 %vm6575_vm3, %v16097_v55  ;;  %v20381_v3 = vadd.f32 %v20286_v61, %v6754_v8  ;;  %v20385_v46 = vpop.f32.mrf.mxu0  ;;  %v9874_v22 = vsel %vm16509_vm10, %v9869_v25, %v9873_v44  ;;  %v10267_v51 = vsel %vm16848_vm0, %v10265_v31, %v10266_v20  ;;  %v16098_v8 = vld [vmem:[#allocation3 + $0xcc] sm:$0xff]   ;;  %v10264_v44 = vsel %vm16848_vm0, %v14525_v2, %v10263_v29  ;;  %v10198_v20 = vld [vmem:[#allocation3 + $0x24] sm:$0xe] }
 0x3ab   : > { %22192 = vst [vmem:[#allocation51_spill] sm:$0xff] %v20385_v46  ;;  %v15512_v19 = vpop.f32.mrf.mxu1  ;;  %v14506_v49 = vcombine.low %v9864_v12, %v9874_v22  ;;  %v9882_v28 = vor.u32 %v9881_v43, %v9878_v50  ;;  %v9891_v25 = vrot.slane %v9889_v45, 4  ;;  %v9895_v31 = vshll.u32 %v20383_v34, 16 }
 0x3ac   : > { %v20393_v61 = vadd.f32 %v20295_v11, %v15512_v19  ;;  %v20395_v55 = vpop.f32.mrf.mxu0  ;;  %v10270_v6 = vrot.slane %v20034_v9, 5  ;;  %v20405_v11 = vadd.f32 %v19946_v18, %v20057_v5  ;;  %v14543_v12 = vcombine.low %v10264_v44, %v10267_v51 }
 0x3ad   : > { %v20397_v36 = vpop.f32.mrf.mxu1  ;;  %15751 = vmatprep.mubr.msk.bf16.mxu0 %vm6575_vm3, %v14506_v49  ;;  %v9883_v50 = vrot.slane %v9882_v28, 4  ;;  %v9892_v19 = vor.u32 %v9891_v25, %v9887_v24  ;;  %v10273_v2 = vrot.slane %v20042_v38, 5  ;;  %v14526_v9 = vrot.slane %v10198_v20, 9  ;;  %v10200_v49 = vld [vmem:[#allocation3 + $0x3c] sm:$0xe] }
 0x3ae   : > { %22193 = vst [vmem:[#allocation53_spill] sm:$0xff] %v20397_v36  ;;  %v20408_v43 = vpop.f32.mrf.mxu0  ;;  %v9897_v36 = vrot.slane %v9895_v31, 5  ;;  %v10272_v29 = vrot.slane %v10270_v6, 4  ;;  %v14527_v46 = vrot.slane %v10199_v21, 9  ;;  %v10277_v18 = vrot.slane %v20064_v27, 5 }
 0x3af   : > { %v15515_v22 = vpop.f32.mrf.mxu1  ;;  %v9888_v28 = vsel %vm16509_vm10, %v9883_v50, %v9887_v24  ;;  %v9893_v44 = vrot.slane %v9892_v19, 4  ;;  %v10271_v27 = vsel %vm16848_vm0, %v14526_v9, %v10270_v6  ;;  %v10201_v24 = vld [vmem:[#allocation3 + $0x48] sm:$0xe]  ;;  %vm12431_vm12 = vsmask.f32 2304 }
 0x3b0   : > { %v20412_v45 = vadd.f32 %v20318_v33, %v15515_v22  ;;  %v20415_v5 = vpop.f32.mrf.mxu0  ;;  %v10274_v38 = vsel %vm16848_vm0, %v10272_v29, %v10273_v2  ;;  %v10284_v33 = vrot.slane %v20082_v39, 5  ;;  %v10279_v25 = vrot.slane %v10277_v18, 4  ;;  %v10202_v2 = vld [vmem:[#allocation3 + $0x54] sm:$0xe]  ;;  %vm21683_vm13 = vmand %vm12430_vm11, %vm12431_vm12 }
 0x3b1   : > { %15718 = vmatmul.mubr.msk.bf16.gmra.mxu1 %vm6575_vm3, %v16098_v8  ;;  %v6770_v51 = vpop.f32.mrf.mxu1  ;;  %v10280_v8 = vrot.slane %v20070_v35, 5  ;;  %v9898_v20 = vsel %vm16509_vm10, %v9893_v44, %v9897_v36  ;;  %v14528_v22 = vrot.slane %v10200_v49, 9  ;;  %v14544_v29 = vcombine.low %v10271_v27, %v10274_v38 }
 0x3b2   : > { %15757 = vmatprep.mubr.msk.bf16.mxu1 %vm6575_vm3, %v14543_v12  ;;  %v20425_v21 = vadd.f32 %v20324_v0, %v6770_v51  ;;  %v20430_v31 = vpop.f32.mrf.mxu0  ;;  %v10286_v39 = vrot.slane %v10284_v33, 4  ;;  %v10287_v12 = vrot.slane %v20086_v13, 5  ;;  %v14507_v19 = vcombine.low %v9888_v28, %v9898_v20  ;;  %v10204_v20 = vld [vmem:[#allocation3 + $0x6c] sm:$0xe] }
 0x3b3   : > { %22194 = vst [vmem:[#allocation52_spill] sm:$0xff] %v20430_v31  ;;  %v15516_v50 = vpop.f32.mrf.mxu1  ;;  %v10281_v6 = vsel %vm16848_vm0, %v10279_v25, %v10280_v8  ;;  %v10278_v36 = vsel %vm16848_vm0, %v14527_v46, %v10277_v18  ;;  %v14529_v13 = vrot.slane %v10201_v24, 9  ;;  %v20454_v28 = vsel %vm16848_vm0, %v14528_v22, %v10284_v33  ;;  %v10203_v18 = vld [vmem:[#allocation3 + $0x60] sm:$0xe] }
 0x3b4   : > { %v20436_v0 = vadd.f32 %v20337_v62, %v15516_v50  ;;  %v20440_v35 = vpop.f32.mrf.mxu0  ;;  %v20448_v49 = vsel %vm16848_vm0, %v10286_v39, %v10287_v12  ;;  %v10291_v62 = vrot.slane %v20098_v32, 5  ;;  %15752 = vmatmul.mubr.msk.bf16.gmra.mxu0 %vm6575_vm3, %v14507_v19  ;;  %v14545_v51 = vcombine.low %v10278_v36, %v10281_v6 }
 0x3b5   : > { %v20442_v9 = vpop.f32.mrf.mxu1  ;;  %v10294_v38 = vrot.slane %v20107_v60, 5  ;;  %v10298_v46 = vrot.slane %v20128_v10, 5  ;;  %v14546_v25 = vcombine.low %v20454_v28, %v20448_v49  ;;  %v14530_v24 = vrot.slane %v10202_v2, 9  ;;  %v10205_v49 = vld [vmem:[#allocation3 + $0x78] sm:$0xe] }
 0x3b6   : > { %22195 = vst [vmem:[#allocation54_spill] sm:$0xff] %v20436_v0  ;;  %22196 = vst [vmem:[#allocation56_spill] sm:$0xff] %v20442_v9  ;;  %v20456_v44 = vpop.f32.mrf.mxu0  ;;  %v10292_v32 = vsel %vm16848_vm0, %v14529_v13, %v10291_v62  ;;  %v10293_v8 = vrot.slane %v10291_v62, 4  ;;  %v10301_v60 = vrot.slane %v20138_v47, 5  ;;  %v10305_v10 = vrot.slane %v20149_v59, 5 }
 0x3b7   : > { %v15555_v27 = vpop.f32.mrf.mxu1  ;;  %v10300_v22 = vrot.slane %v10298_v46, 4  ;;  %v20476_v19 = vsel %vm16848_vm0, %v14530_v24, %v10298_v46  ;;  %v14531_v6 = vrot.slane %v10203_v18, 9  ;;  %v14532_v36 = vrot.slane %v10204_v20, 9 }
 0x3b8   : > { %v20465_v33 = vadd.f32 %v15555_v27, %v20105_v40  ;;  %v20467_v50 = vpop.f32.mrf.mxu0  ;;  %v10295_v12 = vsel %vm16848_vm0, %v10293_v8, %v10294_v38  ;;  %v10312_v40 = vrot.slane %v20175_v30, 5  ;;  %v10307_v28 = vrot.slane %v10305_v10, 4  ;;  %v10206_v27 = vld [vmem:[#allocation3 + $0x84] sm:$0xe]  ;;  %v22205_v30 = vld [vmem:[#allocation39_spill] sm:$0xff] }
 0x3b9   : > { %15758 = vmatmul.mubr.msk.bf16.vlgmr.msra.gmra.mxu1 %vm6575_vm3, %v14544_v29  ;;  %v7379_v39 = vpop.f32.mrf.mxu1  ;;  %v20487_v59 = vsel %vm16848_vm0, %v10300_v22, %v10301_v60  ;;  %v10308_v29 = vrot.slane %v20157_v57, 5  ;;  %v14547_v62 = vcombine.low %v10292_v32, %v10295_v12  ;;  %v20499_v46 = vsel %vm16848_vm0, %v14531_v6, %v10305_v10  ;;  %v10209_v6 = vld [vmem:[#allocation3 + $0xa8] sm:$0xe] }
 0x3ba   : > { %15761 = vmatprep.mubr.msk.bf16.mxu1 %vm6575_vm3, %v14545_v51  ;;  %v20481_v2 = vadd.f32 %v7379_v39, %v20122_v37  ;;  %v20483_v47 = vpop.f32.mrf.mxu0  ;;  %v10314_v51 = vrot.slane %v10312_v40, 4  ;;  %v10315_v57 = vrot.slane %v20177_v54, 5  ;;  %v10319_v18 = vrot.slane %v20196_v16, 5  ;;  %v10207_v39 = vld [vmem:[#allocation3 + $0x90] sm:$0xe] }
 0x3bb   : > { %22197 = vst [vmem:[#allocation55_spill] sm:$0xff] %v20483_v47  ;;  %v15556_v13 = vpop.f32.mrf.mxu1  ;;  %v20505_v8 = vsel %vm16848_vm0, %v10307_v28, %v10308_v29  ;;  %v14533_v24 = vrot.slane %v10205_v49, 9  ;;  %v10326_v20 = vrot.slane %v20213_v53, 5  ;;  %v10322_v10 = vrot.slane %v20198_v48, 5 }
 0x3bc   : > { %v20493_v37 = vadd.f32 %v15556_v13, %v20126_v41  ;;  %v20495_v38 = vpop.f32.mrf.mxu0  ;;  %v20509_v41 = vsel %vm16848_vm0, %v14532_v36, %v10312_v40  ;;  %v20521_v16 = vsel %vm16848_vm0, %v10314_v51, %v10315_v57  ;;  %v10321_v53 = vrot.slane %v10319_v18, 4  ;;  %v22199_v13 = vld [vmem:[#allocation23_spill] sm:$0xff] }
 0x3bd   : > { %v7382_v32 = vpop.f32.mrf.mxu1  ;;  %v14534_v40 = vrot.slane %v10206_v27, 9  ;;  %v20533_v49 = vsel %vm16848_vm0, %v14533_v24, %v10319_v18  ;;  %v10329_v28 = vrot.slane %v22199_v13, 5  ;;  %v10333_v48 = vrot.slane %v20234_v63, 5  ;;  %v10208_v51 = vld [vmem:[#allocation3 + $0x9c] sm:$0xe]  ;;  %v22200_v24 = vld [vmem:[#allocation44_spill] sm:$0xff] }
 0x3be   : > { %v20513_v22 = vadd.f32 %v7382_v32, %v20405_v11  ;;  %v20515_v60 = vpop.f32.mrf.mxu0  ;;  %v10328_v11 = vrot.slane %v10326_v20, 4  ;;  %v20540_v27 = vsel %vm16848_vm0, %v10321_v53, %v10322_v10  ;;  %v14535_v32 = vrot.slane %v10207_v39, 9  ;;  %v22202_v53 = vld [vmem:[#allocation24_spill] sm:$0xff] }
 0x3bf   : > { %v15559_v12 = vpop.f32.mrf.mxu1  ;;  %v10340_v18 = vrot.slane %v20258_v42, 5  ;;  %v10336_v13 = vrot.slane %v22202_v53, 5  ;;  %v10335_v42 = vrot.slane %v10333_v48, 4  ;;  %vm12521_vm1 = vsmask.f32 5392 }
 0x3c0   : > { %22198 = vst [vmem:[#allocation57_spill] sm:$0xff] %v20513_v22  ;;  %v20527_v29 = vadd.f32 %v15559_v12, %v20147_v58  ;;  %v20529_v36 = vpop.f32.mrf.mxu0  ;;  %v20544_v58 = vsel %vm16848_vm0, %v14534_v40, %v10326_v20  ;;  %v20555_v10 = vsel %vm16848_vm0, %v10328_v11, %v10329_v28  ;;  %v14536_v40 = vrot.slane %v10208_v51, 9  ;;  %v22211_v22 = vld [vmem:[#allocation42_spill] sm:$0xff] }
 0x3c1   : > { %15762 = vmatmul.mubr.msk.bf16.gmra.mxu1 %vm6575_vm3, %v14546_v25  ;;  %v7395_v57 = vpop.f32.mrf.mxu1  ;;  %v10347_v28 = vrot.slane %v20280_v17, 5  ;;  %v20569_v47 = vsel %vm16848_vm0, %v14535_v32, %v10333_v48  ;;  %v20573_v51 = vsel %vm16848_vm0, %v10335_v42, %v10336_v13  ;;  %v14537_v32 = vrot.slane %v10209_v6, 9 }
 0x3c2   : > { %15765 = vmatprep.mubr.msk.bf16.mxu1 %vm6575_vm3, %v14547_v62  ;;  %v7510_v12 = vadd.f32 %v7395_v57, %v22200_v24  ;;  %v20549_v63 = vpop.f32.mrf.mxu0  ;;  %v10342_v62 = vrot.slane %v10340_v18, 4  ;;  %v22203_v57 = vld [vmem:[#allocation28_spill] sm:$0xff]  ;;  %v22204_v24 = vld [vmem:[#allocation30_spill] sm:$0xff]  ;;  %v14553_v17 = vcombine.low %v20569_v47, %v20573_v51  ;;  %v10357_v0 = vrot.slane %v22211_v22, 5  ;;  %v22214_v22 = vld [vmem:[#allocation45_spill] sm:$0xff] }
 0x3c3   : > { %22201 = vst [vmem:[#allocation58_spill] sm:$0xff] %v20549_v63  ;;  %v15560_v20 = vpop.f32.mrf.mxu1  ;;  %v6973_v54 = vadd.f32 %v22204_v24, %v22203_v57  ;;  %v22206_v63 = vld [vmem:[#allocation35_spill] sm:$0xff]  ;;  %v20577_v57 = vsel %vm16848_vm0, %v14536_v40, %v10340_v18  ;;  %v10349_v42 = vrot.slane %v10347_v28, 4  ;;  %v22209_v40 = vld [vmem:[#allocation29_spill] sm:$0xff]  ;;  %v22212_v47 = vcombine.low %v20476_v19, %v20487_v59 }
 0x3c4   : > { %v7513_v4 = vadd.f32 %v15560_v20, %v22205_v30  ;;  %v20563_v25 = vpop.f32.mrf.mxu0  ;;  %v10343_v11 = vrot.slane %v22206_v63, 5  ;;  %v10210_v30 = vld [vmem:[#allocation3 + $0xb4] sm:$0xe]  ;;  %v10350_v31 = vrot.slane %v22209_v40, 5  ;;  %v22213_v51 = vcombine.low %v20499_v46, %v20505_v8  ;;  %v22215_v8 = vld [vmem:[#allocation21_spill] sm:$0xff] }
 0x3c5   : > { %v7398_v53 = vpop.f32.mrf.mxu1  ;;  %v22207_v20 = vld [vmem:[#allocation26_spill] sm:$0xff]  ;;  %v14538_v9 = vrot.slane %v10210_v30, 9  ;;  %v20629_v40 = vadd.f32 %v20352_v1, %v20465_v33  ;;  %v20647_v1 = vadd.f32 %v20408_v43, %v7510_v12  ;;  %v22218_v43 = vcombine.low %v20509_v41, %v20521_v16 }
 0x3c6   : > { %v10354_v24 = vrot.slane %v22207_v20, 5  ;;  %v20580_v39 = vadd.f32 %v7398_v53, %v6973_v54  ;;  %v20582_v63 = vpop.f32.mrf.mxu0  ;;  %v20588_v48 = vsel %vm16848_vm0, %v10342_v62, %v10343_v11  ;;  %v22210_v54 = vld [vmem:[#allocation49_spill] sm:$0xff]  ;;  %v20601_v62 = vsel %vm16848_vm0, %v14537_v32, %v10347_v28 }
 0x3c7   : > { %v15563_v13 = vpop.f32.mrf.mxu1  ;;  %v14554_v18 = vcombine.low %v20577_v57, %v20588_v48  ;;  %v20605_v11 = vsel %vm16848_vm0, %v10349_v42, %v10350_v31  ;;  %v22229_v57 = vld [vmem:[#allocation47_spill] sm:$0xff] }
 0x3c8   : > { %22208 = vst [vmem:[#allocation59_spill] sm:$0xff] %v20580_v39  ;;  %v10356_v20 = vrot.slane %v10354_v24, 4  ;;  %v7516_v53 = vadd.f32 %v15563_v13, %v22210_v54  ;;  %v15606_v39 = vpop.f32.mrf.mxu0  ;;  %v14555_v19 = vcombine.low %v20601_v62, %v20605_v11  ;;  %v20618_v59 = vsel %vm16848_vm0, %v14538_v9, %v10354_v24  ;;  %v22221_v11 = vld [vmem:[#allocation37_spill] sm:$0xff] }
 0x3c9   : > { %15766 = vmatmul.mubr.msk.bf16.gmra.mxu1 %vm6575_vm3, %v22212_v47  ;;  %v7411_v6 = vpop.f32.mrf.mxu1  ;;  %v20633_v54 = vadd.f32 %v20363_v14, %v20481_v2  ;;  %v20641_v24 = vadd.f32 %v20395_v55, %v20527_v29  ;;  %v20650_v14 = vadd.f32 %v20415_v5, %v7513_v4  ;;  %v22219_v4 = vcombine.low %v20533_v49, %v20540_v27  ;;  %v22220_v5 = vld [vmem:[#allocation22_spill] sm:$0xff] }
 0x3ca   : > { %15769 = vmatprep.mubr.msk.bf16.mxu1 %vm6575_vm3, %v22213_v51  ;;  %v7514_v30 = vadd.f32 %v7411_v6, %v22214_v22  ;;  %v20612_v13 = vpop.f32.mrf.mxu0  ;;  %v20622_v31 = vsel %vm16848_vm0, %v10356_v20, %v10357_v0  ;;  %v20637_v0 = vadd.f32 %v20371_v15, %v20493_v37  ;;  %v22216_v20 = vld [vmem:[#allocation27_spill] sm:$0xff]  ;;  %v20653_v2 = vadd.f32 %v20440_v35, %v7516_v53 }
 0x3cb   : > { %v15564_v28 = vpop.f32.mrf.mxu1  ;;  %v14556_v46 = vcombine.low %v20618_v59, %v20622_v31  ;;  %v22217_v15 = vld [vmem:[#allocation31_spill] sm:$0xff] }
 0x3cc   : > { %v7517_v32 = vadd.f32 %v15564_v28, %v22215_v8  ;;  %v15609_v42 = vpop.f32.mrf.mxu0  ;;  %v20657_v55 = vadd.f32 %v20456_v44, %v7514_v30  ;;  %v22222_v30 = vld [vmem:[#allocation41_spill] sm:$0xff] }
 0x3cd   : > { %v7414_v9 = vpop.f32.mrf.mxu1 }
 0x3ce   : > { %v20644_v47 = vadd.f32 %v7414_v9, %v22216_v20  ;;  %v7821_v6 = vpop.f32.mrf.mxu0  ;;  %v20660_v29 = vadd.f32 %v20467_v50, %v7517_v32  ;;  %v22223_v32 = vld [vmem:[#allocation40_spill] sm:$0xff]  ;;  %v22224_v20 = vcombine.low %v20544_v58, %v20555_v10  ;;  %v10361_v10 = vrot.slane %v20327_v26, 5 }
 0x3cf   : > { %v15567_v33 = vpop.f32.mrf.mxu1 }
 0x3d0   : > { %v7520_v37 = vadd.f32 %v15567_v33, %v22217_v15  ;;  %v15610_v62 = vpop.f32.mrf.mxu0 }
 0x3d1   : > { %15770 = vmatmul.mubr.msk.bf16.gmra.mxu1 %vm6575_vm3, %v22218_v43  ;;  %v7427_v12 = vpop.f32.mrf.mxu1 }
 0x3d2   : > { %15773 = vmatprep.mubr.msk.bf16.mxu1 %vm6575_vm3, %v22219_v4  ;;  %v7518_v35 = vadd.f32 %v7427_v12, %v22220_v5  ;;  %v20671_v53 = vpop.f32.mrf.mxu0  ;;  %v20674_v44 = vadd.f32 %v20495_v38, %v7520_v37  ;;  %v22226_v12 = vld [vmem:[#allocation25_spill] sm:$0xff] }
 0x3d3   : > { %v15568_v50 = vpop.f32.mrf.mxu1 }
 0x3d4   : > { %v7521_v51 = vadd.f32 %v15568_v50, %v22221_v11  ;;  %v15613_v22 = vpop.f32.mrf.mxu0  ;;  %v20678_v41 = vadd.f32 %v20515_v60, %v7518_v35  ;;  %v22225_v60 = vld [vmem:[#allocation34_spill] sm:$0xff] }
 0x3d5   : > { %v7430_v16 = vpop.f32.mrf.mxu1 }
 0x3d6   : > { %v20681_v28 = vadd.f32 %v7430_v16, %v22222_v30  ;;  %v7837_v49 = vpop.f32.mrf.mxu0  ;;  %v20684_v27 = vadd.f32 %v20529_v36, %v7521_v51  ;;  %v22227_v51 = vld [vmem:[#allocation43_spill] sm:$0xff] }
 0x3d7   : > { %v15571_v8 = vpop.f32.mrf.mxu1 }
 0x3d8   : > { %v7524_v9 = vadd.f32 %v15571_v8, %v22223_v32  ;;  %v15614_v38 = vpop.f32.mrf.mxu0  ;;  %v10363_v8 = vrot.slane %v10361_v10, 4  ;;  %v10211_v32 = vld [vmem:[#allocation3 + $0xc0] sm:$0xe] }
 0x3d9   : > { %15774 = vmatmul.mubr.msk.bf16.gmra.mxu1 %vm6575_vm3, %v22224_v20  ;;  %v7443_v33 = vpop.f32.mrf.mxu1 }
 0x3da   : > { %15777 = vmatprep.mubr.msk.bf16.mxu1 %vm6575_vm3, %v14553_v17  ;;  %v7522_v15 = vadd.f32 %v7443_v33, %v22225_v60  ;;  %v20693_v37 = vpop.f32.mrf.mxu0  ;;  %v20696_v43 = vadd.f32 %v20563_v25, %v7524_v9  ;;  %v22228_v33 = vld [vmem:[#allocation46_spill] sm:$0xff] }
 0x3db   : > { %v15572_v36 = vpop.f32.mrf.mxu1  ;;  %v10364_v60 = vrot.slane %v22228_v33, 5 }
 0x3dc   : > { %v7525_v4 = vadd.f32 %v15572_v36, %v22226_v12  ;;  %v15617_v5 = vpop.f32.mrf.mxu0  ;;  %v20700_v35 = vadd.f32 %v20582_v63, %v7522_v15  ;;  %v10212_v15 = vld [vmem:[#allocation3 + $0xcc] sm:$0xe] }
 0x3dd   : > { %v20702_v58 = vpop.f32.mrf.mxu1  ;;  %v10365_v12 = vsel %vm16848_vm0, %v10363_v8, %v10364_v60 }
 0x3de   : > { %v7853_v50 = vpop.f32.mrf.mxu0  ;;  %v20705_v17 = vadd.f32 %v15606_v39, %v7525_v4  ;;  %v10368_v39 = vrot.slane %v20365_v7, 5  ;;  %v14540_v4 = vrot.slane %v10212_v15, 9 }
 0x3df   : > { %v15575_v11 = vpop.f32.mrf.mxu1 }
 0x3e0   : > { %v7528_v16 = vadd.f32 %v15575_v11, %v22227_v51  ;;  %v15618_v30 = vpop.f32.mrf.mxu0  ;;  %v10370_v7 = vrot.slane %v10368_v39, 4 }
 0x3e1   : > { %15778 = vmatmul.mubr.msk.bf16.gmra.mxu1 %vm6575_vm3, %v14554_v18  ;;  %v7459_v25 = vpop.f32.mrf.mxu1 }
 0x3e2   : > { %15781 = vmatprep.mubr.msk.bf16.mxu1 %vm6575_vm3, %v14555_v19  ;;  %v7526_v63 = vadd.f32 %v7459_v25, %v20350_v52  ;;  %v20714_v26 = vpop.f32.mrf.mxu0  ;;  %v20717_v9 = vadd.f32 %v15609_v42, %v7528_v16  ;;  %v14539_v52 = vrot.slane %v10211_v32, 9  ;;  %v10371_v42 = vrot.slane %v20383_v34, 5 }
 0x3e3   : > { %v15576_v20 = vpop.f32.mrf.mxu1 }
 0x3e4   : > { %v7529_v48 = vadd.f32 %v15576_v20, %v22229_v57  ;;  %v20721_v18 = vpop.f32.mrf.mxu0  ;;  %v20723_v36 = vadd.f32 %v7821_v6, %v7526_v63  ;;  %v10362_v25 = vsel %vm16848_vm0, %v14539_v52, %v10361_v10  ;;  %v10372_v10 = vsel %vm16848_vm0, %v10370_v7, %v10371_v42 }
 0x3e5   : > { %v20725_v19 = vpop.f32.mrf.mxu1  ;;  %v14557_v63 = vcombine.low %v10362_v25, %v10365_v12 }
 0x3e6   : > { %v20730_v11 = vpop.f32.mrf.mxu0  ;;  %v20732_v51 = vadd.f32 %v15610_v62, %v7529_v48  ;;  %v10369_v62 = vsel %vm16848_vm0, %v14540_v4, %v10368_v39  ;;  %v22230_v4 = vld [vmem:[#allocation54_spill] sm:$0xff]  ;;  %vm12519_vm0 = vsmask.f32 3336 }
 0x3e8   : > { %v15579_v16 = vpop.f32.mrf.mxu1  ;;  %v20737_v20 = vpop.f32.mrf.mxu0 }
 0x3e9   : > { %v7532_v6 = vadd.f32 %v15579_v16, %v20369_v23  ;;  %15782 = vmatmul.mubr.msk.bf16.gmra.mxu1 %vm6575_vm3, %v14556_v46 }
 0x3ea   : > { %v7475_v8 = vpop.f32.mrf.mxu1  ;;  %15785 = vmatprep.mubr.msk.bf16.mxu1 %vm6575_vm3, %v14557_v63  ;;  %v20749_v23 = vpop.f32.mrf.mxu0 }
 0x3eb   : > { %v7530_v34 = vadd.f32 %v7475_v8, %v20381_v3  ;;  %v20751_v32 = vadd.f32 %v15613_v22, %v7532_v6  ;;  %v14558_v3 = vcombine.low %v10369_v62, %v10372_v10 }
 0x3ec   : > { %v15580_v33 = vpop.f32.mrf.mxu1  ;;  %v20754_v31 = vpop.f32.mrf.mxu0 }
 0x3ed   : > { %v7533_v59 = vadd.f32 %v15580_v33, %v20393_v61  ;;  %v20756_v46 = vadd.f32 %v7837_v49, %v7530_v34 }
 0x3ee   : > { %v20758_v60 = vpop.f32.mrf.mxu1  ;;  %v20760_v15 = vpop.f32.mrf.mxu0 }
 0x3ef   : > { %v20762_v39 = vadd.f32 %v15614_v38, %v7533_v59 }
 0x3f0   : > { %v15583_v56 = vpop.f32.mrf.mxu1  ;;  %v20765_v48 = vpop.f32.mrf.mxu0 }
 0x3f1   : > { %v7536_v57 = vadd.f32 %v15583_v56, %v20412_v45  ;;  %15786 = vmatmul.mubr.msk.bf16.gmra.mxu1 %vm6575_vm3, %v14558_v3  ;;  %vm12520_vm3 = vmor %vm12518_vm15, %vm12519_vm0 }
 0x3f2   : > { %v7491_v22 = vpop.f32.mrf.mxu1  ;;  %v20769_v52 = vpop.f32.mrf.mxu0  ;;  %vm12522_vm4 = vmor %vm12520_vm3, %vm12521_vm1 }
 0x3f3   : > { %v7534_v61 = vadd.f32 %v7491_v22, %v20425_v21  ;;  %v20771_v49 = vadd.f32 %v15617_v5, %v7536_v57  ;;  %vm21742_vm5 = vmor %vm12522_vm4, %vm12523_vm2 }
 0x3f4   : > { %v15584_v12 = vpop.f32.mrf.mxu1  ;;  %v20774_v42 = vpop.f32.mrf.mxu0 }
 0x3f5   : > { %v7537_v7 = vadd.f32 %v15584_v12, %v22230_v4  ;;  %v20776_v38 = vadd.f32 %v7853_v50, %v7534_v61 }
 0x3f6   : > { %v20778_v16 = vpop.f32.mrf.mxu1  ;;  %v20780_v45 = vpop.f32.mrf.mxu0 }
 0x3f7   : > { %v20782_v25 = vadd.f32 %v15618_v30, %v7537_v7 }
 0x3f8   : > { %v15623_v6 = vpop.f32.mrf.mxu1  ;;  %v20787_v63 = vpop.f32.mrf.mxu0 }
 0x3f9   : > { %v20785_v21 = vadd.f32 %v15623_v6, %v20629_v40 }
 0x3fa   : > { %v8471_v5 = vpop.f32.mrf.mxu1  ;;  %v20792_v34 = vpop.f32.mrf.mxu0 }
 0x3fb   : > { %v20790_v8 = vadd.f32 %v8471_v5, %v20633_v54 }
 0x3fc   : > { %v15624_v50 = vpop.f32.mrf.mxu1  ;;  %v20797_v10 = vpop.f32.mrf.mxu0 }
 0x3fd   : > { %v20795_v62 = vadd.f32 %v15624_v50, %v20637_v0  ;;  %22231 = vst [vmem:[#allocation60_spill] sm:$0xff] %v20797_v10 }
 0x3fe   : > { %v20799_v30 = vpop.f32.mrf.mxu1  ;;  %v20801_v33 = vpop.f32.mrf.mxu0 }
 0x3ff   : > { %22232 = vst [vmem:[#allocation61_spill] sm:$0xff] %v20801_v33 }
 0x400   : > { %v15627_v40 = vpop.f32.mrf.mxu1  ;;  %v20806_v3 = vpop.f32.mrf.mxu0 }
 0x401   : > { %v20804_v59 = vadd.f32 %v15627_v40, %v20641_v24  ;;  %22233 = vst [vmem:[#allocation62_spill] sm:$0xff] %v20806_v3  ;;  %v10834_v3 = vld [vmem:[#allocation4 + $0x24] sm:$0x1] }
 0x402   : > { %v8487_v54 = vpop.f32.mrf.mxu1  ;;  %v20811_v57 = vpop.f32.mrf.mxu0 }
 0x403   : > { %v20809_v56 = vadd.f32 %v8487_v54, %v20647_v1  ;;  %22234 = vst [vmem:[#allocation63_spill] sm:$0xff] %v20811_v57 }
 0x404   : > { %v15628_v0 = vpop.f32.mrf.mxu1  ;;  %v20816_v61 = vpop.f32.mrf.mxu0 }
 0x405   : > { %v20814_v22 = vadd.f32 %v15628_v0, %v20650_v14  ;;  %22235 = vst [vmem:[#allocation64_spill] sm:$0xff] %v20816_v61 }
 0x406   : > { %v20818_v12 = vpop.f32.mrf.mxu1  ;;  %v20820_v4 = vpop.f32.mrf.mxu0 }
 0x407   : > { %22236 = vst [vmem:[#allocation66_spill] sm:$0xff] %v20820_v4 }
 0x408   : > { %v15631_v24 = vpop.f32.mrf.mxu1  ;;  %v20825_v6 = vpop.f32.mrf.mxu0 }
 0x409   : > { %v20823_v7 = vadd.f32 %v15631_v24, %v20653_v2  ;;  %22237 = vst [vmem:[#allocation65_spill] sm:$0xff] %v20825_v6 }
 0x40a   : > { %v8503_v1 = vpop.f32.mrf.mxu1  ;;  %v20830_v50 = vpop.f32.mrf.mxu0 }
 0x40b   : > { %v20828_v5 = vadd.f32 %v8503_v1, %v20657_v55  ;;  %22238 = vst [vmem:[#allocation68_spill] sm:$0xff] %v20830_v50 }
 0x40c   : > { %v15632_v14 = vpop.f32.mrf.mxu1  ;;  %v20835_v54 = vpop.f32.mrf.mxu0 }
 0x40d   : > { %v20833_v40 = vadd.f32 %v15632_v14, %v20660_v29  ;;  %22239 = vst [vmem:[#allocation67_spill] sm:$0xff] %v20835_v54 }
 0x40e   : > { %v20837_v0 = vpop.f32.mrf.mxu1  ;;  %v20839_v4 = vpop.f32.mrf.mxu0 }
 0x40f   : > { %22240 = vst [vmem:[#allocation69_spill] sm:$0xff] %v20839_v4 }
 0x410   : > { %v15635_v2 = vpop.f32.mrf.mxu1  ;;  %v20844_v6 = vpop.f32.mrf.mxu0 }
 0x411   : > { %v20842_v24 = vadd.f32 %v15635_v2, %v20674_v44  ;;  %22242 = vst [vmem:[#allocation70_spill] sm:$0xff] %v20844_v6 }
 0x412   : > { %v8519_v55 = vpop.f32.mrf.mxu1  ;;  %v20852_v14 = vpop.f32.mrf.mxu0 }
 0x413   : > { %22241 = vst [vmem:[#allocation71_spill] sm:$0xff] %v20842_v24  ;;  %v20847_v1 = vadd.f32 %v8519_v55, %v20678_v41  ;;  %22245 = vst [vmem:[#allocation72_spill] sm:$0xff] %v20852_v14  ;;  %v22310_v24 = vld [vmem:[#allocation48_spill] sm:$0xff] }
 0x414   : > { %v15636_v50 = vpop.f32.mrf.mxu1  ;;  %v20859_v44 = vpop.f32.mrf.mxu0 }
 0x415   : > { %22243 = vst [vmem:[#allocation19_spill] sm:$0xff] %v20847_v1  ;;  %v20850_v29 = vadd.f32 %v15636_v50, %v20684_v27  ;;  %22247 = vst [vmem:[#allocation18_spill] sm:$0xff] %v20859_v44  ;;  %v22254_v44 = vmov 0  }
 0x416   : > { %v20854_v54 = vpop.f32.mrf.mxu1  ;;  %v20867_v27 = vpop.f32.mrf.mxu0  ;;  %10825 = vst.msk [vmem:[#allocation4 + $0x10] sm:$0xf] %vm10814_vm6, %v22254_v44  ;;  %10815 = vst.msk [vmem:[#allocation4] sm:$0xf] %vm10814_vm6, %v22254_v44 }
 0x417   : > { %22244 = vst [vmem:[#allocation20_spill] sm:$0xff] %v20850_v29  ;;  %22250 = vst [vmem:[#allocation24_spill] sm:$0xff] %v20867_v27 }
 0x418   : > { %v15639_v61 = vpop.f32.mrf.mxu1  ;;  %10821 = vst.msk [vmem:[#allocation4 + $0x8] sm:$0xf] %vm10814_vm6, %v22254_v44  ;;  %10829 = vst.msk [vmem:[#allocation4 + $0x18] sm:$0xf] %vm10814_vm6, %v22254_v44 }
 0x419   : > { %v20857_v4 = vadd.f32 %v15639_v61, %v20696_v43  ;;  %v20874_v43 = vpop.f32.mrf.mxu0  ;;  %10833 = vst.msk [vmem:[#allocation4 + $0x20] sm:$0xf] %vm10814_vm6, %v22254_v44  ;;  %10837 = vst.msk [vmem:[#allocation4 + $0x28] sm:$0xf] %vm10814_vm6, %v22254_v44 }
 0x41a   : > { %v8535_v2 = vpop.f32.mrf.mxu1  ;;  %22253 = vst [vmem:[#allocation39_spill] sm:$0xff] %v20874_v43  ;;  %10841 = vst.msk [vmem:[#allocation4 + $0x30] sm:$0xf] %vm10814_vm6, %v22254_v44 }
 0x41b   : > { %22246 = vst [vmem:[#allocation17_spill] sm:$0xff] %v20857_v4  ;;  %v20862_v6 = vadd.f32 %v8535_v2, %v20700_v35  ;;  %10845 = vst.msk [vmem:[#allocation4 + $0x38] sm:$0xf] %vm10814_vm6, %v22254_v44  ;;  %v16099_v2 = vld [vmem:[%s21934_s5 + $0x18] sm:$0xff]  }
 0x41c   : > { %v15640_v41 = vpop.f32.mrf.mxu1  ;;  %10849 = vst.msk [vmem:[#allocation4 + $0x40] sm:$0xf] %vm10814_vm6, %v22254_v44  ;;  %11609 = vst.msk [vmem:[#allocation5] sm:$0xf] %vm10814_vm6, %v22254_v44  ;;  %15789 = vmatprep.subr.bf16.mxu0 %v16099_v2 }
 0x41d   : > { %22248 = vst [vmem:[#allocation23_spill] sm:$0xff] %v20862_v6  ;;  %v20865_v55 = vadd.f32 %v15640_v41, %v20705_v17  ;;  %11613 = vst.msk [vmem:[#allocation5 + $0x8] sm:$0xf] %vm10814_vm6, %v22254_v44  ;;  %15790 = vmatpush3.bf16.msra.mxu0 %v16099_v2 }
 0x41e   : > { %v20869_v50 = vpop.f32.mrf.mxu1  ;;  %11617 = vst.msk [vmem:[#allocation5 + $0x10] sm:$0xf] %vm10814_vm6, %v22254_v44  ;;  %11621 = vst.msk [vmem:[#allocation5 + $0x18] sm:$0xf] %vm10814_vm6, %v22254_v44 }
 0x41f   : > { %22249 = vst [vmem:[#allocation44_spill] sm:$0xff] %v20865_v55  ;;  %22251 = vst [vmem:[#allocation28_spill] sm:$0xff] %v20869_v50  ;;  %v10830_v50 = vld [vmem:[#allocation4 + $0x1c] sm:$0x1] }
 0x420   : > { %v15643_v14 = vpop.f32.mrf.mxu1  ;;  %11625 = vst.msk [vmem:[#allocation5 + $0x20] sm:$0xf] %vm10814_vm6, %v22254_v44  ;;  %11629 = vst.msk [vmem:[#allocation5 + $0x28] sm:$0xf] %vm10814_vm6, %v22254_v44 }
 0x421   : > { %v20872_v57 = vadd.f32 %v15643_v14, %v20717_v9  ;;  %11633 = vst.msk [vmem:[#allocation5 + $0x30] sm:$0xf] %vm10814_vm6, %v22254_v44  ;;  %11637 = vst.msk [vmem:[#allocation5 + $0x38] sm:$0xf] %vm10814_vm6, %v22254_v44  ;;  %v20918_v14 = vpop.f32.mrf.mxu0 }
 0x422   : > { %v8551_v61 = vpop.f32.mrf.mxu1  ;;  %11641 = vst.msk [vmem:[#allocation5 + $0x40] sm:$0xf] %vm10814_vm6, %v22254_v44  ;;  %22257 = vst [vmem:[#allocation29_spill] sm:$0xff] %v20918_v14 }
 0x423   : > { %22252 = vst [vmem:[#allocation30_spill] sm:$0xff] %v20872_v57  ;;  %v20913_v35 = vadd.f32 %v8551_v61, %v20723_v36  ;;  %v20925_v27 = vpop.f32.mrf.mxu0  ;;  %v16103_v57 = vld [vmem:[%s21934_s5 + $0x10] sm:$0xff]  }
 0x424   : > { %v15644_v17 = vpop.f32.mrf.mxu1  ;;  %22259 = vst [vmem:[#allocation42_spill] sm:$0xff] %v20925_v27  ;;  %15791 = vmatprep.subr.bf16.mxu0 %v16103_v57 }
 0x425   : > { %22255 = vst [vmem:[#allocation35_spill] sm:$0xff] %v20913_v35  ;;  %v20916_v9 = vadd.f32 %v15644_v17, %v20732_v51  ;;  %v20933_v17 = vpop.f32.mrf.mxu0  ;;  %15792 = vmatpush3.bf16.msra.mxu0 %v16103_v57  ;;  %v10838_v57 = vld [vmem:[#allocation4 + $0x2c] sm:$0x1] }
 0x426   : > { %v20923_v41 = vpop.f32.mrf.mxu1  ;;  %22262 = vst [vmem:[#allocation27_spill] sm:$0xff] %v20933_v17  ;;  %v10839_v33 = vsel %vm20976_vm9, 0, %v10838_v57 }
 0x427   : > { %22256 = vst [vmem:[#allocation26_spill] sm:$0xff] %v20916_v9  ;;  %22258 = vst [vmem:[#allocation49_spill] sm:$0xff] %v20923_v41  ;;  %v16100_v9 = vld [vmem:[%s21934_s5 + $0x8] sm:$0xff]  }
 0x428   : > { %v15647_v43 = vpop.f32.mrf.mxu1  ;;  %15801 = vmatprep.subr.bf16.mxu1 %v16100_v9  ;;  %10840 = vst [vmem:[#allocation4 + $0x2c] sm:$0x1] %v10839_v33 }
 0x429   : > { %v20928_v36 = vadd.f32 %v15647_v43, %v20751_v32  ;;  %15802 = vmatpush3.bf16.msra.mxu1 %v16100_v9  ;;  %v20943_v32 = vpop.f32.mrf.mxu0 }
 0x42a   : > { %v8567_v44 = vpop.f32.mrf.mxu1  ;;  %22265 = vst [vmem:[#allocation37_spill] sm:$0xff] %v20943_v32 }
 0x42b   : > { %22260 = vst [vmem:[#allocation45_spill] sm:$0xff] %v20928_v36  ;;  %v20931_v51 = vadd.f32 %v8567_v44, %v20756_v46  ;;  %v20948_v27 = vpop.f32.mrf.mxu0 }
 0x42c   : > { %v15648_v61 = vpop.f32.mrf.mxu1  ;;  %22267 = vst [vmem:[#allocation40_spill] sm:$0xff] %v20948_v27 }
 0x42d   : > { %22261 = vst [vmem:[#allocation21_spill] sm:$0xff] %v20931_v51  ;;  %v20936_v14 = vadd.f32 %v15648_v61, %v20762_v39 }
 0x42e   : > { %v20941_v2 = vpop.f32.mrf.mxu1  ;;  %v20958_v51 = vpop.f32.mrf.mxu0 }
 0x42f   : > { %22263 = vst [vmem:[#allocation31_spill] sm:$0xff] %v20936_v14  ;;  %22264 = vst [vmem:[#allocation22_spill] sm:$0xff] %v20941_v2 }
 0x431   : > { %v15651_v43 = vpop.f32.mrf.mxu1 }
 0x432   : > { %v20946_v46 = vadd.f32 %v15651_v43, %v20771_v49  ;;  %v20964_v49 = vpop.f32.mrf.mxu0 }
 0x433   : > { %v8583_v44 = vpop.f32.mrf.mxu1 }
 0x434   : > { %22266 = vst [vmem:[#allocation41_spill] sm:$0xff] %v20946_v46  ;;  %v20951_v39 = vadd.f32 %v8583_v44, %v20776_v38  ;;  %v20970_v38 = vpop.f32.mrf.mxu0  ;;  %v16102_v46 = vld [vmem:[%s21934_s5] sm:$0xff]  }
 0x435   : > { %v15652_v61 = vpop.f32.mrf.mxu1  ;;  %15803 = vmatprep.subr.bf16.mxu1 %v16102_v46 }
 0x436   : > { %22268 = vst [vmem:[#allocation34_spill] sm:$0xff] %v20951_v39  ;;  %v20954_v17 = vadd.f32 %v15652_v61, %v20782_v25  ;;  %v22271_v25 = vmov 0  ;;  %v10822_v39 = vld [vmem:[#allocation4 + $0xc] sm:$0x1]  ;;  %15804 = vmatpush3.bf16.msra.mxu1 %v16102_v46 }
 0x437   : > { %v20956_v14 = vpop.f32.mrf.mxu1  ;;  %v22272_v25 = vsel %vm20976_vm9, 4294967295, %v22271_v25  ;;  %v10823_v35 = vsel %vm20976_vm9, 0, %v10822_v39  ;;  %v10826_v39 = vld [vmem:[#allocation4 + $0x14] sm:$0x1] }
 0x438   : > { %22269 = vst [vmem:[#allocation25_spill] sm:$0xff] %v20954_v17  ;;  %22270 = vst [vmem:[#allocation43_spill] sm:$0xff] %v20956_v14  ;;  %v20982_v17 = vpop.f32.mrf.mxu0  ;;  %v10818_v14 = vld [vmem:[#allocation4 + $0x4] sm:$0x1] }
 0x439   : > { %v20960_v9 = vpop.f32.mrf.mxu1  ;;  %22273 = vst [vmem:[#allocation46_spill] sm:$0xff] %v22272_v25  ;;  %v10819_v2 = vsel %vm20976_vm9, 0, %v10818_v14  ;;  %10824 = vst [vmem:[#allocation4 + $0xc] sm:$0x1] %v10823_v35  ;;  %v10827_v35 = vsel %vm20976_vm9, 0, %v10826_v39 }
 0x43a   : > { %10820 = vst [vmem:[#allocation4 + $0x4] sm:$0x1] %v10819_v2  ;;  %v20998_v55 = vpop.f32.mrf.mxu0  ;;  %v10831_v2 = vsel %vm20976_vm9, 0, %v10830_v50  ;;  %10828 = vst [vmem:[#allocation4 + $0x14] sm:$0x1] %v10827_v35 }
 0x43b   : > { %v20962_v32 = vpop.f32.mrf.mxu1  ;;  %10832 = vst [vmem:[#allocation4 + $0x1c] sm:$0x1] %v10831_v2  ;;  %v21031_v2 = vld [vmem:[%s21934_s5 + $0x28] sm:$0xff]  }
 0x43c   : > { %v21004_v4 = vpop.f32.mrf.mxu0  ;;  %22282 = vst [vmem:[#allocation79_spill] sm:$0xff] %v21031_v2  ;;  %15813 = vmatprep.subr.bf16.mxu0 %v21031_v2 }
 0x43d   : > { %v20966_v43 = vpop.f32.mrf.mxu1 }
 0x43e   : > { %v21018_v1 = vpop.f32.mrf.mxu0 }
 0x43f   : > { %v20968_v27 = vpop.f32.mrf.mxu1  ;;  %22277 = vst [vmem:[#allocation74_spill] sm:$0xff] %v21018_v1  ;;  %v22311_v1 = vld [vmem:[#allocation33_spill] sm:$0xff] }
 0x440   : > { %v21024_v50 = vpop.f32.mrf.mxu0 }
 0x441   : > { %v20972_v44 = vpop.f32.mrf.mxu1  ;;  %22280 = vst [vmem:[#allocation77_spill] sm:$0xff] %v21024_v50  ;;  %v10846_v50 = vld [vmem:[#allocation4 + $0x3c] sm:$0x1] }
 0x442   : > { %v10847_v2 = vsel %vm20976_vm9, 0, %v10846_v50 }
 0x443   : > { %v20980_v61 = vpop.f32.mrf.mxu1  ;;  %v21040_v33 = vpop.f32.mrf.mxu0  ;;  %10848 = vst [vmem:[#allocation4 + $0x3c] sm:$0x1] %v10847_v2 }
 0x444   : > { %22285 = vst [vmem:[#allocation82_spill] sm:$0xff] %v21040_v33 }
 0x445   : > { %v20987_v36 = vpop.f32.mrf.mxu1 }
 0x447   : > { %v20996_v41 = vpop.f32.mrf.mxu1 }
 0x449   : > { %v21000_v6 = vpop.f32.mrf.mxu1 }
 0x44b   : > { %v21002_v14 = vpop.f32.mrf.mxu1 }
 0x44c   : > { %22274 = vst [vmem:[#allocation47_spill] sm:$0xff] %v21002_v14  ;;  %v10835_v14 = vsel %vm20976_vm9, 0, %v10834_v3  ;;  %v21036_v3 = vld [vmem:[%s21934_s5 + $0x38] sm:$0xff]  }
 0x44d   : > { %v21006_v29 = vpop.f32.mrf.mxu1  ;;  %10836 = vst [vmem:[#allocation4 + $0x24] sm:$0x1] %v10835_v14  ;;  %22283 = vst [vmem:[#allocation80_spill] sm:$0xff] %v21036_v3  ;;  %15825 = vmatprep.subr.bf16.mxu1 %v21036_v3  ;;  %v10850_v3 = vld [vmem:[#allocation4 + $0x44] sm:$0x1] }
 0x44e   : > { %22275 = vst [vmem:[#allocation54_spill] sm:$0xff] %v21006_v29 }
 0x44f   : > { %v21012_v46 = vpop.f32.mrf.mxu1 }
 0x450   : > { %22276 = vst [vmem:[#allocation73_spill] sm:$0xff] %v21012_v46  ;;  %v10842_v46 = vld [vmem:[#allocation4 + $0x34] sm:$0x1] }
 0x451   : > { %v21020_v29 = vpop.f32.mrf.mxu1 }
 0x452   : > { %22278 = vst [vmem:[#allocation75_spill] sm:$0xff] %v21020_v29 }
 0x453   : > { %v21022_v39 = vpop.f32.mrf.mxu1 }
 0x454   : > { %22279 = vst [vmem:[#allocation76_spill] sm:$0xff] %v21022_v39  ;;  %v21048_v39 = vpop.f32.mrf.mxu0 }
 0x455   : > { %v21026_v35 = vpop.f32.mrf.mxu1  ;;  %22288 = vst [vmem:[#allocation85_spill] sm:$0xff] %v21048_v39 }
 0x456   : > { %22281 = vst [vmem:[#allocation78_spill] sm:$0xff] %v21026_v35  ;;  %v21058_v33 = vpop.f32.mrf.mxu0 }
 0x457   : > { %v21038_v14 = vpop.f32.mrf.mxu1  ;;  %22291 = vst [vmem:[#allocation88_spill] sm:$0xff] %v21058_v33 }
 0x458   : > { %22284 = vst [vmem:[#allocation81_spill] sm:$0xff] %v21038_v14  ;;  %v10843_v14 = vsel %vm20976_vm9, 0, %v10842_v46 }
 0x459   : > { %v21044_v57 = vpop.f32.mrf.mxu1  ;;  %10844 = vst [vmem:[#allocation4 + $0x34] sm:$0x1] %v10843_v14 }
 0x45a   : > { %22286 = vst [vmem:[#allocation83_spill] sm:$0xff] %v21044_v57 }
 0x45b   : > { %v21046_v35 = vpop.f32.mrf.mxu1 }
 0x45c   : > { %22287 = vst [vmem:[#allocation84_spill] sm:$0xff] %v21046_v35 }
 0x45d   : > { %v21050_v29 = vpop.f32.mrf.mxu1 }
 0x45e   : > { %22289 = vst [vmem:[#allocation86_spill] sm:$0xff] %v21050_v29  ;;  %v10851_v29 = vsel %vm20976_vm9, 0, %v10850_v3 }
 0x45f   : > { %v21052_v10 = vpop.f32.mrf.mxu1  ;;  %10852 = vst [vmem:[#allocation4 + $0x44] sm:$0x1] %v10851_v29 }
 0x460   : > { %22290 = vst [vmem:[#allocation87_spill] sm:$0xff] %v21052_v10  ;;  %v21066_v10 = vpop.f32.mrf.mxu0 }
 0x461   : > { %v21060_v35 = vpop.f32.mrf.mxu1  ;;  %22294 = vst [vmem:[#allocation91_spill] sm:$0xff] %v21066_v10 }
 0x462   : > { %22292 = vst [vmem:[#allocation89_spill] sm:$0xff] %v21060_v35  ;;  %v21072_v50 = vpop.f32.mrf.mxu0 }
 0x463   : > { %v21064_v57 = vpop.f32.mrf.mxu1  ;;  %22297 = vst [vmem:[#allocation94_spill] sm:$0xff] %v21072_v50 }
 0x464   : > { %22293 = vst [vmem:[#allocation90_spill] sm:$0xff] %v21064_v57  ;;  %v21078_v14 = vpop.f32.mrf.mxu0  ;;  %v22305_v57 = vld [vmem:[#allocation57_spill] sm:$0xff] }
 0x465   : > { %v21068_v39 = vpop.f32.mrf.mxu1  ;;  %22300 = vst [vmem:[#allocation97_spill] sm:$0xff] %v21078_v14  ;;  %v22309_v14 = vld [vmem:[#allocation50_spill] sm:$0xff] }
 0x466   : > { %22295 = vst [vmem:[#allocation92_spill] sm:$0xff] %v21068_v39  ;;  %v21084_v29 = vpop.f32.mrf.mxu0  ;;  %v22306_v39 = vld [vmem:[#allocation51_spill] sm:$0xff] }
 0x467   : > { %v21070_v46 = vpop.f32.mrf.mxu1  ;;  %22303 = vst [vmem:[#allocation100_spill] sm:$0xff] %v21084_v29  ;;  %v7869_v10 = vadd.f32 %v22306_v39, %v22305_v57  ;;  %v22308_v29 = vld [vmem:[#allocation38_spill] sm:$0xff]  ;;  %v7037_v39 = vadd.f32 %v22311_v1, %v22310_v24  ;;  %v22317_v24 = vld [vmem:[#allocation59_spill] sm:$0xff]  ;;  %v22318_v1 = vld [vmem:[#allocation52_spill] sm:$0xff] }
 0x468   : > { %22296 = vst [vmem:[#allocation93_spill] sm:$0xff] %v21070_v46  ;;  %v9074_v46 = vadd.f32 %v20721_v18, %v20785_v21  ;;  %v9075_v21 = vadd.f32 %v20737_v20, %v20795_v62 }
 0x469   : > { %v21074_v33 = vpop.f32.mrf.mxu1 }
 0x46a   : > { %22298 = vst [vmem:[#allocation95_spill] sm:$0xff] %v21074_v33  ;;  %v9437_v33 = vadd.f32 %v20960_v9, %v9074_v46  ;;  %v22315_v46 = vld [vmem:[#allocation56_spill] sm:$0xff] }
 0x46b   : > { %v21076_v2 = vpop.f32.mrf.mxu1 }
 0x46c   : > { %22299 = vst [vmem:[#allocation96_spill] sm:$0xff] %v21076_v2  ;;  %v8599_v2 = vadd.f32 %v20799_v30, %v7869_v10  ;;  %v22313_v10 = vld [vmem:[#allocation53_spill] sm:$0xff]  ;;  %v22314_v30 = vld [vmem:[#allocation32_spill] sm:$0xff]  ;;  %v10167_v62 = vadd.f32 %v20958_v51, %v9437_v33 }
 0x46d   : > { %v21080_v35 = vpop.f32.mrf.mxu1  ;;  %v7053_v9 = vadd.f32 %v22314_v30, %v22313_v10 }
 0x46e   : > { %22301 = vst [vmem:[#allocation98_spill] sm:$0xff] %v21080_v35  ;;  %v9072_v35 = vadd.f32 %v20730_v11, %v20790_v8  ;;  %v22316_v11 = vld [vmem:[#allocation36_spill] sm:$0xff] }
 0x46f   : > { %v21082_v3 = vpop.f32.mrf.mxu1  ;;  %v7069_v8 = vadd.f32 %v22316_v11, %v22315_v46  ;;  %v7531_v10 = vadd.f32 %v20758_v60, %v7053_v9  ;;  %v9076_v9 = vadd.f32 %v20760_v15, %v20809_v56 }
 0x470   : > { %22302 = vst [vmem:[#allocation99_spill] sm:$0xff] %v21082_v3  ;;  %v21098_v3 = vpop.f32.mrf.mxu0  ;;  %v9435_v18 = vadd.f32 %v20962_v32, %v9072_v35  ;;  %v9438_v32 = vadd.f32 %v20966_v43, %v9075_v21  ;;  %v9073_v35 = vadd.f32 %v20749_v23, %v8599_v2  ;;  %v21133_v43 = vld [vmem:[%s21933_s4] ss:$0 sm:$0xff]  ;;  %v22320_v23 = vld [vmem:[#allocation58_spill] sm:$0xff] }
 0x471   : > { %v21086_v25 = vpop.f32.mrf.mxu1  ;;  %v7535_v30 = vadd.f32 %v20778_v16, %v7069_v8  ;;  %v7881_v2 = vadd.f32 %v22320_v23, %v20681_v28  ;;  %v9439_v15 = vadd.f32 %v20980_v61, %v9076_v9  ;;  %v22326_v23 = vld [vmem:[#allocation20_spill] sm:$0xff] }
 0x472   : > { %22304 = vst [vmem:[#allocation101_spill] sm:$0xff] %v21086_v25  ;;  %v7021_v25 = vadd.f32 %v22309_v14, %v22308_v29  ;;  %v7527_v14 = vadd.f32 %v20725_v19, %v7037_v39  ;;  %v21121_v20 = vpop.f32.mrf.mxu0  ;;  %v9436_v51 = vadd.f32 %v20968_v27, %v9073_v35  ;;  %v10165_v16 = vadd.f32 %v20964_v49, %v9435_v18 }
 0x473   : > { %v21092_v50 = vpop.f32.mrf.mxu1  ;;  %v10168_v49 = vadd.f32 %v20970_v38, %v9438_v32  ;;  %v10169_v35 = vadd.f32 %v21004_v4, %v9439_v15  ;;  %v22323_v4 = vld [vmem:[#allocation60_spill] sm:$0xff]  ;;  %v22332_v15 = vld [vmem:[#allocation63_spill] sm:$0xff] }
 0x474   : > { %22307 = vst [vmem:[#allocation57_spill] sm:$0xff] %v21092_v50  ;;  %v7523_v50 = vadd.f32 %v20702_v58, %v7021_v25  ;;  %v22319_v58 = vld [vmem:[#allocation55_spill] sm:$0xff]  ;;  %v9078_v25 = vadd.f32 %v20754_v31, %v20804_v59  ;;  %v21142_v31 = vadd.f32 %v20671_v53, %v7527_v14  ;;  %v21147_v46 = vpop.f32.mrf.mxu0  ;;  %v9079_v53 = vadd.f32 %v20765_v48, %v20814_v22 }
 0x475   : > { %v21104_v57 = vpop.f32.mrf.mxu1  ;;  %v7877_v19 = vadd.f32 %v22319_v58, %v20644_v47 }
 0x476   : > { %22312 = vst [vmem:[#allocation51_spill] sm:$0xff] %v21104_v57  ;;  %v7873_v57 = vadd.f32 %v22318_v1, %v22317_v24  ;;  %v7885_v47 = vadd.f32 %v20612_v13, %v7523_v50  ;;  %v9441_v59 = vadd.f32 %v20972_v44, %v9078_v25  ;;  %v21155_v13 = vadd.f32 %v20714_v26, %v7535_v30  ;;  %v21166_v8 = vpop.f32.mrf.mxu0 }
 0x477   : > { %v21115_v29 = vpop.f32.mrf.mxu1  ;;  %v8607_v38 = vadd.f32 %v20837_v0, %v7877_v19  ;;  %v9080_v0 = vadd.f32 %v20780_v45, %v20828_v5  ;;  %v22322_v19 = vld [vmem:[#allocation71_spill] sm:$0xff] }
 0x478   : > { %v8603_v33 = vadd.f32 %v20818_v12, %v7873_v57  ;;  %v21152_v12 = vadd.f32 %v20693_v37, %v7531_v10  ;;  %v10166_v57 = vadd.f32 %v20982_v17, %v9436_v51  ;;  %v9442_v37 = vadd.f32 %v20987_v36, %v9079_v53  ;;  %v21182_v45 = vpop.f32.mrf.mxu0  ;;  %v22331_v53 = vld [vmem:[#allocation54_spill] sm:$0xff] }
 0x479   : > { %v15759_v39 = vpop.f32.mrf.mxu1  ;;  %v10171_v11 = vadd.f32 %v20998_v55, %v9441_v59  ;;  %v9082_v17 = vadd.f32 %v20774_v42, %v20823_v7  ;;  %v9081_v10 = vadd.f32 %v20792_v34, %v8607_v38  ;;  %v22321_v7 = vld [vmem:[#allocation74_spill] sm:$0xff]  ;;  %v9086_v25 = vadd.f32 %v22323_v4, %v22322_v19 }
 0x47a   : > { %v10641_v60 = vadd.f32 %v15759_v39, %v10167_v62  ;;  %v9077_v18 = vadd.f32 %v20769_v52, %v8603_v33  ;;  %v9083_v52 = vadd.f32 %v20787_v63, %v20833_v40  ;;  %v8611_v62 = vadd.f32 %v20854_v54, %v7881_v2  ;;  %v22324_v54 = vld [vmem:[#allocation19_spill] sm:$0xff]  ;;  %v22325_v39 = vld [vmem:[#allocation61_spill] sm:$0xff]  ;;  %v22327_v34 = vld [vmem:[#allocation62_spill] sm:$0xff] }
 0x47b   : > { %v10512_v21 = vpop.f32.mrf.mxu1  ;;  %v10172_v30 = vadd.f32 %v22321_v7, %v9442_v37  ;;  %v9087_v2 = vadd.f32 %v22327_v34, %v22326_v23  ;;  %v22329_v33 = vld [vmem:[#allocation47_spill] sm:$0xff]  ;;  %v21199_v37 = vpop.f32.mrf.mxu0 }
 0x47c   : > { %v10680_v28 = vadd.f32 %v21133_v43, %v10641_v60  ;;  %v10639_v27 = vadd.f32 %v10512_v21, %v10165_v16  ;;  %v9440_v24 = vadd.f32 %v20996_v41, %v9077_v18  ;;  %v9445_v41 = vadd.f32 %v21000_v6, %v9082_v17  ;;  %v22328_v60 = vld [vmem:[#allocation77_spill] sm:$0xff]  ;;  %v22337_v17 = vld [vmem:[#allocation23_spill] sm:$0xff] }
 0x47d   : > { %v15760_v44 = vpop.f32.mrf.mxu1  ;;  %v9084_v6 = vadd.f32 %v22325_v39, %v22324_v54  ;;  %v9443_v59 = vadd.f32 %v22329_v33, %v9080_v0  ;;  %v22338_v0 = vld [vmem:[#allocation66_spill] sm:$0xff]  ;;  %v22346_v54 = vld [vmem:[#allocation88_spill] sm:$0xff]  ;;  %v21228_v23 = vpop.f32.mrf.mxu0 }
 0x47e   : > { %v10678_v56 = vadd.f32 %v21133_v43, %v10639_v27  ;;  %v10642_v50 = vadd.f32 %v15760_v44, %v10168_v49  ;;  %v10712_v48 = vmax.f32 %v10680_v28, 0.0  ;;  %v10170_v16 = vadd.f32 %v22328_v60, %v9440_v24  ;;  %v22330_v27 = vld [vmem:[#allocation28_spill] sm:$0xff] }
 0x47f   : > { %v10515_v26 = vpop.f32.mrf.mxu1  ;;  %v8615_v49 = vadd.f32 %v22330_v27, %v7885_v47  ;;  %v9446_v44 = vadd.f32 %v22331_v53, %v9083_v52  ;;  %v22336_v47 = vld [vmem:[#allocation64_spill] sm:$0xff]  ;;  %v21210_v52 = vadd.f32 %v22338_v0, %v22337_v17  ;;  %v22351_v27 = vld [vmem:[#allocation70_spill] sm:$0xff] }
 0x480   : > { %v10710_v22 = vmax.f32 %v10678_v56, 0.0  ;;  %v10681_v61 = vadd.f32 %v21133_v43, %v10642_v50  ;;  %v10640_v14 = vadd.f32 %v10515_v26, %v10166_v57  ;;  %v9085_v56 = vadd.f32 %v22332_v15, %v8611_v62  ;;  %v22333_v57 = vld [vmem:[#allocation82_spill] sm:$0xff] }
 0x481   : > { %v15763_v36 = vpop.f32.mrf.mxu1  ;;  %v10175_v38 = vadd.f32 %v22333_v57, %v9445_v41  ;;  %v10176_v39 = vadd.f32 %v22346_v54, %v9446_v44  ;;  %v22352_v44 = vld [vmem:[#allocation91_spill] sm:$0xff] }
 0x482   : > { %v10742_v55 = vmax.f32 %v10710_v22, %v10712_v48  ;;  %v10679_v1 = vadd.f32 %v21133_v43, %v10640_v14  ;;  %v10645_v32 = vadd.f32 %v15763_v36, %v10171_v11  ;;  %v10713_v63 = vmax.f32 %v10681_v61, 0.0  ;;  %v22334_v22 = vld [vmem:[#allocation73_spill] sm:$0xff]  ;;  %v22339_v36 = vld [vmem:[#allocation44_spill] sm:$0xff] }
 0x483   : > { %v10528_v42 = vpop.f32.mrf.mxu1  ;;  %v9444_v61 = vadd.f32 %v22334_v22, %v9081_v10  ;;  %v22335_v14 = vld [vmem:[#allocation17_spill] sm:$0xff] }
 0x484   : > { %10759 = vst.msk [vmem:[#allocation9] sm:$0xff] %vm10758_vm7, %v10742_v55  ;;  %v10711_v5 = vmax.f32 %v10679_v1, 0.0  ;;  %v10684_v40 = vadd.f32 %v21133_v43, %v10645_v32  ;;  %v10643_v58 = vadd.f32 %v10528_v42, %v10169_v35  ;;  %v21206_v24 = vadd.f32 %v22336_v47, %v22335_v14  ;;  %v22340_v55 = vld [vmem:[#allocation65_spill] sm:$0xff]  ;;  %v22356_v14 = vld [vmem:[#allocation72_spill] sm:$0xff] }
 0x485   : > { %v15764_v51 = vpop.f32.mrf.mxu1  ;;  %v21214_v1 = vadd.f32 %v22340_v55, %v22339_v36  ;;  %v22341_v42 = vld [vmem:[#allocation85_spill] sm:$0xff]  ;;  %v10174_v15 = vadd.f32 %v22352_v44, %v9444_v61 }
 0x486   : > { %v10743_v21 = vmax.f32 %v10711_v5, %v10713_v63  ;;  %v10682_v9 = vadd.f32 %v21133_v43, %v10643_v58  ;;  %v10646_v28 = vadd.f32 %v15764_v51, %v10172_v30  ;;  %v10716_v18 = vmax.f32 %v10684_v40, 0.0  ;;  %v22342_v10 = vld [vmem:[#allocation49_spill] sm:$0xff]  ;;  %v22343_v63 = vld [vmem:[#allocation68_spill] sm:$0xff]  ;;  %v22344_v40 = vld [vmem:[#allocation30_spill] sm:$0xff] }
 0x487   : > { %v10531_v50 = vpop.f32.mrf.mxu1  ;;  %v10173_v7 = vadd.f32 %v22341_v42, %v9443_v59  ;;  %v8619_v30 = vadd.f32 %v22342_v10, %v21142_v31  ;;  %v21221_v5 = vadd.f32 %v22343_v63, %v8615_v49  ;;  %v22345_v58 = vld [vmem:[#allocation67_spill] sm:$0xff]  ;;  %v22361_v63 = vld [vmem:[#allocation24_spill] sm:$0xff] }
 0x488   : > { %10760 = vst.msk [vmem:[#allocation9 + $0x8] sm:$0xff] %vm10758_vm7, %v10743_v21  ;;  %v10714_v26 = vmax.f32 %v10682_v9, 0.0  ;;  %v10685_v11 = vadd.f32 %v21133_v43, %v10646_v28  ;;  %v10644_v48 = vadd.f32 %v10531_v50, %v10170_v16  ;;  %v21225_v19 = vadd.f32 %v22345_v58, %v22344_v40  ;;  %v22347_v31 = vld [vmem:[#allocation75_spill] sm:$0xff]  ;;  %v22349_v21 = vld [vmem:[#allocation69_spill] sm:$0xff]  ;;  %v22350_v28 = vld [vmem:[#allocation26_spill] sm:$0xff] }
 0x489   : > { %v15767_v32 = vpop.f32.mrf.mxu1  ;;  %v9449_v33 = vadd.f32 %v22347_v31, %v9086_v25  ;;  %v22348_v59 = vld [vmem:[#allocation35_spill] sm:$0xff]  ;;  %v21239_v49 = vadd.f32 %v22351_v27, %v22350_v28  ;;  %v22353_v50 = vld [vmem:[#allocation76_spill] sm:$0xff]  ;;  %v21248_v47 = vadd.f32 %v22356_v14, %v8619_v30  ;;  %v22360_v30 = vld [vmem:[#allocation21_spill] sm:$0xff] }
 0x48a   : > { %v10744_v35 = vmax.f32 %v10714_v26, %v10716_v18  ;;  %v10683_v62 = vadd.f32 %v21133_v43, %v10644_v48  ;;  %v10649_v41 = vadd.f32 %v15767_v32, %v10175_v38  ;;  %v10717_v34 = vmax.f32 %v10685_v11, 0.0  ;;  %v22354_v11 = vld [vmem:[#allocation22_spill] sm:$0xff]  ;;  %v21250_v32 = vpop.f32.mrf.mxu0  ;;  %v10894_v31 = vld [vmem:[#allocation4 + $0xc] sm:$0x1]  ;;  %v22366_v28 = vld [vmem:[#allocation29_spill] sm:$0xff] }
 0x48b   : > { %v10544_v4 = vpop.f32.mrf.mxu1  ;;  %v21235_v9 = vadd.f32 %v22349_v21, %v22348_v59  ;;  %v9447_v57 = vadd.f32 %v22353_v50, %v9084_v6  ;;  %v8623_v25 = vadd.f32 %v22354_v11, %v21152_v12  ;;  %v22355_v48 = vld [vmem:[#allocation78_spill] sm:$0xff]  ;;  %v22357_v12 = vld [vmem:[#allocation81_spill] sm:$0xff]  ;;  %v21261_v40 = vadd.f32 %v22361_v63, %v22360_v30  ;;  %v22364_v59 = vld [vmem:[#allocation31_spill] sm:$0xff] }
 0x48c   : > { %10761 = vst.msk [vmem:[#allocation9 + $0x10] sm:$0xff] %vm10758_vm7, %v10744_v35  ;;  %v10715_v51 = vmax.f32 %v10683_v62, 0.0  ;;  %v10688_v60 = vadd.f32 %v21133_v43, %v10649_v41  ;;  %v10647_v16 = vadd.f32 %v10544_v4, %v10173_v7  ;;  %v9450_v22 = vadd.f32 %v22355_v48, %v9087_v2  ;;  %v10893_v41 = vld [vmem:[#allocation4 + $0x4] sm:$0x1]  ;;  %v22358_v2 = vld [vmem:[#allocation45_spill] sm:$0xff]  ;;  %v22359_v7 = vld [vmem:[#allocation18_spill] sm:$0xff]  ;;  %v21273_v50 = vpop.f32.mrf.mxu0 }
 0x48d   : > { %v15768_v53 = vpop.f32.mrf.mxu1  ;;  %v9448_v42 = vadd.f32 %v22357_v12, %v9085_v56  ;;  %v21257_v10 = vadd.f32 %v22359_v7, %v22358_v2  ;;  %v22362_v58 = vld [vmem:[#allocation94_spill] sm:$0xff]  ;;  %v22365_v56 = vld [vmem:[#allocation39_spill] sm:$0xff]  ;;  %v21271_v27 = vadd.f32 %v22366_v28, %v8623_v25 }
 0x48e   : > { %v10745_v38 = vmax.f32 %v10715_v51, %v10717_v34  ;;  %v10686_v18 = vadd.f32 %v21133_v43, %v10647_v16  ;;  %v10650_v26 = vadd.f32 %v15768_v53, %v10176_v39  ;;  %v10720_v36 = vmax.f32 %v10688_v60, 0.0  ;;  %v22363_v60 = vld [vmem:[#allocation97_spill] sm:$0xff]  ;;  %v22368_v11 = vld [vmem:[#allocation83_spill] sm:$0xff]  ;;  %v22372_v12 = vld [vmem:[#allocation42_spill] sm:$0xff] }
 0x48f   : > { %v10775_v17 = vld [vmem:[#allocation9] ss:$2 sm:$0xff]  ;;  %v10791_v0 = vld [vmem:[#allocation9 + $0x1] ss:$2 sm:$0xff]  ;;  %v10547_v55 = vpop.f32.mrf.mxu1  ;;  %v10179_v4 = vadd.f32 %v22362_v58, %v9449_v33  ;;  %v10177_v16 = vadd.f32 %v22363_v60, %v9447_v57  ;;  %v21268_v21 = vadd.f32 %v22365_v56, %v22364_v59  ;;  %v9453_v48 = vadd.f32 %v22368_v11, %v21206_v24 }
 0x490   : > { %v10806_v61 = vmax.f32 %v10775_v17, %v10791_v0  ;;  %10762 = vst.msk [vmem:[#allocation9 + $0x18] sm:$0xff] %vm10758_vm7, %v10745_v38  ;;  %v10718_v6 = vmax.f32 %v10686_v18, 0.0  ;;  %v10689_v35 = vadd.f32 %v21133_v43, %v10650_v26  ;;  %v10648_v62 = vadd.f32 %v10547_v55, %v10174_v15  ;;  %v22367_v18 = vld [vmem:[#allocation100_spill] sm:$0xff]  ;;  %v22373_v24 = vld [vmem:[#allocation34_spill] sm:$0xff]  ;;  %v22374_v7 = vld [vmem:[#allocation27_spill] sm:$0xff] }
 0x491   : > { %v15771_v54 = vpop.f32.mrf.mxu1  ;;  %v10911_v15 = vshll.u32 %v10893_v41, 16  ;;  %v10180_v26 = vadd.f32 %v22367_v18, %v9450_v22  ;;  %v10178_v17 = vadd.f32 %v21098_v3, %v9448_v42  ;;  %v10925_v0 = vshll.u32 %v10894_v31, 16  ;;  %v22371_v22 = vld [vmem:[#allocation41_spill] sm:$0xff] }
 0x492   : > { %v10853_v39 = vpack.c.bf16 %v10806_v61, %v10806_v61  ;;  %v10746_v34 = vmax.f32 %v10718_v6, %v10720_v36  ;;  %v10687_v51 = vadd.f32 %v21133_v43, %v10648_v62  ;;  %v10653_v53 = vadd.f32 %v15771_v54, %v10179_v4  ;;  %v22369_v36 = vld [vmem:[#allocation84_spill] sm:$0xff]  ;;  %v22370_v62 = vld [vmem:[#allocation86_spill] sm:$0xff] }
 0x493   : > { %v10560_v44 = vpop.f32.mrf.mxu1  ;;  %v10721_v33 = vmax.f32 %v10689_v35, 0.0  ;;  %v9451_v55 = vadd.f32 %v22369_v36, %v21210_v52  ;;  %v9454_v41 = vadd.f32 %v22370_v62, %v21214_v1  ;;  %v21289_v2 = vadd.f32 %v22372_v12, %v22371_v22  ;;  %v21295_v52 = vpop.f32.mrf.mxu0  ;;  %v22380_v12 = vld [vmem:[#allocation93_spill] sm:$0xff] }
 0x494   : > { %10763 = vst.msk [vmem:[#allocation9 + $0x20] sm:$0xff] %vm10758_vm7, %v10746_v34  ;;  %v10719_v38 = vmax.f32 %v10687_v51, 0.0  ;;  %v10651_v57 = vadd.f32 %v10560_v44, %v10177_v16  ;;  %v10692_v25 = vadd.f32 %v21133_v43, %v10653_v53  ;;  %v21293_v30 = vadd.f32 %v22374_v7, %v22373_v24  ;;  %v22375_v34 = vld [vmem:[#allocation87_spill] sm:$0xff] }
 0x495   : > { %10861 = vst.msk [vmem:[#allocation4] sm:$0xf] %vm10814_vm6, %v10853_v39  ;;  %v15772_v14 = vpop.f32.mrf.mxu1  ;;  %v9452_v51 = vadd.f32 %v22375_v34, %v21221_v5  ;;  %v10183_v60 = vadd.f32 %v21121_v20, %v9453_v48  ;;  %v21302_v31 = vrot.slane %v10911_v15, 5  ;;  %v21304_v59 = vrot.slane %v10925_v0, 5  ;;  %v21313_v15 = vpop.f32.mrf.mxu0 }
 0x496   : > { %v10747_v61 = vmax.f32 %v10719_v38, %v10721_v33  ;;  %v10690_v6 = vadd.f32 %v21133_v43, %v10651_v57  ;;  %v10654_v35 = vadd.f32 %v15772_v14, %v10180_v26  ;;  %v10724_v63 = vmax.f32 %v10692_v25, 0.0  ;;  %v22376_v33 = vld [vmem:[#allocation89_spill] sm:$0xff] }
 0x497   : > { %v10777_v3 = vld [vmem:[#allocation9 + $0x10] ss:$2 sm:$0xff]  ;;  %v10793_v42 = vld [vmem:[#allocation9 + $0x11] ss:$2 sm:$0xff]  ;;  %v10563_v58 = vpop.f32.mrf.mxu1  ;;  %v10181_v44 = vadd.f32 %v21147_v46, %v9451_v55  ;;  %v9457_v38 = vadd.f32 %v22376_v33, %v21225_v19  ;;  %v10184_v5 = vadd.f32 %v21166_v8, %v9454_v41  ;;  %v10182_v55 = vadd.f32 %v21182_v45, %v9452_v51  ;;  %v22379_v41 = vld [vmem:[#allocation43_spill] sm:$0xff] }
 0x498   : > { %v10807_v4 = vmax.f32 %v10777_v3, %v10793_v42  ;;  %10764 = vst.msk [vmem:[#allocation9 + $0x28] sm:$0xff] %vm10758_vm7, %v10747_v61  ;;  %v10722_v54 = vmax.f32 %v10690_v6, 0.0  ;;  %v10693_v1 = vadd.f32 %v21133_v43, %v10654_v35  ;;  %v10652_v39 = vadd.f32 %v10563_v58, %v10178_v17  ;;  %v22377_v19 = vld [vmem:[#allocation90_spill] sm:$0xff]  ;;  %v22378_v17 = vld [vmem:[#allocation92_spill] sm:$0xff]  ;;  %v22381_v51 = vld [vmem:[#allocation95_spill] sm:$0xff] }
 0x499   : > { %v15775_v16 = vpop.f32.mrf.mxu1  ;;  %v9455_v14 = vadd.f32 %v22377_v19, %v21235_v9  ;;  %v9458_v8 = vadd.f32 %v22378_v17, %v21239_v49  ;;  %v21328_v22 = vadd.f32 %v22379_v41, %v21155_v13  ;;  %v9456_v9 = vadd.f32 %v22380_v12, %v21248_v47 }
 0x49a   : > { %v10854_v56 = vpack.c.bf16 %v10807_v4, %v10807_v4  ;;  %v10748_v28 = vmax.f32 %v10722_v54, %v10724_v63  ;;  %v10691_v53 = vadd.f32 %v21133_v43, %v10652_v39  ;;  %v10725_v57 = vmax.f32 %v10693_v1, 0.0  ;;  %v15750_v63 = vpop.f32.mrf.mxu0 }
 0x49b   : > { %v10657_v18 = vadd.f32 %v15775_v16, %v10183_v60  ;;  %v10576_v26 = vpop.f32.mrf.mxu1  ;;  %v10187_v1 = vadd.f32 %v21199_v37, %v9457_v38  ;;  %v10185_v39 = vadd.f32 %v21228_v23, %v9455_v14  ;;  %v10188_v47 = vadd.f32 %v21250_v32, %v9458_v8 }
 0x49c   : > { %v21311_v20 = vld [vmem:[#allocation4] sm:$0xf]  ;;  %10862 = vst.msk [vmem:[#allocation4 + $0x8] sm:$0xf] %vm10814_vm6, %v10854_v56  ;;  %v10723_v11 = vmax.f32 %v10691_v53, 0.0  ;;  %v10655_v48 = vadd.f32 %v10576_v26, %v10181_v44  ;;  %v9461_v60 = vadd.f32 %v22381_v51, %v21257_v10  ;;  %v22382_v53 = vld [vmem:[#allocation96_spill] sm:$0xff]  ;;  %v10186_v38 = vadd.f32 %v21273_v50, %v9456_v9  ;;  %v10137_v23 = vpop.f32.mrf.mxu0 }
 0x49d   : > { %10765 = vst.msk [vmem:[#allocation9 + $0x30] sm:$0xff] %vm10758_vm7, %v10748_v28  ;;  %v10902_v46 = vshrl.u32 %v21311_v20, 16  ;;  %v10905_v25 = vshll.u32 %v21311_v20, 16  ;;  %v10696_v0 = vadd.f32 %v21133_v43, %v10657_v18  ;;  %v15776_v36 = vpop.f32.mrf.mxu1  ;;  %v9459_v44 = vadd.f32 %v22382_v53, %v21261_v40  ;;  %v14713_v53 = vld [vmem:[%s21935_s6 + $0x2] ss:$0 sm:$0xff] }
 0x49e   : > { %v10749_v61 = vmax.f32 %v10723_v11, %v10725_v57  ;;  %v10694_v6 = vadd.f32 %v21133_v43, %v10655_v48  ;;  %v10658_v35 = vadd.f32 %v15776_v36, %v10184_v5  ;;  %v22383_v11 = vld [vmem:[#allocation98_spill] sm:$0xff]  ;;  %v21349_v14 = vpop.f32.mrf.mxu0  ;;  %v22384_v36 = vld [vmem:[#allocation99_spill] sm:$0xff] }
 0x49f   : > { %v10904_v62 = vrot.slane %v10902_v46, 4  ;;  %v10779_v24 = vld [vmem:[#allocation9 + $0x20] ss:$2 sm:$0xff]  ;;  %v10795_v7 = vld [vmem:[#allocation9 + $0x21] ss:$2 sm:$0xff]  ;;  %v10728_v49 = vmax.f32 %v10696_v0, 0.0  ;;  %v10579_v3 = vpop.f32.mrf.mxu1  ;;  %v9462_v48 = vadd.f32 %v22383_v11, %v21268_v21 }
 0x4a0   : > { %v10907_v42 = vrot.slane %v10905_v25, 5  ;;  %v10808_v58 = vmax.f32 %v10779_v24, %v10795_v7  ;;  %10766 = vst.msk [vmem:[#allocation9 + $0x38] sm:$0xff] %vm10758_vm7, %v10749_v61  ;;  %v10726_v45 = vmax.f32 %v10694_v6, 0.0  ;;  %v10697_v4 = vadd.f32 %v21133_v43, %v10658_v35  ;;  %v22385_v61 = vld [vmem:[#allocation25_spill] sm:$0xff] }
 0x4a1   : > { %v10656_v54 = vadd.f32 %v10579_v3, %v10182_v55  ;;  %v15779_v13 = vpop.f32.mrf.mxu1  ;;  %v9460_v55 = vadd.f32 %v22384_v36, %v21271_v27  ;;  %v22386_v6 = vld [vmem:[#allocation37_spill] sm:$0xff]  ;;  %v10191_v3 = vadd.f32 %v21295_v52, %v9461_v60 }
 0x4a2   : > { %v10908_v34 = vor.u32 %v10907_v42, %v10904_v62  ;;  %v10855_v16 = vpack.c.bf16 %v10808_v58, %v10808_v58  ;;  %v10750_v56 = vmax.f32 %v10726_v45, %v10728_v49  ;;  %v10729_v33 = vmax.f32 %v10697_v4, 0.0  ;;  %v22387_v4 = vld [vmem:[#allocation101_spill] sm:$0xff] }
 0x4a3   : > { %v10695_v28 = vadd.f32 %v21133_v43, %v10656_v54  ;;  %v10661_v57 = vadd.f32 %v15779_v13, %v10187_v1  ;;  %v10592_v18 = vpop.f32.mrf.mxu1  ;;  %v10886_v37 = vld [vmem:[#allocation4 + $0x8] sm:$0xf]  ;;  %v9103_v35 = vadd.f32 %v22386_v6, %v22385_v61  ;;  %v10189_v42 = vadd.f32 %v21313_v15, %v9459_v44  ;;  %v10150_v1 = vpop.f32.mrf.mxu0 }
 0x4a4   : > { %10863 = vst.msk [vmem:[#allocation4 + $0x10] sm:$0xf] %vm10814_vm6, %v10855_v16  ;;  %v10659_v10 = vadd.f32 %v10592_v18, %v10185_v39  ;;  %v10916_v26 = vshrl.u32 %v10886_v37, 16  ;;  %v10919_v5 = vshll.u32 %v10886_v37, 16  ;;  %v14587_v25 = vcombine.low %v21311_v20, %v10886_v37 }
 0x4a5   : > { %10767 = vst.msk [vmem:[#allocation9 + $0x40] sm:$0xff] %vm10758_vm7, %v10750_v56  ;;  %v10727_v32 = vmax.f32 %v10695_v28, 0.0  ;;  %v10700_v40 = vadd.f32 %v21133_v43, %v10661_v57  ;;  %v15780_v46 = vpop.f32.mrf.mxu1  ;;  %v10909_v19 = vrot.slane %v10908_v34, 4  ;;  %v10192_v58 = vadd.f32 %v15750_v63, %v9462_v48  ;;  %v22388_v34 = vld [vmem:[#allocation57_spill] sm:$0xff]  ;;  %v22391_v48 = vld [vmem:[#allocation40_spill] sm:$0xff] }
 0x4a6   : > { %v10698_v17 = vadd.f32 %v21133_v43, %v10659_v10  ;;  %v10662_v8 = vadd.f32 %v15780_v46, %v10188_v47  ;;  %v10918_v0 = vrot.slane %v10916_v26, 4  ;;  %v10921_v12 = vrot.slane %v10919_v5, 5  ;;  %15805 = vmatprep.mubr.msk.bf16.mxu1 %vm10758_vm7, %v14587_v25 }
 0x4a7   : > { %v10751_v50 = vmax.f32 %v10727_v32, %v10729_v33  ;;  %v10781_v21 = vld [vmem:[#allocation9 + $0x30] ss:$2 sm:$0xff]  ;;  %v10797_v62 = vld [vmem:[#allocation9 + $0x31] ss:$2 sm:$0xff]  ;;  %v10732_v41 = vmax.f32 %v10700_v40, 0.0  ;;  %v10595_v20 = vpop.f32.mrf.mxu1  ;;  %v9465_v54 = vadd.f32 %v22387_v4, %v21289_v2  ;;  %v9463_v51 = vadd.f32 %v22388_v34, %v21293_v30 }
 0x4a8   : > { %v10809_v9 = vmax.f32 %v10781_v21, %v10797_v62  ;;  %v10730_v24 = vmax.f32 %v10698_v17, 0.0  ;;  %v10701_v7 = vadd.f32 %v21133_v43, %v10662_v8  ;;  %v10660_v49 = vadd.f32 %v10595_v20, %v10186_v38  ;;  %v21373_v33 = vld [vmem:[#allocation4 + $0x14] sm:$0x1] }
 0x4a9   : > { %10768 = vst.msk [vmem:[#allocation9 + $0x48] sm:$0xff] %vm10758_vm7, %v10751_v50  ;;  %v15783_v27 = vpop.f32.mrf.mxu1  ;;  %v10922_v45 = vor.u32 %v10921_v12, %v10918_v0  ;;  %v10190_v28 = vadd.f32 %v10137_v23, %v9460_v55  ;;  %v10914_v44 = vsel %vm16509_vm10, %v10909_v19, %v21302_v31  ;;  %v15754_v23 = vpop.f32.mrf.mxu0  ;;  %v22390_v31 = vld [vmem:[#allocation51_spill] sm:$0xff]  ;;  %v9101_v40 = vadd.f32 %v22391_v48, %v21328_v22  ;;  %v10896_v55 = vld [vmem:[#allocation4 + $0x1c] sm:$0x1] }
 0x4aa   : > { %v10856_v13 = vpack.c.bf16 %v10809_v9, %v10809_v9  ;;  %v10752_v39 = vmax.f32 %v10730_v24, %v10732_v41  ;;  %v10699_v47 = vadd.f32 %v21133_v43, %v10660_v49  ;;  %v10665_v16 = vadd.f32 %v15783_v27, %v10191_v3 }
 0x4ab   : > { %v10608_v56 = vpop.f32.mrf.mxu1  ;;  %v10923_v52 = vrot.slane %v10922_v45, 4  ;;  %v21366_v60 = vld [vmem:[#allocation4 + $0x10] sm:$0xf]  ;;  %v10733_v15 = vmax.f32 %v10701_v7, 0.0  ;;  %v9466_v11 = vadd.f32 %v22390_v31, %v9103_v35  ;;  %v10195_v61 = vadd.f32 %v21349_v14, %v9465_v54  ;;  %v10153_v41 = vpop.f32.mrf.mxu0  ;;  %v10898_v31 = vld [vmem:[#allocation4 + $0x2c] sm:$0x1] }
 0x4ac   : > { %10864 = vst.msk [vmem:[#allocation4 + $0x18] sm:$0xf] %vm10814_vm6, %v10856_v13  ;;  %v10731_v2 = vmax.f32 %v10699_v47, 0.0  ;;  %v10663_v63 = vadd.f32 %v10608_v56, %v10189_v42  ;;  %v10704_v30 = vadd.f32 %v21133_v43, %v10665_v16  ;;  %v10930_v37 = vshrl.u32 %v21366_v60, 16  ;;  %v16109_v47 = vld [vmem:[%s21934_s5 + $0x30] sm:$0xff]  }
 0x4ad   : > { %10769 = vst.msk [vmem:[#allocation9 + $0x50] sm:$0xff] %vm10758_vm7, %v10752_v39  ;;  %v15784_v57 = vpop.f32.mrf.mxu1  ;;  %v10928_v18 = vsel %vm16509_vm10, %v10923_v52, %v21304_v59  ;;  %v10933_v38 = vshll.u32 %v21366_v60, 16  ;;  %v10939_v59 = vshll.u32 %v21373_v33, 16  ;;  %v9464_v22 = vadd.f32 %v21115_v29, %v9101_v40 }
 0x4ae   : > { %v10753_v32 = vmax.f32 %v10731_v2, %v10733_v15  ;;  %v10702_v10 = vadd.f32 %v21133_v43, %v10663_v63  ;;  %v10666_v26 = vadd.f32 %v15784_v57, %v10192_v58  ;;  %v14577_v5 = vcombine.low %v10914_v44, %v10928_v18  ;;  %v22392_v57 = vld [vmem:[#allocation80_spill] sm:$0xff] }
 0x4af   : > { %v10736_v19 = vmax.f32 %v10704_v30, 0.0  ;;  %v10611_v50 = vpop.f32.mrf.mxu1  ;;  %v10932_v35 = vrot.slane %v10930_v37, 4  ;;  %v10935_v21 = vrot.slane %v10933_v38, 5  ;;  %v10193_v62 = vadd.f32 %v10150_v1, %v9463_v51 }
 0x4b0   : > { %v10783_v46 = vld [vmem:[#allocation9 + $0x40] ss:$2 sm:$0xff]  ;;  %v10799_v25 = vld [vmem:[#allocation9 + $0x41] ss:$2 sm:$0xff]  ;;  %10770 = vst.msk [vmem:[#allocation9 + $0x58] sm:$0xff] %vm10758_vm7, %v10753_v32  ;;  %v10734_v8 = vmax.f32 %v10702_v10, 0.0  ;;  %v10705_v0 = vadd.f32 %v21133_v43, %v10666_v26  ;;  %v10664_v36 = vadd.f32 %v10611_v50, %v10190_v28  ;;  %15793 = vmatprep.mubr.msk.bf16.mxu0 %vm10758_vm7, %v14577_v5  ;;  %v10196_v24 = vadd.f32 %v15754_v23, %v9466_v11 }
 0x4b1   : > { %v10810_v17 = vmax.f32 %v10783_v46, %v10799_v25  ;;  %v15787_v6 = vpop.f32.mrf.mxu1  ;;  %v10953_v42 = vshll.u32 %v10896_v55, 16  ;;  %v10194_v4 = vadd.f32 %v10153_v41, %v9464_v22  ;;  %v10936_v39 = vor.u32 %v10935_v21, %v10932_v35  ;;  %v10897_v5 = vld [vmem:[#allocation4 + $0x24] sm:$0x1]  ;;  %v11350_v11 = vld [vmem:[#allocation4 + $0xc] sm:$0x1] }
 0x4b2   : > { %v10754_v20 = vmax.f32 %v10734_v8, %v10736_v19  ;;  %v10703_v9 = vadd.f32 %v21133_v43, %v10664_v36  ;;  %v10737_v7 = vmax.f32 %v10705_v0, 0.0  ;;  %v10669_v49 = vadd.f32 %v15787_v6, %v10195_v61  ;;  %v11352_v46 = vld [vmem:[#allocation4 + $0x14] sm:$0x1]  ;;  %v21414_v55 = vld [vmem:[#allocation4 + $0x1c] sm:$0x1] }
 0x4b3   : > { %v10857_v12 = vpack.c.bf16 %v10810_v17, %v10810_v17  ;;  %v10624_v3 = vpop.f32.mrf.mxu1  ;;  %v10888_v27 = vld [vmem:[#allocation4 + $0x18] sm:$0xf]  ;;  %v10937_v18 = vrot.slane %v10936_v39, 4  ;;  %v10941_v37 = vrot.slane %v10939_v59, 5  ;;  %v10955_v23 = vrot.slane %v10953_v42, 5  ;;  %v16110_v17 = vld [vmem:[%s21934_s5 + $0x20] sm:$0xff]  }
 0x4b4   : > { %10771 = vst.msk [vmem:[#allocation9 + $0x60] sm:$0xff] %vm10758_vm7, %v10754_v20  ;;  %v10735_v29 = vmax.f32 %v10703_v9, 0.0  ;;  %v10667_v14 = vadd.f32 %v10624_v3, %v10193_v62  ;;  %v10944_v58 = vshrl.u32 %v10888_v27, 16  ;;  %v10947_v45 = vshll.u32 %v10888_v27, 16  ;;  %v21416_v61 = vld [vmem:[#allocation4 + $0x24] sm:$0x1] }
 0x4b5   : > { %10865 = vst.msk [vmem:[#allocation4 + $0x20] sm:$0xf] %vm10814_vm6, %v10857_v12  ;;  %v10708_v54 = vadd.f32 %v21133_v43, %v10669_v49  ;;  %v15788_v1 = vpop.f32.mrf.mxu1  ;;  %v14588_v13 = vcombine.low %v21366_v60, %v10888_v27  ;;  %v10967_v0 = vshll.u32 %v10897_v5, 16  ;;  %v10981_v36 = vshll.u32 %v10898_v31, 16  ;;  %v11349_v35 = vld [vmem:[#allocation4 + $0x8] sm:$0xf] }
 0x4b6   : > { %v10755_v34 = vmax.f32 %v10735_v29, %v10737_v7  ;;  %v10706_v51 = vadd.f32 %v21133_v43, %v10667_v14  ;;  %v10670_v16 = vadd.f32 %v15788_v1, %v10196_v24  ;;  %v10946_v56 = vrot.slane %v10944_v58, 4  ;;  %v11351_v21 = vld [vmem:[#allocation4 + $0x10] sm:$0xf]  ;;  %v11363_v27 = vld [vmem:[#allocation4 + $0x40] sm:$0xf] }
 0x4b7   : > { %v10785_v28 = vld [vmem:[#allocation9 + $0x50] ss:$2 sm:$0xff]  ;;  %v10801_v52 = vld [vmem:[#allocation9 + $0x51] ss:$2 sm:$0xff]  ;;  %v10740_v15 = vmax.f32 %v10708_v54, 0.0  ;;  %v10949_v2 = vrot.slane %v10947_v45, 5  ;;  %15806 = vmatmul.mubr.msk.bf16.vlgmr.msra.gmra.mxu1 %vm10758_vm7, %v14588_v13  ;;  %v10627_v63 = vpop.f32.mrf.mxu1 }
 0x4b8   : > { %v10811_v44 = vmax.f32 %v10785_v28, %v10801_v52  ;;  %10772 = vst.msk [vmem:[#allocation9 + $0x68] sm:$0xff] %vm10758_vm7, %v10755_v34  ;;  %v10738_v60 = vmax.f32 %v10706_v51, 0.0  ;;  %v10709_v33 = vadd.f32 %v21133_v43, %v10670_v16  ;;  %v10668_v30 = vadd.f32 %v10627_v63, %v10194_v4  ;;  %15826 = vmatpush3.bf16.msra.mxu1 %v22392_v57  ;;  %v22393_v42 = vld [vmem:[#allocation79_spill] sm:$0xff]  ;;  %v21427_v51 = vld [vmem:[#allocation4 + $0x2c] sm:$0x1] }
 0x4b9   : > { %v10950_v38 = vor.u32 %v10949_v2, %v10946_v56  ;;  %15827 = vmatprep.subr.bf16.mxu1 %v16109_v47  ;;  %v11375_v62 = vshll.u32 %v11350_v11, 16  ;;  %v11389_v41 = vshll.u32 %v11352_v46, 16  ;;  %v11403_v49 = vshll.u32 %v21414_v55, 16  ;;  %v11353_v57 = vld [vmem:[#allocation4 + $0x18] sm:$0xf] }
 0x4ba   : > { %v10858_v32 = vpack.c.bf16 %v10811_v44, %v10811_v44  ;;  %v10756_v10 = vmax.f32 %v10738_v60, %v10740_v15  ;;  %v10707_v26 = vadd.f32 %v21133_v43, %v10668_v30  ;;  %v10741_v25 = vmax.f32 %v10709_v33, 0.0 }
 0x4bb   : > { %v10951_v48 = vrot.slane %v10950_v38, 4  ;;  %v10942_v43 = vsel %vm16509_vm10, %v10937_v18, %v10941_v37  ;;  %v11417_v3 = vshll.u32 %v21416_v61, 16  ;;  %v11366_v29 = vshrl.u32 %v11349_v35, 16 }
 0x4bc   : > { %v10889_v40 = vld [vmem:[#allocation4 + $0x20] sm:$0xf]  ;;  %10866 = vst.msk [vmem:[#allocation4 + $0x28] sm:$0xf] %vm10814_vm6, %v10858_v32  ;;  %v10739_v19 = vmax.f32 %v10707_v26, 0.0  ;;  %15828 = vmatpush3.bf16.msra.mxu1 %v16109_v47  ;;  %v11369_v14 = vshll.u32 %v11349_v35, 16 }
 0x4bd   : > { %10773 = vst.msk [vmem:[#allocation9 + $0x70] sm:$0xff] %vm10758_vm7, %v10756_v10  ;;  %v10958_v50 = vshrl.u32 %v10889_v40, 16  ;;  %v10961_v59 = vshll.u32 %v10889_v40, 16  ;;  %v10956_v8 = vsel %vm16509_vm10, %v10951_v48, %v10955_v23  ;;  %v11380_v58 = vshrl.u32 %v11351_v21, 16  ;;  %v11355_v18 = vld [vmem:[#allocation4 + $0x20] sm:$0xf] }
 0x4be   : > { %v10757_v22 = vmax.f32 %v10739_v19, %v10741_v25  ;;  %v14578_v6 = vcombine.low %v10942_v43, %v10956_v8  ;;  %v11383_v45 = vshll.u32 %v11351_v21, 16  ;;  %v10969_v54 = vrot.slane %v10967_v0, 5 }
 0x4bf   : > { %v10787_v12 = vld [vmem:[#allocation9 + $0x60] ss:$2 sm:$0xff]  ;;  %v10803_v20 = vld [vmem:[#allocation9 + $0x61] ss:$2 sm:$0xff]  ;;  %v10960_v9 = vrot.slane %v10958_v50, 4  ;;  %v10963_v24 = vrot.slane %v10961_v59, 5 }
 0x4c0   : > { %v10812_v7 = vmax.f32 %v10787_v12, %v10803_v20  ;;  %10774 = vst.msk [vmem:[#allocation9 + $0x78] sm:$0xff] %vm10758_vm7, %v10757_v22  ;;  %15794 = vmatmul.mubr.msk.bf16.vlgmr.msra.gmra.mxu0 %vm10758_vm7, %v14578_v6  ;;  %v10983_v1 = vrot.slane %v10981_v36, 5  ;;  %v21423_v13 = vrot.slane %v11375_v62, 5  ;;  %v21425_v34 = vrot.slane %v11389_v41, 5 }
 0x4c1   : > { %15814 = vmatpush3.bf16.msra.mxu0 %v22393_v42  ;;  %v10964_v47 = vor.u32 %v10963_v24, %v10960_v9  ;;  %v11464_v16 = vshrl.u32 %v11363_v27, 16  ;;  %v11467_v15 = vshll.u32 %v11363_v27, 16  ;;  %v11368_v2 = vrot.slane %v11366_v29, 4  ;;  %v10899_v9 = vld [vmem:[#allocation4 + $0x34] sm:$0x1] }
 0x4c2   : > { %v10859_v4 = vpack.c.bf16 %v10812_v7, %v10812_v7  ;;  %15815 = vmatprep.subr.bf16.mxu0 %v16110_v17  ;;  %v11371_v63 = vrot.slane %v11369_v14, 5  ;;  %v11382_v44 = vrot.slane %v11380_v58, 4  ;;  %v11385_v60 = vrot.slane %v11383_v45, 5  ;;  %v10900_v29 = vld [vmem:[#allocation4 + $0x3c] sm:$0x1] }
 0x4c3   : > { %v10890_v39 = vld [vmem:[#allocation4 + $0x28] sm:$0xf]  ;;  %v10965_v23 = vrot.slane %v10964_v47, 4  ;;  %v11431_v32 = vshll.u32 %v21427_v51, 16  ;;  %v21432_v31 = vrot.slane %v11464_v16, 4  ;;  %v21434_v11 = vrot.slane %v11467_v15, 5 }
 0x4c4   : > { %10867 = vst.msk [vmem:[#allocation4 + $0x30] sm:$0xf] %vm10814_vm6, %v10859_v4  ;;  %v10972_v56 = vshrl.u32 %v10890_v39, 16  ;;  %v10975_v28 = vshll.u32 %v10890_v39, 16  ;;  %v14589_v52 = vcombine.low %v10889_v40, %v10890_v39  ;;  %v11357_v5 = vld [vmem:[#allocation4 + $0x28] sm:$0xf]  ;;  %v11372_v48 = vor.u32 %v11371_v63, %v11368_v2 }
 0x4c5   : > { %15816 = vmatpush3.bf16.msra.mxu0 %v16110_v17  ;;  %v11386_v40 = vor.u32 %v11385_v60, %v11382_v44  ;;  %v11408_v46 = vshrl.u32 %v11355_v18, 16  ;;  %v11411_v25 = vshll.u32 %v11355_v18, 16  ;;  %v11394_v59 = vshrl.u32 %v11353_v57, 16  ;;  %v11360_v45 = vld [vmem:[#allocation4 + $0x34] sm:$0x1] }
 0x4c6   : > { %v10974_v33 = vrot.slane %v10972_v56, 4  ;;  %v10977_v30 = vrot.slane %v10975_v28, 5  ;;  %15809 = vmatprep.mubr.msk.bf16.mxu1 %vm10758_vm7, %v14589_v52  ;;  %v11397_v17 = vshll.u32 %v11353_v57, 16  ;;  %v10970_v43 = vsel %vm16509_vm10, %v10965_v23, %v10969_v54  ;;  %v11362_v56 = vld [vmem:[#allocation4 + $0x3c] sm:$0x1] }
 0x4c7   : > { %v10789_v37 = vld [vmem:[#allocation9 + $0x70] ss:$2 sm:$0xff]  ;;  %v10805_v38 = vld [vmem:[#allocation9 + $0x71] ss:$2 sm:$0xff]  ;;  %v11422_v36 = vshrl.u32 %v11357_v5, 16  ;;  %v11425_v22 = vshll.u32 %v11357_v5, 16  ;;  %v11470_v2 = vor.u32 %v21434_v11, %v21432_v31 }
 0x4c8   : > { %v10813_v10 = vmax.f32 %v10789_v37, %v10805_v38  ;;  %v10978_v26 = vor.u32 %v10977_v30, %v10974_v33  ;;  %v11410_v12 = vrot.slane %v11408_v46, 4  ;;  %v11413_v20 = vrot.slane %v11411_v25, 5 }
 0x4c9   : > { %v11373_v7 = vrot.slane %v11372_v48, 4  ;;  %v11387_v27 = vrot.slane %v11386_v40, 4  ;;  %v11396_v42 = vrot.slane %v11394_v59, 4  ;;  %v11399_v58 = vrot.slane %v11397_v17, 5  ;;  %v11364_v40 = vld [vmem:[#allocation4 + $0x44] sm:$0x1] }
 0x4ca   : > { %v10860_v19 = vpack.c.bf16 %v10813_v10, %v10813_v10  ;;  %v10979_v50 = vrot.slane %v10978_v26, 4  ;;  %v11424_v4 = vrot.slane %v11422_v36, 4  ;;  %v11427_v54 = vrot.slane %v11425_v22, 5 }
 0x4cb   : > { %v10891_v8 = vld [vmem:[#allocation4 + $0x30] sm:$0xf]  ;;  %v11405_v51 = vrot.slane %v11403_v49, 5  ;;  %v11419_v16 = vrot.slane %v11417_v3, 5  ;;  %v11414_v28 = vor.u32 %v11413_v20, %v11410_v12  ;;  %v10995_v52 = vshll.u32 %v10899_v9, 16 }
 0x4cc   : > { %v11359_v0 = vld [vmem:[#allocation4 + $0x30] sm:$0xf]  ;;  %10868 = vst.msk [vmem:[#allocation4 + $0x38] sm:$0xf] %vm10814_vm6, %v10860_v19  ;;  %v10984_v6 = vsel %vm16509_vm10, %v10979_v50, %v10983_v1  ;;  %v10986_v35 = vshrl.u32 %v10891_v8, 16  ;;  %v10989_v21 = vshll.u32 %v10891_v8, 16  ;;  %v11392_v63 = vsel %vm16509_vm10, %v11387_v27, %v21425_v34 }
 0x4cd   : > { %v11436_v62 = vshrl.u32 %v11359_v0, 16  ;;  %v14579_v41 = vcombine.low %v10970_v43, %v10984_v6  ;;  %v11439_v24 = vshll.u32 %v11359_v0, 16  ;;  %v11433_v15 = vrot.slane %v11431_v32, 5 }
 0x4ce   : > { %v10988_v39 = vrot.slane %v10986_v35, 4  ;;  %v10991_v47 = vrot.slane %v10989_v21, 5  ;;  %v11009_v44 = vshll.u32 %v10900_v29, 16  ;;  %v11445_v33 = vshll.u32 %v11360_v45, 16  ;;  %v16111_v29 = vld [vmem:[#allocation4 + $0x8] ss:$8 sps:$4 sm:$0xff]  }
 0x4cf   : > { %v11438_v14 = vrot.slane %v11436_v62, 4  ;;  %15797 = vmatprep.mubr.msk.bf16.mxu0 %vm10758_vm7, %v14579_v41  ;;  %v11441_v1 = vrot.slane %v11439_v24, 5  ;;  %v11378_v55 = vsel %vm16509_vm10, %v11373_v7, %v21423_v13  ;;  %v11400_v61 = vor.u32 %v11399_v58, %v11396_v42 }
 0x4d0   : > { %v11428_v49 = vor.u32 %v11427_v54, %v11424_v4  ;;  %v11459_v57 = vshll.u32 %v11362_v56, 16  ;;  %v10992_v23 = vor.u32 %v10991_v47, %v10988_v39  ;;  %v14607_v32 = vcombine.low %v11378_v55, %v11392_v63  ;;  %v16112_v4 = vld [vmem:[#allocation4 + $0x18] ss:$8 sps:$4 sm:$0xff]   ;;  %v16113_v54 = vld [vmem:[#allocation4 + $0x28] ss:$8 sps:$4 sm:$0xff]  }
 0x4d1   : > { %v11442_v60 = vor.u32 %v11441_v1, %v11438_v14  ;;  %v11415_v10 = vrot.slane %v11414_v28, 4  ;;  %v11447_v48 = vrot.slane %v11445_v33, 5  ;;  %v11401_v13 = vrot.slane %v11400_v61, 4  ;;  %v16115_v39 = vld [vmem:[%s21934_s5 + $0x58] sm:$0xff]   ;;  %v16116_v47 = vld [vmem:[%s21934_s5 + $0x48] sm:$0xff]  }
 0x4d2   : > { %v10997_v46 = vrot.slane %v10995_v52, 5  ;;  %v10993_v50 = vrot.slane %v10992_v23, 4  ;;  %v11011_v17 = vrot.slane %v11009_v44, 5  ;;  %v11429_v43 = vrot.slane %v11428_v49, 4  ;;  %15837 = vmatprep.subr.bf16.mxu0 %v16115_v39  ;;  %15849 = vmatprep.subr.bf16.mxu1 %v16116_v47  ;;  %v11610_v56 = vld [vmem:[#allocation5 + $0x4] sm:$0x1] }
 0x4d3   : > { %v10892_v30 = vld [vmem:[#allocation4 + $0x38] sm:$0xf]  ;;  %v11443_v11 = vrot.slane %v11442_v60, 4  ;;  %v11473_v36 = vshll.u32 %v11364_v40, 16  ;;  %v11406_v35 = vsel %vm16509_vm10, %v11401_v13, %v11405_v51  ;;  %v11461_v21 = vrot.slane %v11459_v57, 5  ;;  %v16117_v51 = vld [vmem:[%s21934_s5 + $0x40] sm:$0xff]  }
 0x4d4   : > { %v11361_v3 = vld [vmem:[#allocation4 + $0x38] sm:$0xf]  ;;  %v11000_v18 = vshrl.u32 %v10892_v30, 16  ;;  %v11003_v37 = vshll.u32 %v10892_v30, 16  ;;  %v14590_v38 = vcombine.low %v10891_v8, %v10892_v30  ;;  %v11420_v8 = vsel %vm16509_vm10, %v11415_v10, %v11419_v16  ;;  %v16119_v16 = vld [vmem:[%s21934_s5 + $0x50] sm:$0xff]   ;;  %v21504_v44 = vld [vmem:[%s21934_s5 + $0x78] sm:$0xff]  }
 0x4d5   : > { %v11450_v26 = vshrl.u32 %v11361_v3, 16  ;;  %v11453_v34 = vshll.u32 %v11361_v3, 16  ;;  %v11448_v6 = vsel %vm16509_vm10, %v11443_v11, %v11447_v48  ;;  %v11471_v62 = vrot.slane %v11470_v2, 4  ;;  %v16114_v1 = vld [vmem:[#allocation4 + $0x38] ss:$8 sps:$4 sm:$0xff]  }
 0x4d6   : > { %v11002_v5 = vrot.slane %v11000_v18, 4  ;;  %v11005_v31 = vrot.slane %v11003_v37, 5  ;;  %15810 = vmatmul.mubr.msk.bf16.gmra.mxu1 %vm10758_vm7, %v14590_v38  ;;  %v14608_v41 = vcombine.low %v11406_v35, %v11420_v8  ;;  %v10998_v12 = vsel %vm16509_vm10, %v10993_v50, %v10997_v46  ;;  %v11614_v28 = vld [vmem:[#allocation5 + $0xc] sm:$0x1]  ;;  %v21499_v63 = vld [vmem:[%s21934_s5 + $0x68] sm:$0xff]  }
 0x4d7   : > { %15829 = vmatprep.mubr.msk.bf16.mxu1 %vm10758_vm7, %v14607_v32  ;;  %v11452_v25 = vrot.slane %v11450_v26, 4  ;;  %v11455_v19 = vrot.slane %v11453_v34, 5  ;;  %v11434_v9 = vsel %vm16509_vm10, %v11429_v43, %v11433_v15  ;;  %v11475_v42 = vrot.slane %v11473_v36, 5  ;;  %v11618_v60 = vld [vmem:[#allocation5 + $0x14] sm:$0x1] }
 0x4d8   : > { %v11006_v59 = vor.u32 %v11005_v31, %v11002_v5  ;;  %v14609_v7 = vcombine.low %v11434_v9, %v11448_v6  ;;  %v11611_v15 = vsel %vm20976_vm9, 0, %v11610_v56  ;;  %v11615_v2 = vsel %vm20976_vm9, 0, %v11614_v28  ;;  %v11622_v30 = vld [vmem:[#allocation5 + $0x1c] sm:$0x1]  ;;  %v11626_v61 = vld [vmem:[#allocation5 + $0x24] sm:$0x1] }
 0x4d9   : > { %v11456_v0 = vor.u32 %v11455_v19, %v11452_v25  ;;  %v11476_v58 = vsel %vm16509_vm10, %v11471_v62, %v11475_v42  ;;  %11612 = vst [vmem:[#allocation5 + $0x4] sm:$0x1] %v11611_v15  ;;  %11616 = vst [vmem:[#allocation5 + $0xc] sm:$0x1] %v11615_v2  ;;  %v11619_v33 = vsel %vm20976_vm9, 0, %v11618_v60  ;;  %v11623_v55 = vsel %vm20976_vm9, 0, %v11622_v30 }
 0x4da   : > { %v11007_v22 = vrot.slane %v11006_v59, 4  ;;  %11620 = vst [vmem:[#allocation5 + $0x14] sm:$0x1] %v11619_v33  ;;  %11624 = vst [vmem:[#allocation5 + $0x1c] sm:$0x1] %v11623_v55  ;;  %v11627_v3 = vsel %vm20976_vm9, 0, %v11626_v61 }
 0x4db   : > { %v11457_v27 = vrot.slane %v11456_v0, 4  ;;  %v11630_v49 = vld [vmem:[#allocation5 + $0x2c] sm:$0x1]  ;;  %11628 = vst [vmem:[#allocation5 + $0x24] sm:$0x1] %v11627_v3 }
 0x4dc   : > { %v11012_v20 = vsel %vm16509_vm10, %v11007_v22, %v11011_v17  ;;  %v11631_v57 = vsel %vm20976_vm9, 0, %v11630_v49  ;;  %v11634_v18 = vld [vmem:[#allocation5 + $0x34] sm:$0x1]  ;;  %v11638_v38 = vld [vmem:[#allocation5 + $0x3c] sm:$0x1] }
 0x4dd   : > { %v14580_v24 = vcombine.low %v10998_v12, %v11012_v20  ;;  %v11462_v14 = vsel %vm16509_vm10, %v11457_v27, %v11461_v21  ;;  %11632 = vst [vmem:[#allocation5 + $0x2c] sm:$0x1] %v11631_v57  ;;  %v11635_v37 = vsel %vm20976_vm9, 0, %v11634_v18  ;;  %v11639_v23 = vsel %vm20976_vm9, 0, %v11638_v38  ;;  %v11642_v32 = vld [vmem:[#allocation5 + $0x44] sm:$0x1] }
 0x4de   : > { %15830 = vmatmul.mubr.msk.bf16.vlgmr.msra.gmra.mxu1 %vm10758_vm7, %v14608_v41  ;;  %v14610_v45 = vcombine.low %v11462_v14, %v11476_v58  ;;  %11636 = vst [vmem:[#allocation5 + $0x34] sm:$0x1] %v11635_v37  ;;  %11640 = vst [vmem:[#allocation5 + $0x3c] sm:$0x1] %v11639_v23  ;;  %v11643_v10 = vsel %vm20976_vm9, 0, %v11642_v32 }
 0x4df   : > { %15798 = vmatmul.mubr.msk.bf16.gmra.mxu0 %vm10758_vm7, %v14580_v24  ;;  %15833 = vmatprep.mubr.msk.bf16.mxu1 %vm10758_vm7, %v14609_v7  ;;  %11644 = vst [vmem:[#allocation5 + $0x44] sm:$0x1] %v11643_v10  ;;  %vm13581_vm9 = vmand %vm12452_vm14, %vm12518_vm15 }
 0x4e0   : > { %15817 = vmatprep.mubr.msk.bf16.mxu0 %vm10758_vm7, %v16111_v29  ;;  %15850 = vmatpush3.bf16.msra.mxu1 %v16116_v47  ;;  %v11686_v0 = vld [vmem:[#allocation5 + $0x4] sm:$0x1]  ;;  %v11687_v36 = vld [vmem:[#allocation5 + $0xc] sm:$0x1] }
 0x4e1   : > { %15851 = vmatprep.subr.bf16.mxu1 %v16117_v51  ;;  %v11688_v35 = vld [vmem:[#allocation5 + $0x14] sm:$0x1]  ;;  %v11704_v21 = vshll.u32 %v11686_v0, 16  ;;  %v12143_v62 = vld [vmem:[#allocation5 + $0xc] sm:$0x1]  ;;  %v11718_v20 = vshll.u32 %v11687_v36, 16 }
 0x4e2   : > { %v12145_v41 = vld [vmem:[#allocation5 + $0x14] sm:$0x1]  ;;  %v11689_v9 = vld [vmem:[#allocation5 + $0x1c] sm:$0x1]  ;;  %v11732_v7 = vshll.u32 %v11688_v35, 16  ;;  %v12168_v58 = vshll.u32 %v12143_v62, 16 }
 0x4e3   : > { %v11690_v27 = vld [vmem:[#allocation5 + $0x24] sm:$0x1]  ;;  %v12147_v42 = vld [vmem:[#allocation5 + $0x1c] sm:$0x1]  ;;  %v21541_v56 = vrot.slane %v11718_v20, 5  ;;  %v11746_v28 = vshll.u32 %v11689_v9, 16 }
 0x4e4   : > { %15852 = vmatpush3.bf16.msra.mxu1 %v16117_v51  ;;  %v12149_v47 = vld [vmem:[#allocation5 + $0x24] sm:$0x1]  ;;  %v21539_v51 = vld [vmem:[%s21935_s6] ss:$0 sm:$0xff]  ;;  %v11760_v52 = vshll.u32 %v11690_v27, 16  ;;  %v12196_v15 = vshll.u32 %v12147_v42, 16 }
 0x4e5   : > { %15873 = vmatprep.subr.bf16.mxu1 %v21504_v44  ;;  %v21543_v30 = vrot.slane %v11732_v7, 5  ;;  %v12151_v55 = vld [vmem:[#allocation5 + $0x2c] sm:$0x1]  ;;  %v21545_v3 = vrot.slane %v12168_v58, 5  ;;  %v12210_v37 = vshll.u32 %v12149_v47, 16 }
 0x4e6   : > { %15834 = vmatmul.mubr.msk.bf16.gmra.mxu1 %vm10758_vm7, %v14610_v45  ;;  %v12182_v45 = vshll.u32 %v12145_v41, 16  ;;  %v12156_v35 = vld [vmem:[#allocation5 + $0x40] sm:$0xf]  ;;  %v11692_v27 = vld [vmem:[#allocation5 + $0x34] sm:$0x1] }
 0x4e7   : > { %15818 = vmatmul.mubr.msk.bf16.vlgmr.msra.gmra.mxu0 %vm10758_vm7, %v16112_v4  ;;  %v21561_v41 = vrot.slane %v12210_v37, 5  ;;  %v11693_v42 = vld [vmem:[#allocation5 + $0x3c] sm:$0x1] }
 0x4e8   : > { %15821 = vmatprep.mubr.msk.bf16.mxu0 %vm10758_vm7, %v16113_v54  ;;  %15838 = vmatpush3.bf16.msra.mxu0 %v16115_v39  ;;  %v11691_v39 = vld [vmem:[#allocation5 + $0x2c] sm:$0x1]  ;;  %v21547_v57 = vrot.slane %v12182_v45, 5 }
 0x4e9   : > { %15839 = vmatprep.subr.bf16.mxu0 %v16119_v16  ;;  %v11774_v18 = vshll.u32 %v11691_v39, 16 }
 0x4eb   : > { %v21559_v62 = vrot.slane %v11774_v18, 5 }
 0x4ec   : > { %15840 = vmatpush3.bf16.msra.mxu0 %v16119_v16 }
 0x4ed   : > { %15861 = vmatprep.subr.bf16.mxu0 %v21499_v63 }
 0x4ef   : > { %15822 = vmatmul.mubr.msk.bf16.gmra.mxu0 %vm10758_vm7, %v16114_v1  ;;  %v21534_v1 = vrot.slane %v11704_v21, 5 }
 0x577   : > { %v15807_v26 = vpop.f32.mrf.mxu1 }
 0x579   : > { %v11192_v34 = vpop.f32.mrf.mxu1 }
 0x57b   : > { %v15808_v5 = vpop.f32.mrf.mxu1 }
 0x57d   : > { %v11195_v11 = vpop.f32.mrf.mxu1 }
 0x580   : > { %v15795_v31 = vpop.f32.mrf.mxu0 }
 0x581   : > { %v11201_v24 = vadd.f32 %v15807_v26, %v15795_v31  ;;  %v21554_v31 = vrot.slane %v12196_v15, 5 }
 0x582   : > { %v11083_v48 = vpop.f32.mrf.mxu0 }
 0x583   : > { %v11193_v4 = vadd.f32 %v11192_v34, %v11083_v48  ;;  %v21550_v34 = vrot.slane %v11746_v28, 5  ;;  %v12224_v48 = vshll.u32 %v12151_v55, 16  ;;  %v11802_v28 = vshll.u32 %v11693_v42, 16 }
 0x584   : > { %v15796_v46 = vpop.f32.mrf.mxu0 }
 0x585   : > { %v11204_v2 = vadd.f32 %v15808_v5, %v15796_v46  ;;  %v21552_v5 = vrot.slane %v11760_v52, 5 }
 0x586   : > { %v11086_v50 = vpop.f32.mrf.mxu0 }
 0x587   : > { %v11196_v38 = vadd.f32 %v11195_v11, %v11086_v50 }
 0x596   : > { %v21522_v40 = vpop.f32.mrf.mxu1 }
 0x598   : > { %v21524_v13 = vpop.f32.mrf.mxu1 }
 0x59a   : > { %v21526_v25 = vpop.f32.mrf.mxu1 }
 0x59c   : > { %v21528_v19 = vpop.f32.mrf.mxu1 }
 0x59e   : > { %v15831_v59 = vpop.f32.mrf.mxu1 }
 0x59f   : > { %v15799_v17 = vpop.f32.mrf.mxu0 }
 0x5a0   : > { %v11547_v43 = vpop.f32.mrf.mxu1  ;;  %v11217_v11 = vadd.f32 %v21522_v40, %v15799_v17  ;;  %v12257_v17 = vshrl.u32 %v12156_v35, 16 }
 0x5a1   : > { %v11099_v8 = vpop.f32.mrf.mxu0 }
 0x5a2   : > { %v15832_v22 = vpop.f32.mrf.mxu1  ;;  %v11209_v50 = vadd.f32 %v21524_v13, %v11099_v8  ;;  %v12260_v13 = vshll.u32 %v12156_v35, 16  ;;  %v21592_v35 = vld [vmem:[#allocation5 + $0x44] sm:$0x1] }
 0x5a3   : > { %v21530_v6 = vpop.f32.mrf.mxu0 }
 0x5a4   : > { %v11550_v29 = vpop.f32.mrf.mxu1 }
 0x5a5   : > { %v21532_v12 = vpop.f32.mrf.mxu0 }
 0x5a6   : > { %v15835_v61 = vpop.f32.mrf.mxu1 }
 0x5a7   : > { %v15819_v14 = vpop.f32.mrf.mxu0 }
 0x5a8   : > { %v11343_v54 = vadd.f32 %v15819_v14, %v11201_v24 }
 0x5a9   : > { %v11310_v16 = vpop.f32.mrf.mxu0 }
 0x5aa   : > { %v11580_v60 = vadd.f32 %v15831_v59, %v11343_v54  ;;  %v11341_v33 = vadd.f32 %v11310_v16, %v11193_v4  ;;  %v11212_v54 = vadd.f32 %v21528_v19, %v21532_v12  ;;  %v11788_v16 = vshll.u32 %v11692_v27, 16 }
 0x5ab   : > { %v15820_v49 = vpop.f32.mrf.mxu0  ;;  %v21578_v19 = vrot.slane %v12257_v17, 4  ;;  %v21580_v12 = vrot.slane %v12260_v13, 5 }
 0x5ac   : > { %v11595_v23 = vadd.f32 %v21539_v51, %v11580_v60  ;;  %v11578_v32 = vadd.f32 %v11547_v43, %v11341_v33  ;;  %v11344_v10 = vadd.f32 %v15820_v49, %v11204_v2  ;;  %v11563_v43 = vpop.f32.mrf.mxu1  ;;  %v21571_v2 = vld [vmem:[#allocation5 + $0x34] sm:$0x1]  ;;  %v21573_v60 = vld [vmem:[#allocation5 + $0x3c] sm:$0x1]  ;;  %v21576_v49 = vrot.slane %v12224_v48, 5 }
 0x5ad   : > { %v11313_v26 = vpop.f32.mrf.mxu0  ;;  %v12252_v48 = vshll.u32 %v21573_v60, 16 }
 0x5ae   : > { %v11603_v46 = vmax.f32 %v11595_v23, 0.0  ;;  %v11593_v59 = vadd.f32 %v21539_v51, %v11578_v32  ;;  %v11581_v0 = vadd.f32 %v15832_v22, %v11344_v10  ;;  %v11342_v36 = vadd.f32 %v11313_v26, %v11196_v38 }
 0x5af   : > { %v15823_v21 = vpop.f32.mrf.mxu0  ;;  %v11220_v22 = vadd.f32 %v21526_v25, %v21530_v6  ;;  %v21584_v10 = vrot.slane %v11788_v16, 5  ;;  %v12238_v26 = vshll.u32 %v21571_v2, 16 }
 0x5b0   : > { %v11647_v20 = vpack.c.bf16 %v11603_v46, %v11603_v46  ;;  %v11601_v9 = vmax.f32 %v11593_v59, 0.0  ;;  %v11596_v24 = vadd.f32 %v21539_v51, %v11581_v0  ;;  %v11579_v7 = vadd.f32 %v11550_v29, %v11342_v36  ;;  %v15836_v29 = vpop.f32.mrf.mxu1 }
 0x5b1   : > { %v11347_v14 = vadd.f32 %v15823_v21, %v11217_v11  ;;  %v11326_v40 = vpop.f32.mrf.mxu0  ;;  %v21590_v36 = vrot.slane %v11802_v28, 5  ;;  %v12263_v21 = vor.u32 %v21580_v12, %v21578_v19 }
 0x5b2   : > { %11655 = vst.msk [vmem:[#allocation5 + $0x10] sm:$0xf] %vm10814_vm6, %v11647_v20  ;;  %v11645_v8 = vpack.c.bf16 %v11601_v9, %v11601_v9  ;;  %v11604_v58 = vmax.f32 %v11596_v24, 0.0  ;;  %v11594_v45 = vadd.f32 %v21539_v51, %v11579_v7  ;;  %v11345_v4 = vadd.f32 %v11326_v40, %v11209_v50  ;;  %v11566_v23 = vpop.f32.mrf.mxu1 }
 0x5b3   : > { %v11584_v39 = vadd.f32 %v15835_v61, %v11347_v14  ;;  %v15824_v47 = vpop.f32.mrf.mxu0  ;;  %v12266_v40 = vshll.u32 %v21592_v35, 16 }
 0x5b4   : > { %11653 = vst.msk [vmem:[#allocation5] sm:$0xf] %vm10814_vm6, %v11645_v8  ;;  %v11648_v25 = vpack.c.bf16 %v11604_v58, %v11604_v58  ;;  %v11602_v6 = vmax.f32 %v11594_v45, 0.0  ;;  %v11582_v52 = vadd.f32 %v11563_v43, %v11345_v4  ;;  %v11348_v15 = vadd.f32 %v15824_v47, %v11220_v22 }
 0x5b5   : > { %v11599_v33 = vadd.f32 %v21539_v51, %v11584_v39  ;;  %v11329_v55 = vpop.f32.mrf.mxu0 }
 0x5b6   : > { %11656 = vst.msk [vmem:[#allocation5 + $0x18] sm:$0xf] %vm10814_vm6, %v11648_v25  ;;  %v11646_v61 = vpack.c.bf16 %v11602_v6, %v11602_v6  ;;  %v11597_v18 = vadd.f32 %v21539_v51, %v11582_v52  ;;  %v11585_v37 = vadd.f32 %v15836_v29, %v11348_v15  ;;  %v11346_v38 = vadd.f32 %v11329_v55, %v11212_v54 }
 0x5b7   : > { %v11607_v32 = vmax.f32 %v11599_v33, 0.0 }
 0x5b8   : > { %11654 = vst.msk [vmem:[#allocation5 + $0x8] sm:$0xf] %vm10814_vm6, %v11646_v61  ;;  %v11605_v46 = vmax.f32 %v11597_v18, 0.0  ;;  %v11600_v59 = vadd.f32 %v21539_v51, %v11585_v37  ;;  %v11583_v0 = vadd.f32 %v11566_v23, %v11346_v38 }
 0x5b9   : > { %v11651_v11 = vpack.c.bf16 %v11607_v32, %v11607_v32  ;;  %v11680_v50 = vld [vmem:[#allocation5 + $0x10] sm:$0xf] }
 0x5ba   : > { %v12144_v43 = vld [vmem:[#allocation5 + $0x10] sm:$0xf]  ;;  %v11649_v20 = vpack.c.bf16 %v11605_v46, %v11605_v46  ;;  %v11608_v9 = vmax.f32 %v11600_v59, 0.0  ;;  %v11598_v24 = vadd.f32 %v21539_v51, %v11583_v0  ;;  %v11723_v7 = vshrl.u32 %v11680_v50, 16  ;;  %v16125_v0 = vld [vmem:[%s21934_s5 + $0x70] sm:$0xff]  }
 0x5bb   : > { %11659 = vst.msk [vmem:[#allocation5 + $0x30] sm:$0xf] %vm10814_vm6, %v11651_v11  ;;  %v11678_v27 = vld [vmem:[#allocation5] sm:$0xf]  ;;  %v11726_v42 = vshll.u32 %v11680_v50, 16  ;;  %v12173_v22 = vshrl.u32 %v12144_v43, 16 }
 0x5bc   : > { %v12176_v14 = vshll.u32 %v12144_v43, 16  ;;  %11657 = vst.msk [vmem:[#allocation5 + $0x20] sm:$0xf] %vm10814_vm6, %v11649_v20  ;;  %v11652_v17 = vpack.c.bf16 %v11608_v9, %v11608_v9  ;;  %v11606_v13 = vmax.f32 %v11598_v24, 0.0  ;;  %v11695_v8 = vshrl.u32 %v11678_v27, 16 }
 0x5bd   : > { %v11698_v58 = vshll.u32 %v11678_v27, 16  ;;  %v11681_v45 = vld [vmem:[#allocation5 + $0x18] sm:$0xf]  ;;  %v11725_v4 = vrot.slane %v11723_v7, 4  ;;  %v11728_v54 = vrot.slane %v11726_v42, 5  ;;  %v12175_v29 = vrot.slane %v12173_v22, 4 }
 0x5be   : > { %v12178_v51 = vrot.slane %v12176_v14, 5  ;;  %11660 = vst.msk [vmem:[#allocation5 + $0x38] sm:$0xf] %vm10814_vm6, %v11652_v17  ;;  %v11650_v39 = vpack.c.bf16 %v11606_v13, %v11606_v13  ;;  %v11697_v47 = vrot.slane %v11695_v8, 4  ;;  %v11737_v28 = vshrl.u32 %v11681_v45, 16 }
 0x5bf   : > { %v11700_v16 = vrot.slane %v11698_v58, 5  ;;  %v11679_v25 = vld [vmem:[#allocation5 + $0x8] sm:$0xf]  ;;  %v11740_v6 = vshll.u32 %v11681_v45, 16  ;;  %v14645_v52 = vcombine.low %v11680_v50, %v11681_v45  ;;  %v11729_v15 = vor.u32 %v11728_v54, %v11725_v4 }
 0x5c0   : > { %v12142_v33 = vld [vmem:[#allocation5 + $0x8] sm:$0xf]  ;;  %v12179_v55 = vor.u32 %v12178_v51, %v12175_v29  ;;  %11658 = vst.msk [vmem:[#allocation5 + $0x28] sm:$0xf] %vm10814_vm6, %v11650_v39  ;;  %v11709_v61 = vshrl.u32 %v11679_v25, 16  ;;  %v11712_v18 = vshll.u32 %v11679_v25, 16  ;;  %v14644_v37 = vcombine.low %v11678_v27, %v11679_v25 }
 0x5c1   : > { %v11739_v38 = vrot.slane %v11737_v28, 4  ;;  %v11742_v23 = vrot.slane %v11740_v6, 5  ;;  %v11701_v32 = vor.u32 %v11700_v16, %v11697_v47  ;;  %v11730_v46 = vrot.slane %v11729_v15, 4 }
 0x5c2   : > { %v12159_v59 = vshrl.u32 %v12142_v33, 16  ;;  %v11711_v11 = vrot.slane %v11709_v61, 4  ;;  %v11714_v43 = vrot.slane %v11712_v18, 5  ;;  %15853 = vmatprep.mubr.msk.bf16.mxu1 %vm10758_vm7, %v14644_v37  ;;  %v11684_v50 = vld [vmem:[#allocation5 + $0x30] sm:$0xf]  ;;  %v12162_v20 = vshll.u32 %v12142_v33, 16 }
 0x5c3   : > { %v21606_v9 = vrot.slane %v12179_v55, 4  ;;  %15854 = vmatmul.mubr.msk.bf16.vlgmr.msra.gmra.mxu1 %vm10758_vm7, %v14645_v52  ;;  %v11682_v24 = vld [vmem:[#allocation5 + $0x20] sm:$0xf]  ;;  %v11702_v7 = vrot.slane %v11701_v32, 4  ;;  %v11779_v27 = vshrl.u32 %v11684_v50, 16  ;;  %v11782_v42 = vshll.u32 %v11684_v50, 16 }
 0x5c4   : > { %v11735_v22 = vsel %vm16509_vm10, %v11730_v46, %v21543_v30  ;;  %v11751_v14 = vshrl.u32 %v11682_v24, 16  ;;  %v11754_v17 = vshll.u32 %v11682_v24, 16  ;;  %v11715_v13 = vor.u32 %v11714_v43, %v11711_v11  ;;  %15874 = vmatpush3.bf16.msra.mxu1 %v21504_v44  ;;  %v16126_v55 = vld [vmem:[%s21934_s5 + $0x60] sm:$0xff]   ;;  %v12146_v61 = vld [vmem:[#allocation5 + $0x18] sm:$0xf] }
 0x5c5   : > { %v11743_v8 = vor.u32 %v11742_v23, %v11739_v38  ;;  %v11707_v58 = vsel %vm16509_vm10, %v11702_v7, %v21534_v1  ;;  %v11685_v45 = vld [vmem:[#allocation5 + $0x38] sm:$0xf]  ;;  %v11781_v4 = vrot.slane %v11779_v27, 4  ;;  %v11784_v54 = vrot.slane %v11782_v42, 5  ;;  %15875 = vmatprep.subr.bf16.mxu1 %v16125_v0  ;;  %v12148_v32 = vld [vmem:[#allocation5 + $0x20] sm:$0xf] }
 0x5c6   : > { %v12161_v29 = vrot.slane %v12159_v59, 4  ;;  %v11753_v51 = vrot.slane %v11751_v14, 4  ;;  %v11756_v39 = vrot.slane %v11754_v17, 5  ;;  %v11716_v47 = vrot.slane %v11715_v13, 4 }
 0x5c7   : > { %v11793_v16 = vshrl.u32 %v11685_v45, 16  ;;  %v11683_v30 = vld [vmem:[#allocation5 + $0x28] sm:$0xf]  ;;  %v11796_v28 = vshll.u32 %v11685_v45, 16  ;;  %v14647_v25 = vcombine.low %v11684_v50, %v11685_v45  ;;  %v11744_v6 = vrot.slane %v11743_v8, 4 }
 0x5c8   : > { %v12164_v52 = vrot.slane %v12162_v20, 5  ;;  %v11765_v15 = vshrl.u32 %v11683_v30, 16  ;;  %v11768_v44 = vshll.u32 %v11683_v30, 16  ;;  %v14646_v33 = vcombine.low %v11682_v24, %v11683_v30  ;;  %15876 = vmatpush3.bf16.msra.mxu1 %v16125_v0  ;;  %v12150_v13 = vld [vmem:[#allocation5 + $0x28] sm:$0xf] }
 0x5c9   : > { %v11721_v1 = vsel %vm16509_vm10, %v11716_v47, %v21541_v56  ;;  %v11795_v37 = vrot.slane %v11793_v16, 4  ;;  %v11798_v38 = vrot.slane %v11796_v28, 5  ;;  %v11749_v23 = vsel %vm16509_vm10, %v11744_v6, %v21550_v34  ;;  %v16129_v60 = vld [vmem:[#allocation5 + $0x28] ss:$8 sps:$4 sm:$0xff]  }
 0x5ca   : > { %v14634_v18 = vcombine.low %v11707_v58, %v11721_v1  ;;  %v11767_v46 = vrot.slane %v11765_v15, 4  ;;  %v11770_v59 = vrot.slane %v11768_v44, 5  ;;  %15857 = vmatprep.mubr.msk.bf16.mxu1 %vm10758_vm7, %v14646_v33  ;;  %v14635_v11 = vcombine.low %v11735_v22, %v11749_v23 }
 0x5cb   : > { %v12165_v56 = vor.u32 %v12164_v52, %v12161_v29  ;;  %15858 = vmatmul.mubr.msk.bf16.gmra.mxu1 %vm10758_vm7, %v14647_v25  ;;  %v12185_v0 = vsel %vm16509_vm10, %v21606_v9, %v21547_v57  ;;  %v11757_v43 = vor.u32 %v11756_v39, %v11753_v51  ;;  %v12187_v50 = vshrl.u32 %v12146_v61, 16  ;;  %v12152_v39 = vld [vmem:[#allocation5 + $0x30] sm:$0xf] }
 0x5cc   : > { %15841 = vmatprep.mubr.msk.bf16.mxu0 %vm10758_vm7, %v14634_v18  ;;  %v12190_v20 = vshll.u32 %v12146_v61, 16  ;;  %v11771_v24 = vor.u32 %v11770_v59, %v11767_v46  ;;  %v12201_v7 = vshrl.u32 %v12148_v32, 16  ;;  %v12204_v27 = vshll.u32 %v12148_v32, 16  ;;  %v16127_v59 = vld [vmem:[#allocation5 + $0x8] ss:$8 sps:$4 sm:$0xff]  }
 0x5cd   : > { %15842 = vmatmul.mubr.msk.bf16.vlgmr.msra.gmra.mxu0 %vm10758_vm7, %v14635_v11  ;;  %v12166_v34 = vrot.slane %v12165_v56, 4  ;;  %v11758_v42 = vrot.slane %v11757_v43, 4  ;;  %v12189_v22 = vrot.slane %v12187_v50, 4  ;;  %v11785_v17 = vor.u32 %v11784_v54, %v11781_v4 }
 0x5ce   : > { %15862 = vmatpush3.bf16.msra.mxu0 %v21499_v63  ;;  %v12192_v14 = vrot.slane %v12190_v20, 5  ;;  %v11772_v9 = vrot.slane %v11771_v24, 4  ;;  %v12203_v8 = vrot.slane %v12201_v7, 4  ;;  %v12206_v58 = vrot.slane %v12204_v27, 5  ;;  %v16128_v24 = vld [vmem:[#allocation5 + $0x18] ss:$8 sps:$4 sm:$0xff]  }
 0x5cf   : > { %v12171_v57 = vsel %vm16509_vm10, %v12166_v34, %v21545_v3  ;;  %15863 = vmatprep.subr.bf16.mxu0 %v16126_v55  ;;  %v11763_v29 = vsel %vm16509_vm10, %v11758_v42, %v21552_v5  ;;  %v11786_v63 = vrot.slane %v11785_v17, 4  ;;  %v11799_v47 = vor.u32 %v11798_v38, %v11795_v37  ;;  %v12154_v3 = vld [vmem:[#allocation5 + $0x38] sm:$0xf]  ;;  %v12433_v27 = vld [vmem:[#allocation6] sm:$0x7] }
 0x5d0   : > { %v14664_v45 = vcombine.low %v12171_v57, %v12185_v0  ;;  %v12193_v51 = vor.u32 %v12192_v14, %v12189_v22  ;;  %v11777_v4 = vsel %vm16509_vm10, %v11772_v9, %v21559_v62  ;;  %v12207_v54 = vor.u32 %v12206_v58, %v12203_v8  ;;  %v12442_v22 = vld [vmem:[#allocation6 + $0xc] sm:$0x7]  ;;  %v12439_v17 = vld [vmem:[#allocation6 + $0x8] sm:$0x7]  ;;  %v16131_v57 = vld [vmem:[%s21934_s5 + $0x98] sm:$0xff]  }
 0x5d1   : > { %v12215_v16 = vshrl.u32 %v12150_v13, 16  ;;  %v14636_v30 = vcombine.low %v11763_v29, %v11777_v4  ;;  %v11791_v25 = vsel %vm16509_vm10, %v11786_v63, %v21584_v10  ;;  %v12218_v5 = vshll.u32 %v12150_v13, 16  ;;  %v16132_v9 = vld [vmem:[%s21934_s5 + $0x88] sm:$0xff]   ;;  %v16133_v58 = vld [vmem:[%s21934_s5 + $0x80] sm:$0xff]   ;;  %v12445_v29 = vld [vmem:[#allocation6 + $0x10] sm:$0x7] }
 0x5d2   : > { %15877 = vmatprep.mubr.msk.bf16.mxu1 %vm10758_vm7, %v14664_v45  ;;  %v12194_v28 = vrot.slane %v12193_v51, 4  ;;  %15864 = vmatpush3.bf16.msra.mxu0 %v16126_v55  ;;  %v12208_v6 = vrot.slane %v12207_v54, 4  ;;  %v11800_v52 = vrot.slane %v11799_v47, 4  ;;  %v12229_v44 = vshrl.u32 %v12152_v39, 16  ;;  %v16136_v45 = vld [vmem:[%s21934_s5 + $0x90] sm:$0xff]  }
 0x5d3   : > { %v12217_v15 = vrot.slane %v12215_v16, 4  ;;  %15845 = vmatprep.mubr.msk.bf16.mxu0 %vm10758_vm7, %v14636_v30  ;;  %v12220_v33 = vrot.slane %v12218_v5, 5  ;;  %v12232_v1 = vshll.u32 %v12152_v39, 16  ;;  %v12243_v61 = vshrl.u32 %v12154_v3, 16 }
 0x5d4   : > { %v12199_v62 = vsel %vm16509_vm10, %v12194_v28, %v21554_v31  ;;  %v12213_v18 = vsel %vm16509_vm10, %v12208_v6, %v21561_v41  ;;  %v11805_v10 = vsel %vm16509_vm10, %v11800_v52, %v21590_v36  ;;  %v12231_v55 = vrot.slane %v12229_v44, 4 }
 0x5d5   : > { %v12246_v37 = vshll.u32 %v12154_v3, 16  ;;  %v14665_v38 = vcombine.low %v12199_v62, %v12213_v18  ;;  %v14637_v23 = vcombine.low %v11791_v25, %v11805_v10  ;;  %v12221_v32 = vor.u32 %v12220_v33, %v12217_v15 }
 0x5d6   : > { %v12234_v46 = vrot.slane %v12232_v1, 5  ;;  %v12245_v11 = vrot.slane %v12243_v61, 4  ;;  %v12264_v56 = vrot.slane %v12263_v21, 4  ;;  %v12268_v41 = vrot.slane %v12266_v40, 5 }
 0x5d7   : > { %v12248_v31 = vrot.slane %v12246_v37, 5  ;;  %15878 = vmatmul.mubr.msk.bf16.vlgmr.msra.gmra.mxu1 %vm10758_vm7, %v14665_v38  ;;  %15846 = vmatmul.mubr.msk.bf16.gmra.mxu0 %vm10758_vm7, %v14637_v23  ;;  %v12222_v36 = vrot.slane %v12221_v32, 4  ;;  %v12240_v43 = vrot.slane %v12238_v26, 5  ;;  %v12254_v20 = vrot.slane %v12252_v48, 5  ;;  %v12436_v48 = vld [vmem:[#allocation6 + $0x4] sm:$0x7] }
 0x5d8   : > { %v12235_v0 = vor.u32 %v12234_v46, %v12231_v55  ;;  %15865 = vmatprep.mubr.msk.bf16.mxu0 %vm10758_vm7, %v16127_v59  ;;  %v12269_v21 = vsel %vm16509_vm10, %v12264_v56, %v12268_v41  ;;  %v12437_v7 = vsel %vm21683_vm13, 0, %v12436_v48  ;;  %v12434_v42 = vsel %vm21683_vm13, 0, %v12433_v27 }
 0x5d9   : > { %v12249_v50 = vor.u32 %v12248_v31, %v12245_v11  ;;  %v12227_v19 = vsel %vm16509_vm10, %v12222_v36, %v21576_v49  ;;  %v16130_v49 = vld [vmem:[#allocation5 + $0x38] ss:$8 sps:$4 sm:$0xff]   ;;  %12438 = vst [vmem:[#allocation6 + $0x4] sm:$0x7] %v12437_v7  ;;  %12435 = vst [vmem:[#allocation6] sm:$0x7] %v12434_v42 }
 0x5da   : > { %v12236_v12 = vrot.slane %v12235_v0, 4  ;;  %v12443_v14 = vsel %vm21683_vm13, 0, %v12442_v22  ;;  %v12440_v13 = vsel %vm21683_vm13, 0, %v12439_v17  ;;  %v16258_v8 = vmov 0.0   ;;  %v14675_v31 = vld [vmem:[%s21935_s6 + $0x1] ss:$0 sm:$0xff] }
 0x5db   : > { %v12250_v35 = vrot.slane %v12249_v50, 4  ;;  %12444 = vst [vmem:[#allocation6 + $0xc] sm:$0x7] %v12443_v14  ;;  %12441 = vst [vmem:[#allocation6 + $0x8] sm:$0x7] %v12440_v13  ;;  %15885 = vmatprep.subr.bf16.mxu0 %v16258_v8  ;;  %15893 = vmatprep.subr.bf16.mxu1 %v16258_v8  ;;  %v12446_v51 = vsel %vm21683_vm13, 0, %v12445_v29 }
 0x5dc   : > { %v12241_v40 = vsel %vm16509_vm10, %v12236_v12, %v12240_v43  ;;  %15894 = vmatpush3.bf16.msra.mxu1 %v16132_v9  ;;  %12447 = vst [vmem:[#allocation6 + $0x10] sm:$0x7] %v12446_v51 }
 0x5dd   : > { %v14666_v2 = vcombine.low %v12227_v19, %v12241_v40  ;;  %v12255_v26 = vsel %vm16509_vm10, %v12250_v35, %v12254_v20  ;;  %15895 = vmatprep.subr.bf16.mxu1 %v16258_v8  ;;  %vm16259_vm10 = vmmov 0  }
 0x5de   : > { %v14667_v34 = vcombine.low %v12255_v26, %v12269_v21 }
 0x5df   : > { %15881 = vmatprep.mubr.msk.bf16.mxu1 %vm10758_vm7, %v14666_v2  ;;  %15866 = vmatmul.mubr.msk.bf16.vlgmr.msra.gmra.mxu0 %vm10758_vm7, %v16128_v24 }
 0x5e0   : > { %15882 = vmatmul.mubr.msk.bf16.gmra.mxu1 %vm10758_vm7, %v14667_v34  ;;  %15869 = vmatprep.mubr.msk.bf16.mxu0 %vm10758_vm7, %v16129_v60 }
 0x5e1   : > { %15886 = vmatpush3.bf16.msra.mxu0 %v16131_v57  ;;  %15897 = vmatprep.mubr.msk.bf16.mxu1 %vm16259_vm10, %v16258_v8 }
 0x5e2   : > { %15887 = vmatprep.subr.bf16.mxu0 %v16258_v8  ;;  %15896 = vmatpush3.bf16.msra.mxu1 %v16133_v58 }
 0x5e3   : > { %15909 = vmatprep.subr.bf16.mxu1 %v16258_v8 }
 0x5e5   : > { %15888 = vmatpush3.bf16.msra.mxu0 %v16136_v45 }
 0x5e6   : > { %15901 = vmatprep.subr.bf16.mxu0 %v16258_v8 }
 0x5e7   : > { %15870 = vmatmul.mubr.msk.bf16.gmra.mxu0 %vm10758_vm7, %v16130_v49 }
 0x5e8   : > { %15889 = vmatprep.mubr.msk.bf16.mxu0 %vm16259_vm10, %v16258_v8 }
 0x683   : > { %v15855_v63 = vpop.f32.mrf.mxu1 }
 0x685   : > { %v11985_v39 = vpop.f32.mrf.mxu1 }
 0x687   : > { %v15856_v4 = vpop.f32.mrf.mxu1 }
 0x689   : > { %v11988_v54 = vpop.f32.mrf.mxu1 }
 0x68b   : > { %v15859_v47 = vpop.f32.mrf.mxu1 }
 0x68d   : > { %v15843_v16 = vpop.f32.mrf.mxu0  ;;  %v12001_v3 = vpop.f32.mrf.mxu1 }
 0x68e   : > { %v11994_v18 = vadd.f32 %v15855_v63, %v15843_v16 }
 0x68f   : > { %v11876_v30 = vpop.f32.mrf.mxu0  ;;  %v15860_v28 = vpop.f32.mrf.mxu1 }
 0x690   : > { %v11986_v37 = vadd.f32 %v11985_v39, %v11876_v30 }
 0x691   : > { %v15844_v25 = vpop.f32.mrf.mxu0  ;;  %v12004_v5 = vpop.f32.mrf.mxu1 }
 0x692   : > { %v11997_v32 = vadd.f32 %v15856_v4, %v15844_v25 }
 0x693   : > { %v11879_v6 = vpop.f32.mrf.mxu0 }
 0x694   : > { %v11989_v41 = vadd.f32 %v11988_v54, %v11879_v6 }
 0x697   : > { %v15879_v52 = vpop.f32.mrf.mxu1  ;;  %v15847_v15 = vpop.f32.mrf.mxu0 }
 0x698   : > { %v12010_v50 = vadd.f32 %v15859_v47, %v15847_v15 }
 0x699   : > { %v12340_v44 = vpop.f32.mrf.mxu1  ;;  %v11892_v62 = vpop.f32.mrf.mxu0 }
 0x69a   : > { %v12002_v35 = vadd.f32 %v12001_v3, %v11892_v62 }
 0x69b   : > { %v15880_v33 = vpop.f32.mrf.mxu1  ;;  %v15848_v1 = vpop.f32.mrf.mxu0 }
 0x69c   : > { %v12013_v42 = vadd.f32 %v15860_v28, %v15848_v1 }
 0x69d   : > { %v11895_v61 = vpop.f32.mrf.mxu0  ;;  %v12343_v10 = vpop.f32.mrf.mxu1 }
 0x69e   : > { %v12005_v22 = vadd.f32 %v12004_v5, %v11895_v61 }
 0x69f   : > { %v15867_v55 = vpop.f32.mrf.mxu0 }
 0x6a0   : > { %v12136_v38 = vadd.f32 %v15867_v55, %v11994_v18  ;;  %v15883_v11 = vpop.f32.mrf.mxu1 }
 0x6a1   : > { %v12103_v23 = vpop.f32.mrf.mxu0 }
 0x6a2   : > { %v12373_v46 = vadd.f32 %v15879_v52, %v12136_v38  ;;  %v12134_v59 = vadd.f32 %v12103_v23, %v11986_v37  ;;  %v12356_v21 = vpop.f32.mrf.mxu1  ;;  %v14708_v37 = vld.sshfl [vmem:[#allocation6 + $0x10] sm:$0x13 pattern:$0x76325410] }
 0x6a3   : > { %v15868_v56 = vpop.f32.mrf.mxu0  ;;  %v12898_v23 = vshrl.u32 %v14708_v37, 16 }
 0x6a4   : > { %v12371_v36 = vadd.f32 %v12340_v44, %v12134_v59  ;;  %v12137_v0 = vadd.f32 %v15868_v56, %v11997_v32  ;;  %v12389_v20 = vadd.f32 %v14675_v31, %v12373_v46  ;;  %v15884_v14 = vpop.f32.mrf.mxu1  ;;  %v12901_v32 = vshll.u32 %v14708_v37, 16 }
 0x6a5   : > { %v12106_v43 = vpop.f32.mrf.mxu0 }
 0x6a6   : > { %v12374_v19 = vadd.f32 %v15880_v33, %v12137_v0  ;;  %v12135_v12 = vadd.f32 %v12106_v43, %v11989_v41  ;;  %v12387_v2 = vadd.f32 %v14675_v31, %v12371_v36  ;;  %v12397_v49 = vmax.f32 %v12389_v20, 0.0  ;;  %v12359_v4 = vpop.f32.mrf.mxu1 }
 0x6a7   : > { %v15871_v40 = vpop.f32.mrf.mxu0  ;;  %v12586_v41 = vlaneseq  ;;  %v16260_v0 = vmov 1983009808   ;;  %v12903_v20 = vrot.slane %v12901_v32, 7 }
 0x6a8   : > { %v12390_v26 = vadd.f32 %v14675_v31, %v12374_v19  ;;  %v12372_v34 = vadd.f32 %v12343_v10, %v12135_v12  ;;  %v12140_v24 = vadd.f32 %v15871_v40, %v12010_v50  ;;  %v12395_v57 = vmax.f32 %v12387_v2, 0.0 }
 0x6a9   : > { %v12119_v60 = vpop.f32.mrf.mxu0  ;;  %v12584_v43 = vunpack.c.l.s4 %v16260_v0  ;;  %v12900_v50 = vrot.slane %v12898_v23, 6 }
 0x6aa   : > { %v12398_v48 = vmax.f32 %v12390_v26, 0.0  ;;  %v12388_v7 = vadd.f32 %v14675_v31, %v12372_v34  ;;  %v12138_v27 = vadd.f32 %v12119_v60, %v12002_v35  ;;  %v12377_v17 = vadd.f32 %v15883_v11, %v12140_v24 }
 0x6ab   : > { %v15872_v13 = vpop.f32.mrf.mxu0  ;;  %v12854_v35 = vcombine.high %v14708_v37, %v14708_v37  ;;  %v12585_v26 = vunpack.c.0.s8 %v12584_v43  ;;  %v21731_v34 = vshrl.u32 %v12586_v41, 7 }
 0x6ac   : > { %v12404_v9 = vmax.f32 %v12397_v49, %v12398_v48  ;;  %v12396_v58 = vmax.f32 %v12388_v7, 0.0  ;;  %v12375_v45 = vadd.f32 %v12356_v21, %v12138_v27  ;;  %v12141_v29 = vadd.f32 %v15872_v13, %v12013_v42 }
 0x6ad   : > { %v12122_v51 = vpop.f32.mrf.mxu0  ;;  %v12393_v54 = vadd.f32 %v14675_v31, %v12377_v17  ;;  %v12904_v48 = vor.u32 %v12903_v20, %v12900_v50  ;;  %v12907_v7 = vshll.u32 %v12854_v35, 16  ;;  %v21734_v13 = vsub.s32 %v12585_v26, %v21731_v34 }
 0x6ae   : > { %12408 = vst.msk [vmem:[#allocation10 + $0x8] sm:$0xff] %vm10758_vm7, %v12404_v9  ;;  %v12403_v63 = vmax.f32 %v12395_v57, %v12396_v58  ;;  %v12139_v39 = vadd.f32 %v12122_v51, %v12005_v22  ;;  %v12378_v47 = vadd.f32 %v15884_v14, %v12141_v29  ;;  %v12391_v16 = vadd.f32 %v14675_v31, %v12375_v45 }
 0x6af   : > { %v12401_v25 = vmax.f32 %v12393_v54, 0.0  ;;  %v12905_v45 = vrot.slane %v12904_v48, 2  ;;  %v12909_v29 = vrot.slane %v12907_v7, 7 }
 0x6b0   : > { %12407 = vst.msk [vmem:[#allocation10] sm:$0xff] %vm10758_vm7, %v12403_v63  ;;  %v12376_v3 = vadd.f32 %v12359_v4, %v12139_v39  ;;  %v12394_v30 = vadd.f32 %v14675_v31, %v12378_v47  ;;  %v12399_v6 = vmax.f32 %v12391_v16, 0.0 }
 0x6b1   : > { %v12910_v32 = vsel %vm21742_vm5, %v12905_v45, %v12909_v29  ;;  %v13007_v45 = vld [vmem:[#allocation7 + $0xc] sm:$0x7] }
 0x6b2   : > { %v12392_v28 = vadd.f32 %v14675_v31, %v12376_v3  ;;  %v12402_v5 = vmax.f32 %v12394_v30, 0.0 }
 0x6b4   : > { %v12400_v52 = vmax.f32 %v12392_v28, 0.0  ;;  %v12406_v62 = vmax.f32 %v12401_v25, %v12402_v5 }
 0x6b5   : > { %v12413_v15 = vld [vmem:[#allocation10 + $0x8] ss:$2 sm:$0xf]  ;;  %v12421_v44 = vld [vmem:[#allocation10 + $0x9] ss:$2 sm:$0xf] }
 0x6b6   : > { %v12427_v33 = vmax.f32 %v12413_v15, %v12421_v44  ;;  %v12405_v1 = vmax.f32 %v12399_v6, %v12400_v52  ;;  %12410 = vst.msk [vmem:[#allocation10 + $0x18] sm:$0xff] %vm10758_vm7, %v12406_v62  ;;  %v16137_v6 = vld [vmem:[%s21934_s5 + $0xb8] sm:$0xff]  }
 0x6b7   : > { %v12411_v61 = vld [vmem:[#allocation10] ss:$2 sm:$0xf]  ;;  %v12419_v18 = vld [vmem:[#allocation10 + $0x1] ss:$2 sm:$0xf] }
 0x6b8   : > { %v12449_v10 = vpack.c.bf16 %v12427_v33, %v12427_v33  ;;  %v12426_v55 = vmax.f32 %v12411_v61, %v12419_v18  ;;  %12409 = vst.msk [vmem:[#allocation10 + $0x10] sm:$0xff] %vm10758_vm7, %v12405_v1 }
 0x6ba   : > { %12454 = vst.msk [vmem:[#allocation6 + $0x4] sm:$0x3] %vm12452_vm14, %v12449_v10  ;;  %v12448_v38 = vpack.c.bf16 %v12426_v55, %v12426_v55 }
 0x6bc   : > { %12453 = vst.msk [vmem:[#allocation6] sm:$0x3] %vm12452_vm14, %v12448_v38 }
 0x6bd   : > { %v12417_v46 = vld [vmem:[#allocation10 + $0x18] ss:$2 sm:$0xf]  ;;  %v12425_v59 = vld [vmem:[#allocation10 + $0x19] ss:$2 sm:$0xf] }
 0x6be   : > { %v12429_v11 = vmax.f32 %v12417_v46, %v12425_v59  ;;  %v16138_v46 = vld [vmem:[%s21934_s5 + $0xb0] sm:$0xff]  }
 0x6bf   : > { %v12415_v31 = vld [vmem:[#allocation10 + $0x10] ss:$2 sm:$0xf]  ;;  %v12423_v56 = vld [vmem:[#allocation10 + $0x11] ss:$2 sm:$0xf] }
 0x6c0   : > { %v12428_v36 = vmax.f32 %v12415_v31, %v12423_v56  ;;  %v12451_v19 = vpack.c.bf16 %v12429_v11, %v12429_v11 }
 0x6c1   : > { %v14693_v12 = vld.sshfl [vmem:[#allocation6 + $0x4] sm:$0x13 pattern:$0x76325410] }
 0x6c2   : > { %v12450_v21 = vpack.c.bf16 %v12428_v36, %v12428_v36  ;;  %12456 = vst.msk [vmem:[#allocation6 + $0xc] sm:$0x3] %vm12452_vm14, %v12451_v19  ;;  %v12540_v40 = vshrl.u32 %v14693_v12, 16  ;;  %v12543_v2 = vshll.u32 %v14693_v12, 16  ;;  %v12501_v27 = vcombine.high %v14693_v12, %v14693_v12 }
 0x6c3   : > { %v14692_v24 = vld.sshfl [vmem:[#allocation6] sm:$0x13 pattern:$0x76325410] }
 0x6c4   : > { %12455 = vst.msk [vmem:[#allocation6 + $0x8] sm:$0x3] %vm12452_vm14, %v12450_v21  ;;  %v12526_v60 = vshrl.u32 %v14692_v24, 16  ;;  %v12529_v49 = vshll.u32 %v14692_v24, 16  ;;  %v12542_v14 = vrot.slane %v12540_v40, 6  ;;  %v12545_v17 = vrot.slane %v12543_v2, 7 }
 0x6c5   : > { %v16186_v57 = vld.sshfl [vmem:[#allocation6] sm:$0xf pattern:$0x76325410]  ;;  %v12493_v9 = vcombine.high %v14692_v24, %v14692_v24  ;;  %v12549_v54 = vshll.u32 %v12501_v27, 16 }
 0x6c6   : > { %v12528_v42 = vrot.slane %v12526_v60, 6  ;;  %v12531_v22 = vrot.slane %v12529_v49, 7  ;;  %v12546_v4 = vor.u32 %v12545_v17, %v12542_v14  ;;  %v16139_v60 = vld [vmem:[%s21934_s5 + $0xa8] sm:$0xff]   ;;  %v12998_v14 = vld [vmem:[#allocation7] sm:$0x7] }
 0x6c7   : > { %v12535_v3 = vshll.u32 %v12493_v9, 16  ;;  %v12551_v23 = vrot.slane %v12549_v54, 7  ;;  %v13001_v17 = vld [vmem:[#allocation7 + $0x4] sm:$0x7]  ;;  %v16149_v54 = vld [vmem:[%s21934_s5 + $0xd0] sm:$0xff]  }
 0x6c8   : > { %v12532_v58 = vor.u32 %v12531_v22, %v12528_v42  ;;  %v12547_v1 = vrot.slane %v12546_v4, 2  ;;  %v16140_v42 = vld [vmem:[%s21934_s5 + $0xa0] sm:$0xff]   ;;  %v13002_v9 = vsel %vm21683_vm13, 0, %v13001_v17  ;;  %v16147_v4 = vld [vmem:[%s21934_s5 + $0xd8] sm:$0xff]  }
 0x6c9   : > { %v14695_v51 = vld.sshfl [vmem:[#allocation6 + $0xc] sm:$0x13 pattern:$0x76325410]  ;;  %v12537_v10 = vrot.slane %v12535_v3, 7 }
 0x6ca   : > { %v12517_v39 = vcombine.high %v14695_v51, %v14695_v51  ;;  %v12568_v47 = vshrl.u32 %v14695_v51, 16  ;;  %v12571_v30 = vshll.u32 %v14695_v51, 16  ;;  %v12533_v25 = vrot.slane %v12532_v58, 2  ;;  %13003 = vst [vmem:[#allocation7 + $0x4] sm:$0x7] %v13002_v9 }
 0x6cb   : > { %v16187_v63 = vld.sshfl [vmem:[#allocation6 + $0x8] sm:$0xf pattern:$0x76325410]  ;;  %v12552_v36 = vsel %vm21742_vm5, %v12547_v1, %v12551_v23  ;;  %v13004_v58 = vld [vmem:[#allocation7 + $0x8] sm:$0x7] }
 0x6cc   : > { %v14694_v16 = vld.sshfl [vmem:[#allocation6 + $0x8] sm:$0x13 pattern:$0x76325410]  ;;  %v12570_v15 = vrot.slane %v12568_v47, 6  ;;  %v12573_v44 = vrot.slane %v12571_v30, 7  ;;  %v12674_v33 = vcombine.low %v16186_v57, %v16187_v63  ;;  %v12538_v59 = vsel %vm21742_vm5, %v12533_v25, %v12537_v10 }
 0x6cd   : > { %v12509_v28 = vcombine.high %v14694_v16, %v14694_v16  ;;  %v12554_v5 = vshrl.u32 %v14694_v16, 16  ;;  %v12557_v52 = vshll.u32 %v14694_v16, 16  ;;  %v12577_v62 = vshll.u32 %v12517_v39, 16  ;;  %v16143_v63 = vld [vmem:[%s21934_s5 + $0xc8] sm:$0xff]   ;;  %v16144_v39 = vld [vmem:[%s21934_s5 + $0xc0] sm:$0xff]  }
 0x6ce   : > { %v12574_v38 = vor.u32 %v12573_v44, %v12570_v15  ;;  %15898 = vmatmul.mubr.msk.bf16.vlgmr.msra.gmra.mxu1 %vm10758_vm7, %v12674_v33  ;;  %v12581_v20 = vcombine.low %v12538_v59, %v12552_v36  ;;  %v16188_v7 = vld.sshfl [vmem:[#allocation6 + $0x4] sm:$0xf pattern:$0x76325410]  ;;  %v12999_v57 = vsel %vm21683_vm13, 0, %v12998_v14  ;;  %v13005_v29 = vsel %vm21683_vm13, 0, %v13004_v58 }
 0x6cf   : > { %v12556_v61 = vrot.slane %v12554_v5, 6  ;;  %v12559_v55 = vrot.slane %v12557_v52, 7  ;;  %v12563_v37 = vshll.u32 %v12509_v28, 16  ;;  %15910 = vmatpush3.bf16.msra.mxu1 %v16137_v6  ;;  %15913 = vmatprep.mubr.msk.bf16.mxu1 %vm16259_vm10, %v16258_v8  ;;  %v12579_v56 = vrot.slane %v12577_v62, 7  ;;  %13000 = vst [vmem:[#allocation7] sm:$0x7] %v12999_v57 }
 0x6d0   : > { %v12575_v31 = vrot.slane %v12574_v38, 2  ;;  %15911 = vmatprep.subr.bf16.mxu1 %v16258_v8  ;;  %v12589_v40 = vrot.slane %v12581_v20, %v21734_v13  ;;  %v16189_v27 = vld.sshfl [vmem:[#allocation6 + $0xc] sm:$0xf pattern:$0x76325410]  ;;  %v13008_v51 = vsel %vm21683_vm13, 0, %v13007_v45 }
 0x6d1   : > { %v12560_v11 = vor.u32 %v12559_v55, %v12556_v61  ;;  %v12565_v43 = vrot.slane %v12563_v37, 7  ;;  %v12756_v22 = vcombine.low %v16188_v7, %v16189_v27  ;;  %13006 = vst [vmem:[#allocation7 + $0x8] sm:$0x7] %v13005_v29  ;;  %13009 = vst [vmem:[#allocation7 + $0xc] sm:$0x7] %v13008_v51 }
 0x6d2   : > { %v12580_v50 = vsel %vm21742_vm5, %v12575_v31, %v12579_v56  ;;  %v13010_v47 = vld [vmem:[#allocation7 + $0x10] sm:$0x7] }
 0x6d3   : > { %v12561_v0 = vrot.slane %v12560_v11, 2  ;;  %v12912_v19 = vcombine.low %v12580_v50, %v12910_v32  ;;  %15912 = vmatpush3.bf16.msra.mxu1 %v16138_v46  ;;  %v13011_v16 = vsel %vm21683_vm13, 0, %v13010_v47  ;;  %vm13753_vm13 = vcmask 1041409  }
 0x6d4   : > { %15925 = vmatprep.subr.bf16.mxu1 %v16258_v8  ;;  %13012 = vst [vmem:[#allocation7 + $0x10] sm:$0x7] %v13011_v16 }
 0x6d5   : > { %v12566_v12 = vsel %vm21742_vm5, %v12561_v0, %v12565_v43  ;;  %v12926_v24 = vrot.slane %v12912_v19, %v21734_v13 }
 0x6d6   : > { %v12582_v35 = vcombine.low %v12566_v12, %v12580_v50  ;;  %v12911_v21 = vcombine.low %v12552_v36, %v12566_v12 }
 0x6d8   : > { %v12596_v2 = vrot.slane %v12582_v35, %v21734_v13  ;;  %v12919_v26 = vrot.slane %v12911_v21, %v21734_v13 }
 0x6da   : > { %v12597_v49 = vcombine.low %v12589_v40, %v12596_v2  ;;  %v12927_v48 = vcombine.low %v12919_v26, %v12926_v24 }
 0x6db   : > { %v14746_v50 = vld.sshfl [vmem:[#allocation7 + $0x10] sm:$0x13 pattern:$0x76325410] }
 0x6dc   : > { %15890 = vmatmul.mubr.msk.bf16.vlgmr.msra.gmra.mxu0 %vm10758_vm7, %v12597_v49  ;;  %15914 = vmatmul.mubr.msk.bf16.vlgmr.msra.gmra.mxu1 %vm10758_vm7, %v12927_v48  ;;  %v13461_v21 = vshrl.u32 %v14746_v50, 16  ;;  %v13417_v2 = vcombine.high %v14746_v50, %v14746_v50  ;;  %v13464_v26 = vshll.u32 %v14746_v50, 16 }
 0x6dd   : > { %15902 = vmatpush3.bf16.msra.mxu0 %v16139_v60  ;;  %15905 = vmatprep.mubr.msk.bf16.mxu0 %vm16259_vm10, %v16258_v8 }
 0x6de   : > { %15903 = vmatprep.subr.bf16.mxu0 %v16258_v8  ;;  %15929 = vmatprep.mubr.msk.bf16.mxu1 %vm16259_vm10, %v16258_v8  ;;  %v13463_v24 = vrot.slane %v13461_v21, 6  ;;  %v13466_v7 = vrot.slane %v13464_v26, 7  ;;  %v13470_v27 = vshll.u32 %v13417_v2, 16 }
 0x6df   : > { %15926 = vmatpush3.bf16.msra.mxu1 %v16143_v63 }
 0x6e0   : > { %15927 = vmatprep.subr.bf16.mxu1 %v16258_v8 }
 0x6e1   : > { %15904 = vmatpush3.bf16.msra.mxu0 %v16140_v42 }
 0x6e2   : > { %15917 = vmatprep.subr.bf16.mxu0 %v16258_v8 }
 0x6e3   : > { %15928 = vmatpush3.bf16.msra.mxu1 %v16144_v39 }
 0x6e4   : > { %15906 = vmatmul.mubr.msk.bf16.vlgmr.msra.gmra.mxu0 %vm10758_vm7, %v12756_v22  ;;  %15941 = vmatprep.subr.bf16.mxu1 %v16258_v8 }
 0x6e5   : > { %15921 = vmatprep.mubr.msk.bf16.mxu0 %vm16259_vm10, %v16258_v8  ;;  %15918 = vmatpush3.bf16.msra.mxu0 %v16147_v4  ;;  %v13467_v4 = vor.u32 %v13466_v7, %v13463_v24 }
 0x6e6   : > { %15919 = vmatprep.subr.bf16.mxu0 %v16258_v8 }
 0x6e9   : > { %15920 = vmatpush3.bf16.msra.mxu0 %v16149_v54  ;;  %v13472_v54 = vrot.slane %v13470_v27, 7  ;;  %v16151_v27 = vld [vmem:[%s21934_s5 + $0xe8] sm:$0xff]  }
 0x6ea   : > { %15933 = vmatprep.subr.bf16.mxu0 %v16258_v8 }
 0x78e   : > { %v12724_v3 = vpop.f32.mrf.mxu1 }
 0x790   : > { %v15899_v30 = vpop.f32.mrf.mxu1 }
 0x791   : > { %v16148_v30 = vld [vmem:[%s21934_s5 + $0xf8] sm:$0xff]  }
 0x792   : > { %v12727_v28 = vpop.f32.mrf.mxu1 }
 0x794   : > { %v15900_v25 = vpop.f32.mrf.mxu1 }
 0x79c   : > { %v12647_v5 = vpop.f32.mrf.mxu0  ;;  %v12977_v6 = vpop.f32.mrf.mxu1 }
 0x79d   : > { %v12725_v61 = vadd.f32 %v12724_v3, %v12647_v5 }
 0x79e   : > { %v15891_v52 = vpop.f32.mrf.mxu0  ;;  %v15915_v15 = vpop.f32.mrf.mxu1 }
 0x7a0   : > { %v12650_v44 = vpop.f32.mrf.mxu0  ;;  %v12980_v62 = vpop.f32.mrf.mxu1 }
 0x7a1   : > { %v12728_v38 = vadd.f32 %v12727_v28, %v12650_v44 }
 0x7a2   : > { %v15892_v33 = vpop.f32.mrf.mxu0  ;;  %v15916_v1 = vpop.f32.mrf.mxu1 }
 0x7a4   : > { %v12806_v10 = vpop.f32.mrf.mxu0 }
 0x7a5   : > { %v12813_v55 = vadd.f32 %v12806_v10, %v12725_v61 }
 0x7a6   : > { %v15907_v37 = vpop.f32.mrf.mxu0 }
 0x7a7   : > { %v12984_v23 = vadd.f32 %v12977_v6, %v12813_v55 }
 0x7a8   : > { %v12809_v32 = vpop.f32.mrf.mxu0 }
 0x7a9   : > { %v12994_v46 = vadd.f32 %v14713_v53, %v12984_v23  ;;  %v12814_v59 = vadd.f32 %v12809_v32, %v12728_v38  ;;  %v13468_v38 = vrot.slane %v13467_v4, 2  ;;  %v16150_v23 = vld [vmem:[%s21934_s5 + $0xf0] sm:$0xff]  }
 0x7aa   : > { %v15908_v11 = vpop.f32.mrf.mxu0 }
 0x7ab   : > { %v12996_v31 = vmax.f32 %v12994_v46, 0.0  ;;  %v12985_v56 = vadd.f32 %v12980_v62, %v12814_v59  ;;  %v13473_v50 = vsel %vm21742_vm5, %v13468_v38, %v13472_v54 }
 0x7ad   : > { %v13015_v36 = vcombine.high %v12996_v31, %v12996_v31  ;;  %v13019_v0 = vpack.c.bf16 %v12996_v31, %v12996_v31  ;;  %v12995_v43 = vadd.f32 %v14713_v53, %v12985_v56 }
 0x7af   : > { %v13020_v20 = vpack.c.bf16 %v13015_v36, %v13015_v36  ;;  %13023 = vst.msk [vmem:[#allocation7] sm:$0x3] %vm12452_vm14, %v13019_v0  ;;  %v12997_v19 = vmax.f32 %v12995_v43, 0.0 }
 0x7b1   : > { %13024 = vst.msk [vmem:[#allocation7 + $0x4] sm:$0x3] %vm12452_vm14, %v13020_v20  ;;  %v13016_v12 = vcombine.high %v12997_v19, %v12997_v19  ;;  %v13021_v35 = vpack.c.bf16 %v12997_v19, %v12997_v19 }
 0x7b3   : > { %v13022_v40 = vpack.c.bf16 %v13016_v12, %v13016_v12  ;;  %13025 = vst.msk [vmem:[#allocation7 + $0x8] sm:$0x3] %vm12452_vm14, %v13021_v35 }
 0x7b5   : > { %13026 = vst.msk [vmem:[#allocation7 + $0xc] sm:$0x3] %vm12452_vm14, %v13022_v40 }
 0x7b6   : > { %v14730_v60 = vld.sshfl [vmem:[#allocation7] sm:$0x13 pattern:$0x76325410] }
 0x7b7   : > { %v13089_v49 = vshrl.u32 %v14730_v60, 16  ;;  %v13092_v48 = vshll.u32 %v14730_v60, 16  ;;  %v13063_v29 = vcombine.high %v14730_v60, %v14730_v60 }
 0x7b8   : > { %v16190_v42 = vld.sshfl [vmem:[#allocation7] sm:$0xf pattern:$0x76325410] }
 0x7b9   : > { %v14731_v22 = vld.sshfl [vmem:[#allocation7 + $0x4] sm:$0x13 pattern:$0x76325410]  ;;  %v13091_v14 = vrot.slane %v13089_v49, 6  ;;  %v13094_v17 = vrot.slane %v13092_v48, 7 }
 0x7ba   : > { %v14732_v57 = vld.sshfl [vmem:[#allocation7 + $0x8] sm:$0x13 pattern:$0x76325410]  ;;  %v13071_v9 = vcombine.high %v14731_v22, %v14731_v22  ;;  %v13103_v58 = vshrl.u32 %v14731_v22, 16  ;;  %v13106_v51 = vshll.u32 %v14731_v22, 16 }
 0x7bb   : > { %v13079_v39 = vcombine.high %v14732_v57, %v14732_v57  ;;  %v13095_v47 = vor.u32 %v13094_v17, %v13091_v14  ;;  %v13117_v5 = vshrl.u32 %v14732_v57, 16  ;;  %v13120_v6 = vshll.u32 %v14732_v57, 16  ;;  %v16193_v18 = vld.sshfl [vmem:[#allocation7 + $0x4] sm:$0xf pattern:$0x76325410] }
 0x7bc   : > { %v16191_v45 = vld.sshfl [vmem:[#allocation7 + $0x8] sm:$0xf pattern:$0x76325410]  ;;  %v13105_v16 = vrot.slane %v13103_v58, 6  ;;  %v13108_v3 = vrot.slane %v13106_v51, 7 }
 0x7bd   : > { %v14733_v63 = vld.sshfl [vmem:[#allocation7 + $0xc] sm:$0x13 pattern:$0x76325410]  ;;  %v13112_v25 = vshll.u32 %v13071_v9, 16  ;;  %v13237_v52 = vcombine.low %v16190_v42, %v16191_v45  ;;  %v13098_v15 = vshll.u32 %v13063_v29, 16 }
 0x7be   : > { %v13087_v28 = vcombine.high %v14733_v63, %v14733_v63  ;;  %v13109_v44 = vor.u32 %v13108_v3, %v13105_v16  ;;  %v13131_v62 = vshrl.u32 %v14733_v63, 16  ;;  %v13119_v33 = vrot.slane %v13117_v5, 6  ;;  %v16192_v14 = vld.sshfl [vmem:[#allocation7 + $0xc] sm:$0xf pattern:$0x76325410] }
 0x7bf   : > { %v13122_v1 = vrot.slane %v13120_v6, 7  ;;  %v13126_v61 = vshll.u32 %v13079_v39, 16  ;;  %v13134_v10 = vshll.u32 %v14733_v63, 16  ;;  %15930 = vmatmul.mubr.msk.bf16.vlgmr.msra.gmra.mxu1 %vm10758_vm7, %v13237_v52  ;;  %v13096_v55 = vrot.slane %v13095_v47, 2  ;;  %v16152_v17 = vld [vmem:[%s21934_s5 + $0xe0] sm:$0xff]  }
 0x7c0   : > { %v13110_v53 = vrot.slane %v13109_v44, 2  ;;  %v13133_v37 = vrot.slane %v13131_v62, 6  ;;  %15942 = vmatpush3.bf16.msra.mxu1 %v16148_v30  ;;  %15945 = vmatprep.mubr.msk.bf16.mxu1 %vm16259_vm10, %v16258_v8  ;;  %v13114_v32 = vrot.slane %v13112_v25, 7  ;;  %v13140_v11 = vshll.u32 %v13087_v28, 16  ;;  %v13588_v57 = vld [vmem:[#allocation8 + $0x4] sm:$0x3] }
 0x7c1   : > { %v13123_v46 = vor.u32 %v13122_v1, %v13119_v33  ;;  %v13136_v59 = vrot.slane %v13134_v10, 7  ;;  %15943 = vmatprep.subr.bf16.mxu1 %v16258_v8  ;;  %v13100_v31 = vrot.slane %v13098_v15, 7  ;;  %v13128_v0 = vrot.slane %v13126_v61, 7  ;;  %v13582_v58 = vld [vmem:[#allocation8] sm:$0x3] }
 0x7c2   : > { %v13115_v56 = vsel %vm21742_vm5, %v13110_v53, %v13114_v32  ;;  %v13142_v35 = vrot.slane %v13140_v11, 7  ;;  %v13589_v9 = vsel %vm13581_vm9, 0, %v13588_v57  ;;  %v13583_v45 = vsel %vm13581_vm9, 0, %v13582_v58  ;;  %v21859_v51 = vld [vmem:[%s21936_s7 + $0x2] ss:$0 sm:$0xff] }
 0x7c3   : > { %v13124_v36 = vrot.slane %v13123_v46, 2  ;;  %v13137_v43 = vor.u32 %v13136_v59, %v13133_v37  ;;  %v13101_v20 = vsel %vm21742_vm5, %v13096_v55, %v13100_v31  ;;  %13590 = vst [vmem:[#allocation8 + $0x4] sm:$0x3] %v13589_v9  ;;  %13584 = vst [vmem:[#allocation8] sm:$0x3] %v13583_v45 }
 0x7c4   : > { %15944 = vmatpush3.bf16.msra.mxu1 %v16150_v23  ;;  %v13144_v21 = vcombine.low %v13101_v20, %v13115_v56  ;;  %v13585_v63 = vld [vmem:[#allocation8 + $0x2] sm:$0x3]  ;;  %v14751_v10 = vld [vmem:[%s21935_s6 + $0x3] ss:$0 sm:$0xff] }
 0x7c5   : > { %v13129_v19 = vsel %vm21742_vm5, %v13124_v36, %v13128_v0  ;;  %v13138_v12 = vrot.slane %v13137_v43, 2  ;;  %v13586_v4 = vsel %vm13581_vm9, 0, %v13585_v63  ;;  %v14758_v63 = vld [vmem:[%s21936_s7 + $0x3] ss:$0 sm:$0xff] }
 0x7c6   : > { %v13474_v40 = vcombine.low %v13115_v56, %v13129_v19  ;;  %v13152_v60 = vrot.slane %v13144_v21, %v21734_v13  ;;  %13587 = vst [vmem:[#allocation8 + $0x2] sm:$0x3] %v13586_v4 }
 0x7c7   : > { %v13143_v2 = vsel %vm21742_vm5, %v13138_v12, %v13142_v35 }
 0x7c8   : > { %v13145_v26 = vcombine.low %v13129_v19, %v13143_v2  ;;  %v13475_v24 = vcombine.low %v13143_v2, %v13473_v50  ;;  %v13482_v48 = vrot.slane %v13474_v40, %v21734_v13 }
 0x7ca   : > { %v13159_v49 = vrot.slane %v13145_v26, %v21734_v13  ;;  %v13489_v7 = vrot.slane %v13475_v24, %v21734_v13  ;;  %v13319_v13 = vcombine.low %v16193_v18, %v16192_v14  ;;  %v13646_v29 = vld [vmem:[#allocation8 + $0x4] sm:$0x1]  ;;  %v14754_v24 = vld [vmem:[%s21936_s7 + $0x1] ss:$0 sm:$0xff] }
 0x7cc   : > { %v13160_v42 = vcombine.low %v13152_v60, %v13159_v49  ;;  %v13490_v22 = vcombine.low %v13482_v48, %v13489_v7  ;;  %v14752_v60 = vld [vmem:[%s21936_s7] ss:$0 sm:$0xff]  ;;  %v13668_v7 = vld [vmem:[#allocation8 + $0x4] sm:$0x3] }
 0x7cd   : > { %v13670_v18 = vunpack.c.l.bf16 %v13668_v7 }
 0x7ce   : > { %15922 = vmatmul.mubr.msk.bf16.vlgmr.msra.gmra.mxu0 %vm10758_vm7, %v13160_v42  ;;  %15946 = vmatmul.mubr.msk.bf16.vlgmr.msra.gmra.mxu1 %vm10758_vm7, %v13490_v22 }
 0x7cf   : > { %15934 = vmatpush3.bf16.msra.mxu0 %v16151_v27  ;;  %15937 = vmatprep.mubr.msk.bf16.mxu0 %vm16259_vm10, %v16258_v8  ;;  %vm13756_vm10 = vcmask 9216  }
 0x7d0   : > { %15935 = vmatprep.subr.bf16.mxu0 %v16258_v8  ;;  %v13648_v8 = vunpack.c.l.bf16 %v13646_v29 }
 0x7d2   : > { %v13658_v39 = vmul.f32 %v21859_v51, %v13648_v8 }
 0x7d3   : > { %15936 = vmatpush3.bf16.msra.mxu0 %v16152_v17 }
 0x7d4   : > { %v13662_v54 = vsel %vm12452_vm14, %v13658_v39, 0.0 }
 0x7d5   : > { %13663 = vadd.xlane.f32.xlu1 %v13662_v54 }
 0x7d6   : > { %15938 = vmatmul.mubr.msk.bf16.vlgmr.msra.gmra.mxu0 %vm10758_vm7, %v13319_v13 }
 0x87f   : > { %v13287_v47 = vpop.f32.mrf.mxu1 }
 0x881   : > { %v15931_v16 = vpop.f32.mrf.mxu1 }
 0x883   : > { %v13290_v3 = vpop.f32.mrf.mxu1 }
 0x885   : > { %v15932_v30 = vpop.f32.mrf.mxu1 }
 0x88e   : > { %v13210_v28 = vpop.f32.mrf.mxu0  ;;  %v13540_v25 = vpop.f32.mrf.mxu1 }
 0x88f   : > { %v13288_v33 = vadd.f32 %v13287_v47, %v13210_v28  ;;  %v13680_v47 = vmul.f32 %v14758_v63, %v13670_v18 }
 0x890   : > { %v15923_v5 = vpop.f32.mrf.mxu0  ;;  %v15947_v6 = vpop.f32.mrf.mxu1 }
 0x892   : > { %v13213_v52 = vpop.f32.mrf.mxu0  ;;  %v13543_v15 = vpop.f32.mrf.mxu1 }
 0x893   : > { %v13291_v53 = vadd.f32 %v13290_v3, %v13213_v52 }
 0x894   : > { %v15924_v44 = vpop.f32.mrf.mxu0  ;;  %v15948_v62 = vpop.f32.mrf.mxu1 }
 0x895   : > { %v13664_v44 = vpop.xlane.xlu1 %13663 }
 0x896   : > { %v13369_v1 = vpop.f32.mrf.mxu0 }
 0x897   : > { %v13376_v61 = vadd.f32 %v13369_v1, %v13288_v33 }
 0x898   : > { %v15939_v55 = vpop.f32.mrf.mxu0 }
 0x899   : > { %v13547_v37 = vadd.f32 %v13540_v25, %v13376_v61 }
 0x89a   : > { %v13372_v38 = vpop.f32.mrf.mxu0 }
 0x89b   : > { %v13557_v23 = vadd.f32 %v14751_v10, %v13547_v37  ;;  %v13377_v32 = vadd.f32 %v13372_v38, %v13291_v53 }
 0x89c   : > { %v15940_v46 = vpop.f32.mrf.mxu0 }
 0x89d   : > { %v13559_v59 = vmax.f32 %v13557_v23, 0.0  ;;  %v13548_v11 = vadd.f32 %v13543_v15, %v13377_v32  ;;  %v14759_v15 = vld [vmem:[#allocation12] ss:$0 sm:$0xff] }
 0x89f   : > { %v13563_v31 = vcombine.high %v13559_v59, %v13559_v59  ;;  %v13558_v56 = vadd.f32 %v14751_v10, %v13548_v11 }
 0x8a1   : > { %v13567_v36 = vmax.f32 %v13559_v59, %v13563_v31  ;;  %v13560_v0 = vmax.f32 %v13558_v56, 0.0 }
 0x8a3   : > { %13569 = vst.msk [vmem:[#allocation11] sm:$0xf] %vm10814_vm6, %v13567_v36  ;;  %v13564_v43 = vcombine.high %v13560_v0, %v13560_v0 }
 0x8a5   : > { %v13568_v50 = vmax.f32 %v13560_v0, %v13564_v43 }
 0x8a7   : > { %13570 = vst.msk [vmem:[#allocation11 + $0x4] sm:$0xf] %vm10814_vm6, %v13568_v50  ;;  %vm13629_vm6 = vcmask 256001  }
 0x8a8   : > { %v13684_v25 = vsel %vm13629_vm6, %v13680_v47, 0.0 }
 0x8aa   : > { %v13571_v20 = vld [vmem:[#allocation11] ss:$2 sm:$0x3]  ;;  %v13575_v19 = vld [vmem:[#allocation11 + $0x1] ss:$2 sm:$0x3] }
 0x8ab   : > { %v13578_v12 = vmax.f32 %v13571_v20, %v13575_v19 }
 0x8ad   : > { %v13591_v35 = vpack.c.bf16 %v13578_v12, %v13578_v12 }
 0x8ae   : > { %v13573_v21 = vld [vmem:[#allocation11 + $0x4] ss:$2 sm:$0x3]  ;;  %v13577_v40 = vld [vmem:[#allocation11 + $0x5] ss:$2 sm:$0x3] }
 0x8af   : > { %v13579_v2 = vmax.f32 %v13573_v21, %v13577_v40  ;;  %13594 = vst.msk [vmem:[#allocation8] sm:$0x1] %vm10816_vm8, %v13591_v35 }
 0x8b1   : > { %v13592_v26 = vpack.c.bf16 %v13579_v2, %v13579_v2 }
 0x8b3   : > { %13595 = vst.msk [vmem:[#allocation8 + $0x2] sm:$0x1] %vm10816_vm8, %v13592_v26 }
 0x8b6   : > { %v13615_v49 = vld [vmem:[#allocation8] sm:$0x3] }
 0x8b7   : > { %v13596_v48 = vld [vmem:[#allocation8] sm:$0x1]  ;;  %v13617_v27 = vunpack.c.l.bf16 %v13615_v49 }
 0x8b8   : > { %v13598_v42 = vunpack.c.l.bf16 %v13596_v48 }
 0x8b9   : > { %v13627_v22 = vmul.f32 %v14754_v24, %v13617_v27 }
 0x8ba   : > { %v13607_v14 = vmul.f32 %v14752_v60, %v13598_v42  ;;  %v13616_v17 = vld [vmem:[#allocation8 + $0x2] sm:$0x3] }
 0x8bb   : > { %v13597_v13 = vld [vmem:[#allocation8 + $0x2] sm:$0x1]  ;;  %v13630_v9 = vsel %vm13629_vm6, %v13627_v22, 0.0  ;;  %v13618_v45 = vunpack.c.l.bf16 %v13616_v17 }
 0x8bc   : > { %v13645_v57 = vld [vmem:[#allocation8 + $0x2] sm:$0x1]  ;;  %v13609_v58 = vsel %vm12452_vm14, %v13607_v14, 0.0  ;;  %v13599_v29 = vunpack.c.l.bf16 %v13597_v13  ;;  %13631 = vadd.xlane.f32.xlu0 %v13630_v9 }
 0x8bd   : > { %13610 = vadd.xlane.f32.xlu1 %v13609_v58  ;;  %v13647_v8 = vunpack.c.l.bf16 %v13645_v57  ;;  %v13667_v39 = vld [vmem:[#allocation8 + $0x2] sm:$0x3]  ;;  %v13628_v4 = vmul.f32 %v14754_v24, %v13618_v45  ;;  %v13744_v45 = vand.u32 127, %v12586_v41 }
 0x8be   : > { %v13608_v54 = vmul.f32 %v14752_v60, %v13599_v29  ;;  %v13669_v28 = vunpack.c.l.bf16 %v13667_v39 }
 0x8bf   : > { %v13633_v16 = vsel %vm13629_vm6, %v13628_v4, 0.0  ;;  %v13657_v30 = vmul.f32 %v21859_v51, %v13647_v8  ;;  %v13747_v8 = vsub.s32 %v13744_v45, %v21731_v34 }
 0x8c0   : > { %v13612_v3 = vsel %vm12452_vm14, %v13608_v54, 0.0  ;;  %13634 = vadd.xlane.f32.xlu0 %v13633_v16  ;;  %v13679_v6 = vmul.f32 %v14758_v63, %v13669_v28 }
 0x8c1   : > { %13613 = vadd.xlane.f32.xlu1 %v13612_v3  ;;  %v13659_v5 = vsel %vm12452_vm14, %v13657_v30, 0.0 }
 0x8c2   : > { %v13681_v52 = vsel %vm13629_vm6, %v13679_v6, 0.0 }
 0x8c4   : > { %13660 = vadd.xlane.f32.xlu0 %v13659_v5 }
 0x8c5   : > { %13685 = vadd.xlane.f32.xlu1 %v13684_v25 }
 0x8c8   : > { %13682 = vadd.xlane.f32.xlu0 %v13681_v52 }
 0x8de   : > { %13702 = vperm.xlu0 %15993, %v14759_v15  }
 0x945   : > { %v13632_v62 = vpop.xlane.xlu0 %13631 }
 0x946   : > { %v13611_v33 = vpop.xlane.xlu1 %13610  ;;  %v13638_v55 = vrot.slane %v13632_v62, 1 }
 0x948   : > { %v13642_v23 = vadd.f32 %v13638_v55, %v13611_v33 }
 0x949   : > { %v13635_v1 = vpop.xlane.xlu0 %13634 }
 0x94a   : > { %v13614_v51 = vpop.xlane.xlu1 %13613  ;;  %v13639_v61 = vrot.slane %v13635_v1, 1 }
 0x94c   : > { %v13643_v53 = vadd.f32 %v13639_v61, %v13614_v51 }
 0x94d   : > { %v13661_v10 = vpop.xlane.xlu0 %13660 }
 0x94e   : > { %v13686_v37 = vpop.xlane.xlu1 %13685  ;;  %v13666_v32 = vadd.f32 %v13664_v44, %v13643_v53  ;;  %v13665_v11 = vadd.f32 %v13661_v10, %v13642_v23 }
 0x94f   : > { %v13690_v46 = vrot.slane %v13686_v37, 1 }
 0x951   : > { %v13683_v38 = vpop.xlane.xlu0 %13682  ;;  %v13694_v56 = vadd.f32 %v13690_v46, %v13666_v32 }
 0x952   : > { %v13689_v59 = vrot.slane %v13683_v38, 1 }
 0x954   : > { %v13693_v31 = vadd.f32 %v13689_v59, %v13665_v11 }
 0x959   : > { %v13703_v36 = vpop.permute.xlu0 %13702 }
 0x95a   : > { %v13705_v0 = vadd.f32 %v13703_v36, %v13693_v31  ;;  %v13706_v43 = vadd.f32 %v13703_v36, %v13694_v56 }
 0x95c   : > { %v13707_v50 = vmin.f32 %v13705_v0, 20.0  ;;  %v13708_v20 = vmin.f32 %v13706_v43, 20.0  ;;  %vm13731_vm7 = vcmp.gt.f32.partialorder %v13705_v0, 20.0  ;;  %vm13732_vm12 = vcmp.gt.f32.partialorder %v13706_v43, 20.0 }
 0x95e   : > { %v13709_v19 = vmul.f32 1.442695, %v13707_v50  ;;  %v13711_v12 = vmul.f32 1.442695, %v13708_v20 }
 0x960   : > { %16155 = vpow2.f32 %v13709_v19 }
 0x961   : > { %16157 = vpow2.f32 %v13711_v12 }
 0x96d   : > { %v16156_v35 = vpop.eup %16155 }
 0x96e   : > { %v16158_v21 = vpop.eup %16157  ;;  %v13713_v40 = vadd.f32 1.0, %v16156_v35 }
 0x96f   : > { %v13714_v2 = vadd.f32 1.0, %v16158_v21 }
 0x970   : > { %16159 = vlog2.f32 %v13713_v40  ;;  %v14760_v26 = vadd.f32 -1.0, %v13713_v40  ;;  %vm13715_vm8 = vcmp.eq.f32.partialorder %v13713_v40, 1.0 }
 0x971   : > { %16161 = vlog2.f32 %v13714_v2  ;;  %v14761_v24 = vadd.f32 -1.0, %v13714_v2  ;;  %vm13716_vm11 = vcmp.eq.f32.partialorder %v13714_v2, 1.0 }
 0x972   : > { %16163 = vrcp.f32 %v14760_v26 }
 0x973   : > { %16165 = vrcp.f32 %v14761_v24 }
 0x97d   : > { %v16160_v60 = vpop.eup %16159 }
 0x97e   : > { %v16162_v49 = vpop.eup %16161  ;;  %v13718_v27 = vmul.f32 0.6931472, %v16160_v60 }
 0x97f   : > { %v16164_v48 = vpop.eup %16163  ;;  %v13720_v22 = vmul.f32 0.6931472, %v16162_v49 }
 0x980   : > { %v16166_v7 = vpop.eup %16165  ;;  %v13724_v42 = vmul.f32 %v16164_v48, %v16156_v35 }
 0x981   : > { %v13726_v14 = vmul.f32 %v16166_v7, %v16158_v21 }
 0x982   : > { %v13727_v18 = vmul.f32 %v13724_v42, %v13718_v27 }
 0x983   : > { %v13728_v17 = vmul.f32 %v13726_v14, %v13720_v22 }
 0x984   : > { %v13729_v13 = vsel %vm13715_vm8, %v16156_v35, %v13727_v18 }
 0x985   : > { %v13733_v57 = vsel %vm13731_vm7, %v13705_v0, %v13729_v13  ;;  %v13730_v9 = vsel %vm13716_vm11, %v16158_v21, %v13728_v17 }
 0x986   : > { %13738 = vperm.xlu1 %15994, %v13733_v57   ;;  %v13734_v58 = vsel %vm13732_vm12, %v13706_v43, %v13730_v9 }
 0x98a   : > { %13741 = vperm.xlu1 %15994, %v13734_v58  }
 0xa01   : > { %v13739_v29 = vpop.permute.xlu1 %13738 }
 0xa02   : > { %v13748_v39 = vrot.slane %v13739_v29, %v13747_v8 }
 0xa05   : > { %v13742_v63 = vpop.permute.xlu1 %13741 }
 0xa06   : > { %v13752_v4 = vrot.slane %v13742_v63, %v13747_v8 }
 0xa08   : > { %v13754_v41 = vsel %vm13753_vm13, %v13752_v4, %v13748_v39 }
 0xa09   : > { %13757 = vst.msk [vmem:[%s327_s26] sm:$0x3] %vm13756_vm10, %v13754_v41 }
 0xa0a   : > { %16207 = shalt.err (!%p16204_p3)
}
 0xa0b   : > { %s16208_s22 = scalar_lea.hbm %s21894_s30, 32  ;;  %s16212_s25 = scalar_lea.hbm %s21938_s9, 64 }
 0xa0c   : > { %p16209_p4 = scmp.ne.s32.totalorder %s21894_s30, %s16208_s22  ;;  %p16213_p9 = scmp.lt.s32.totalorder %s21894_s30, %s21938_s9 }
 0xa0d   : > { %p16214_p10 = scmp.lt.s32.totalorder %s16212_s25, %s16208_s22 }
 0xa0e   : > { %p16210_p7 = pnand %p16209_p4, %p16353_p5 }
 0xa0f   : > { %p16215_p11 = por %p16214_p10, %p16213_p9 }
 0xa10   : > { %p16211_p8 = pneg %p16210_p7 }
 0xa12   : > { %p16216_p12 = pnand %p16215_p11, %p16211_p8 }
 0xa14   : > { %16219 = shalt.err (!%p16216_p12)
}
 0xa15   : > { %15949 = dma.vmem_to_hbm [thread:$0]  (%p16353_p5), %s13773_s27, 32, %s21894_s30, %s13759_s10  }
 0xa16 PF: > { %p15955_p13 = scmp.ge.s32.totalorder %s16254_s14, 2  ;;  %s13784_s29 = sand.u32 1, %s16242_s11  }
 0xa17   : > { %s13785_s15 = scalar_lea.sflag [#allocation14], %s13784_s29 }
 0xa18   : > { %p15952_p0 = pnand %p15955_p13, %p16357_p6 }
 0xa1a   : > { %p15953_p1 = pneg %p15952_p0 }
 0xa1c   : > { %16237 = dma.done.wait (%p15953_p1), %s13785_s15, 32  }
 0xa1d   : > { %16239 = vsyncadd (%p15953_p1), %s13785_s15, 4294967264  ;;  %p21_p2 = scmp.ge.s32.totalorder %s16340_s16, 4   ;;  %s22399_s11 = smov %s16246_s12 }
 0xa1e   : > { %s22400_s12 = smov %s16250_s13  ;;  %s22401_s13 = smov %s16351_s19 }
 0xa1f   : > { %s22402_s14 = smov %s16340_s16  ;;  %23 = sbr.rel (!%p21_p2) target bundleno = 6 (0x6), region = 150 }
 0xa24   :  { %13790 = vsyncpa [#allocation14], 1 }
 0xa25   :  { %13792 = vsyncpa [#allocation14 + $0x1], 1 }

</bundles_post_ra>
